<compile_context>
chip_gen: v5e
topology: v5e:2x2
jax: 0.10.0
libtpu: 0.0.40
codegen_flags: <defaults>
</compile_context>

<pallas_src>
import jax
import jax.numpy as jnp
from jax.experimental import pallas as pl
from jax.experimental.pallas import tpu as pltpu


def _basic_block_kernel(x_ref, w1_ref, t1_ref, w2_ref, t2_ref, o_ref,
                        slab_ref, y1_ref):
    # x_ref : (nb, C_in, H, W)              raw NCHW input block (VMEM)
    # w1_ref: (C_out*C_in*9,)  SMEM         conv1 weights (BN1 scale folded)
    # t1_ref: (C_out,)         SMEM         BN1 shift
    # w2_ref: (C_out*C_out*9,) SMEM         conv2 weights (BN2 scale folded)
    # t2_ref: (C_out,)         SMEM         BN2 shift
    # o_ref : (1, C_out, H, nb*(W+4)-4)     lane-dense output slab
    # slab_ref: VMEM (C_in,  H+4, nb*(W+4)) padded packed input slab
    # y1_ref  : VMEM (C_out, H+4, nb*(W+4)) staged conv1 output
    nb, C_in, H, W = x_ref.shape
    C_out = o_ref.shape[1]
    Wp = W + 4
    Wtot = slab_ref.shape[2]            # nb * Wp
    Hg, Wg = H + 2, Wtot - 2            # conv1 / y1 compute grid (slab (1,1)+)
    Ho, Wo = H, Wtot - 4                # conv2 / output grid     (slab (2,2)+)

    # ---- build zero-padded, lane-packed input slab in VMEM -----------------
    # Zeroed EVERY step (not just step 0) so the kernel stays correct when the
    # grid axis is sharded across TensorCores ("parallel").
    slab_ref[...] = jnp.zeros_like(slab_ref)
    for n in range(nb):
        base = n * Wp
        for c in range(C_in):
            slab_ref[c, 2:2 + H, base + 2:base + 2 + W] = (
                x_ref[n, c, :, :].astype(jnp.float32))

    # ---- interior mask on the (Hg, Wg) grid (grid (i,j) <-> slab (i+1,j+1)).
    # Zeroing y1 outside the per-image interiors reproduces conv2's zero
    # padding and kills the junk columns between packed images.
    row = jax.lax.broadcasted_iota(jnp.int32, (Hg, Wg), 0)
    col = jax.lax.broadcasted_iota(jnp.int32, (Hg, Wg), 1)
    row_ok = (row >= 1) & (row <= H)
    col_ok = (col >= 1) & (col <= W)
    for n in range(1, nb):
        base = n * Wp
        col_ok = col_ok | ((col >= base + 1) & (col <= base + W))
    mask = (row_ok & col_ok).astype(jnp.float32)

    # ---- conv1 (3x3) + folded BN1 shift + ReLU  ->  y1 scratch -------------
    acc1 = [jnp.zeros((Hg, Wg), jnp.float32) for _ in range(C_out)]
    for ci in range(C_in):
        for kh in range(3):
            for kw in range(3):
                tap = slab_ref[ci, kh:kh + Hg, kw:kw + Wg]
                for co in range(C_out):
                    w = w1_ref[(co * C_in + ci) * 9 + kh * 3 + kw]
                    acc1[co] = acc1[co] + w * tap
    for co in range(C_out):
        y1_ref[co, 1:1 + Hg, 1:1 + Wg] = (
            jnp.maximum(acc1[co] + t1_ref[co], 0.0) * mask)

    # ---- conv2 (3x3) + folded BN2 shift + residual + ReLU -------------------
    acc2 = [jnp.zeros((Ho, Wo), jnp.float32) for _ in range(C_out)]
    for ci in range(C_out):
        for kh in range(3):
            for kw in range(3):
                tap = y1_ref[ci, kh + 1:kh + 1 + Ho, kw + 1:kw + 1 + Wo]
                for co in range(C_out):
                    w = w2_ref[(co * C_out + ci) * 9 + kh * 3 + kw]
                    acc2[co] = acc2[co] + w * tap
    for co in range(C_out):
        identity = slab_ref[co, 2:2 + Ho, 2:2 + Wo]   # original x (channel co)
        o_ref[0, co, :, :] = jnp.maximum(
            acc2[co] + t2_ref[co] + identity, 0.0).astype(o_ref.dtype)


def dynamic_basic_block_forward(x, w1, gamma1, beta1, mean1, var1,
                                w2, gamma2, beta2, mean2, var2, eps=1e-5):
    """x: (N, C_in, H, W); w1: (C_out, C_in, 3, 3); w2: (C_out, C_out, 3, 3);
    BN params: (C_out,). Returns (N, C_out, H, W)."""
    N, C_in, H, W = x.shape
    C_out = w1.shape[0]
    assert w1.shape == (C_out, C_in, 3, 3)
    assert w2.shape == (C_out, C_out, 3, 3)
    assert C_in == C_out, "residual add requires matching channels (downsample=None)"

    # eval-mode BN(z) = z*s + t ; fold s into conv weights (exact, any sign).
    s1 = gamma1 / jnp.sqrt(var1 + eps)
    t1 = beta1 - mean1 * s1
    s2 = gamma2 / jnp.sqrt(var2 + eps)
    t2 = beta2 - mean2 * s2
    w1f = (w1 * s1[:, None, None, None]).reshape(-1).astype(jnp.float32)
    w2f = (w2 * s2[:, None, None, None]).reshape(-1).astype(jnp.float32)

    # images per grid step: pack enough along lanes (~512) for dense vector
    # width; for large N this naturally yields >= 2 grid steps (v7x megacore).
    Wp = W + 4
    nb = min(N, max(1, pl.cdiv(512, Wp)))
    if pl.cdiv(N, nb) == 1 and N >= 8:
        nb = pl.cdiv(N, 2)           # keep >= 2 parallel steps when N allows
    G = pl.cdiv(N, nb)
    N_pad = G * nb
    if N_pad != N:
        x = jnp.pad(x, ((0, N_pad - N), (0, 0), (0, 0), (0, 0)))
    Wtot = nb * Wp
    We = Wtot - 4                    # lane-dense output slab width

    out_slab = pl.pallas_call(
        _basic_block_kernel,
        out_shape=jax.ShapeDtypeStruct((G, C_out, H, We), x.dtype),
        grid=(G,),
        in_specs=[
            pl.BlockSpec((nb, C_in, H, W), lambda g: (g, 0, 0, 0)),
            pl.BlockSpec(memory_space=pltpu.MemorySpace.SMEM),
            pl.BlockSpec(memory_space=pltpu.MemorySpace.SMEM),
            pl.BlockSpec(memory_space=pltpu.MemorySpace.SMEM),
            pl.BlockSpec(memory_space=pltpu.MemorySpace.SMEM),
        ],
        out_specs=pl.BlockSpec((1, C_out, H, We), lambda g: (g, 0, 0, 0)),
        scratch_shapes=[
            pltpu.VMEM((C_in, H + 4, Wtot), jnp.float32),   # packed input slab
            pltpu.VMEM((C_out, H + 4, Wtot), jnp.float32),  # staged y1
        ],
        compiler_params=pltpu.CompilerParams(
            dimension_semantics=("parallel",)),
    )(x, w1f, t1.astype(jnp.float32), w2f, t2.astype(jnp.float32))

    # unpack the lane-dense slab back to NCHW (layout plumbing only).
    out_slab = jnp.pad(out_slab, ((0, 0), (0, 0), (0, 0), (0, 4)))  # width Wtot
    out = out_slab.reshape(G, C_out, H, nb, Wp)[..., :W]            # (G,C,H,nb,W)
    out = out.transpose(0, 3, 1, 2, 4).reshape(N_pad, C_out, H, W)
    return out[:N]


def _reference(x, w1, g1, b1, m1, v1, w2, g2, b2, m2, v2, eps=1e-5):
    """Pure-JAX reference replicating DynamicBasicBlock_base.forward
    (downsample=None, stride=1, eval-mode BN)."""
    def conv3x3(inp, w):
        return jax.lax.conv_general_dilated(
            inp, w, window_strides=(1, 1), padding=((1, 1), (1, 1)),
            dimension_numbers=('NCHW', 'OIHW', 'NCHW'),
            precision=jax.lax.Precision.HIGHEST)

    def bn(z, g, b, m, v):
        return ((z - m[None, :, None, None])
                / jnp.sqrt(v[None, :, None, None] + eps)
                * g[None, :, None, None] + b[None, :, None, None])

    y = jnp.maximum(bn(conv3x3(x, w1), g1, b1, m1, v1), 0.0)
    y = bn(conv3x3(y, w2), g2, b2, m2, v2)
    return jnp.maximum(y + x, 0.0)


if __name__ == "__main__":
    # DynamicBasicBlock_base(in_channels=4, out_channels=[4]) defaults:
    # downsample=None, stride=1, eval-mode BN.
    N, C, H, W = 2, 4, 16, 16
    out_channels = [C]
    C_out = max(out_channels)

    key = jax.random.PRNGKey(0)
    ks = jax.random.split(key, 11)
    x = jax.random.normal(ks[0], (N, C, H, W), dtype=jnp.float32)
    w1 = jax.random.normal(ks[1], (C_out, C, 3, 3), dtype=jnp.float32) * 0.1
    g1 = 1.0 + 0.1 * jax.random.normal(ks[2], (C_out,), dtype=jnp.float32)
    b1 = 0.1 * jax.random.normal(ks[3], (C_out,), dtype=jnp.float32)
    m1 = 0.1 * jax.random.normal(ks[4], (C_out,), dtype=jnp.float32)
    v1 = jnp.abs(jax.random.normal(ks[5], (C_out,), dtype=jnp.float32)) + 0.5
    w2 = jax.random.normal(ks[6], (C_out, C_out, 3, 3), dtype=jnp.float32) * 0.1
    g2 = 1.0 + 0.1 * jax.random.normal(ks[7], (C_out,), dtype=jnp.float32)
    b2 = 0.1 * jax.random.normal(ks[8], (C_out,), dtype=jnp.float32)
    m2 = 0.1 * jax.random.normal(ks[9], (C_out,), dtype=jnp.float32)
    v2 = jnp.abs(jax.random.normal(ks[10], (C_out,), dtype=jnp.float32)) + 0.5

    out = dynamic_basic_block_forward(x, w1, g1, b1, m1, v1,
                                      w2, g2, b2, m2, v2)
    out = jax.block_until_ready(out)

    ref = _reference(x, w1, g1, b1, m1, v1, w2, g2, b2, m2, v2)
    assert out.shape == (N, C_out, H, W)
    err = float(jnp.max(jnp.abs(out - ref)))
    assert err < 1e-4, f"mismatch vs reference: {err}"

    print("KERNEL_OK")
</pallas_src>

<mosaic_0001>
module attributes {stable_mosaic.version = 11 : i64} {
  func.func @_basic_block_kernel(%arg0: i32, %arg1: memref<2x4x16x16xf32, #tpu.memory_space<vmem>>, %arg2: memref<144xf32, #tpu.memory_space<smem>>, %arg3: memref<4xf32, #tpu.memory_space<smem>>, %arg4: memref<144xf32, #tpu.memory_space<smem>>, %arg5: memref<4xf32, #tpu.memory_space<smem>>, %arg6: memref<1x4x16x36xf32, #tpu.memory_space<vmem>>, %arg7: memref<4x20x40xf32, #tpu.memory_space<vmem>>, %arg8: memref<4x20x40xf32, #tpu.memory_space<vmem>>) attributes {dimension_semantics = [#tpu.dimension_semantics<parallel>], iteration_bounds = array<i64: 1>, scalar_prefetch = 0 : i64, scratch_operands = 2 : i64, tpu.core_type = #tpu.core_type<tc>, window_params = [{transform_indices = @transform_0, window_bounds = array<i64: 2, 4, 16, 16>}, {transform_indices = @transform_1, window_bounds = array<i64: 144>}, {transform_indices = @transform_2, window_bounds = array<i64: 4>}, {transform_indices = @transform_3, window_bounds = array<i64: 144>}, {transform_indices = @transform_4, window_bounds = array<i64: 4>}, {transform_indices = @transform_5, window_bounds = array<i64: 1, 4, 16, 36>}]} {
    %cst = arith.constant 0.000000e+00 : f32
    %0 = vector.broadcast %cst : f32 to vector<4x20x40xf32>
    %c0 = arith.constant 0 : index
    %c0_0 = arith.constant 0 : index
    %c0_1 = arith.constant 0 : index
    %1 = vector.load %arg7[%c0, %c0_0, %c0_1] : memref<4x20x40xf32, #tpu.memory_space<vmem>>, vector<4x20x40xf32>
    tpu.vector_store %arg7[%c0, %c0_0, %c0_1], %0 {strides = array<i32>} : memref<4x20x40xf32, #tpu.memory_space<vmem>>, vector<4x20x40xf32>,
    %c0_2 = arith.constant 0 : index
    %c0_3 = arith.constant 0 : index
    %c0_4 = arith.constant 0 : index
    %c0_5 = arith.constant 0 : index
    %2 = vector.load %arg1[%c0_2, %c0_3, %c0_4, %c0_5] : memref<2x4x16x16xf32, #tpu.memory_space<vmem>>, vector<1x1x16x16xf32>
    %3 = vector.shape_cast %2 : vector<1x1x16x16xf32> to vector<16x16xf32>
    %c0_6 = arith.constant 0 : index
    %c2 = arith.constant 2 : index
    %c2_7 = arith.constant 2 : index
    %4 = vector.load %arg7[%c0_6, %c2, %c2_7] : memref<4x20x40xf32, #tpu.memory_space<vmem>>, vector<1x16x16xf32>
    %5 = vector.shape_cast %4 : vector<1x16x16xf32> to vector<16x16xf32>
    %6 = vector.shape_cast %3 : vector<16x16xf32> to vector<1x16x16xf32>
    tpu.vector_store %arg7[%c0_6, %c2, %c2_7], %6 {strides = array<i32>} : memref<4x20x40xf32, #tpu.memory_space<vmem>>, vector<1x16x16xf32>,
    %c0_8 = arith.constant 0 : index
    %c1 = arith.constant 1 : index
    %c0_9 = arith.constant 0 : index
    %c0_10 = arith.constant 0 : index
    %7 = vector.load %arg1[%c0_8, %c1, %c0_9, %c0_10] : memref<2x4x16x16xf32, #tpu.memory_space<vmem>>, vector<1x1x16x16xf32>
    %8 = vector.shape_cast %7 : vector<1x1x16x16xf32> to vector<16x16xf32>
    %c1_11 = arith.constant 1 : index
    %c2_12 = arith.constant 2 : index
    %c2_13 = arith.constant 2 : index
    %9 = vector.load %arg7[%c1_11, %c2_12, %c2_13] : memref<4x20x40xf32, #tpu.memory_space<vmem>>, vector<1x16x16xf32>
    %10 = vector.shape_cast %9 : vector<1x16x16xf32> to vector<16x16xf32>
    %11 = vector.shape_cast %8 : vector<16x16xf32> to vector<1x16x16xf32>
    tpu.vector_store %arg7[%c1_11, %c2_12, %c2_13], %11 {strides = array<i32>} : memref<4x20x40xf32, #tpu.memory_space<vmem>>, vector<1x16x16xf32>,
    %c0_14 = arith.constant 0 : index
    %c2_15 = arith.constant 2 : index
    %c0_16 = arith.constant 0 : index
    %c0_17 = arith.constant 0 : index
    %12 = vector.load %arg1[%c0_14, %c2_15, %c0_16, %c0_17] : memref<2x4x16x16xf32, #tpu.memory_space<vmem>>, vector<1x1x16x16xf32>
    %13 = vector.shape_cast %12 : vector<1x1x16x16xf32> to vector<16x16xf32>
    %c2_18 = arith.constant 2 : index
    %c2_19 = arith.constant 2 : index
    %c2_20 = arith.constant 2 : index
    %14 = vector.load %arg7[%c2_18, %c2_19, %c2_20] : memref<4x20x40xf32, #tpu.memory_space<vmem>>, vector<1x16x16xf32>
    %15 = vector.shape_cast %14 : vector<1x16x16xf32> to vector<16x16xf32>
    %16 = vector.shape_cast %13 : vector<16x16xf32> to vector<1x16x16xf32>
    tpu.vector_store %arg7[%c2_18, %c2_19, %c2_20], %16 {strides = array<i32>} : memref<4x20x40xf32, #tpu.memory_space<vmem>>, vector<1x16x16xf32>,
    %c0_21 = arith.constant 0 : index
    %c3 = arith.constant 3 : index
    %c0_22 = arith.constant 0 : index
    %c0_23 = arith.constant 0 : index
    %17 = vector.load %arg1[%c0_21, %c3, %c0_22, %c0_23] : memref<2x4x16x16xf32, #tpu.memory_space<vmem>>, vector<1x1x16x16xf32>
    %18 = vector.shape_cast %17 : vector<1x1x16x16xf32> to vector<16x16xf32>
    %c3_24 = arith.constant 3 : index
    %c2_25 = arith.constant 2 : index
    %c2_26 = arith.constant 2 : index
    %19 = vector.load %arg7[%c3_24, %c2_25, %c2_26] : memref<4x20x40xf32, #tpu.memory_space<vmem>>, vector<1x16x16xf32>
    %20 = vector.shape_cast %19 : vector<1x16x16xf32> to vector<16x16xf32>
    %21 = vector.shape_cast %18 : vector<16x16xf32> to vector<1x16x16xf32>
    tpu.vector_store %arg7[%c3_24, %c2_25, %c2_26], %21 {strides = array<i32>} : memref<4x20x40xf32, #tpu.memory_space<vmem>>, vector<1x16x16xf32>,
    %c1_27 = arith.constant 1 : index
    %c0_28 = arith.constant 0 : index
    %c0_29 = arith.constant 0 : index
    %c0_30 = arith.constant 0 : index
    %22 = vector.load %arg1[%c1_27, %c0_28, %c0_29, %c0_30] : memref<2x4x16x16xf32, #tpu.memory_space<vmem>>, vector<1x1x16x16xf32>
    %23 = vector.shape_cast %22 : vector<1x1x16x16xf32> to vector<16x16xf32>
    %c0_31 = arith.constant 0 : index
    %c2_32 = arith.constant 2 : index
    %c22 = arith.constant 22 : index
    %24 = vector.load %arg7[%c0_31, %c2_32, %c22] : memref<4x20x40xf32, #tpu.memory_space<vmem>>, vector<1x16x16xf32>
    %25 = vector.shape_cast %24 : vector<1x16x16xf32> to vector<16x16xf32>
    %26 = vector.shape_cast %23 : vector<16x16xf32> to vector<1x16x16xf32>
    tpu.vector_store %arg7[%c0_31, %c2_32, %c22], %26 {strides = array<i32>} : memref<4x20x40xf32, #tpu.memory_space<vmem>>, vector<1x16x16xf32>,
    %c1_33 = arith.constant 1 : index
    %c1_34 = arith.constant 1 : index
    %c0_35 = arith.constant 0 : index
    %c0_36 = arith.constant 0 : index
    %27 = vector.load %arg1[%c1_33, %c1_34, %c0_35, %c0_36] : memref<2x4x16x16xf32, #tpu.memory_space<vmem>>, vector<1x1x16x16xf32>
    %28 = vector.shape_cast %27 : vector<1x1x16x16xf32> to vector<16x16xf32>
    %c1_37 = arith.constant 1 : index
    %c2_38 = arith.constant 2 : index
    %c22_39 = arith.constant 22 : index
    %29 = vector.load %arg7[%c1_37, %c2_38, %c22_39] : memref<4x20x40xf32, #tpu.memory_space<vmem>>, vector<1x16x16xf32>
    %30 = vector.shape_cast %29 : vector<1x16x16xf32> to vector<16x16xf32>
    %31 = vector.shape_cast %28 : vector<16x16xf32> to vector<1x16x16xf32>
    tpu.vector_store %arg7[%c1_37, %c2_38, %c22_39], %31 {strides = array<i32>} : memref<4x20x40xf32, #tpu.memory_space<vmem>>, vector<1x16x16xf32>,
    %c1_40 = arith.constant 1 : index
    %c2_41 = arith.constant 2 : index
    %c0_42 = arith.constant 0 : index
    %c0_43 = arith.constant 0 : index
    %32 = vector.load %arg1[%c1_40, %c2_41, %c0_42, %c0_43] : memref<2x4x16x16xf32, #tpu.memory_space<vmem>>, vector<1x1x16x16xf32>
    %33 = vector.shape_cast %32 : vector<1x1x16x16xf32> to vector<16x16xf32>
    %c2_44 = arith.constant 2 : index
    %c2_45 = arith.constant 2 : index
    %c22_46 = arith.constant 22 : index
    %34 = vector.load %arg7[%c2_44, %c2_45, %c22_46] : memref<4x20x40xf32, #tpu.memory_space<vmem>>, vector<1x16x16xf32>
    %35 = vector.shape_cast %34 : vector<1x16x16xf32> to vector<16x16xf32>
    %36 = vector.shape_cast %33 : vector<16x16xf32> to vector<1x16x16xf32>
    tpu.vector_store %arg7[%c2_44, %c2_45, %c22_46], %36 {strides = array<i32>} : memref<4x20x40xf32, #tpu.memory_space<vmem>>, vector<1x16x16xf32>,
    %c1_47 = arith.constant 1 : index
    %c3_48 = arith.constant 3 : index
    %c0_49 = arith.constant 0 : index
    %c0_50 = arith.constant 0 : index
    %37 = vector.load %arg1[%c1_47, %c3_48, %c0_49, %c0_50] : memref<2x4x16x16xf32, #tpu.memory_space<vmem>>, vector<1x1x16x16xf32>
    %38 = vector.shape_cast %37 : vector<1x1x16x16xf32> to vector<16x16xf32>
    %c3_51 = arith.constant 3 : index
    %c2_52 = arith.constant 2 : index
    %c22_53 = arith.constant 22 : index
    %39 = vector.load %arg7[%c3_51, %c2_52, %c22_53] : memref<4x20x40xf32, #tpu.memory_space<vmem>>, vector<1x16x16xf32>
    %40 = vector.shape_cast %39 : vector<1x16x16xf32> to vector<16x16xf32>
    %41 = vector.shape_cast %38 : vector<16x16xf32> to vector<1x16x16xf32>
    tpu.vector_store %arg7[%c3_51, %c2_52, %c22_53], %41 {strides = array<i32>} : memref<4x20x40xf32, #tpu.memory_space<vmem>>, vector<1x16x16xf32>,
    %42 = tpu.iota {dimensions = array<i32: 0>} : vector<18x38xi32>
    %43 = tpu.iota {dimensions = array<i32: 1>} : vector<18x38xi32>
    %c1_i32 = arith.constant 1 : i32
    %44 = vector.broadcast %c1_i32 : i32 to vector<18x38xi32>
    %45 = arith.cmpi sge, %42, %44 : vector<18x38xi32>
    %c16_i32 = arith.constant 16 : i32
    %46 = vector.broadcast %c16_i32 : i32 to vector<18x38xi32>
    %47 = arith.cmpi sle, %42, %46 : vector<18x38xi32>
    %48 = arith.andi %45, %47 : vector<18x38xi1>
    %c1_i32_54 = arith.constant 1 : i32
    %49 = vector.broadcast %c1_i32_54 : i32 to vector<18x38xi32>
    %50 = arith.cmpi sge, %43, %49 : vector<18x38xi32>
    %c16_i32_55 = arith.constant 16 : i32
    %51 = vector.broadcast %c16_i32_55 : i32 to vector<18x38xi32>
    %52 = arith.cmpi sle, %43, %51 : vector<18x38xi32>
    %53 = arith.andi %50, %52 : vector<18x38xi1>
    %c21_i32 = arith.constant 21 : i32
    %54 = vector.broadcast %c21_i32 : i32 to vector<18x38xi32>
    %55 = arith.cmpi sge, %43, %54 : vector<18x38xi32>
    %c36_i32 = arith.constant 36 : i32
    %56 = vector.broadcast %c36_i32 : i32 to vector<18x38xi32>
    %57 = arith.cmpi sle, %43, %56 : vector<18x38xi32>
    %58 = arith.andi %55, %57 : vector<18x38xi1>
    %59 = arith.ori %53, %58 : vector<18x38xi1>
    %60 = arith.andi %48, %59 : vector<18x38xi1>
    %61 = arith.extui %60 : vector<18x38xi1> to vector<18x38xi32>
    %62 = arith.sitofp %61 : vector<18x38xi32> to vector<18x38xf32>
    %cst_56 = arith.constant 0.000000e+00 : f32
    %63 = vector.broadcast %cst_56 : f32 to vector<18x38xf32>
    %cst_57 = arith.constant 0.000000e+00 : f32
    %64 = vector.broadcast %cst_57 : f32 to vector<18x38xf32>
    %cst_58 = arith.constant 0.000000e+00 : f32
    %65 = vector.broadcast %cst_58 : f32 to vector<18x38xf32>
    %cst_59 = arith.constant 0.000000e+00 : f32
    %66 = vector.broadcast %cst_59 : f32 to vector<18x38xf32>
    %c0_60 = arith.constant 0 : index
    %c0_61 = arith.constant 0 : index
    %c0_62 = arith.constant 0 : index
    %67 = vector.load %arg7[%c0_60, %c0_61, %c0_62] : memref<4x20x40xf32, #tpu.memory_space<vmem>>, vector<1x18x38xf32>
    %68 = vector.shape_cast %67 : vector<1x18x38xf32> to vector<18x38xf32>
    %c0_63 = arith.constant 0 : index
    %69 = memref.load %arg2[%c0_63] : memref<144xf32, #tpu.memory_space<smem>>
    %70 = vector.broadcast %69 : f32 to vector<18x38xf32>
    %71 = arith.mulf %70, %68 : vector<18x38xf32>
    %72 = arith.addf %63, %71 : vector<18x38xf32>
    %c36 = arith.constant 36 : index
    %73 = memref.load %arg2[%c36] : memref<144xf32, #tpu.memory_space<smem>>
    %74 = vector.broadcast %73 : f32 to vector<18x38xf32>
    %75 = arith.mulf %74, %68 : vector<18x38xf32>
    %76 = arith.addf %64, %75 : vector<18x38xf32>
    %c72 = arith.constant 72 : index
    %77 = memref.load %arg2[%c72] : memref<144xf32, #tpu.memory_space<smem>>
    %78 = vector.broadcast %77 : f32 to vector<18x38xf32>
    %79 = arith.mulf %78, %68 : vector<18x38xf32>
    %80 = arith.addf %65, %79 : vector<18x38xf32>
    %c108 = arith.constant 108 : index
    %81 = memref.load %arg2[%c108] : memref<144xf32, #tpu.memory_space<smem>>
    %82 = vector.broadcast %81 : f32 to vector<18x38xf32>
    %83 = arith.mulf %82, %68 : vector<18x38xf32>
    %84 = arith.addf %66, %83 : vector<18x38xf32>
    %c0_64 = arith.constant 0 : index
    %c0_65 = arith.constant 0 : index
    %c1_66 = arith.constant 1 : index
    %85 = vector.load %arg7[%c0_64, %c0_65, %c1_66] : memref<4x20x40xf32, #tpu.memory_space<vmem>>, vector<1x18x38xf32>
    %86 = vector.shape_cast %85 : vector<1x18x38xf32> to vector<18x38xf32>
    %c1_67 = arith.constant 1 : index
    %87 = memref.load %arg2[%c1_67] : memref<144xf32, #tpu.memory_space<smem>>
    %88 = vector.broadcast %87 : f32 to vector<18x38xf32>
    %89 = arith.mulf %88, %86 : vector<18x38xf32>
    %90 = arith.addf %72, %89 : vector<18x38xf32>
    %c37 = arith.constant 37 : index
    %91 = memref.load %arg2[%c37] : memref<144xf32, #tpu.memory_space<smem>>
    %92 = vector.broadcast %91 : f32 to vector<18x38xf32>
    %93 = arith.mulf %92, %86 : vector<18x38xf32>
    %94 = arith.addf %76, %93 : vector<18x38xf32>
    %c73 = arith.constant 73 : index
    %95 = memref.load %arg2[%c73] : memref<144xf32, #tpu.memory_space<smem>>
    %96 = vector.broadcast %95 : f32 to vector<18x38xf32>
    %97 = arith.mulf %96, %86 : vector<18x38xf32>
    %98 = arith.addf %80, %97 : vector<18x38xf32>
    %c109 = arith.constant 109 : index
    %99 = memref.load %arg2[%c109] : memref<144xf32, #tpu.memory_space<smem>>
    %100 = vector.broadcast %99 : f32 to vector<18x38xf32>
    %101 = arith.mulf %100, %86 : vector<18x38xf32>
    %102 = arith.addf %84, %101 : vector<18x38xf32>
    %c0_68 = arith.constant 0 : index
    %c0_69 = arith.constant 0 : index
    %c2_70 = arith.constant 2 : index
    %103 = vector.load %arg7[%c0_68, %c0_69, %c2_70] : memref<4x20x40xf32, #tpu.memory_space<vmem>>, vector<1x18x38xf32>
    %104 = vector.shape_cast %103 : vector<1x18x38xf32> to vector<18x38xf32>
    %c2_71 = arith.constant 2 : index
    %105 = memref.load %arg2[%c2_71] : memref<144xf32, #tpu.memory_space<smem>>
    %106 = vector.broadcast %105 : f32 to vector<18x38xf32>
    %107 = arith.mulf %106, %104 : vector<18x38xf32>
    %108 = arith.addf %90, %107 : vector<18x38xf32>
    %c38 = arith.constant 38 : index
    %109 = memref.load %arg2[%c38] : memref<144xf32, #tpu.memory_space<smem>>
    %110 = vector.broadcast %109 : f32 to vector<18x38xf32>
    %111 = arith.mulf %110, %104 : vector<18x38xf32>
    %112 = arith.addf %94, %111 : vector<18x38xf32>
    %c74 = arith.constant 74 : index
    %113 = memref.load %arg2[%c74] : memref<144xf32, #tpu.memory_space<smem>>
    %114 = vector.broadcast %113 : f32 to vector<18x38xf32>
    %115 = arith.mulf %114, %104 : vector<18x38xf32>
    %116 = arith.addf %98, %115 : vector<18x38xf32>
    %c110 = arith.constant 110 : index
    %117 = memref.load %arg2[%c110] : memref<144xf32, #tpu.memory_space<smem>>
    %118 = vector.broadcast %117 : f32 to vector<18x38xf32>
    %119 = arith.mulf %118, %104 : vector<18x38xf32>
    %120 = arith.addf %102, %119 : vector<18x38xf32>
    %c0_72 = arith.constant 0 : index
    %c1_73 = arith.constant 1 : index
    %c0_74 = arith.constant 0 : index
    %121 = vector.load %arg7[%c0_72, %c1_73, %c0_74] : memref<4x20x40xf32, #tpu.memory_space<vmem>>, vector<1x18x38xf32>
    %122 = vector.shape_cast %121 : vector<1x18x38xf32> to vector<18x38xf32>
    %c3_75 = arith.constant 3 : index
    %123 = memref.load %arg2[%c3_75] : memref<144xf32, #tpu.memory_space<smem>>
    %124 = vector.broadcast %123 : f32 to vector<18x38xf32>
    %125 = arith.mulf %124, %122 : vector<18x38xf32>
    %126 = arith.addf %108, %125 : vector<18x38xf32>
    %c39 = arith.constant 39 : index
    %127 = memref.load %arg2[%c39] : memref<144xf32, #tpu.memory_space<smem>>
    %128 = vector.broadcast %127 : f32 to vector<18x38xf32>
    %129 = arith.mulf %128, %122 : vector<18x38xf32>
    %130 = arith.addf %112, %129 : vector<18x38xf32>
    %c75 = arith.constant 75 : index
    %131 = memref.load %arg2[%c75] : memref<144xf32, #tpu.memory_space<smem>>
    %132 = vector.broadcast %131 : f32 to vector<18x38xf32>
    %133 = arith.mulf %132, %122 : vector<18x38xf32>
    %134 = arith.addf %116, %133 : vector<18x38xf32>
    %c111 = arith.constant 111 : index
    %135 = memref.load %arg2[%c111] : memref<144xf32, #tpu.memory_space<smem>>
    %136 = vector.broadcast %135 : f32 to vector<18x38xf32>
    %137 = arith.mulf %136, %122 : vector<18x38xf32>
    %138 = arith.addf %120, %137 : vector<18x38xf32>
    %c0_76 = arith.constant 0 : index
    %c1_77 = arith.constant 1 : index
    %c1_78 = arith.constant 1 : index
    %139 = vector.load %arg7[%c0_76, %c1_77, %c1_78] : memref<4x20x40xf32, #tpu.memory_space<vmem>>, vector<1x18x38xf32>
    %140 = vector.shape_cast %139 : vector<1x18x38xf32> to vector<18x38xf32>
    %c4 = arith.constant 4 : index
    %141 = memref.load %arg2[%c4] : memref<144xf32, #tpu.memory_space<smem>>
    %142 = vector.broadcast %141 : f32 to vector<18x38xf32>
    %143 = arith.mulf %142, %140 : vector<18x38xf32>
    %144 = arith.addf %126, %143 : vector<18x38xf32>
    %c40 = arith.constant 40 : index
    %145 = memref.load %arg2[%c40] : memref<144xf32, #tpu.memory_space<smem>>
    %146 = vector.broadcast %145 : f32 to vector<18x38xf32>
    %147 = arith.mulf %146, %140 : vector<18x38xf32>
    %148 = arith.addf %130, %147 : vector<18x38xf32>
    %c76 = arith.constant 76 : index
    %149 = memref.load %arg2[%c76] : memref<144xf32, #tpu.memory_space<smem>>
    %150 = vector.broadcast %149 : f32 to vector<18x38xf32>
    %151 = arith.mulf %150, %140 : vector<18x38xf32>
    %152 = arith.addf %134, %151 : vector<18x38xf32>
    %c112 = arith.constant 112 : index
    %153 = memref.load %arg2[%c112] : memref<144xf32, #tpu.memory_space<smem>>
    %154 = vector.broadcast %153 : f32 to vector<18x38xf32>
    %155 = arith.mulf %154, %140 : vector<18x38xf32>
    %156 = arith.addf %138, %155 : vector<18x38xf32>
    %c0_79 = arith.constant 0 : index
    %c1_80 = arith.constant 1 : index
    %c2_81 = arith.constant 2 : index
    %157 = vector.load %arg7[%c0_79, %c1_80, %c2_81] : memref<4x20x40xf32, #tpu.memory_space<vmem>>, vector<1x18x38xf32>
    %158 = vector.shape_cast %157 : vector<1x18x38xf32> to vector<18x38xf32>
    %c5 = arith.constant 5 : index
    %159 = memref.load %arg2[%c5] : memref<144xf32, #tpu.memory_space<smem>>
    %160 = vector.broadcast %159 : f32 to vector<18x38xf32>
    %161 = arith.mulf %160, %158 : vector<18x38xf32>
    %162 = arith.addf %144, %161 : vector<18x38xf32>
    %c41 = arith.constant 41 : index
    %163 = memref.load %arg2[%c41] : memref<144xf32, #tpu.memory_space<smem>>
    %164 = vector.broadcast %163 : f32 to vector<18x38xf32>
    %165 = arith.mulf %164, %158 : vector<18x38xf32>
    %166 = arith.addf %148, %165 : vector<18x38xf32>
    %c77 = arith.constant 77 : index
    %167 = memref.load %arg2[%c77] : memref<144xf32, #tpu.memory_space<smem>>
    %168 = vector.broadcast %167 : f32 to vector<18x38xf32>
    %169 = arith.mulf %168, %158 : vector<18x38xf32>
    %170 = arith.addf %152, %169 : vector<18x38xf32>
    %c113 = arith.constant 113 : index
    %171 = memref.load %arg2[%c113] : memref<144xf32, #tpu.memory_space<smem>>
    %172 = vector.broadcast %171 : f32 to vector<18x38xf32>
    %173 = arith.mulf %172, %158 : vector<18x38xf32>
    %174 = arith.addf %156, %173 : vector<18x38xf32>
    %c0_82 = arith.constant 0 : index
    %c2_83 = arith.constant 2 : index
    %c0_84 = arith.constant 0 : index
    %175 = vector.load %arg7[%c0_82, %c2_83, %c0_84] : memref<4x20x40xf32, #tpu.memory_space<vmem>>, vector<1x18x38xf32>
    %176 = vector.shape_cast %175 : vector<1x18x38xf32> to vector<18x38xf32>
    %c6 = arith.constant 6 : index
    %177 = memref.load %arg2[%c6] : memref<144xf32, #tpu.memory_space<smem>>
    %178 = vector.broadcast %177 : f32 to vector<18x38xf32>
    %179 = arith.mulf %178, %176 : vector<18x38xf32>
    %180 = arith.addf %162, %179 : vector<18x38xf32>
    %c42 = arith.constant 42 : index
    %181 = memref.load %arg2[%c42] : memref<144xf32, #tpu.memory_space<smem>>
    %182 = vector.broadcast %181 : f32 to vector<18x38xf32>
    %183 = arith.mulf %182, %176 : vector<18x38xf32>
    %184 = arith.addf %166, %183 : vector<18x38xf32>
    %c78 = arith.constant 78 : index
    %185 = memref.load %arg2[%c78] : memref<144xf32, #tpu.memory_space<smem>>
    %186 = vector.broadcast %185 : f32 to vector<18x38xf32>
    %187 = arith.mulf %186, %176 : vector<18x38xf32>
    %188 = arith.addf %170, %187 : vector<18x38xf32>
    %c114 = arith.constant 114 : index
    %189 = memref.load %arg2[%c114] : memref<144xf32, #tpu.memory_space<smem>>
    %190 = vector.broadcast %189 : f32 to vector<18x38xf32>
    %191 = arith.mulf %190, %176 : vector<18x38xf32>
    %192 = arith.addf %174, %191 : vector<18x38xf32>
    %c0_85 = arith.constant 0 : index
    %c2_86 = arith.constant 2 : index
    %c1_87 = arith.constant 1 : index
    %193 = vector.load %arg7[%c0_85, %c2_86, %c1_87] : memref<4x20x40xf32, #tpu.memory_space<vmem>>, vector<1x18x38xf32>
    %194 = vector.shape_cast %193 : vector<1x18x38xf32> to vector<18x38xf32>
    %c7 = arith.constant 7 : index
    %195 = memref.load %arg2[%c7] : memref<144xf32, #tpu.memory_space<smem>>
    %196 = vector.broadcast %195 : f32 to vector<18x38xf32>
    %197 = arith.mulf %196, %194 : vector<18x38xf32>
    %198 = arith.addf %180, %197 : vector<18x38xf32>
    %c43 = arith.constant 43 : index
    %199 = memref.load %arg2[%c43] : memref<144xf32, #tpu.memory_space<smem>>
    %200 = vector.broadcast %199 : f32 to vector<18x38xf32>
    %201 = arith.mulf %200, %194 : vector<18x38xf32>
    %202 = arith.addf %184, %201 : vector<18x38xf32>
    %c79 = arith.constant 79 : index
    %203 = memref.load %arg2[%c79] : memref<144xf32, #tpu.memory_space<smem>>
    %204 = vector.broadcast %203 : f32 to vector<18x38xf32>
    %205 = arith.mulf %204, %194 : vector<18x38xf32>
    %206 = arith.addf %188, %205 : vector<18x38xf32>
    %c115 = arith.constant 115 : index
    %207 = memref.load %arg2[%c115] : memref<144xf32, #tpu.memory_space<smem>>
    %208 = vector.broadcast %207 : f32 to vector<18x38xf32>
    %209 = arith.mulf %208, %194 : vector<18x38xf32>
    %210 = arith.addf %192, %209 : vector<18x38xf32>
    %c0_88 = arith.constant 0 : index
    %c2_89 = arith.constant 2 : index
    %c2_90 = arith.constant 2 : index
    %211 = vector.load %arg7[%c0_88, %c2_89, %c2_90] : memref<4x20x40xf32, #tpu.memory_space<vmem>>, vector<1x18x38xf32>
    %212 = vector.shape_cast %211 : vector<1x18x38xf32> to vector<18x38xf32>
    %c8 = arith.constant 8 : index
    %213 = memref.load %arg2[%c8] : memref<144xf32, #tpu.memory_space<smem>>
    %214 = vector.broadcast %213 : f32 to vector<18x38xf32>
    %215 = arith.mulf %214, %212 : vector<18x38xf32>
    %216 = arith.addf %198, %215 : vector<18x38xf32>
    %c44 = arith.constant 44 : index
    %217 = memref.load %arg2[%c44] : memref<144xf32, #tpu.memory_space<smem>>
    %218 = vector.broadcast %217 : f32 to vector<18x38xf32>
    %219 = arith.mulf %218, %212 : vector<18x38xf32>
    %220 = arith.addf %202, %219 : vector<18x38xf32>
    %c80 = arith.constant 80 : index
    %221 = memref.load %arg2[%c80] : memref<144xf32, #tpu.memory_space<smem>>
    %222 = vector.broadcast %221 : f32 to vector<18x38xf32>
    %223 = arith.mulf %222, %212 : vector<18x38xf32>
    %224 = arith.addf %206, %223 : vector<18x38xf32>
    %c116 = arith.constant 116 : index
    %225 = memref.load %arg2[%c116] : memref<144xf32, #tpu.memory_space<smem>>
    %226 = vector.broadcast %225 : f32 to vector<18x38xf32>
    %227 = arith.mulf %226, %212 : vector<18x38xf32>
    %228 = arith.addf %210, %227 : vector<18x38xf32>
    %c1_91 = arith.constant 1 : index
    %c0_92 = arith.constant 0 : index
    %c0_93 = arith.constant 0 : index
    %229 = vector.load %arg7[%c1_91, %c0_92, %c0_93] : memref<4x20x40xf32, #tpu.memory_space<vmem>>, vector<1x18x38xf32>
    %230 = vector.shape_cast %229 : vector<1x18x38xf32> to vector<18x38xf32>
    %c9 = arith.constant 9 : index
    %231 = memref.load %arg2[%c9] : memref<144xf32, #tpu.memory_space<smem>>
    %232 = vector.broadcast %231 : f32 to vector<18x38xf32>
    %233 = arith.mulf %232, %230 : vector<18x38xf32>
    %234 = arith.addf %216, %233 : vector<18x38xf32>
    %c45 = arith.constant 45 : index
    %235 = memref.load %arg2[%c45] : memref<144xf32, #tpu.memory_space<smem>>
    %236 = vector.broadcast %235 : f32 to vector<18x38xf32>
    %237 = arith.mulf %236, %230 : vector<18x38xf32>
    %238 = arith.addf %220, %237 : vector<18x38xf32>
    %c81 = arith.constant 81 : index
    %239 = memref.load %arg2[%c81] : memref<144xf32, #tpu.memory_space<smem>>
    %240 = vector.broadcast %239 : f32 to vector<18x38xf32>
    %241 = arith.mulf %240, %230 : vector<18x38xf32>
    %242 = arith.addf %224, %241 : vector<18x38xf32>
    %c117 = arith.constant 117 : index
    %243 = memref.load %arg2[%c117] : memref<144xf32, #tpu.memory_space<smem>>
    %244 = vector.broadcast %243 : f32 to vector<18x38xf32>
    %245 = arith.mulf %244, %230 : vector<18x38xf32>
    %246 = arith.addf %228, %245 : vector<18x38xf32>
    %c1_94 = arith.constant 1 : index
    %c0_95 = arith.constant 0 : index
    %c1_96 = arith.constant 1 : index
    %247 = vector.load %arg7[%c1_94, %c0_95, %c1_96] : memref<4x20x40xf32, #tpu.memory_space<vmem>>, vector<1x18x38xf32>
    %248 = vector.shape_cast %247 : vector<1x18x38xf32> to vector<18x38xf32>
    %c10 = arith.constant 10 : index
    %249 = memref.load %arg2[%c10] : memref<144xf32, #tpu.memory_space<smem>>
    %250 = vector.broadcast %249 : f32 to vector<18x38xf32>
    %251 = arith.mulf %250, %248 : vector<18x38xf32>
    %252 = arith.addf %234, %251 : vector<18x38xf32>
    %c46 = arith.constant 46 : index
    %253 = memref.load %arg2[%c46] : memref<144xf32, #tpu.memory_space<smem>>
    %254 = vector.broadcast %253 : f32 to vector<18x38xf32>
    %255 = arith.mulf %254, %248 : vector<18x38xf32>
    %256 = arith.addf %238, %255 : vector<18x38xf32>
    %c82 = arith.constant 82 : index
    %257 = memref.load %arg2[%c82] : memref<144xf32, #tpu.memory_space<smem>>
    %258 = vector.broadcast %257 : f32 to vector<18x38xf32>
    %259 = arith.mulf %258, %248 : vector<18x38xf32>
    %260 = arith.addf %242, %259 : vector<18x38xf32>
    %c118 = arith.constant 118 : index
    %261 = memref.load %arg2[%c118] : memref<144xf32, #tpu.memory_space<smem>>
    %262 = vector.broadcast %261 : f32 to vector<18x38xf32>
    %263 = arith.mulf %262, %248 : vector<18x38xf32>
    %264 = arith.addf %246, %263 : vector<18x38xf32>
    %c1_97 = arith.constant 1 : index
    %c0_98 = arith.constant 0 : index
    %c2_99 = arith.constant 2 : index
    %265 = vector.load %arg7[%c1_97, %c0_98, %c2_99] : memref<4x20x40xf32, #tpu.memory_space<vmem>>, vector<1x18x38xf32>
    %266 = vector.shape_cast %265 : vector<1x18x38xf32> to vector<18x38xf32>
    %c11 = arith.constant 11 : index
    %267 = memref.load %arg2[%c11] : memref<144xf32, #tpu.memory_space<smem>>
    %268 = vector.broadcast %267 : f32 to vector<18x38xf32>
    %269 = arith.mulf %268, %266 : vector<18x38xf32>
    %270 = arith.addf %252, %269 : vector<18x38xf32>
    %c47 = arith.constant 47 : index
    %271 = memref.load %arg2[%c47] : memref<144xf32, #tpu.memory_space<smem>>
    %272 = vector.broadcast %271 : f32 to vector<18x38xf32>
    %273 = arith.mulf %272, %266 : vector<18x38xf32>
    %274 = arith.addf %256, %273 : vector<18x38xf32>
    %c83 = arith.constant 83 : index
    %275 = memref.load %arg2[%c83] : memref<144xf32, #tpu.memory_space<smem>>
    %276 = vector.broadcast %275 : f32 to vector<18x38xf32>
    %277 = arith.mulf %276, %266 : vector<18x38xf32>
    %278 = arith.addf %260, %277 : vector<18x38xf32>
    %c119 = arith.constant 119 : index
    %279 = memref.load %arg2[%c119] : memref<144xf32, #tpu.memory_space<smem>>
    %280 = vector.broadcast %279 : f32 to vector<18x38xf32>
    %281 = arith.mulf %280, %266 : vector<18x38xf32>
    %282 = arith.addf %264, %281 : vector<18x38xf32>
    %c1_100 = arith.constant 1 : index
    %c1_101 = arith.constant 1 : index
    %c0_102 = arith.constant 0 : index
    %283 = vector.load %arg7[%c1_100, %c1_101, %c0_102] : memref<4x20x40xf32, #tpu.memory_space<vmem>>, vector<1x18x38xf32>
    %284 = vector.shape_cast %283 : vector<1x18x38xf32> to vector<18x38xf32>
    %c12 = arith.constant 12 : index
    %285 = memref.load %arg2[%c12] : memref<144xf32, #tpu.memory_space<smem>>
    %286 = vector.broadcast %285 : f32 to vector<18x38xf32>
    %287 = arith.mulf %286, %284 : vector<18x38xf32>
    %288 = arith.addf %270, %287 : vector<18x38xf32>
    %c48 = arith.constant 48 : index
    %289 = memref.load %arg2[%c48] : memref<144xf32, #tpu.memory_space<smem>>
    %290 = vector.broadcast %289 : f32 to vector<18x38xf32>
    %291 = arith.mulf %290, %284 : vector<18x38xf32>
    %292 = arith.addf %274, %291 : vector<18x38xf32>
    %c84 = arith.constant 84 : index
    %293 = memref.load %arg2[%c84] : memref<144xf32, #tpu.memory_space<smem>>
    %294 = vector.broadcast %293 : f32 to vector<18x38xf32>
    %295 = arith.mulf %294, %284 : vector<18x38xf32>
    %296 = arith.addf %278, %295 : vector<18x38xf32>
    %c120 = arith.constant 120 : index
    %297 = memref.load %arg2[%c120] : memref<144xf32, #tpu.memory_space<smem>>
    %298 = vector.broadcast %297 : f32 to vector<18x38xf32>
    %299 = arith.mulf %298, %284 : vector<18x38xf32>
    %300 = arith.addf %282, %299 : vector<18x38xf32>
    %c1_103 = arith.constant 1 : index
    %c1_104 = arith.constant 1 : index
    %c1_105 = arith.constant 1 : index
    %301 = vector.load %arg7[%c1_103, %c1_104, %c1_105] : memref<4x20x40xf32, #tpu.memory_space<vmem>>, vector<1x18x38xf32>
    %302 = vector.shape_cast %301 : vector<1x18x38xf32> to vector<18x38xf32>
    %c13 = arith.constant 13 : index
    %303 = memref.load %arg2[%c13] : memref<144xf32, #tpu.memory_space<smem>>
    %304 = vector.broadcast %303 : f32 to vector<18x38xf32>
    %305 = arith.mulf %304, %302 : vector<18x38xf32>
    %306 = arith.addf %288, %305 : vector<18x38xf32>
    %c49 = arith.constant 49 : index
    %307 = memref.load %arg2[%c49] : memref<144xf32, #tpu.memory_space<smem>>
    %308 = vector.broadcast %307 : f32 to vector<18x38xf32>
    %309 = arith.mulf %308, %302 : vector<18x38xf32>
    %310 = arith.addf %292, %309 : vector<18x38xf32>
    %c85 = arith.constant 85 : index
    %311 = memref.load %arg2[%c85] : memref<144xf32, #tpu.memory_space<smem>>
    %312 = vector.broadcast %311 : f32 to vector<18x38xf32>
    %313 = arith.mulf %312, %302 : vector<18x38xf32>
    %314 = arith.addf %296, %313 : vector<18x38xf32>
    %c121 = arith.constant 121 : index
    %315 = memref.load %arg2[%c121] : memref<144xf32, #tpu.memory_space<smem>>
    %316 = vector.broadcast %315 : f32 to vector<18x38xf32>
    %317 = arith.mulf %316, %302 : vector<18x38xf32>
    %318 = arith.addf %300, %317 : vector<18x38xf32>
    %c1_106 = arith.constant 1 : index
    %c1_107 = arith.constant 1 : index
    %c2_108 = arith.constant 2 : index
    %319 = vector.load %arg7[%c1_106, %c1_107, %c2_108] : memref<4x20x40xf32, #tpu.memory_space<vmem>>, vector<1x18x38xf32>
    %320 = vector.shape_cast %319 : vector<1x18x38xf32> to vector<18x38xf32>
    %c14 = arith.constant 14 : index
    %321 = memref.load %arg2[%c14] : memref<144xf32, #tpu.memory_space<smem>>
    %322 = vector.broadcast %321 : f32 to vector<18x38xf32>
    %323 = arith.mulf %322, %320 : vector<18x38xf32>
    %324 = arith.addf %306, %323 : vector<18x38xf32>
    %c50 = arith.constant 50 : index
    %325 = memref.load %arg2[%c50] : memref<144xf32, #tpu.memory_space<smem>>
    %326 = vector.broadcast %325 : f32 to vector<18x38xf32>
    %327 = arith.mulf %326, %320 : vector<18x38xf32>
    %328 = arith.addf %310, %327 : vector<18x38xf32>
    %c86 = arith.constant 86 : index
    %329 = memref.load %arg2[%c86] : memref<144xf32, #tpu.memory_space<smem>>
    %330 = vector.broadcast %329 : f32 to vector<18x38xf32>
    %331 = arith.mulf %330, %320 : vector<18x38xf32>
    %332 = arith.addf %314, %331 : vector<18x38xf32>
    %c122 = arith.constant 122 : index
    %333 = memref.load %arg2[%c122] : memref<144xf32, #tpu.memory_space<smem>>
    %334 = vector.broadcast %333 : f32 to vector<18x38xf32>
    %335 = arith.mulf %334, %320 : vector<18x38xf32>
    %336 = arith.addf %318, %335 : vector<18x38xf32>
    %c1_109 = arith.constant 1 : index
    %c2_110 = arith.constant 2 : index
    %c0_111 = arith.constant 0 : index
    %337 = vector.load %arg7[%c1_109, %c2_110, %c0_111] : memref<4x20x40xf32, #tpu.memory_space<vmem>>, vector<1x18x38xf32>
    %338 = vector.shape_cast %337 : vector<1x18x38xf32> to vector<18x38xf32>
    %c15 = arith.constant 15 : index
    %339 = memref.load %arg2[%c15] : memref<144xf32, #tpu.memory_space<smem>>
    %340 = vector.broadcast %339 : f32 to vector<18x38xf32>
    %341 = arith.mulf %340, %338 : vector<18x38xf32>
    %342 = arith.addf %324, %341 : vector<18x38xf32>
    %c51 = arith.constant 51 : index
    %343 = memref.load %arg2[%c51] : memref<144xf32, #tpu.memory_space<smem>>
    %344 = vector.broadcast %343 : f32 to vector<18x38xf32>
    %345 = arith.mulf %344, %338 : vector<18x38xf32>
    %346 = arith.addf %328, %345 : vector<18x38xf32>
    %c87 = arith.constant 87 : index
    %347 = memref.load %arg2[%c87] : memref<144xf32, #tpu.memory_space<smem>>
    %348 = vector.broadcast %347 : f32 to vector<18x38xf32>
    %349 = arith.mulf %348, %338 : vector<18x38xf32>
    %350 = arith.addf %332, %349 : vector<18x38xf32>
    %c123 = arith.constant 123 : index
    %351 = memref.load %arg2[%c123] : memref<144xf32, #tpu.memory_space<smem>>
    %352 = vector.broadcast %351 : f32 to vector<18x38xf32>
    %353 = arith.mulf %352, %338 : vector<18x38xf32>
    %354 = arith.addf %336, %353 : vector<18x38xf32>
    %c1_112 = arith.constant 1 : index
    %c2_113 = arith.constant 2 : index
    %c1_114 = arith.constant 1 : index
    %355 = vector.load %arg7[%c1_112, %c2_113, %c1_114] : memref<4x20x40xf32, #tpu.memory_space<vmem>>, vector<1x18x38xf32>
    %356 = vector.shape_cast %355 : vector<1x18x38xf32> to vector<18x38xf32>
    %c16 = arith.constant 16 : index
    %357 = memref.load %arg2[%c16] : memref<144xf32, #tpu.memory_space<smem>>
    %358 = vector.broadcast %357 : f32 to vector<18x38xf32>
    %359 = arith.mulf %358, %356 : vector<18x38xf32>
    %360 = arith.addf %342, %359 : vector<18x38xf32>
    %c52 = arith.constant 52 : index
    %361 = memref.load %arg2[%c52] : memref<144xf32, #tpu.memory_space<smem>>
    %362 = vector.broadcast %361 : f32 to vector<18x38xf32>
    %363 = arith.mulf %362, %356 : vector<18x38xf32>
    %364 = arith.addf %346, %363 : vector<18x38xf32>
    %c88 = arith.constant 88 : index
    %365 = memref.load %arg2[%c88] : memref<144xf32, #tpu.memory_space<smem>>
    %366 = vector.broadcast %365 : f32 to vector<18x38xf32>
    %367 = arith.mulf %366, %356 : vector<18x38xf32>
    %368 = arith.addf %350, %367 : vector<18x38xf32>
    %c124 = arith.constant 124 : index
    %369 = memref.load %arg2[%c124] : memref<144xf32, #tpu.memory_space<smem>>
    %370 = vector.broadcast %369 : f32 to vector<18x38xf32>
    %371 = arith.mulf %370, %356 : vector<18x38xf32>
    %372 = arith.addf %354, %371 : vector<18x38xf32>
    %c1_115 = arith.constant 1 : index
    %c2_116 = arith.constant 2 : index
    %c2_117 = arith.constant 2 : index
    %373 = vector.load %arg7[%c1_115, %c2_116, %c2_117] : memref<4x20x40xf32, #tpu.memory_space<vmem>>, vector<1x18x38xf32>
    %374 = vector.shape_cast %373 : vector<1x18x38xf32> to vector<18x38xf32>
    %c17 = arith.constant 17 : index
    %375 = memref.load %arg2[%c17] : memref<144xf32, #tpu.memory_space<smem>>
    %376 = vector.broadcast %375 : f32 to vector<18x38xf32>
    %377 = arith.mulf %376, %374 : vector<18x38xf32>
    %378 = arith.addf %360, %377 : vector<18x38xf32>
    %c53 = arith.constant 53 : index
    %379 = memref.load %arg2[%c53] : memref<144xf32, #tpu.memory_space<smem>>
    %380 = vector.broadcast %379 : f32 to vector<18x38xf32>
    %381 = arith.mulf %380, %374 : vector<18x38xf32>
    %382 = arith.addf %364, %381 : vector<18x38xf32>
    %c89 = arith.constant 89 : index
    %383 = memref.load %arg2[%c89] : memref<144xf32, #tpu.memory_space<smem>>
    %384 = vector.broadcast %383 : f32 to vector<18x38xf32>
    %385 = arith.mulf %384, %374 : vector<18x38xf32>
    %386 = arith.addf %368, %385 : vector<18x38xf32>
    %c125 = arith.constant 125 : index
    %387 = memref.load %arg2[%c125] : memref<144xf32, #tpu.memory_space<smem>>
    %388 = vector.broadcast %387 : f32 to vector<18x38xf32>
    %389 = arith.mulf %388, %374 : vector<18x38xf32>
    %390 = arith.addf %372, %389 : vector<18x38xf32>
    %c2_118 = arith.constant 2 : index
    %c0_119 = arith.constant 0 : index
    %c0_120 = arith.constant 0 : index
    %391 = vector.load %arg7[%c2_118, %c0_119, %c0_120] : memref<4x20x40xf32, #tpu.memory_space<vmem>>, vector<1x18x38xf32>
    %392 = vector.shape_cast %391 : vector<1x18x38xf32> to vector<18x38xf32>
    %c18 = arith.constant 18 : index
    %393 = memref.load %arg2[%c18] : memref<144xf32, #tpu.memory_space<smem>>
    %394 = vector.broadcast %393 : f32 to vector<18x38xf32>
    %395 = arith.mulf %394, %392 : vector<18x38xf32>
    %396 = arith.addf %378, %395 : vector<18x38xf32>
    %c54 = arith.constant 54 : index
    %397 = memref.load %arg2[%c54] : memref<144xf32, #tpu.memory_space<smem>>
    %398 = vector.broadcast %397 : f32 to vector<18x38xf32>
    %399 = arith.mulf %398, %392 : vector<18x38xf32>
    %400 = arith.addf %382, %399 : vector<18x38xf32>
    %c90 = arith.constant 90 : index
    %401 = memref.load %arg2[%c90] : memref<144xf32, #tpu.memory_space<smem>>
    %402 = vector.broadcast %401 : f32 to vector<18x38xf32>
    %403 = arith.mulf %402, %392 : vector<18x38xf32>
    %404 = arith.addf %386, %403 : vector<18x38xf32>
    %c126 = arith.constant 126 : index
    %405 = memref.load %arg2[%c126] : memref<144xf32, #tpu.memory_space<smem>>
    %406 = vector.broadcast %405 : f32 to vector<18x38xf32>
    %407 = arith.mulf %406, %392 : vector<18x38xf32>
    %408 = arith.addf %390, %407 : vector<18x38xf32>
    %c2_121 = arith.constant 2 : index
    %c0_122 = arith.constant 0 : index
    %c1_123 = arith.constant 1 : index
    %409 = vector.load %arg7[%c2_121, %c0_122, %c1_123] : memref<4x20x40xf32, #tpu.memory_space<vmem>>, vector<1x18x38xf32>
    %410 = vector.shape_cast %409 : vector<1x18x38xf32> to vector<18x38xf32>
    %c19 = arith.constant 19 : index
    %411 = memref.load %arg2[%c19] : memref<144xf32, #tpu.memory_space<smem>>
    %412 = vector.broadcast %411 : f32 to vector<18x38xf32>
    %413 = arith.mulf %412, %410 : vector<18x38xf32>
    %414 = arith.addf %396, %413 : vector<18x38xf32>
    %c55 = arith.constant 55 : index
    %415 = memref.load %arg2[%c55] : memref<144xf32, #tpu.memory_space<smem>>
    %416 = vector.broadcast %415 : f32 to vector<18x38xf32>
    %417 = arith.mulf %416, %410 : vector<18x38xf32>
    %418 = arith.addf %400, %417 : vector<18x38xf32>
    %c91 = arith.constant 91 : index
    %419 = memref.load %arg2[%c91] : memref<144xf32, #tpu.memory_space<smem>>
    %420 = vector.broadcast %419 : f32 to vector<18x38xf32>
    %421 = arith.mulf %420, %410 : vector<18x38xf32>
    %422 = arith.addf %404, %421 : vector<18x38xf32>
    %c127 = arith.constant 127 : index
    %423 = memref.load %arg2[%c127] : memref<144xf32, #tpu.memory_space<smem>>
    %424 = vector.broadcast %423 : f32 to vector<18x38xf32>
    %425 = arith.mulf %424, %410 : vector<18x38xf32>
    %426 = arith.addf %408, %425 : vector<18x38xf32>
    %c2_124 = arith.constant 2 : index
    %c0_125 = arith.constant 0 : index
    %c2_126 = arith.constant 2 : index
    %427 = vector.load %arg7[%c2_124, %c0_125, %c2_126] : memref<4x20x40xf32, #tpu.memory_space<vmem>>, vector<1x18x38xf32>
    %428 = vector.shape_cast %427 : vector<1x18x38xf32> to vector<18x38xf32>
    %c20 = arith.constant 20 : index
    %429 = memref.load %arg2[%c20] : memref<144xf32, #tpu.memory_space<smem>>
    %430 = vector.broadcast %429 : f32 to vector<18x38xf32>
    %431 = arith.mulf %430, %428 : vector<18x38xf32>
    %432 = arith.addf %414, %431 : vector<18x38xf32>
    %c56 = arith.constant 56 : index
    %433 = memref.load %arg2[%c56] : memref<144xf32, #tpu.memory_space<smem>>
    %434 = vector.broadcast %433 : f32 to vector<18x38xf32>
    %435 = arith.mulf %434, %428 : vector<18x38xf32>
    %436 = arith.addf %418, %435 : vector<18x38xf32>
    %c92 = arith.constant 92 : index
    %437 = memref.load %arg2[%c92] : memref<144xf32, #tpu.memory_space<smem>>
    %438 = vector.broadcast %437 : f32 to vector<18x38xf32>
    %439 = arith.mulf %438, %428 : vector<18x38xf32>
    %440 = arith.addf %422, %439 : vector<18x38xf32>
    %c128 = arith.constant 128 : index
    %441 = memref.load %arg2[%c128] : memref<144xf32, #tpu.memory_space<smem>>
    %442 = vector.broadcast %441 : f32 to vector<18x38xf32>
    %443 = arith.mulf %442, %428 : vector<18x38xf32>
    %444 = arith.addf %426, %443 : vector<18x38xf32>
    %c2_127 = arith.constant 2 : index
    %c1_128 = arith.constant 1 : index
    %c0_129 = arith.constant 0 : index
    %445 = vector.load %arg7[%c2_127, %c1_128, %c0_129] : memref<4x20x40xf32, #tpu.memory_space<vmem>>, vector<1x18x38xf32>
    %446 = vector.shape_cast %445 : vector<1x18x38xf32> to vector<18x38xf32>
    %c21 = arith.constant 21 : index
    %447 = memref.load %arg2[%c21] : memref<144xf32, #tpu.memory_space<smem>>
    %448 = vector.broadcast %447 : f32 to vector<18x38xf32>
    %449 = arith.mulf %448, %446 : vector<18x38xf32>
    %450 = arith.addf %432, %449 : vector<18x38xf32>
    %c57 = arith.constant 57 : index
    %451 = memref.load %arg2[%c57] : memref<144xf32, #tpu.memory_space<smem>>
    %452 = vector.broadcast %451 : f32 to vector<18x38xf32>
    %453 = arith.mulf %452, %446 : vector<18x38xf32>
    %454 = arith.addf %436, %453 : vector<18x38xf32>
    %c93 = arith.constant 93 : index
    %455 = memref.load %arg2[%c93] : memref<144xf32, #tpu.memory_space<smem>>
    %456 = vector.broadcast %455 : f32 to vector<18x38xf32>
    %457 = arith.mulf %456, %446 : vector<18x38xf32>
    %458 = arith.addf %440, %457 : vector<18x38xf32>
    %c129 = arith.constant 129 : index
    %459 = memref.load %arg2[%c129] : memref<144xf32, #tpu.memory_space<smem>>
    %460 = vector.broadcast %459 : f32 to vector<18x38xf32>
    %461 = arith.mulf %460, %446 : vector<18x38xf32>
    %462 = arith.addf %444, %461 : vector<18x38xf32>
    %c2_130 = arith.constant 2 : index
    %c1_131 = arith.constant 1 : index
    %c1_132 = arith.constant 1 : index
    %463 = vector.load %arg7[%c2_130, %c1_131, %c1_132] : memref<4x20x40xf32, #tpu.memory_space<vmem>>, vector<1x18x38xf32>
    %464 = vector.shape_cast %463 : vector<1x18x38xf32> to vector<18x38xf32>
    %c22_133 = arith.constant 22 : index
    %465 = memref.load %arg2[%c22_133] : memref<144xf32, #tpu.memory_space<smem>>
    %466 = vector.broadcast %465 : f32 to vector<18x38xf32>
    %467 = arith.mulf %466, %464 : vector<18x38xf32>
    %468 = arith.addf %450, %467 : vector<18x38xf32>
    %c58 = arith.constant 58 : index
    %469 = memref.load %arg2[%c58] : memref<144xf32, #tpu.memory_space<smem>>
    %470 = vector.broadcast %469 : f32 to vector<18x38xf32>
    %471 = arith.mulf %470, %464 : vector<18x38xf32>
    %472 = arith.addf %454, %471 : vector<18x38xf32>
    %c94 = arith.constant 94 : index
    %473 = memref.load %arg2[%c94] : memref<144xf32, #tpu.memory_space<smem>>
    %474 = vector.broadcast %473 : f32 to vector<18x38xf32>
    %475 = arith.mulf %474, %464 : vector<18x38xf32>
    %476 = arith.addf %458, %475 : vector<18x38xf32>
    %c130 = arith.constant 130 : index
    %477 = memref.load %arg2[%c130] : memref<144xf32, #tpu.memory_space<smem>>
    %478 = vector.broadcast %477 : f32 to vector<18x38xf32>
    %479 = arith.mulf %478, %464 : vector<18x38xf32>
    %480 = arith.addf %462, %479 : vector<18x38xf32>
    %c2_134 = arith.constant 2 : index
    %c1_135 = arith.constant 1 : index
    %c2_136 = arith.constant 2 : index
    %481 = vector.load %arg7[%c2_134, %c1_135, %c2_136] : memref<4x20x40xf32, #tpu.memory_space<vmem>>, vector<1x18x38xf32>
    %482 = vector.shape_cast %481 : vector<1x18x38xf32> to vector<18x38xf32>
    %c23 = arith.constant 23 : index
    %483 = memref.load %arg2[%c23] : memref<144xf32, #tpu.memory_space<smem>>
    %484 = vector.broadcast %483 : f32 to vector<18x38xf32>
    %485 = arith.mulf %484, %482 : vector<18x38xf32>
    %486 = arith.addf %468, %485 : vector<18x38xf32>
    %c59 = arith.constant 59 : index
    %487 = memref.load %arg2[%c59] : memref<144xf32, #tpu.memory_space<smem>>
    %488 = vector.broadcast %487 : f32 to vector<18x38xf32>
    %489 = arith.mulf %488, %482 : vector<18x38xf32>
    %490 = arith.addf %472, %489 : vector<18x38xf32>
    %c95 = arith.constant 95 : index
    %491 = memref.load %arg2[%c95] : memref<144xf32, #tpu.memory_space<smem>>
    %492 = vector.broadcast %491 : f32 to vector<18x38xf32>
    %493 = arith.mulf %492, %482 : vector<18x38xf32>
    %494 = arith.addf %476, %493 : vector<18x38xf32>
    %c131 = arith.constant 131 : index
    %495 = memref.load %arg2[%c131] : memref<144xf32, #tpu.memory_space<smem>>
    %496 = vector.broadcast %495 : f32 to vector<18x38xf32>
    %497 = arith.mulf %496, %482 : vector<18x38xf32>
    %498 = arith.addf %480, %497 : vector<18x38xf32>
    %c2_137 = arith.constant 2 : index
    %c2_138 = arith.constant 2 : index
    %c0_139 = arith.constant 0 : index
    %499 = vector.load %arg7[%c2_137, %c2_138, %c0_139] : memref<4x20x40xf32, #tpu.memory_space<vmem>>, vector<1x18x38xf32>
    %500 = vector.shape_cast %499 : vector<1x18x38xf32> to vector<18x38xf32>
    %c24 = arith.constant 24 : index
    %501 = memref.load %arg2[%c24] : memref<144xf32, #tpu.memory_space<smem>>
    %502 = vector.broadcast %501 : f32 to vector<18x38xf32>
    %503 = arith.mulf %502, %500 : vector<18x38xf32>
    %504 = arith.addf %486, %503 : vector<18x38xf32>
    %c60 = arith.constant 60 : index
    %505 = memref.load %arg2[%c60] : memref<144xf32, #tpu.memory_space<smem>>
    %506 = vector.broadcast %505 : f32 to vector<18x38xf32>
    %507 = arith.mulf %506, %500 : vector<18x38xf32>
    %508 = arith.addf %490, %507 : vector<18x38xf32>
    %c96 = arith.constant 96 : index
    %509 = memref.load %arg2[%c96] : memref<144xf32, #tpu.memory_space<smem>>
    %510 = vector.broadcast %509 : f32 to vector<18x38xf32>
    %511 = arith.mulf %510, %500 : vector<18x38xf32>
    %512 = arith.addf %494, %511 : vector<18x38xf32>
    %c132 = arith.constant 132 : index
    %513 = memref.load %arg2[%c132] : memref<144xf32, #tpu.memory_space<smem>>
    %514 = vector.broadcast %513 : f32 to vector<18x38xf32>
    %515 = arith.mulf %514, %500 : vector<18x38xf32>
    %516 = arith.addf %498, %515 : vector<18x38xf32>
    %c2_140 = arith.constant 2 : index
    %c2_141 = arith.constant 2 : index
    %c1_142 = arith.constant 1 : index
    %517 = vector.load %arg7[%c2_140, %c2_141, %c1_142] : memref<4x20x40xf32, #tpu.memory_space<vmem>>, vector<1x18x38xf32>
    %518 = vector.shape_cast %517 : vector<1x18x38xf32> to vector<18x38xf32>
    %c25 = arith.constant 25 : index
    %519 = memref.load %arg2[%c25] : memref<144xf32, #tpu.memory_space<smem>>
    %520 = vector.broadcast %519 : f32 to vector<18x38xf32>
    %521 = arith.mulf %520, %518 : vector<18x38xf32>
    %522 = arith.addf %504, %521 : vector<18x38xf32>
    %c61 = arith.constant 61 : index
    %523 = memref.load %arg2[%c61] : memref<144xf32, #tpu.memory_space<smem>>
    %524 = vector.broadcast %523 : f32 to vector<18x38xf32>
    %525 = arith.mulf %524, %518 : vector<18x38xf32>
    %526 = arith.addf %508, %525 : vector<18x38xf32>
    %c97 = arith.constant 97 : index
    %527 = memref.load %arg2[%c97] : memref<144xf32, #tpu.memory_space<smem>>
    %528 = vector.broadcast %527 : f32 to vector<18x38xf32>
    %529 = arith.mulf %528, %518 : vector<18x38xf32>
    %530 = arith.addf %512, %529 : vector<18x38xf32>
    %c133 = arith.constant 133 : index
    %531 = memref.load %arg2[%c133] : memref<144xf32, #tpu.memory_space<smem>>
    %532 = vector.broadcast %531 : f32 to vector<18x38xf32>
    %533 = arith.mulf %532, %518 : vector<18x38xf32>
    %534 = arith.addf %516, %533 : vector<18x38xf32>
    %c2_143 = arith.constant 2 : index
    %c2_144 = arith.constant 2 : index
    %c2_145 = arith.constant 2 : index
    %535 = vector.load %arg7[%c2_143, %c2_144, %c2_145] : memref<4x20x40xf32, #tpu.memory_space<vmem>>, vector<1x18x38xf32>
    %536 = vector.shape_cast %535 : vector<1x18x38xf32> to vector<18x38xf32>
    %c26 = arith.constant 26 : index
    %537 = memref.load %arg2[%c26] : memref<144xf32, #tpu.memory_space<smem>>
    %538 = vector.broadcast %537 : f32 to vector<18x38xf32>
    %539 = arith.mulf %538, %536 : vector<18x38xf32>
    %540 = arith.addf %522, %539 : vector<18x38xf32>
    %c62 = arith.constant 62 : index
    %541 = memref.load %arg2[%c62] : memref<144xf32, #tpu.memory_space<smem>>
    %542 = vector.broadcast %541 : f32 to vector<18x38xf32>
    %543 = arith.mulf %542, %536 : vector<18x38xf32>
    %544 = arith.addf %526, %543 : vector<18x38xf32>
    %c98 = arith.constant 98 : index
    %545 = memref.load %arg2[%c98] : memref<144xf32, #tpu.memory_space<smem>>
    %546 = vector.broadcast %545 : f32 to vector<18x38xf32>
    %547 = arith.mulf %546, %536 : vector<18x38xf32>
    %548 = arith.addf %530, %547 : vector<18x38xf32>
    %c134 = arith.constant 134 : index
    %549 = memref.load %arg2[%c134] : memref<144xf32, #tpu.memory_space<smem>>
    %550 = vector.broadcast %549 : f32 to vector<18x38xf32>
    %551 = arith.mulf %550, %536 : vector<18x38xf32>
    %552 = arith.addf %534, %551 : vector<18x38xf32>
    %c3_146 = arith.constant 3 : index
    %c0_147 = arith.constant 0 : index
    %c0_148 = arith.constant 0 : index
    %553 = vector.load %arg7[%c3_146, %c0_147, %c0_148] : memref<4x20x40xf32, #tpu.memory_space<vmem>>, vector<1x18x38xf32>
    %554 = vector.shape_cast %553 : vector<1x18x38xf32> to vector<18x38xf32>
    %c27 = arith.constant 27 : index
    %555 = memref.load %arg2[%c27] : memref<144xf32, #tpu.memory_space<smem>>
    %556 = vector.broadcast %555 : f32 to vector<18x38xf32>
    %557 = arith.mulf %556, %554 : vector<18x38xf32>
    %558 = arith.addf %540, %557 : vector<18x38xf32>
    %c63 = arith.constant 63 : index
    %559 = memref.load %arg2[%c63] : memref<144xf32, #tpu.memory_space<smem>>
    %560 = vector.broadcast %559 : f32 to vector<18x38xf32>
    %561 = arith.mulf %560, %554 : vector<18x38xf32>
    %562 = arith.addf %544, %561 : vector<18x38xf32>
    %c99 = arith.constant 99 : index
    %563 = memref.load %arg2[%c99] : memref<144xf32, #tpu.memory_space<smem>>
    %564 = vector.broadcast %563 : f32 to vector<18x38xf32>
    %565 = arith.mulf %564, %554 : vector<18x38xf32>
    %566 = arith.addf %548, %565 : vector<18x38xf32>
    %c135 = arith.constant 135 : index
    %567 = memref.load %arg2[%c135] : memref<144xf32, #tpu.memory_space<smem>>
    %568 = vector.broadcast %567 : f32 to vector<18x38xf32>
    %569 = arith.mulf %568, %554 : vector<18x38xf32>
    %570 = arith.addf %552, %569 : vector<18x38xf32>
    %c3_149 = arith.constant 3 : index
    %c0_150 = arith.constant 0 : index
    %c1_151 = arith.constant 1 : index
    %571 = vector.load %arg7[%c3_149, %c0_150, %c1_151] : memref<4x20x40xf32, #tpu.memory_space<vmem>>, vector<1x18x38xf32>
    %572 = vector.shape_cast %571 : vector<1x18x38xf32> to vector<18x38xf32>
    %c28 = arith.constant 28 : index
    %573 = memref.load %arg2[%c28] : memref<144xf32, #tpu.memory_space<smem>>
    %574 = vector.broadcast %573 : f32 to vector<18x38xf32>
    %575 = arith.mulf %574, %572 : vector<18x38xf32>
    %576 = arith.addf %558, %575 : vector<18x38xf32>
    %c64 = arith.constant 64 : index
    %577 = memref.load %arg2[%c64] : memref<144xf32, #tpu.memory_space<smem>>
    %578 = vector.broadcast %577 : f32 to vector<18x38xf32>
    %579 = arith.mulf %578, %572 : vector<18x38xf32>
    %580 = arith.addf %562, %579 : vector<18x38xf32>
    %c100 = arith.constant 100 : index
    %581 = memref.load %arg2[%c100] : memref<144xf32, #tpu.memory_space<smem>>
    %582 = vector.broadcast %581 : f32 to vector<18x38xf32>
    %583 = arith.mulf %582, %572 : vector<18x38xf32>
    %584 = arith.addf %566, %583 : vector<18x38xf32>
    %c136 = arith.constant 136 : index
    %585 = memref.load %arg2[%c136] : memref<144xf32, #tpu.memory_space<smem>>
    %586 = vector.broadcast %585 : f32 to vector<18x38xf32>
    %587 = arith.mulf %586, %572 : vector<18x38xf32>
    %588 = arith.addf %570, %587 : vector<18x38xf32>
    %c3_152 = arith.constant 3 : index
    %c0_153 = arith.constant 0 : index
    %c2_154 = arith.constant 2 : index
    %589 = vector.load %arg7[%c3_152, %c0_153, %c2_154] : memref<4x20x40xf32, #tpu.memory_space<vmem>>, vector<1x18x38xf32>
    %590 = vector.shape_cast %589 : vector<1x18x38xf32> to vector<18x38xf32>
    %c29 = arith.constant 29 : index
    %591 = memref.load %arg2[%c29] : memref<144xf32, #tpu.memory_space<smem>>
    %592 = vector.broadcast %591 : f32 to vector<18x38xf32>
    %593 = arith.mulf %592, %590 : vector<18x38xf32>
    %594 = arith.addf %576, %593 : vector<18x38xf32>
    %c65 = arith.constant 65 : index
    %595 = memref.load %arg2[%c65] : memref<144xf32, #tpu.memory_space<smem>>
    %596 = vector.broadcast %595 : f32 to vector<18x38xf32>
    %597 = arith.mulf %596, %590 : vector<18x38xf32>
    %598 = arith.addf %580, %597 : vector<18x38xf32>
    %c101 = arith.constant 101 : index
    %599 = memref.load %arg2[%c101] : memref<144xf32, #tpu.memory_space<smem>>
    %600 = vector.broadcast %599 : f32 to vector<18x38xf32>
    %601 = arith.mulf %600, %590 : vector<18x38xf32>
    %602 = arith.addf %584, %601 : vector<18x38xf32>
    %c137 = arith.constant 137 : index
    %603 = memref.load %arg2[%c137] : memref<144xf32, #tpu.memory_space<smem>>
    %604 = vector.broadcast %603 : f32 to vector<18x38xf32>
    %605 = arith.mulf %604, %590 : vector<18x38xf32>
    %606 = arith.addf %588, %605 : vector<18x38xf32>
    %c3_155 = arith.constant 3 : index
    %c1_156 = arith.constant 1 : index
    %c0_157 = arith.constant 0 : index
    %607 = vector.load %arg7[%c3_155, %c1_156, %c0_157] : memref<4x20x40xf32, #tpu.memory_space<vmem>>, vector<1x18x38xf32>
    %608 = vector.shape_cast %607 : vector<1x18x38xf32> to vector<18x38xf32>
    %c30 = arith.constant 30 : index
    %609 = memref.load %arg2[%c30] : memref<144xf32, #tpu.memory_space<smem>>
    %610 = vector.broadcast %609 : f32 to vector<18x38xf32>
    %611 = arith.mulf %610, %608 : vector<18x38xf32>
    %612 = arith.addf %594, %611 : vector<18x38xf32>
    %c66 = arith.constant 66 : index
    %613 = memref.load %arg2[%c66] : memref<144xf32, #tpu.memory_space<smem>>
    %614 = vector.broadcast %613 : f32 to vector<18x38xf32>
    %615 = arith.mulf %614, %608 : vector<18x38xf32>
    %616 = arith.addf %598, %615 : vector<18x38xf32>
    %c102 = arith.constant 102 : index
    %617 = memref.load %arg2[%c102] : memref<144xf32, #tpu.memory_space<smem>>
    %618 = vector.broadcast %617 : f32 to vector<18x38xf32>
    %619 = arith.mulf %618, %608 : vector<18x38xf32>
    %620 = arith.addf %602, %619 : vector<18x38xf32>
    %c138 = arith.constant 138 : index
    %621 = memref.load %arg2[%c138] : memref<144xf32, #tpu.memory_space<smem>>
    %622 = vector.broadcast %621 : f32 to vector<18x38xf32>
    %623 = arith.mulf %622, %608 : vector<18x38xf32>
    %624 = arith.addf %606, %623 : vector<18x38xf32>
    %c3_158 = arith.constant 3 : index
    %c1_159 = arith.constant 1 : index
    %c1_160 = arith.constant 1 : index
    %625 = vector.load %arg7[%c3_158, %c1_159, %c1_160] : memref<4x20x40xf32, #tpu.memory_space<vmem>>, vector<1x18x38xf32>
    %626 = vector.shape_cast %625 : vector<1x18x38xf32> to vector<18x38xf32>
    %c31 = arith.constant 31 : index
    %627 = memref.load %arg2[%c31] : memref<144xf32, #tpu.memory_space<smem>>
    %628 = vector.broadcast %627 : f32 to vector<18x38xf32>
    %629 = arith.mulf %628, %626 : vector<18x38xf32>
    %630 = arith.addf %612, %629 : vector<18x38xf32>
    %c67 = arith.constant 67 : index
    %631 = memref.load %arg2[%c67] : memref<144xf32, #tpu.memory_space<smem>>
    %632 = vector.broadcast %631 : f32 to vector<18x38xf32>
    %633 = arith.mulf %632, %626 : vector<18x38xf32>
    %634 = arith.addf %616, %633 : vector<18x38xf32>
    %c103 = arith.constant 103 : index
    %635 = memref.load %arg2[%c103] : memref<144xf32, #tpu.memory_space<smem>>
    %636 = vector.broadcast %635 : f32 to vector<18x38xf32>
    %637 = arith.mulf %636, %626 : vector<18x38xf32>
    %638 = arith.addf %620, %637 : vector<18x38xf32>
    %c139 = arith.constant 139 : index
    %639 = memref.load %arg2[%c139] : memref<144xf32, #tpu.memory_space<smem>>
    %640 = vector.broadcast %639 : f32 to vector<18x38xf32>
    %641 = arith.mulf %640, %626 : vector<18x38xf32>
    %642 = arith.addf %624, %641 : vector<18x38xf32>
    %c3_161 = arith.constant 3 : index
    %c1_162 = arith.constant 1 : index
    %c2_163 = arith.constant 2 : index
    %643 = vector.load %arg7[%c3_161, %c1_162, %c2_163] : memref<4x20x40xf32, #tpu.memory_space<vmem>>, vector<1x18x38xf32>
    %644 = vector.shape_cast %643 : vector<1x18x38xf32> to vector<18x38xf32>
    %c32 = arith.constant 32 : index
    %645 = memref.load %arg2[%c32] : memref<144xf32, #tpu.memory_space<smem>>
    %646 = vector.broadcast %645 : f32 to vector<18x38xf32>
    %647 = arith.mulf %646, %644 : vector<18x38xf32>
    %648 = arith.addf %630, %647 : vector<18x38xf32>
    %c68 = arith.constant 68 : index
    %649 = memref.load %arg2[%c68] : memref<144xf32, #tpu.memory_space<smem>>
    %650 = vector.broadcast %649 : f32 to vector<18x38xf32>
    %651 = arith.mulf %650, %644 : vector<18x38xf32>
    %652 = arith.addf %634, %651 : vector<18x38xf32>
    %c104 = arith.constant 104 : index
    %653 = memref.load %arg2[%c104] : memref<144xf32, #tpu.memory_space<smem>>
    %654 = vector.broadcast %653 : f32 to vector<18x38xf32>
    %655 = arith.mulf %654, %644 : vector<18x38xf32>
    %656 = arith.addf %638, %655 : vector<18x38xf32>
    %c140 = arith.constant 140 : index
    %657 = memref.load %arg2[%c140] : memref<144xf32, #tpu.memory_space<smem>>
    %658 = vector.broadcast %657 : f32 to vector<18x38xf32>
    %659 = arith.mulf %658, %644 : vector<18x38xf32>
    %660 = arith.addf %642, %659 : vector<18x38xf32>
    %c3_164 = arith.constant 3 : index
    %c2_165 = arith.constant 2 : index
    %c0_166 = arith.constant 0 : index
    %661 = vector.load %arg7[%c3_164, %c2_165, %c0_166] : memref<4x20x40xf32, #tpu.memory_space<vmem>>, vector<1x18x38xf32>
    %662 = vector.shape_cast %661 : vector<1x18x38xf32> to vector<18x38xf32>
    %c33 = arith.constant 33 : index
    %663 = memref.load %arg2[%c33] : memref<144xf32, #tpu.memory_space<smem>>
    %664 = vector.broadcast %663 : f32 to vector<18x38xf32>
    %665 = arith.mulf %664, %662 : vector<18x38xf32>
    %666 = arith.addf %648, %665 : vector<18x38xf32>
    %c69 = arith.constant 69 : index
    %667 = memref.load %arg2[%c69] : memref<144xf32, #tpu.memory_space<smem>>
    %668 = vector.broadcast %667 : f32 to vector<18x38xf32>
    %669 = arith.mulf %668, %662 : vector<18x38xf32>
    %670 = arith.addf %652, %669 : vector<18x38xf32>
    %c105 = arith.constant 105 : index
    %671 = memref.load %arg2[%c105] : memref<144xf32, #tpu.memory_space<smem>>
    %672 = vector.broadcast %671 : f32 to vector<18x38xf32>
    %673 = arith.mulf %672, %662 : vector<18x38xf32>
    %674 = arith.addf %656, %673 : vector<18x38xf32>
    %c141 = arith.constant 141 : index
    %675 = memref.load %arg2[%c141] : memref<144xf32, #tpu.memory_space<smem>>
    %676 = vector.broadcast %675 : f32 to vector<18x38xf32>
    %677 = arith.mulf %676, %662 : vector<18x38xf32>
    %678 = arith.addf %660, %677 : vector<18x38xf32>
    %c3_167 = arith.constant 3 : index
    %c2_168 = arith.constant 2 : index
    %c1_169 = arith.constant 1 : index
    %679 = vector.load %arg7[%c3_167, %c2_168, %c1_169] : memref<4x20x40xf32, #tpu.memory_space<vmem>>, vector<1x18x38xf32>
    %680 = vector.shape_cast %679 : vector<1x18x38xf32> to vector<18x38xf32>
    %c34 = arith.constant 34 : index
    %681 = memref.load %arg2[%c34] : memref<144xf32, #tpu.memory_space<smem>>
    %682 = vector.broadcast %681 : f32 to vector<18x38xf32>
    %683 = arith.mulf %682, %680 : vector<18x38xf32>
    %684 = arith.addf %666, %683 : vector<18x38xf32>
    %c70 = arith.constant 70 : index
    %685 = memref.load %arg2[%c70] : memref<144xf32, #tpu.memory_space<smem>>
    %686 = vector.broadcast %685 : f32 to vector<18x38xf32>
    %687 = arith.mulf %686, %680 : vector<18x38xf32>
    %688 = arith.addf %670, %687 : vector<18x38xf32>
    %c106 = arith.constant 106 : index
    %689 = memref.load %arg2[%c106] : memref<144xf32, #tpu.memory_space<smem>>
    %690 = vector.broadcast %689 : f32 to vector<18x38xf32>
    %691 = arith.mulf %690, %680 : vector<18x38xf32>
    %692 = arith.addf %674, %691 : vector<18x38xf32>
    %c142 = arith.constant 142 : index
    %693 = memref.load %arg2[%c142] : memref<144xf32, #tpu.memory_space<smem>>
    %694 = vector.broadcast %693 : f32 to vector<18x38xf32>
    %695 = arith.mulf %694, %680 : vector<18x38xf32>
    %696 = arith.addf %678, %695 : vector<18x38xf32>
    %c3_170 = arith.constant 3 : index
    %c2_171 = arith.constant 2 : index
    %c2_172 = arith.constant 2 : index
    %697 = vector.load %arg7[%c3_170, %c2_171, %c2_172] : memref<4x20x40xf32, #tpu.memory_space<vmem>>, vector<1x18x38xf32>
    %698 = vector.shape_cast %697 : vector<1x18x38xf32> to vector<18x38xf32>
    %c35 = arith.constant 35 : index
    %699 = memref.load %arg2[%c35] : memref<144xf32, #tpu.memory_space<smem>>
    %700 = vector.broadcast %699 : f32 to vector<18x38xf32>
    %701 = arith.mulf %700, %698 : vector<18x38xf32>
    %702 = arith.addf %684, %701 : vector<18x38xf32>
    %c71 = arith.constant 71 : index
    %703 = memref.load %arg2[%c71] : memref<144xf32, #tpu.memory_space<smem>>
    %704 = vector.broadcast %703 : f32 to vector<18x38xf32>
    %705 = arith.mulf %704, %698 : vector<18x38xf32>
    %706 = arith.addf %688, %705 : vector<18x38xf32>
    %c107 = arith.constant 107 : index
    %707 = memref.load %arg2[%c107] : memref<144xf32, #tpu.memory_space<smem>>
    %708 = vector.broadcast %707 : f32 to vector<18x38xf32>
    %709 = arith.mulf %708, %698 : vector<18x38xf32>
    %710 = arith.addf %692, %709 : vector<18x38xf32>
    %c143 = arith.constant 143 : index
    %711 = memref.load %arg2[%c143] : memref<144xf32, #tpu.memory_space<smem>>
    %712 = vector.broadcast %711 : f32 to vector<18x38xf32>
    %713 = arith.mulf %712, %698 : vector<18x38xf32>
    %714 = arith.addf %696, %713 : vector<18x38xf32>
    %c0_173 = arith.constant 0 : index
    %715 = memref.load %arg3[%c0_173] : memref<4xf32, #tpu.memory_space<smem>>
    %716 = vector.broadcast %715 : f32 to vector<18x38xf32>
    %717 = arith.addf %702, %716 : vector<18x38xf32>
    %cst_174 = arith.constant 0.000000e+00 : f32
    %718 = vector.broadcast %cst_174 : f32 to vector<18x38xf32>
    %719 = arith.maximumf %717, %718 : vector<18x38xf32>
    %720 = arith.mulf %719, %62 : vector<18x38xf32>
    %c0_175 = arith.constant 0 : index
    %c1_176 = arith.constant 1 : index
    %c1_177 = arith.constant 1 : index
    %721 = vector.load %arg8[%c0_175, %c1_176, %c1_177] : memref<4x20x40xf32, #tpu.memory_space<vmem>>, vector<1x18x38xf32>
    %722 = vector.shape_cast %721 : vector<1x18x38xf32> to vector<18x38xf32>
    %723 = vector.shape_cast %720 : vector<18x38xf32> to vector<1x18x38xf32>
    tpu.vector_store %arg8[%c0_175, %c1_176, %c1_177], %723 {strides = array<i32>} : memref<4x20x40xf32, #tpu.memory_space<vmem>>, vector<1x18x38xf32>,
    %c1_178 = arith.constant 1 : index
    %724 = memref.load %arg3[%c1_178] : memref<4xf32, #tpu.memory_space<smem>>
    %725 = vector.broadcast %724 : f32 to vector<18x38xf32>
    %726 = arith.addf %706, %725 : vector<18x38xf32>
    %cst_179 = arith.constant 0.000000e+00 : f32
    %727 = vector.broadcast %cst_179 : f32 to vector<18x38xf32>
    %728 = arith.maximumf %726, %727 : vector<18x38xf32>
    %729 = arith.mulf %728, %62 : vector<18x38xf32>
    %c1_180 = arith.constant 1 : index
    %c1_181 = arith.constant 1 : index
    %c1_182 = arith.constant 1 : index
    %730 = vector.load %arg8[%c1_180, %c1_181, %c1_182] : memref<4x20x40xf32, #tpu.memory_space<vmem>>, vector<1x18x38xf32>
    %731 = vector.shape_cast %730 : vector<1x18x38xf32> to vector<18x38xf32>
    %732 = vector.shape_cast %729 : vector<18x38xf32> to vector<1x18x38xf32>
    tpu.vector_store %arg8[%c1_180, %c1_181, %c1_182], %732 {strides = array<i32>} : memref<4x20x40xf32, #tpu.memory_space<vmem>>, vector<1x18x38xf32>,
    %c2_183 = arith.constant 2 : index
    %733 = memref.load %arg3[%c2_183] : memref<4xf32, #tpu.memory_space<smem>>
    %734 = vector.broadcast %733 : f32 to vector<18x38xf32>
    %735 = arith.addf %710, %734 : vector<18x38xf32>
    %cst_184 = arith.constant 0.000000e+00 : f32
    %736 = vector.broadcast %cst_184 : f32 to vector<18x38xf32>
    %737 = arith.maximumf %735, %736 : vector<18x38xf32>
    %738 = arith.mulf %737, %62 : vector<18x38xf32>
    %c2_185 = arith.constant 2 : index
    %c1_186 = arith.constant 1 : index
    %c1_187 = arith.constant 1 : index
    %739 = vector.load %arg8[%c2_185, %c1_186, %c1_187] : memref<4x20x40xf32, #tpu.memory_space<vmem>>, vector<1x18x38xf32>
    %740 = vector.shape_cast %739 : vector<1x18x38xf32> to vector<18x38xf32>
    %741 = vector.shape_cast %738 : vector<18x38xf32> to vector<1x18x38xf32>
    tpu.vector_store %arg8[%c2_185, %c1_186, %c1_187], %741 {strides = array<i32>} : memref<4x20x40xf32, #tpu.memory_space<vmem>>, vector<1x18x38xf32>,
    %c3_188 = arith.constant 3 : index
    %742 = memref.load %arg3[%c3_188] : memref<4xf32, #tpu.memory_space<smem>>
    %743 = vector.broadcast %742 : f32 to vector<18x38xf32>
    %744 = arith.addf %714, %743 : vector<18x38xf32>
    %cst_189 = arith.constant 0.000000e+00 : f32
    %745 = vector.broadcast %cst_189 : f32 to vector<18x38xf32>
    %746 = arith.maximumf %744, %745 : vector<18x38xf32>
    %747 = arith.mulf %746, %62 : vector<18x38xf32>
    %c3_190 = arith.constant 3 : index
    %c1_191 = arith.constant 1 : index
    %c1_192 = arith.constant 1 : index
    %748 = vector.load %arg8[%c3_190, %c1_191, %c1_192] : memref<4x20x40xf32, #tpu.memory_space<vmem>>, vector<1x18x38xf32>
    %749 = vector.shape_cast %748 : vector<1x18x38xf32> to vector<18x38xf32>
    %750 = vector.shape_cast %747 : vector<18x38xf32> to vector<1x18x38xf32>
    tpu.vector_store %arg8[%c3_190, %c1_191, %c1_192], %750 {strides = array<i32>} : memref<4x20x40xf32, #tpu.memory_space<vmem>>, vector<1x18x38xf32>,
    %cst_193 = arith.constant 0.000000e+00 : f32
    %751 = vector.broadcast %cst_193 : f32 to vector<16x36xf32>
    %cst_194 = arith.constant 0.000000e+00 : f32
    %752 = vector.broadcast %cst_194 : f32 to vector<16x36xf32>
    %cst_195 = arith.constant 0.000000e+00 : f32
    %753 = vector.broadcast %cst_195 : f32 to vector<16x36xf32>
    %cst_196 = arith.constant 0.000000e+00 : f32
    %754 = vector.broadcast %cst_196 : f32 to vector<16x36xf32>
    %c0_197 = arith.constant 0 : index
    %c1_198 = arith.constant 1 : index
    %c1_199 = arith.constant 1 : index
    %755 = vector.load %arg8[%c0_197, %c1_198, %c1_199] : memref<4x20x40xf32, #tpu.memory_space<vmem>>, vector<1x16x36xf32>
    %756 = vector.shape_cast %755 : vector<1x16x36xf32> to vector<16x36xf32>
    %c0_200 = arith.constant 0 : index
    %757 = memref.load %arg4[%c0_200] : memref<144xf32, #tpu.memory_space<smem>>
    %758 = vector.broadcast %757 : f32 to vector<16x36xf32>
    %759 = arith.mulf %758, %756 : vector<16x36xf32>
    %760 = arith.addf %751, %759 : vector<16x36xf32>
    %c36_201 = arith.constant 36 : index
    %761 = memref.load %arg4[%c36_201] : memref<144xf32, #tpu.memory_space<smem>>
    %762 = vector.broadcast %761 : f32 to vector<16x36xf32>
    %763 = arith.mulf %762, %756 : vector<16x36xf32>
    %764 = arith.addf %752, %763 : vector<16x36xf32>
    %c72_202 = arith.constant 72 : index
    %765 = memref.load %arg4[%c72_202] : memref<144xf32, #tpu.memory_space<smem>>
    %766 = vector.broadcast %765 : f32 to vector<16x36xf32>
    %767 = arith.mulf %766, %756 : vector<16x36xf32>
    %768 = arith.addf %753, %767 : vector<16x36xf32>
    %c108_203 = arith.constant 108 : index
    %769 = memref.load %arg4[%c108_203] : memref<144xf32, #tpu.memory_space<smem>>
    %770 = vector.broadcast %769 : f32 to vector<16x36xf32>
    %771 = arith.mulf %770, %756 : vector<16x36xf32>
    %772 = arith.addf %754, %771 : vector<16x36xf32>
    %c0_204 = arith.constant 0 : index
    %c1_205 = arith.constant 1 : index
    %c2_206 = arith.constant 2 : index
    %773 = vector.load %arg8[%c0_204, %c1_205, %c2_206] : memref<4x20x40xf32, #tpu.memory_space<vmem>>, vector<1x16x36xf32>
    %774 = vector.shape_cast %773 : vector<1x16x36xf32> to vector<16x36xf32>
    %c1_207 = arith.constant 1 : index
    %775 = memref.load %arg4[%c1_207] : memref<144xf32, #tpu.memory_space<smem>>
    %776 = vector.broadcast %775 : f32 to vector<16x36xf32>
    %777 = arith.mulf %776, %774 : vector<16x36xf32>
    %778 = arith.addf %760, %777 : vector<16x36xf32>
    %c37_208 = arith.constant 37 : index
    %779 = memref.load %arg4[%c37_208] : memref<144xf32, #tpu.memory_space<smem>>
    %780 = vector.broadcast %779 : f32 to vector<16x36xf32>
    %781 = arith.mulf %780, %774 : vector<16x36xf32>
    %782 = arith.addf %764, %781 : vector<16x36xf32>
    %c73_209 = arith.constant 73 : index
    %783 = memref.load %arg4[%c73_209] : memref<144xf32, #tpu.memory_space<smem>>
    %784 = vector.broadcast %783 : f32 to vector<16x36xf32>
    %785 = arith.mulf %784, %774 : vector<16x36xf32>
    %786 = arith.addf %768, %785 : vector<16x36xf32>
    %c109_210 = arith.constant 109 : index
    %787 = memref.load %arg4[%c109_210] : memref<144xf32, #tpu.memory_space<smem>>
    %788 = vector.broadcast %787 : f32 to vector<16x36xf32>
    %789 = arith.mulf %788, %774 : vector<16x36xf32>
    %790 = arith.addf %772, %789 : vector<16x36xf32>
    %c0_211 = arith.constant 0 : index
    %c1_212 = arith.constant 1 : index
    %c3_213 = arith.constant 3 : index
    %791 = vector.load %arg8[%c0_211, %c1_212, %c3_213] : memref<4x20x40xf32, #tpu.memory_space<vmem>>, vector<1x16x36xf32>
    %792 = vector.shape_cast %791 : vector<1x16x36xf32> to vector<16x36xf32>
    %c2_214 = arith.constant 2 : index
    %793 = memref.load %arg4[%c2_214] : memref<144xf32, #tpu.memory_space<smem>>
    %794 = vector.broadcast %793 : f32 to vector<16x36xf32>
    %795 = arith.mulf %794, %792 : vector<16x36xf32>
    %796 = arith.addf %778, %795 : vector<16x36xf32>
    %c38_215 = arith.constant 38 : index
    %797 = memref.load %arg4[%c38_215] : memref<144xf32, #tpu.memory_space<smem>>
    %798 = vector.broadcast %797 : f32 to vector<16x36xf32>
    %799 = arith.mulf %798, %792 : vector<16x36xf32>
    %800 = arith.addf %782, %799 : vector<16x36xf32>
    %c74_216 = arith.constant 74 : index
    %801 = memref.load %arg4[%c74_216] : memref<144xf32, #tpu.memory_space<smem>>
    %802 = vector.broadcast %801 : f32 to vector<16x36xf32>
    %803 = arith.mulf %802, %792 : vector<16x36xf32>
    %804 = arith.addf %786, %803 : vector<16x36xf32>
    %c110_217 = arith.constant 110 : index
    %805 = memref.load %arg4[%c110_217] : memref<144xf32, #tpu.memory_space<smem>>
    %806 = vector.broadcast %805 : f32 to vector<16x36xf32>
    %807 = arith.mulf %806, %792 : vector<16x36xf32>
    %808 = arith.addf %790, %807 : vector<16x36xf32>
    %c0_218 = arith.constant 0 : index
    %c2_219 = arith.constant 2 : index
    %c1_220 = arith.constant 1 : index
    %809 = vector.load %arg8[%c0_218, %c2_219, %c1_220] : memref<4x20x40xf32, #tpu.memory_space<vmem>>, vector<1x16x36xf32>
    %810 = vector.shape_cast %809 : vector<1x16x36xf32> to vector<16x36xf32>
    %c3_221 = arith.constant 3 : index
    %811 = memref.load %arg4[%c3_221] : memref<144xf32, #tpu.memory_space<smem>>
    %812 = vector.broadcast %811 : f32 to vector<16x36xf32>
    %813 = arith.mulf %812, %810 : vector<16x36xf32>
    %814 = arith.addf %796, %813 : vector<16x36xf32>
    %c39_222 = arith.constant 39 : index
    %815 = memref.load %arg4[%c39_222] : memref<144xf32, #tpu.memory_space<smem>>
    %816 = vector.broadcast %815 : f32 to vector<16x36xf32>
    %817 = arith.mulf %816, %810 : vector<16x36xf32>
    %818 = arith.addf %800, %817 : vector<16x36xf32>
    %c75_223 = arith.constant 75 : index
    %819 = memref.load %arg4[%c75_223] : memref<144xf32, #tpu.memory_space<smem>>
    %820 = vector.broadcast %819 : f32 to vector<16x36xf32>
    %821 = arith.mulf %820, %810 : vector<16x36xf32>
    %822 = arith.addf %804, %821 : vector<16x36xf32>
    %c111_224 = arith.constant 111 : index
    %823 = memref.load %arg4[%c111_224] : memref<144xf32, #tpu.memory_space<smem>>
    %824 = vector.broadcast %823 : f32 to vector<16x36xf32>
    %825 = arith.mulf %824, %810 : vector<16x36xf32>
    %826 = arith.addf %808, %825 : vector<16x36xf32>
    %c0_225 = arith.constant 0 : index
    %c2_226 = arith.constant 2 : index
    %c2_227 = arith.constant 2 : index
    %827 = vector.load %arg8[%c0_225, %c2_226, %c2_227] : memref<4x20x40xf32, #tpu.memory_space<vmem>>, vector<1x16x36xf32>
    %828 = vector.shape_cast %827 : vector<1x16x36xf32> to vector<16x36xf32>
    %c4_228 = arith.constant 4 : index
    %829 = memref.load %arg4[%c4_228] : memref<144xf32, #tpu.memory_space<smem>>
    %830 = vector.broadcast %829 : f32 to vector<16x36xf32>
    %831 = arith.mulf %830, %828 : vector<16x36xf32>
    %832 = arith.addf %814, %831 : vector<16x36xf32>
    %c40_229 = arith.constant 40 : index
    %833 = memref.load %arg4[%c40_229] : memref<144xf32, #tpu.memory_space<smem>>
    %834 = vector.broadcast %833 : f32 to vector<16x36xf32>
    %835 = arith.mulf %834, %828 : vector<16x36xf32>
    %836 = arith.addf %818, %835 : vector<16x36xf32>
    %c76_230 = arith.constant 76 : index
    %837 = memref.load %arg4[%c76_230] : memref<144xf32, #tpu.memory_space<smem>>
    %838 = vector.broadcast %837 : f32 to vector<16x36xf32>
    %839 = arith.mulf %838, %828 : vector<16x36xf32>
    %840 = arith.addf %822, %839 : vector<16x36xf32>
    %c112_231 = arith.constant 112 : index
    %841 = memref.load %arg4[%c112_231] : memref<144xf32, #tpu.memory_space<smem>>
    %842 = vector.broadcast %841 : f32 to vector<16x36xf32>
    %843 = arith.mulf %842, %828 : vector<16x36xf32>
    %844 = arith.addf %826, %843 : vector<16x36xf32>
    %c0_232 = arith.constant 0 : index
    %c2_233 = arith.constant 2 : index
    %c3_234 = arith.constant 3 : index
    %845 = vector.load %arg8[%c0_232, %c2_233, %c3_234] : memref<4x20x40xf32, #tpu.memory_space<vmem>>, vector<1x16x36xf32>
    %846 = vector.shape_cast %845 : vector<1x16x36xf32> to vector<16x36xf32>
    %c5_235 = arith.constant 5 : index
    %847 = memref.load %arg4[%c5_235] : memref<144xf32, #tpu.memory_space<smem>>
    %848 = vector.broadcast %847 : f32 to vector<16x36xf32>
    %849 = arith.mulf %848, %846 : vector<16x36xf32>
    %850 = arith.addf %832, %849 : vector<16x36xf32>
    %c41_236 = arith.constant 41 : index
    %851 = memref.load %arg4[%c41_236] : memref<144xf32, #tpu.memory_space<smem>>
    %852 = vector.broadcast %851 : f32 to vector<16x36xf32>
    %853 = arith.mulf %852, %846 : vector<16x36xf32>
    %854 = arith.addf %836, %853 : vector<16x36xf32>
    %c77_237 = arith.constant 77 : index
    %855 = memref.load %arg4[%c77_237] : memref<144xf32, #tpu.memory_space<smem>>
    %856 = vector.broadcast %855 : f32 to vector<16x36xf32>
    %857 = arith.mulf %856, %846 : vector<16x36xf32>
    %858 = arith.addf %840, %857 : vector<16x36xf32>
    %c113_238 = arith.constant 113 : index
    %859 = memref.load %arg4[%c113_238] : memref<144xf32, #tpu.memory_space<smem>>
    %860 = vector.broadcast %859 : f32 to vector<16x36xf32>
    %861 = arith.mulf %860, %846 : vector<16x36xf32>
    %862 = arith.addf %844, %861 : vector<16x36xf32>
    %c0_239 = arith.constant 0 : index
    %c3_240 = arith.constant 3 : index
    %c1_241 = arith.constant 1 : index
    %863 = vector.load %arg8[%c0_239, %c3_240, %c1_241] : memref<4x20x40xf32, #tpu.memory_space<vmem>>, vector<1x16x36xf32>
    %864 = vector.shape_cast %863 : vector<1x16x36xf32> to vector<16x36xf32>
    %c6_242 = arith.constant 6 : index
    %865 = memref.load %arg4[%c6_242] : memref<144xf32, #tpu.memory_space<smem>>
    %866 = vector.broadcast %865 : f32 to vector<16x36xf32>
    %867 = arith.mulf %866, %864 : vector<16x36xf32>
    %868 = arith.addf %850, %867 : vector<16x36xf32>
    %c42_243 = arith.constant 42 : index
    %869 = memref.load %arg4[%c42_243] : memref<144xf32, #tpu.memory_space<smem>>
    %870 = vector.broadcast %869 : f32 to vector<16x36xf32>
    %871 = arith.mulf %870, %864 : vector<16x36xf32>
    %872 = arith.addf %854, %871 : vector<16x36xf32>
    %c78_244 = arith.constant 78 : index
    %873 = memref.load %arg4[%c78_244] : memref<144xf32, #tpu.memory_space<smem>>
    %874 = vector.broadcast %873 : f32 to vector<16x36xf32>
    %875 = arith.mulf %874, %864 : vector<16x36xf32>
    %876 = arith.addf %858, %875 : vector<16x36xf32>
    %c114_245 = arith.constant 114 : index
    %877 = memref.load %arg4[%c114_245] : memref<144xf32, #tpu.memory_space<smem>>
    %878 = vector.broadcast %877 : f32 to vector<16x36xf32>
    %879 = arith.mulf %878, %864 : vector<16x36xf32>
    %880 = arith.addf %862, %879 : vector<16x36xf32>
    %c0_246 = arith.constant 0 : index
    %c3_247 = arith.constant 3 : index
    %c2_248 = arith.constant 2 : index
    %881 = vector.load %arg8[%c0_246, %c3_247, %c2_248] : memref<4x20x40xf32, #tpu.memory_space<vmem>>, vector<1x16x36xf32>
    %882 = vector.shape_cast %881 : vector<1x16x36xf32> to vector<16x36xf32>
    %c7_249 = arith.constant 7 : index
    %883 = memref.load %arg4[%c7_249] : memref<144xf32, #tpu.memory_space<smem>>
    %884 = vector.broadcast %883 : f32 to vector<16x36xf32>
    %885 = arith.mulf %884, %882 : vector<16x36xf32>
    %886 = arith.addf %868, %885 : vector<16x36xf32>
    %c43_250 = arith.constant 43 : index
    %887 = memref.load %arg4[%c43_250] : memref<144xf32, #tpu.memory_space<smem>>
    %888 = vector.broadcast %887 : f32 to vector<16x36xf32>
    %889 = arith.mulf %888, %882 : vector<16x36xf32>
    %890 = arith.addf %872, %889 : vector<16x36xf32>
    %c79_251 = arith.constant 79 : index
    %891 = memref.load %arg4[%c79_251] : memref<144xf32, #tpu.memory_space<smem>>
    %892 = vector.broadcast %891 : f32 to vector<16x36xf32>
    %893 = arith.mulf %892, %882 : vector<16x36xf32>
    %894 = arith.addf %876, %893 : vector<16x36xf32>
    %c115_252 = arith.constant 115 : index
    %895 = memref.load %arg4[%c115_252] : memref<144xf32, #tpu.memory_space<smem>>
    %896 = vector.broadcast %895 : f32 to vector<16x36xf32>
    %897 = arith.mulf %896, %882 : vector<16x36xf32>
    %898 = arith.addf %880, %897 : vector<16x36xf32>
    %c0_253 = arith.constant 0 : index
    %c3_254 = arith.constant 3 : index
    %c3_255 = arith.constant 3 : index
    %899 = vector.load %arg8[%c0_253, %c3_254, %c3_255] : memref<4x20x40xf32, #tpu.memory_space<vmem>>, vector<1x16x36xf32>
    %900 = vector.shape_cast %899 : vector<1x16x36xf32> to vector<16x36xf32>
    %c8_256 = arith.constant 8 : index
    %901 = memref.load %arg4[%c8_256] : memref<144xf32, #tpu.memory_space<smem>>
    %902 = vector.broadcast %901 : f32 to vector<16x36xf32>
    %903 = arith.mulf %902, %900 : vector<16x36xf32>
    %904 = arith.addf %886, %903 : vector<16x36xf32>
    %c44_257 = arith.constant 44 : index
    %905 = memref.load %arg4[%c44_257] : memref<144xf32, #tpu.memory_space<smem>>
    %906 = vector.broadcast %905 : f32 to vector<16x36xf32>
    %907 = arith.mulf %906, %900 : vector<16x36xf32>
    %908 = arith.addf %890, %907 : vector<16x36xf32>
    %c80_258 = arith.constant 80 : index
    %909 = memref.load %arg4[%c80_258] : memref<144xf32, #tpu.memory_space<smem>>
    %910 = vector.broadcast %909 : f32 to vector<16x36xf32>
    %911 = arith.mulf %910, %900 : vector<16x36xf32>
    %912 = arith.addf %894, %911 : vector<16x36xf32>
    %c116_259 = arith.constant 116 : index
    %913 = memref.load %arg4[%c116_259] : memref<144xf32, #tpu.memory_space<smem>>
    %914 = vector.broadcast %913 : f32 to vector<16x36xf32>
    %915 = arith.mulf %914, %900 : vector<16x36xf32>
    %916 = arith.addf %898, %915 : vector<16x36xf32>
    %c1_260 = arith.constant 1 : index
    %c1_261 = arith.constant 1 : index
    %c1_262 = arith.constant 1 : index
    %917 = vector.load %arg8[%c1_260, %c1_261, %c1_262] : memref<4x20x40xf32, #tpu.memory_space<vmem>>, vector<1x16x36xf32>
    %918 = vector.shape_cast %917 : vector<1x16x36xf32> to vector<16x36xf32>
    %c9_263 = arith.constant 9 : index
    %919 = memref.load %arg4[%c9_263] : memref<144xf32, #tpu.memory_space<smem>>
    %920 = vector.broadcast %919 : f32 to vector<16x36xf32>
    %921 = arith.mulf %920, %918 : vector<16x36xf32>
    %922 = arith.addf %904, %921 : vector<16x36xf32>
    %c45_264 = arith.constant 45 : index
    %923 = memref.load %arg4[%c45_264] : memref<144xf32, #tpu.memory_space<smem>>
    %924 = vector.broadcast %923 : f32 to vector<16x36xf32>
    %925 = arith.mulf %924, %918 : vector<16x36xf32>
    %926 = arith.addf %908, %925 : vector<16x36xf32>
    %c81_265 = arith.constant 81 : index
    %927 = memref.load %arg4[%c81_265] : memref<144xf32, #tpu.memory_space<smem>>
    %928 = vector.broadcast %927 : f32 to vector<16x36xf32>
    %929 = arith.mulf %928, %918 : vector<16x36xf32>
    %930 = arith.addf %912, %929 : vector<16x36xf32>
    %c117_266 = arith.constant 117 : index
    %931 = memref.load %arg4[%c117_266] : memref<144xf32, #tpu.memory_space<smem>>
    %932 = vector.broadcast %931 : f32 to vector<16x36xf32>
    %933 = arith.mulf %932, %918 : vector<16x36xf32>
    %934 = arith.addf %916, %933 : vector<16x36xf32>
    %c1_267 = arith.constant 1 : index
    %c1_268 = arith.constant 1 : index
    %c2_269 = arith.constant 2 : index
    %935 = vector.load %arg8[%c1_267, %c1_268, %c2_269] : memref<4x20x40xf32, #tpu.memory_space<vmem>>, vector<1x16x36xf32>
    %936 = vector.shape_cast %935 : vector<1x16x36xf32> to vector<16x36xf32>
    %c10_270 = arith.constant 10 : index
    %937 = memref.load %arg4[%c10_270] : memref<144xf32, #tpu.memory_space<smem>>
    %938 = vector.broadcast %937 : f32 to vector<16x36xf32>
    %939 = arith.mulf %938, %936 : vector<16x36xf32>
    %940 = arith.addf %922, %939 : vector<16x36xf32>
    %c46_271 = arith.constant 46 : index
    %941 = memref.load %arg4[%c46_271] : memref<144xf32, #tpu.memory_space<smem>>
    %942 = vector.broadcast %941 : f32 to vector<16x36xf32>
    %943 = arith.mulf %942, %936 : vector<16x36xf32>
    %944 = arith.addf %926, %943 : vector<16x36xf32>
    %c82_272 = arith.constant 82 : index
    %945 = memref.load %arg4[%c82_272] : memref<144xf32, #tpu.memory_space<smem>>
    %946 = vector.broadcast %945 : f32 to vector<16x36xf32>
    %947 = arith.mulf %946, %936 : vector<16x36xf32>
    %948 = arith.addf %930, %947 : vector<16x36xf32>
    %c118_273 = arith.constant 118 : index
    %949 = memref.load %arg4[%c118_273] : memref<144xf32, #tpu.memory_space<smem>>
    %950 = vector.broadcast %949 : f32 to vector<16x36xf32>
    %951 = arith.mulf %950, %936 : vector<16x36xf32>
    %952 = arith.addf %934, %951 : vector<16x36xf32>
    %c1_274 = arith.constant 1 : index
    %c1_275 = arith.constant 1 : index
    %c3_276 = arith.constant 3 : index
    %953 = vector.load %arg8[%c1_274, %c1_275, %c3_276] : memref<4x20x40xf32, #tpu.memory_space<vmem>>, vector<1x16x36xf32>
    %954 = vector.shape_cast %953 : vector<1x16x36xf32> to vector<16x36xf32>
    %c11_277 = arith.constant 11 : index
    %955 = memref.load %arg4[%c11_277] : memref<144xf32, #tpu.memory_space<smem>>
    %956 = vector.broadcast %955 : f32 to vector<16x36xf32>
    %957 = arith.mulf %956, %954 : vector<16x36xf32>
    %958 = arith.addf %940, %957 : vector<16x36xf32>
    %c47_278 = arith.constant 47 : index
    %959 = memref.load %arg4[%c47_278] : memref<144xf32, #tpu.memory_space<smem>>
    %960 = vector.broadcast %959 : f32 to vector<16x36xf32>
    %961 = arith.mulf %960, %954 : vector<16x36xf32>
    %962 = arith.addf %944, %961 : vector<16x36xf32>
    %c83_279 = arith.constant 83 : index
    %963 = memref.load %arg4[%c83_279] : memref<144xf32, #tpu.memory_space<smem>>
    %964 = vector.broadcast %963 : f32 to vector<16x36xf32>
    %965 = arith.mulf %964, %954 : vector<16x36xf32>
    %966 = arith.addf %948, %965 : vector<16x36xf32>
    %c119_280 = arith.constant 119 : index
    %967 = memref.load %arg4[%c119_280] : memref<144xf32, #tpu.memory_space<smem>>
    %968 = vector.broadcast %967 : f32 to vector<16x36xf32>
    %969 = arith.mulf %968, %954 : vector<16x36xf32>
    %970 = arith.addf %952, %969 : vector<16x36xf32>
    %c1_281 = arith.constant 1 : index
    %c2_282 = arith.constant 2 : index
    %c1_283 = arith.constant 1 : index
    %971 = vector.load %arg8[%c1_281, %c2_282, %c1_283] : memref<4x20x40xf32, #tpu.memory_space<vmem>>, vector<1x16x36xf32>
    %972 = vector.shape_cast %971 : vector<1x16x36xf32> to vector<16x36xf32>
    %c12_284 = arith.constant 12 : index
    %973 = memref.load %arg4[%c12_284] : memref<144xf32, #tpu.memory_space<smem>>
    %974 = vector.broadcast %973 : f32 to vector<16x36xf32>
    %975 = arith.mulf %974, %972 : vector<16x36xf32>
    %976 = arith.addf %958, %975 : vector<16x36xf32>
    %c48_285 = arith.constant 48 : index
    %977 = memref.load %arg4[%c48_285] : memref<144xf32, #tpu.memory_space<smem>>
    %978 = vector.broadcast %977 : f32 to vector<16x36xf32>
    %979 = arith.mulf %978, %972 : vector<16x36xf32>
    %980 = arith.addf %962, %979 : vector<16x36xf32>
    %c84_286 = arith.constant 84 : index
    %981 = memref.load %arg4[%c84_286] : memref<144xf32, #tpu.memory_space<smem>>
    %982 = vector.broadcast %981 : f32 to vector<16x36xf32>
    %983 = arith.mulf %982, %972 : vector<16x36xf32>
    %984 = arith.addf %966, %983 : vector<16x36xf32>
    %c120_287 = arith.constant 120 : index
    %985 = memref.load %arg4[%c120_287] : memref<144xf32, #tpu.memory_space<smem>>
    %986 = vector.broadcast %985 : f32 to vector<16x36xf32>
    %987 = arith.mulf %986, %972 : vector<16x36xf32>
    %988 = arith.addf %970, %987 : vector<16x36xf32>
    %c1_288 = arith.constant 1 : index
    %c2_289 = arith.constant 2 : index
    %c2_290 = arith.constant 2 : index
    %989 = vector.load %arg8[%c1_288, %c2_289, %c2_290] : memref<4x20x40xf32, #tpu.memory_space<vmem>>, vector<1x16x36xf32>
    %990 = vector.shape_cast %989 : vector<1x16x36xf32> to vector<16x36xf32>
    %c13_291 = arith.constant 13 : index
    %991 = memref.load %arg4[%c13_291] : memref<144xf32, #tpu.memory_space<smem>>
    %992 = vector.broadcast %991 : f32 to vector<16x36xf32>
    %993 = arith.mulf %992, %990 : vector<16x36xf32>
    %994 = arith.addf %976, %993 : vector<16x36xf32>
    %c49_292 = arith.constant 49 : index
    %995 = memref.load %arg4[%c49_292] : memref<144xf32, #tpu.memory_space<smem>>
    %996 = vector.broadcast %995 : f32 to vector<16x36xf32>
    %997 = arith.mulf %996, %990 : vector<16x36xf32>
    %998 = arith.addf %980, %997 : vector<16x36xf32>
    %c85_293 = arith.constant 85 : index
    %999 = memref.load %arg4[%c85_293] : memref<144xf32, #tpu.memory_space<smem>>
    %1000 = vector.broadcast %999 : f32 to vector<16x36xf32>
    %1001 = arith.mulf %1000, %990 : vector<16x36xf32>
    %1002 = arith.addf %984, %1001 : vector<16x36xf32>
    %c121_294 = arith.constant 121 : index
    %1003 = memref.load %arg4[%c121_294] : memref<144xf32, #tpu.memory_space<smem>>
    %1004 = vector.broadcast %1003 : f32 to vector<16x36xf32>
    %1005 = arith.mulf %1004, %990 : vector<16x36xf32>
    %1006 = arith.addf %988, %1005 : vector<16x36xf32>
    %c1_295 = arith.constant 1 : index
    %c2_296 = arith.constant 2 : index
    %c3_297 = arith.constant 3 : index
    %1007 = vector.load %arg8[%c1_295, %c2_296, %c3_297] : memref<4x20x40xf32, #tpu.memory_space<vmem>>, vector<1x16x36xf32>
    %1008 = vector.shape_cast %1007 : vector<1x16x36xf32> to vector<16x36xf32>
    %c14_298 = arith.constant 14 : index
    %1009 = memref.load %arg4[%c14_298] : memref<144xf32, #tpu.memory_space<smem>>
    %1010 = vector.broadcast %1009 : f32 to vector<16x36xf32>
    %1011 = arith.mulf %1010, %1008 : vector<16x36xf32>
    %1012 = arith.addf %994, %1011 : vector<16x36xf32>
    %c50_299 = arith.constant 50 : index
    %1013 = memref.load %arg4[%c50_299] : memref<144xf32, #tpu.memory_space<smem>>
    %1014 = vector.broadcast %1013 : f32 to vector<16x36xf32>
    %1015 = arith.mulf %1014, %1008 : vector<16x36xf32>
    %1016 = arith.addf %998, %1015 : vector<16x36xf32>
    %c86_300 = arith.constant 86 : index
    %1017 = memref.load %arg4[%c86_300] : memref<144xf32, #tpu.memory_space<smem>>
    %1018 = vector.broadcast %1017 : f32 to vector<16x36xf32>
    %1019 = arith.mulf %1018, %1008 : vector<16x36xf32>
    %1020 = arith.addf %1002, %1019 : vector<16x36xf32>
    %c122_301 = arith.constant 122 : index
    %1021 = memref.load %arg4[%c122_301] : memref<144xf32, #tpu.memory_space<smem>>
    %1022 = vector.broadcast %1021 : f32 to vector<16x36xf32>
    %1023 = arith.mulf %1022, %1008 : vector<16x36xf32>
    %1024 = arith.addf %1006, %1023 : vector<16x36xf32>
    %c1_302 = arith.constant 1 : index
    %c3_303 = arith.constant 3 : index
    %c1_304 = arith.constant 1 : index
    %1025 = vector.load %arg8[%c1_302, %c3_303, %c1_304] : memref<4x20x40xf32, #tpu.memory_space<vmem>>, vector<1x16x36xf32>
    %1026 = vector.shape_cast %1025 : vector<1x16x36xf32> to vector<16x36xf32>
    %c15_305 = arith.constant 15 : index
    %1027 = memref.load %arg4[%c15_305] : memref<144xf32, #tpu.memory_space<smem>>
    %1028 = vector.broadcast %1027 : f32 to vector<16x36xf32>
    %1029 = arith.mulf %1028, %1026 : vector<16x36xf32>
    %1030 = arith.addf %1012, %1029 : vector<16x36xf32>
    %c51_306 = arith.constant 51 : index
    %1031 = memref.load %arg4[%c51_306] : memref<144xf32, #tpu.memory_space<smem>>
    %1032 = vector.broadcast %1031 : f32 to vector<16x36xf32>
    %1033 = arith.mulf %1032, %1026 : vector<16x36xf32>
    %1034 = arith.addf %1016, %1033 : vector<16x36xf32>
    %c87_307 = arith.constant 87 : index
    %1035 = memref.load %arg4[%c87_307] : memref<144xf32, #tpu.memory_space<smem>>
    %1036 = vector.broadcast %1035 : f32 to vector<16x36xf32>
    %1037 = arith.mulf %1036, %1026 : vector<16x36xf32>
    %1038 = arith.addf %1020, %1037 : vector<16x36xf32>
    %c123_308 = arith.constant 123 : index
    %1039 = memref.load %arg4[%c123_308] : memref<144xf32, #tpu.memory_space<smem>>
    %1040 = vector.broadcast %1039 : f32 to vector<16x36xf32>
    %1041 = arith.mulf %1040, %1026 : vector<16x36xf32>
    %1042 = arith.addf %1024, %1041 : vector<16x36xf32>
    %c1_309 = arith.constant 1 : index
    %c3_310 = arith.constant 3 : index
    %c2_311 = arith.constant 2 : index
    %1043 = vector.load %arg8[%c1_309, %c3_310, %c2_311] : memref<4x20x40xf32, #tpu.memory_space<vmem>>, vector<1x16x36xf32>
    %1044 = vector.shape_cast %1043 : vector<1x16x36xf32> to vector<16x36xf32>
    %c16_312 = arith.constant 16 : index
    %1045 = memref.load %arg4[%c16_312] : memref<144xf32, #tpu.memory_space<smem>>
    %1046 = vector.broadcast %1045 : f32 to vector<16x36xf32>
    %1047 = arith.mulf %1046, %1044 : vector<16x36xf32>
    %1048 = arith.addf %1030, %1047 : vector<16x36xf32>
    %c52_313 = arith.constant 52 : index
    %1049 = memref.load %arg4[%c52_313] : memref<144xf32, #tpu.memory_space<smem>>
    %1050 = vector.broadcast %1049 : f32 to vector<16x36xf32>
    %1051 = arith.mulf %1050, %1044 : vector<16x36xf32>
    %1052 = arith.addf %1034, %1051 : vector<16x36xf32>
    %c88_314 = arith.constant 88 : index
    %1053 = memref.load %arg4[%c88_314] : memref<144xf32, #tpu.memory_space<smem>>
    %1054 = vector.broadcast %1053 : f32 to vector<16x36xf32>
    %1055 = arith.mulf %1054, %1044 : vector<16x36xf32>
    %1056 = arith.addf %1038, %1055 : vector<16x36xf32>
    %c124_315 = arith.constant 124 : index
    %1057 = memref.load %arg4[%c124_315] : memref<144xf32, #tpu.memory_space<smem>>
    %1058 = vector.broadcast %1057 : f32 to vector<16x36xf32>
    %1059 = arith.mulf %1058, %1044 : vector<16x36xf32>
    %1060 = arith.addf %1042, %1059 : vector<16x36xf32>
    %c1_316 = arith.constant 1 : index
    %c3_317 = arith.constant 3 : index
    %c3_318 = arith.constant 3 : index
    %1061 = vector.load %arg8[%c1_316, %c3_317, %c3_318] : memref<4x20x40xf32, #tpu.memory_space<vmem>>, vector<1x16x36xf32>
    %1062 = vector.shape_cast %1061 : vector<1x16x36xf32> to vector<16x36xf32>
    %c17_319 = arith.constant 17 : index
    %1063 = memref.load %arg4[%c17_319] : memref<144xf32, #tpu.memory_space<smem>>
    %1064 = vector.broadcast %1063 : f32 to vector<16x36xf32>
    %1065 = arith.mulf %1064, %1062 : vector<16x36xf32>
    %1066 = arith.addf %1048, %1065 : vector<16x36xf32>
    %c53_320 = arith.constant 53 : index
    %1067 = memref.load %arg4[%c53_320] : memref<144xf32, #tpu.memory_space<smem>>
    %1068 = vector.broadcast %1067 : f32 to vector<16x36xf32>
    %1069 = arith.mulf %1068, %1062 : vector<16x36xf32>
    %1070 = arith.addf %1052, %1069 : vector<16x36xf32>
    %c89_321 = arith.constant 89 : index
    %1071 = memref.load %arg4[%c89_321] : memref<144xf32, #tpu.memory_space<smem>>
    %1072 = vector.broadcast %1071 : f32 to vector<16x36xf32>
    %1073 = arith.mulf %1072, %1062 : vector<16x36xf32>
    %1074 = arith.addf %1056, %1073 : vector<16x36xf32>
    %c125_322 = arith.constant 125 : index
    %1075 = memref.load %arg4[%c125_322] : memref<144xf32, #tpu.memory_space<smem>>
    %1076 = vector.broadcast %1075 : f32 to vector<16x36xf32>
    %1077 = arith.mulf %1076, %1062 : vector<16x36xf32>
    %1078 = arith.addf %1060, %1077 : vector<16x36xf32>
    %c2_323 = arith.constant 2 : index
    %c1_324 = arith.constant 1 : index
    %c1_325 = arith.constant 1 : index
    %1079 = vector.load %arg8[%c2_323, %c1_324, %c1_325] : memref<4x20x40xf32, #tpu.memory_space<vmem>>, vector<1x16x36xf32>
    %1080 = vector.shape_cast %1079 : vector<1x16x36xf32> to vector<16x36xf32>
    %c18_326 = arith.constant 18 : index
    %1081 = memref.load %arg4[%c18_326] : memref<144xf32, #tpu.memory_space<smem>>
    %1082 = vector.broadcast %1081 : f32 to vector<16x36xf32>
    %1083 = arith.mulf %1082, %1080 : vector<16x36xf32>
    %1084 = arith.addf %1066, %1083 : vector<16x36xf32>
    %c54_327 = arith.constant 54 : index
    %1085 = memref.load %arg4[%c54_327] : memref<144xf32, #tpu.memory_space<smem>>
    %1086 = vector.broadcast %1085 : f32 to vector<16x36xf32>
    %1087 = arith.mulf %1086, %1080 : vector<16x36xf32>
    %1088 = arith.addf %1070, %1087 : vector<16x36xf32>
    %c90_328 = arith.constant 90 : index
    %1089 = memref.load %arg4[%c90_328] : memref<144xf32, #tpu.memory_space<smem>>
    %1090 = vector.broadcast %1089 : f32 to vector<16x36xf32>
    %1091 = arith.mulf %1090, %1080 : vector<16x36xf32>
    %1092 = arith.addf %1074, %1091 : vector<16x36xf32>
    %c126_329 = arith.constant 126 : index
    %1093 = memref.load %arg4[%c126_329] : memref<144xf32, #tpu.memory_space<smem>>
    %1094 = vector.broadcast %1093 : f32 to vector<16x36xf32>
    %1095 = arith.mulf %1094, %1080 : vector<16x36xf32>
    %1096 = arith.addf %1078, %1095 : vector<16x36xf32>
    %c2_330 = arith.constant 2 : index
    %c1_331 = arith.constant 1 : index
    %c2_332 = arith.constant 2 : index
    %1097 = vector.load %arg8[%c2_330, %c1_331, %c2_332] : memref<4x20x40xf32, #tpu.memory_space<vmem>>, vector<1x16x36xf32>
    %1098 = vector.shape_cast %1097 : vector<1x16x36xf32> to vector<16x36xf32>
    %c19_333 = arith.constant 19 : index
    %1099 = memref.load %arg4[%c19_333] : memref<144xf32, #tpu.memory_space<smem>>
    %1100 = vector.broadcast %1099 : f32 to vector<16x36xf32>
    %1101 = arith.mulf %1100, %1098 : vector<16x36xf32>
    %1102 = arith.addf %1084, %1101 : vector<16x36xf32>
    %c55_334 = arith.constant 55 : index
    %1103 = memref.load %arg4[%c55_334] : memref<144xf32, #tpu.memory_space<smem>>
    %1104 = vector.broadcast %1103 : f32 to vector<16x36xf32>
    %1105 = arith.mulf %1104, %1098 : vector<16x36xf32>
    %1106 = arith.addf %1088, %1105 : vector<16x36xf32>
    %c91_335 = arith.constant 91 : index
    %1107 = memref.load %arg4[%c91_335] : memref<144xf32, #tpu.memory_space<smem>>
    %1108 = vector.broadcast %1107 : f32 to vector<16x36xf32>
    %1109 = arith.mulf %1108, %1098 : vector<16x36xf32>
    %1110 = arith.addf %1092, %1109 : vector<16x36xf32>
    %c127_336 = arith.constant 127 : index
    %1111 = memref.load %arg4[%c127_336] : memref<144xf32, #tpu.memory_space<smem>>
    %1112 = vector.broadcast %1111 : f32 to vector<16x36xf32>
    %1113 = arith.mulf %1112, %1098 : vector<16x36xf32>
    %1114 = arith.addf %1096, %1113 : vector<16x36xf32>
    %c2_337 = arith.constant 2 : index
    %c1_338 = arith.constant 1 : index
    %c3_339 = arith.constant 3 : index
    %1115 = vector.load %arg8[%c2_337, %c1_338, %c3_339] : memref<4x20x40xf32, #tpu.memory_space<vmem>>, vector<1x16x36xf32>
    %1116 = vector.shape_cast %1115 : vector<1x16x36xf32> to vector<16x36xf32>
    %c20_340 = arith.constant 20 : index
    %1117 = memref.load %arg4[%c20_340] : memref<144xf32, #tpu.memory_space<smem>>
    %1118 = vector.broadcast %1117 : f32 to vector<16x36xf32>
    %1119 = arith.mulf %1118, %1116 : vector<16x36xf32>
    %1120 = arith.addf %1102, %1119 : vector<16x36xf32>
    %c56_341 = arith.constant 56 : index
    %1121 = memref.load %arg4[%c56_341] : memref<144xf32, #tpu.memory_space<smem>>
    %1122 = vector.broadcast %1121 : f32 to vector<16x36xf32>
    %1123 = arith.mulf %1122, %1116 : vector<16x36xf32>
    %1124 = arith.addf %1106, %1123 : vector<16x36xf32>
    %c92_342 = arith.constant 92 : index
    %1125 = memref.load %arg4[%c92_342] : memref<144xf32, #tpu.memory_space<smem>>
    %1126 = vector.broadcast %1125 : f32 to vector<16x36xf32>
    %1127 = arith.mulf %1126, %1116 : vector<16x36xf32>
    %1128 = arith.addf %1110, %1127 : vector<16x36xf32>
    %c128_343 = arith.constant 128 : index
    %1129 = memref.load %arg4[%c128_343] : memref<144xf32, #tpu.memory_space<smem>>
    %1130 = vector.broadcast %1129 : f32 to vector<16x36xf32>
    %1131 = arith.mulf %1130, %1116 : vector<16x36xf32>
    %1132 = arith.addf %1114, %1131 : vector<16x36xf32>
    %c2_344 = arith.constant 2 : index
    %c2_345 = arith.constant 2 : index
    %c1_346 = arith.constant 1 : index
    %1133 = vector.load %arg8[%c2_344, %c2_345, %c1_346] : memref<4x20x40xf32, #tpu.memory_space<vmem>>, vector<1x16x36xf32>
    %1134 = vector.shape_cast %1133 : vector<1x16x36xf32> to vector<16x36xf32>
    %c21_347 = arith.constant 21 : index
    %1135 = memref.load %arg4[%c21_347] : memref<144xf32, #tpu.memory_space<smem>>
    %1136 = vector.broadcast %1135 : f32 to vector<16x36xf32>
    %1137 = arith.mulf %1136, %1134 : vector<16x36xf32>
    %1138 = arith.addf %1120, %1137 : vector<16x36xf32>
    %c57_348 = arith.constant 57 : index
    %1139 = memref.load %arg4[%c57_348] : memref<144xf32, #tpu.memory_space<smem>>
    %1140 = vector.broadcast %1139 : f32 to vector<16x36xf32>
    %1141 = arith.mulf %1140, %1134 : vector<16x36xf32>
    %1142 = arith.addf %1124, %1141 : vector<16x36xf32>
    %c93_349 = arith.constant 93 : index
    %1143 = memref.load %arg4[%c93_349] : memref<144xf32, #tpu.memory_space<smem>>
    %1144 = vector.broadcast %1143 : f32 to vector<16x36xf32>
    %1145 = arith.mulf %1144, %1134 : vector<16x36xf32>
    %1146 = arith.addf %1128, %1145 : vector<16x36xf32>
    %c129_350 = arith.constant 129 : index
    %1147 = memref.load %arg4[%c129_350] : memref<144xf32, #tpu.memory_space<smem>>
    %1148 = vector.broadcast %1147 : f32 to vector<16x36xf32>
    %1149 = arith.mulf %1148, %1134 : vector<16x36xf32>
    %1150 = arith.addf %1132, %1149 : vector<16x36xf32>
    %c2_351 = arith.constant 2 : index
    %c2_352 = arith.constant 2 : index
    %c2_353 = arith.constant 2 : index
    %1151 = vector.load %arg8[%c2_351, %c2_352, %c2_353] : memref<4x20x40xf32, #tpu.memory_space<vmem>>, vector<1x16x36xf32>
    %1152 = vector.shape_cast %1151 : vector<1x16x36xf32> to vector<16x36xf32>
    %c22_354 = arith.constant 22 : index
    %1153 = memref.load %arg4[%c22_354] : memref<144xf32, #tpu.memory_space<smem>>
    %1154 = vector.broadcast %1153 : f32 to vector<16x36xf32>
    %1155 = arith.mulf %1154, %1152 : vector<16x36xf32>
    %1156 = arith.addf %1138, %1155 : vector<16x36xf32>
    %c58_355 = arith.constant 58 : index
    %1157 = memref.load %arg4[%c58_355] : memref<144xf32, #tpu.memory_space<smem>>
    %1158 = vector.broadcast %1157 : f32 to vector<16x36xf32>
    %1159 = arith.mulf %1158, %1152 : vector<16x36xf32>
    %1160 = arith.addf %1142, %1159 : vector<16x36xf32>
    %c94_356 = arith.constant 94 : index
    %1161 = memref.load %arg4[%c94_356] : memref<144xf32, #tpu.memory_space<smem>>
    %1162 = vector.broadcast %1161 : f32 to vector<16x36xf32>
    %1163 = arith.mulf %1162, %1152 : vector<16x36xf32>
    %1164 = arith.addf %1146, %1163 : vector<16x36xf32>
    %c130_357 = arith.constant 130 : index
    %1165 = memref.load %arg4[%c130_357] : memref<144xf32, #tpu.memory_space<smem>>
    %1166 = vector.broadcast %1165 : f32 to vector<16x36xf32>
    %1167 = arith.mulf %1166, %1152 : vector<16x36xf32>
    %1168 = arith.addf %1150, %1167 : vector<16x36xf32>
    %c2_358 = arith.constant 2 : index
    %c2_359 = arith.constant 2 : index
    %c3_360 = arith.constant 3 : index
    %1169 = vector.load %arg8[%c2_358, %c2_359, %c3_360] : memref<4x20x40xf32, #tpu.memory_space<vmem>>, vector<1x16x36xf32>
    %1170 = vector.shape_cast %1169 : vector<1x16x36xf32> to vector<16x36xf32>
    %c23_361 = arith.constant 23 : index
    %1171 = memref.load %arg4[%c23_361] : memref<144xf32, #tpu.memory_space<smem>>
    %1172 = vector.broadcast %1171 : f32 to vector<16x36xf32>
    %1173 = arith.mulf %1172, %1170 : vector<16x36xf32>
    %1174 = arith.addf %1156, %1173 : vector<16x36xf32>
    %c59_362 = arith.constant 59 : index
    %1175 = memref.load %arg4[%c59_362] : memref<144xf32, #tpu.memory_space<smem>>
    %1176 = vector.broadcast %1175 : f32 to vector<16x36xf32>
    %1177 = arith.mulf %1176, %1170 : vector<16x36xf32>
    %1178 = arith.addf %1160, %1177 : vector<16x36xf32>
    %c95_363 = arith.constant 95 : index
    %1179 = memref.load %arg4[%c95_363] : memref<144xf32, #tpu.memory_space<smem>>
    %1180 = vector.broadcast %1179 : f32 to vector<16x36xf32>
    %1181 = arith.mulf %1180, %1170 : vector<16x36xf32>
    %1182 = arith.addf %1164, %1181 : vector<16x36xf32>
    %c131_364 = arith.constant 131 : index
    %1183 = memref.load %arg4[%c131_364] : memref<144xf32, #tpu.memory_space<smem>>
    %1184 = vector.broadcast %1183 : f32 to vector<16x36xf32>
    %1185 = arith.mulf %1184, %1170 : vector<16x36xf32>
    %1186 = arith.addf %1168, %1185 : vector<16x36xf32>
    %c2_365 = arith.constant 2 : index
    %c3_366 = arith.constant 3 : index
    %c1_367 = arith.constant 1 : index
    %1187 = vector.load %arg8[%c2_365, %c3_366, %c1_367] : memref<4x20x40xf32, #tpu.memory_space<vmem>>, vector<1x16x36xf32>
    %1188 = vector.shape_cast %1187 : vector<1x16x36xf32> to vector<16x36xf32>
    %c24_368 = arith.constant 24 : index
    %1189 = memref.load %arg4[%c24_368] : memref<144xf32, #tpu.memory_space<smem>>
    %1190 = vector.broadcast %1189 : f32 to vector<16x36xf32>
    %1191 = arith.mulf %1190, %1188 : vector<16x36xf32>
    %1192 = arith.addf %1174, %1191 : vector<16x36xf32>
    %c60_369 = arith.constant 60 : index
    %1193 = memref.load %arg4[%c60_369] : memref<144xf32, #tpu.memory_space<smem>>
    %1194 = vector.broadcast %1193 : f32 to vector<16x36xf32>
    %1195 = arith.mulf %1194, %1188 : vector<16x36xf32>
    %1196 = arith.addf %1178, %1195 : vector<16x36xf32>
    %c96_370 = arith.constant 96 : index
    %1197 = memref.load %arg4[%c96_370] : memref<144xf32, #tpu.memory_space<smem>>
    %1198 = vector.broadcast %1197 : f32 to vector<16x36xf32>
    %1199 = arith.mulf %1198, %1188 : vector<16x36xf32>
    %1200 = arith.addf %1182, %1199 : vector<16x36xf32>
    %c132_371 = arith.constant 132 : index
    %1201 = memref.load %arg4[%c132_371] : memref<144xf32, #tpu.memory_space<smem>>
    %1202 = vector.broadcast %1201 : f32 to vector<16x36xf32>
    %1203 = arith.mulf %1202, %1188 : vector<16x36xf32>
    %1204 = arith.addf %1186, %1203 : vector<16x36xf32>
    %c2_372 = arith.constant 2 : index
    %c3_373 = arith.constant 3 : index
    %c2_374 = arith.constant 2 : index
    %1205 = vector.load %arg8[%c2_372, %c3_373, %c2_374] : memref<4x20x40xf32, #tpu.memory_space<vmem>>, vector<1x16x36xf32>
    %1206 = vector.shape_cast %1205 : vector<1x16x36xf32> to vector<16x36xf32>
    %c25_375 = arith.constant 25 : index
    %1207 = memref.load %arg4[%c25_375] : memref<144xf32, #tpu.memory_space<smem>>
    %1208 = vector.broadcast %1207 : f32 to vector<16x36xf32>
    %1209 = arith.mulf %1208, %1206 : vector<16x36xf32>
    %1210 = arith.addf %1192, %1209 : vector<16x36xf32>
    %c61_376 = arith.constant 61 : index
    %1211 = memref.load %arg4[%c61_376] : memref<144xf32, #tpu.memory_space<smem>>
    %1212 = vector.broadcast %1211 : f32 to vector<16x36xf32>
    %1213 = arith.mulf %1212, %1206 : vector<16x36xf32>
    %1214 = arith.addf %1196, %1213 : vector<16x36xf32>
    %c97_377 = arith.constant 97 : index
    %1215 = memref.load %arg4[%c97_377] : memref<144xf32, #tpu.memory_space<smem>>
    %1216 = vector.broadcast %1215 : f32 to vector<16x36xf32>
    %1217 = arith.mulf %1216, %1206 : vector<16x36xf32>
    %1218 = arith.addf %1200, %1217 : vector<16x36xf32>
    %c133_378 = arith.constant 133 : index
    %1219 = memref.load %arg4[%c133_378] : memref<144xf32, #tpu.memory_space<smem>>
    %1220 = vector.broadcast %1219 : f32 to vector<16x36xf32>
    %1221 = arith.mulf %1220, %1206 : vector<16x36xf32>
    %1222 = arith.addf %1204, %1221 : vector<16x36xf32>
    %c2_379 = arith.constant 2 : index
    %c3_380 = arith.constant 3 : index
    %c3_381 = arith.constant 3 : index
    %1223 = vector.load %arg8[%c2_379, %c3_380, %c3_381] : memref<4x20x40xf32, #tpu.memory_space<vmem>>, vector<1x16x36xf32>
    %1224 = vector.shape_cast %1223 : vector<1x16x36xf32> to vector<16x36xf32>
    %c26_382 = arith.constant 26 : index
    %1225 = memref.load %arg4[%c26_382] : memref<144xf32, #tpu.memory_space<smem>>
    %1226 = vector.broadcast %1225 : f32 to vector<16x36xf32>
    %1227 = arith.mulf %1226, %1224 : vector<16x36xf32>
    %1228 = arith.addf %1210, %1227 : vector<16x36xf32>
    %c62_383 = arith.constant 62 : index
    %1229 = memref.load %arg4[%c62_383] : memref<144xf32, #tpu.memory_space<smem>>
    %1230 = vector.broadcast %1229 : f32 to vector<16x36xf32>
    %1231 = arith.mulf %1230, %1224 : vector<16x36xf32>
    %1232 = arith.addf %1214, %1231 : vector<16x36xf32>
    %c98_384 = arith.constant 98 : index
    %1233 = memref.load %arg4[%c98_384] : memref<144xf32, #tpu.memory_space<smem>>
    %1234 = vector.broadcast %1233 : f32 to vector<16x36xf32>
    %1235 = arith.mulf %1234, %1224 : vector<16x36xf32>
    %1236 = arith.addf %1218, %1235 : vector<16x36xf32>
    %c134_385 = arith.constant 134 : index
    %1237 = memref.load %arg4[%c134_385] : memref<144xf32, #tpu.memory_space<smem>>
    %1238 = vector.broadcast %1237 : f32 to vector<16x36xf32>
    %1239 = arith.mulf %1238, %1224 : vector<16x36xf32>
    %1240 = arith.addf %1222, %1239 : vector<16x36xf32>
    %c3_386 = arith.constant 3 : index
    %c1_387 = arith.constant 1 : index
    %c1_388 = arith.constant 1 : index
    %1241 = vector.load %arg8[%c3_386, %c1_387, %c1_388] : memref<4x20x40xf32, #tpu.memory_space<vmem>>, vector<1x16x36xf32>
    %1242 = vector.shape_cast %1241 : vector<1x16x36xf32> to vector<16x36xf32>
    %c27_389 = arith.constant 27 : index
    %1243 = memref.load %arg4[%c27_389] : memref<144xf32, #tpu.memory_space<smem>>
    %1244 = vector.broadcast %1243 : f32 to vector<16x36xf32>
    %1245 = arith.mulf %1244, %1242 : vector<16x36xf32>
    %1246 = arith.addf %1228, %1245 : vector<16x36xf32>
    %c63_390 = arith.constant 63 : index
    %1247 = memref.load %arg4[%c63_390] : memref<144xf32, #tpu.memory_space<smem>>
    %1248 = vector.broadcast %1247 : f32 to vector<16x36xf32>
    %1249 = arith.mulf %1248, %1242 : vector<16x36xf32>
    %1250 = arith.addf %1232, %1249 : vector<16x36xf32>
    %c99_391 = arith.constant 99 : index
    %1251 = memref.load %arg4[%c99_391] : memref<144xf32, #tpu.memory_space<smem>>
    %1252 = vector.broadcast %1251 : f32 to vector<16x36xf32>
    %1253 = arith.mulf %1252, %1242 : vector<16x36xf32>
    %1254 = arith.addf %1236, %1253 : vector<16x36xf32>
    %c135_392 = arith.constant 135 : index
    %1255 = memref.load %arg4[%c135_392] : memref<144xf32, #tpu.memory_space<smem>>
    %1256 = vector.broadcast %1255 : f32 to vector<16x36xf32>
    %1257 = arith.mulf %1256, %1242 : vector<16x36xf32>
    %1258 = arith.addf %1240, %1257 : vector<16x36xf32>
    %c3_393 = arith.constant 3 : index
    %c1_394 = arith.constant 1 : index
    %c2_395 = arith.constant 2 : index
    %1259 = vector.load %arg8[%c3_393, %c1_394, %c2_395] : memref<4x20x40xf32, #tpu.memory_space<vmem>>, vector<1x16x36xf32>
    %1260 = vector.shape_cast %1259 : vector<1x16x36xf32> to vector<16x36xf32>
    %c28_396 = arith.constant 28 : index
    %1261 = memref.load %arg4[%c28_396] : memref<144xf32, #tpu.memory_space<smem>>
    %1262 = vector.broadcast %1261 : f32 to vector<16x36xf32>
    %1263 = arith.mulf %1262, %1260 : vector<16x36xf32>
    %1264 = arith.addf %1246, %1263 : vector<16x36xf32>
    %c64_397 = arith.constant 64 : index
    %1265 = memref.load %arg4[%c64_397] : memref<144xf32, #tpu.memory_space<smem>>
    %1266 = vector.broadcast %1265 : f32 to vector<16x36xf32>
    %1267 = arith.mulf %1266, %1260 : vector<16x36xf32>
    %1268 = arith.addf %1250, %1267 : vector<16x36xf32>
    %c100_398 = arith.constant 100 : index
    %1269 = memref.load %arg4[%c100_398] : memref<144xf32, #tpu.memory_space<smem>>
    %1270 = vector.broadcast %1269 : f32 to vector<16x36xf32>
    %1271 = arith.mulf %1270, %1260 : vector<16x36xf32>
    %1272 = arith.addf %1254, %1271 : vector<16x36xf32>
    %c136_399 = arith.constant 136 : index
    %1273 = memref.load %arg4[%c136_399] : memref<144xf32, #tpu.memory_space<smem>>
    %1274 = vector.broadcast %1273 : f32 to vector<16x36xf32>
    %1275 = arith.mulf %1274, %1260 : vector<16x36xf32>
    %1276 = arith.addf %1258, %1275 : vector<16x36xf32>
    %c3_400 = arith.constant 3 : index
    %c1_401 = arith.constant 1 : index
    %c3_402 = arith.constant 3 : index
    %1277 = vector.load %arg8[%c3_400, %c1_401, %c3_402] : memref<4x20x40xf32, #tpu.memory_space<vmem>>, vector<1x16x36xf32>
    %1278 = vector.shape_cast %1277 : vector<1x16x36xf32> to vector<16x36xf32>
    %c29_403 = arith.constant 29 : index
    %1279 = memref.load %arg4[%c29_403] : memref<144xf32, #tpu.memory_space<smem>>
    %1280 = vector.broadcast %1279 : f32 to vector<16x36xf32>
    %1281 = arith.mulf %1280, %1278 : vector<16x36xf32>
    %1282 = arith.addf %1264, %1281 : vector<16x36xf32>
    %c65_404 = arith.constant 65 : index
    %1283 = memref.load %arg4[%c65_404] : memref<144xf32, #tpu.memory_space<smem>>
    %1284 = vector.broadcast %1283 : f32 to vector<16x36xf32>
    %1285 = arith.mulf %1284, %1278 : vector<16x36xf32>
    %1286 = arith.addf %1268, %1285 : vector<16x36xf32>
    %c101_405 = arith.constant 101 : index
    %1287 = memref.load %arg4[%c101_405] : memref<144xf32, #tpu.memory_space<smem>>
    %1288 = vector.broadcast %1287 : f32 to vector<16x36xf32>
    %1289 = arith.mulf %1288, %1278 : vector<16x36xf32>
    %1290 = arith.addf %1272, %1289 : vector<16x36xf32>
    %c137_406 = arith.constant 137 : index
    %1291 = memref.load %arg4[%c137_406] : memref<144xf32, #tpu.memory_space<smem>>
    %1292 = vector.broadcast %1291 : f32 to vector<16x36xf32>
    %1293 = arith.mulf %1292, %1278 : vector<16x36xf32>
    %1294 = arith.addf %1276, %1293 : vector<16x36xf32>
    %c3_407 = arith.constant 3 : index
    %c2_408 = arith.constant 2 : index
    %c1_409 = arith.constant 1 : index
    %1295 = vector.load %arg8[%c3_407, %c2_408, %c1_409] : memref<4x20x40xf32, #tpu.memory_space<vmem>>, vector<1x16x36xf32>
    %1296 = vector.shape_cast %1295 : vector<1x16x36xf32> to vector<16x36xf32>
    %c30_410 = arith.constant 30 : index
    %1297 = memref.load %arg4[%c30_410] : memref<144xf32, #tpu.memory_space<smem>>
    %1298 = vector.broadcast %1297 : f32 to vector<16x36xf32>
    %1299 = arith.mulf %1298, %1296 : vector<16x36xf32>
    %1300 = arith.addf %1282, %1299 : vector<16x36xf32>
    %c66_411 = arith.constant 66 : index
    %1301 = memref.load %arg4[%c66_411] : memref<144xf32, #tpu.memory_space<smem>>
    %1302 = vector.broadcast %1301 : f32 to vector<16x36xf32>
    %1303 = arith.mulf %1302, %1296 : vector<16x36xf32>
    %1304 = arith.addf %1286, %1303 : vector<16x36xf32>
    %c102_412 = arith.constant 102 : index
    %1305 = memref.load %arg4[%c102_412] : memref<144xf32, #tpu.memory_space<smem>>
    %1306 = vector.broadcast %1305 : f32 to vector<16x36xf32>
    %1307 = arith.mulf %1306, %1296 : vector<16x36xf32>
    %1308 = arith.addf %1290, %1307 : vector<16x36xf32>
    %c138_413 = arith.constant 138 : index
    %1309 = memref.load %arg4[%c138_413] : memref<144xf32, #tpu.memory_space<smem>>
    %1310 = vector.broadcast %1309 : f32 to vector<16x36xf32>
    %1311 = arith.mulf %1310, %1296 : vector<16x36xf32>
    %1312 = arith.addf %1294, %1311 : vector<16x36xf32>
    %c3_414 = arith.constant 3 : index
    %c2_415 = arith.constant 2 : index
    %c2_416 = arith.constant 2 : index
    %1313 = vector.load %arg8[%c3_414, %c2_415, %c2_416] : memref<4x20x40xf32, #tpu.memory_space<vmem>>, vector<1x16x36xf32>
    %1314 = vector.shape_cast %1313 : vector<1x16x36xf32> to vector<16x36xf32>
    %c31_417 = arith.constant 31 : index
    %1315 = memref.load %arg4[%c31_417] : memref<144xf32, #tpu.memory_space<smem>>
    %1316 = vector.broadcast %1315 : f32 to vector<16x36xf32>
    %1317 = arith.mulf %1316, %1314 : vector<16x36xf32>
    %1318 = arith.addf %1300, %1317 : vector<16x36xf32>
    %c67_418 = arith.constant 67 : index
    %1319 = memref.load %arg4[%c67_418] : memref<144xf32, #tpu.memory_space<smem>>
    %1320 = vector.broadcast %1319 : f32 to vector<16x36xf32>
    %1321 = arith.mulf %1320, %1314 : vector<16x36xf32>
    %1322 = arith.addf %1304, %1321 : vector<16x36xf32>
    %c103_419 = arith.constant 103 : index
    %1323 = memref.load %arg4[%c103_419] : memref<144xf32, #tpu.memory_space<smem>>
    %1324 = vector.broadcast %1323 : f32 to vector<16x36xf32>
    %1325 = arith.mulf %1324, %1314 : vector<16x36xf32>
    %1326 = arith.addf %1308, %1325 : vector<16x36xf32>
    %c139_420 = arith.constant 139 : index
    %1327 = memref.load %arg4[%c139_420] : memref<144xf32, #tpu.memory_space<smem>>
    %1328 = vector.broadcast %1327 : f32 to vector<16x36xf32>
    %1329 = arith.mulf %1328, %1314 : vector<16x36xf32>
    %1330 = arith.addf %1312, %1329 : vector<16x36xf32>
    %c3_421 = arith.constant 3 : index
    %c2_422 = arith.constant 2 : index
    %c3_423 = arith.constant 3 : index
    %1331 = vector.load %arg8[%c3_421, %c2_422, %c3_423] : memref<4x20x40xf32, #tpu.memory_space<vmem>>, vector<1x16x36xf32>
    %1332 = vector.shape_cast %1331 : vector<1x16x36xf32> to vector<16x36xf32>
    %c32_424 = arith.constant 32 : index
    %1333 = memref.load %arg4[%c32_424] : memref<144xf32, #tpu.memory_space<smem>>
    %1334 = vector.broadcast %1333 : f32 to vector<16x36xf32>
    %1335 = arith.mulf %1334, %1332 : vector<16x36xf32>
    %1336 = arith.addf %1318, %1335 : vector<16x36xf32>
    %c68_425 = arith.constant 68 : index
    %1337 = memref.load %arg4[%c68_425] : memref<144xf32, #tpu.memory_space<smem>>
    %1338 = vector.broadcast %1337 : f32 to vector<16x36xf32>
    %1339 = arith.mulf %1338, %1332 : vector<16x36xf32>
    %1340 = arith.addf %1322, %1339 : vector<16x36xf32>
    %c104_426 = arith.constant 104 : index
    %1341 = memref.load %arg4[%c104_426] : memref<144xf32, #tpu.memory_space<smem>>
    %1342 = vector.broadcast %1341 : f32 to vector<16x36xf32>
    %1343 = arith.mulf %1342, %1332 : vector<16x36xf32>
    %1344 = arith.addf %1326, %1343 : vector<16x36xf32>
    %c140_427 = arith.constant 140 : index
    %1345 = memref.load %arg4[%c140_427] : memref<144xf32, #tpu.memory_space<smem>>
    %1346 = vector.broadcast %1345 : f32 to vector<16x36xf32>
    %1347 = arith.mulf %1346, %1332 : vector<16x36xf32>
    %1348 = arith.addf %1330, %1347 : vector<16x36xf32>
    %c3_428 = arith.constant 3 : index
    %c3_429 = arith.constant 3 : index
    %c1_430 = arith.constant 1 : index
    %1349 = vector.load %arg8[%c3_428, %c3_429, %c1_430] : memref<4x20x40xf32, #tpu.memory_space<vmem>>, vector<1x16x36xf32>
    %1350 = vector.shape_cast %1349 : vector<1x16x36xf32> to vector<16x36xf32>
    %c33_431 = arith.constant 33 : index
    %1351 = memref.load %arg4[%c33_431] : memref<144xf32, #tpu.memory_space<smem>>
    %1352 = vector.broadcast %1351 : f32 to vector<16x36xf32>
    %1353 = arith.mulf %1352, %1350 : vector<16x36xf32>
    %1354 = arith.addf %1336, %1353 : vector<16x36xf32>
    %c69_432 = arith.constant 69 : index
    %1355 = memref.load %arg4[%c69_432] : memref<144xf32, #tpu.memory_space<smem>>
    %1356 = vector.broadcast %1355 : f32 to vector<16x36xf32>
    %1357 = arith.mulf %1356, %1350 : vector<16x36xf32>
    %1358 = arith.addf %1340, %1357 : vector<16x36xf32>
    %c105_433 = arith.constant 105 : index
    %1359 = memref.load %arg4[%c105_433] : memref<144xf32, #tpu.memory_space<smem>>
    %1360 = vector.broadcast %1359 : f32 to vector<16x36xf32>
    %1361 = arith.mulf %1360, %1350 : vector<16x36xf32>
    %1362 = arith.addf %1344, %1361 : vector<16x36xf32>
    %c141_434 = arith.constant 141 : index
    %1363 = memref.load %arg4[%c141_434] : memref<144xf32, #tpu.memory_space<smem>>
    %1364 = vector.broadcast %1363 : f32 to vector<16x36xf32>
    %1365 = arith.mulf %1364, %1350 : vector<16x36xf32>
    %1366 = arith.addf %1348, %1365 : vector<16x36xf32>
    %c3_435 = arith.constant 3 : index
    %c3_436 = arith.constant 3 : index
    %c2_437 = arith.constant 2 : index
    %1367 = vector.load %arg8[%c3_435, %c3_436, %c2_437] : memref<4x20x40xf32, #tpu.memory_space<vmem>>, vector<1x16x36xf32>
    %1368 = vector.shape_cast %1367 : vector<1x16x36xf32> to vector<16x36xf32>
    %c34_438 = arith.constant 34 : index
    %1369 = memref.load %arg4[%c34_438] : memref<144xf32, #tpu.memory_space<smem>>
    %1370 = vector.broadcast %1369 : f32 to vector<16x36xf32>
    %1371 = arith.mulf %1370, %1368 : vector<16x36xf32>
    %1372 = arith.addf %1354, %1371 : vector<16x36xf32>
    %c70_439 = arith.constant 70 : index
    %1373 = memref.load %arg4[%c70_439] : memref<144xf32, #tpu.memory_space<smem>>
    %1374 = vector.broadcast %1373 : f32 to vector<16x36xf32>
    %1375 = arith.mulf %1374, %1368 : vector<16x36xf32>
    %1376 = arith.addf %1358, %1375 : vector<16x36xf32>
    %c106_440 = arith.constant 106 : index
    %1377 = memref.load %arg4[%c106_440] : memref<144xf32, #tpu.memory_space<smem>>
    %1378 = vector.broadcast %1377 : f32 to vector<16x36xf32>
    %1379 = arith.mulf %1378, %1368 : vector<16x36xf32>
    %1380 = arith.addf %1362, %1379 : vector<16x36xf32>
    %c142_441 = arith.constant 142 : index
    %1381 = memref.load %arg4[%c142_441] : memref<144xf32, #tpu.memory_space<smem>>
    %1382 = vector.broadcast %1381 : f32 to vector<16x36xf32>
    %1383 = arith.mulf %1382, %1368 : vector<16x36xf32>
    %1384 = arith.addf %1366, %1383 : vector<16x36xf32>
    %c3_442 = arith.constant 3 : index
    %c3_443 = arith.constant 3 : index
    %c3_444 = arith.constant 3 : index
    %1385 = vector.load %arg8[%c3_442, %c3_443, %c3_444] : memref<4x20x40xf32, #tpu.memory_space<vmem>>, vector<1x16x36xf32>
    %1386 = vector.shape_cast %1385 : vector<1x16x36xf32> to vector<16x36xf32>
    %c35_445 = arith.constant 35 : index
    %1387 = memref.load %arg4[%c35_445] : memref<144xf32, #tpu.memory_space<smem>>
    %1388 = vector.broadcast %1387 : f32 to vector<16x36xf32>
    %1389 = arith.mulf %1388, %1386 : vector<16x36xf32>
    %1390 = arith.addf %1372, %1389 : vector<16x36xf32>
    %c71_446 = arith.constant 71 : index
    %1391 = memref.load %arg4[%c71_446] : memref<144xf32, #tpu.memory_space<smem>>
    %1392 = vector.broadcast %1391 : f32 to vector<16x36xf32>
    %1393 = arith.mulf %1392, %1386 : vector<16x36xf32>
    %1394 = arith.addf %1376, %1393 : vector<16x36xf32>
    %c107_447 = arith.constant 107 : index
    %1395 = memref.load %arg4[%c107_447] : memref<144xf32, #tpu.memory_space<smem>>
    %1396 = vector.broadcast %1395 : f32 to vector<16x36xf32>
    %1397 = arith.mulf %1396, %1386 : vector<16x36xf32>
    %1398 = arith.addf %1380, %1397 : vector<16x36xf32>
    %c143_448 = arith.constant 143 : index
    %1399 = memref.load %arg4[%c143_448] : memref<144xf32, #tpu.memory_space<smem>>
    %1400 = vector.broadcast %1399 : f32 to vector<16x36xf32>
    %1401 = arith.mulf %1400, %1386 : vector<16x36xf32>
    %1402 = arith.addf %1384, %1401 : vector<16x36xf32>
    %c0_449 = arith.constant 0 : index
    %c2_450 = arith.constant 2 : index
    %c2_451 = arith.constant 2 : index
    %1403 = vector.load %arg7[%c0_449, %c2_450, %c2_451] : memref<4x20x40xf32, #tpu.memory_space<vmem>>, vector<1x16x36xf32>
    %1404 = vector.shape_cast %1403 : vector<1x16x36xf32> to vector<16x36xf32>
    %c0_452 = arith.constant 0 : index
    %1405 = memref.load %arg5[%c0_452] : memref<4xf32, #tpu.memory_space<smem>>
    %1406 = vector.broadcast %1405 : f32 to vector<16x36xf32>
    %1407 = arith.addf %1390, %1406 : vector<16x36xf32>
    %1408 = arith.addf %1407, %1404 : vector<16x36xf32>
    %cst_453 = arith.constant 0.000000e+00 : f32
    %1409 = vector.broadcast %cst_453 : f32 to vector<16x36xf32>
    %1410 = arith.maximumf %1408, %1409 : vector<16x36xf32>
    %c0_454 = arith.constant 0 : index
    %c0_455 = arith.constant 0 : index
    %c0_456 = arith.constant 0 : index
    %c0_457 = arith.constant 0 : index
    %1411 = vector.load %arg6[%c0_454, %c0_455, %c0_456, %c0_457] : memref<1x4x16x36xf32, #tpu.memory_space<vmem>>, vector<1x1x16x36xf32>
    %1412 = vector.shape_cast %1411 : vector<1x1x16x36xf32> to vector<16x36xf32>
    %1413 = vector.shape_cast %1410 : vector<16x36xf32> to vector<1x1x16x36xf32>
    tpu.vector_store %arg6[%c0_454, %c0_455, %c0_456, %c0_457], %1413 {strides = array<i32>} : memref<1x4x16x36xf32, #tpu.memory_space<vmem>>, vector<1x1x16x36xf32>,
    %c1_458 = arith.constant 1 : index
    %c2_459 = arith.constant 2 : index
    %c2_460 = arith.constant 2 : index
    %1414 = vector.load %arg7[%c1_458, %c2_459, %c2_460] : memref<4x20x40xf32, #tpu.memory_space<vmem>>, vector<1x16x36xf32>
    %1415 = vector.shape_cast %1414 : vector<1x16x36xf32> to vector<16x36xf32>
    %c1_461 = arith.constant 1 : index
    %1416 = memref.load %arg5[%c1_461] : memref<4xf32, #tpu.memory_space<smem>>
    %1417 = vector.broadcast %1416 : f32 to vector<16x36xf32>
    %1418 = arith.addf %1394, %1417 : vector<16x36xf32>
    %1419 = arith.addf %1418, %1415 : vector<16x36xf32>
    %cst_462 = arith.constant 0.000000e+00 : f32
    %1420 = vector.broadcast %cst_462 : f32 to vector<16x36xf32>
    %1421 = arith.maximumf %1419, %1420 : vector<16x36xf32>
    %c0_463 = arith.constant 0 : index
    %c1_464 = arith.constant 1 : index
    %c0_465 = arith.constant 0 : index
    %c0_466 = arith.constant 0 : index
    %1422 = vector.load %arg6[%c0_463, %c1_464, %c0_465, %c0_466] : memref<1x4x16x36xf32, #tpu.memory_space<vmem>>, vector<1x1x16x36xf32>
    %1423 = vector.shape_cast %1422 : vector<1x1x16x36xf32> to vector<16x36xf32>
    %1424 = vector.shape_cast %1421 : vector<16x36xf32> to vector<1x1x16x36xf32>
    tpu.vector_store %arg6[%c0_463, %c1_464, %c0_465, %c0_466], %1424 {strides = array<i32>} : memref<1x4x16x36xf32, #tpu.memory_space<vmem>>, vector<1x1x16x36xf32>,
    %c2_467 = arith.constant 2 : index
    %c2_468 = arith.constant 2 : index
    %c2_469 = arith.constant 2 : index
    %1425 = vector.load %arg7[%c2_467, %c2_468, %c2_469] : memref<4x20x40xf32, #tpu.memory_space<vmem>>, vector<1x16x36xf32>
    %1426 = vector.shape_cast %1425 : vector<1x16x36xf32> to vector<16x36xf32>
    %c2_470 = arith.constant 2 : index
    %1427 = memref.load %arg5[%c2_470] : memref<4xf32, #tpu.memory_space<smem>>
    %1428 = vector.broadcast %1427 : f32 to vector<16x36xf32>
    %1429 = arith.addf %1398, %1428 : vector<16x36xf32>
    %1430 = arith.addf %1429, %1426 : vector<16x36xf32>
    %cst_471 = arith.constant 0.000000e+00 : f32
    %1431 = vector.broadcast %cst_471 : f32 to vector<16x36xf32>
    %1432 = arith.maximumf %1430, %1431 : vector<16x36xf32>
    %c0_472 = arith.constant 0 : index
    %c2_473 = arith.constant 2 : index
    %c0_474 = arith.constant 0 : index
    %c0_475 = arith.constant 0 : index
    %1433 = vector.load %arg6[%c0_472, %c2_473, %c0_474, %c0_475] : memref<1x4x16x36xf32, #tpu.memory_space<vmem>>, vector<1x1x16x36xf32>
    %1434 = vector.shape_cast %1433 : vector<1x1x16x36xf32> to vector<16x36xf32>
    %1435 = vector.shape_cast %1432 : vector<16x36xf32> to vector<1x1x16x36xf32>
    tpu.vector_store %arg6[%c0_472, %c2_473, %c0_474, %c0_475], %1435 {strides = array<i32>} : memref<1x4x16x36xf32, #tpu.memory_space<vmem>>, vector<1x1x16x36xf32>,
    %c3_476 = arith.constant 3 : index
    %c2_477 = arith.constant 2 : index
    %c2_478 = arith.constant 2 : index
    %1436 = vector.load %arg7[%c3_476, %c2_477, %c2_478] : memref<4x20x40xf32, #tpu.memory_space<vmem>>, vector<1x16x36xf32>
    %1437 = vector.shape_cast %1436 : vector<1x16x36xf32> to vector<16x36xf32>
    %c3_479 = arith.constant 3 : index
    %1438 = memref.load %arg5[%c3_479] : memref<4xf32, #tpu.memory_space<smem>>
    %1439 = vector.broadcast %1438 : f32 to vector<16x36xf32>
    %1440 = arith.addf %1402, %1439 : vector<16x36xf32>
    %1441 = arith.addf %1440, %1437 : vector<16x36xf32>
    %cst_480 = arith.constant 0.000000e+00 : f32
    %1442 = vector.broadcast %cst_480 : f32 to vector<16x36xf32>
    %1443 = arith.maximumf %1441, %1442 : vector<16x36xf32>
    %c0_481 = arith.constant 0 : index
    %c3_482 = arith.constant 3 : index
    %c0_483 = arith.constant 0 : index
    %c0_484 = arith.constant 0 : index
    %1444 = vector.load %arg6[%c0_481, %c3_482, %c0_483, %c0_484] : memref<1x4x16x36xf32, #tpu.memory_space<vmem>>, vector<1x1x16x36xf32>
    %1445 = vector.shape_cast %1444 : vector<1x1x16x36xf32> to vector<16x36xf32>
    %1446 = vector.shape_cast %1443 : vector<16x36xf32> to vector<1x1x16x36xf32>
    tpu.vector_store %arg6[%c0_481, %c3_482, %c0_483, %c0_484], %1446 {strides = array<i32>} : memref<1x4x16x36xf32, #tpu.memory_space<vmem>>, vector<1x1x16x36xf32>,
    return
  }
  func.func @transform_0(%arg0: i32) -> (i32, i32, i32, i32) {
    %c0_i32 = arith.constant 0 : i32
    %c0_i32_0 = arith.constant 0 : i32
    %c0_i32_1 = arith.constant 0 : i32
    %c0_i32_2 = arith.constant 0 : i32
    return %arg0, %c0_i32, %c0_i32_0, %c0_i32_1 : i32, i32, i32, i32
  }
  func.func @transform_1(%arg0: i32) -> i32 {
    %c0_i32 = arith.constant 0 : i32
    %c0_i32_0 = arith.constant 0 : i32
    return %c0_i32 : i32
  }
  func.func @transform_2(%arg0: i32) -> i32 {
    %c0_i32 = arith.constant 0 : i32
    %c0_i32_0 = arith.constant 0 : i32
    return %c0_i32 : i32
  }
  func.func @transform_3(%arg0: i32) -> i32 {
    %c0_i32 = arith.constant 0 : i32
    %c0_i32_0 = arith.constant 0 : i32
    return %c0_i32 : i32
  }
  func.func @transform_4(%arg0: i32) -> i32 {
    %c0_i32 = arith.constant 0 : i32
    %c0_i32_0 = arith.constant 0 : i32
    return %c0_i32 : i32
  }
  func.func @transform_5(%arg0: i32) -> (i32, i32, i32, i32) {
    %c0_i32 = arith.constant 0 : i32
    %c0_i32_0 = arith.constant 0 : i32
    %c0_i32_1 = arith.constant 0 : i32
    %c0_i32_2 = arith.constant 0 : i32
    return %arg0, %c0_i32, %c0_i32_0, %c0_i32_1 : i32, i32, i32, i32
  }
}

</mosaic_0001>

<bundles_post_ra>
// kernel: tpu_custom_call.1
= control target key start
LH: loop header
LB: loop body
LE: loop exit
PB: predicated region body
PF: predicated region fallthrough
CT: control target
= control target key end

     0   :  { %10 = vsyncpa [#allocation5], 0  ;;  %s8099_s0 = inlined_call_operand.hbm [shape: f32[2,4,16,16], index: 0, kind: input, shape index: {}]   ;;  %s8100_s1 = inlined_call_operand.hbm [shape: f32[144], index: 1, kind: input, shape index: {}]   ;;  %s8101_s2 = inlined_call_operand.hbm [shape: f32[4], index: 2, kind: input, shape index: {}]   ;;  %s8102_s3 = inlined_call_operand.vmem [shape: f32[144], index: 3, kind: input, shape index: {}]   ;;  %s8103_s4 = inlined_call_operand.vmem [shape: f32[4], index: 4, kind: input, shape index: {}]   ;;  %s8104_s5 = inlined_call_operand.hbm [shape: f32[1,4,16,36], index: 5, kind: output, shape index: {}]  }
   0x1   :  { %11 = vsyncpa [#allocation7], 0 }
   0x2   :  { %12 = vsyncpa [#allocation11], 0 }
   0x3   :  { %13 = vsyncpa [#allocation8], 0 }
   0x4   :  { %14 = vsyncpa [#allocation14], 0 }
   0x5   :  { %15 = vsyncpa [#allocation6], 0  ;;  %s20_s20 = sshll.u32 %s8099_s0, 4  ;;  %s4900_s21 = smov [#allocation4]   ;;  %s21_s20 = int_to_ptr.hbm [resolvable:$true] %s20_s20 }
   0x6   :  { %s22_s22 = sshll.u32 %s4900_s21, 4  ;;  %s34_s25 = sshll.u32 %s8100_s1, 4  ;;  %s23_s22 = int_to_ptr.vmem [resolvable:$true] %s22_s22  ;;  %s35_s25 = int_to_ptr.hbm [resolvable:$true] %s34_s25 }
   0x7   :  { %s4901_s26 = smov 128   ;;  %s4902_s27 = smov 8  }
   0x8   :  { %28 = dma.hbm_to_vmem [thread:$0]  %s21_s20, 2048, %s23_s22, [#allocation5], %s4901_s26, %s4901_s26, %s4902_s27  }
   0x9   :  { %s4903_s28 = smov [#allocation9]   ;;  %s43_s0 = sshll.u32 %s8101_s2, 4  ;;  %s44_s0 = int_to_ptr.hbm [resolvable:$true] %s43_s0 }
   0xa   :  { %37 = dma.hbm_to_smem %s35_s25, 32, %s4903_s28, [#allocation7]  }
   0xb   :  { %s52_s8 = sshll.u32 %s8102_s3, 4  ;;  %s4904_s9 = smov [#allocation10]   ;;  %s53_s8 = int_to_ptr.vmem [resolvable:$true] %s52_s8 }
   0xc   :  { %46 = dma.hbm_to_smem %s44_s0, 16, %s4904_s9, [#allocation11]  }
   0xd   :  { %s4905_s1 = smov [#allocation12]   ;;  %s61_s12 = sshll.u32 %s8103_s4, 4  ;;  %s62_s12 = int_to_ptr.vmem [resolvable:$true] %s61_s12 }
   0xe   :  { %55 = dma.vmem_to_smem %s53_s8, 32, %s4905_s1, [#allocation8]  }
   0xf   :  { %s4906_s13 = smov [#allocation13]  }
  0x10   :  { %64 = dma.vmem_to_smem %s62_s12, 16, %s4906_s13, [#allocation14]  }
  0x11   :  { %4888 = dma.done.wait [#allocation5], 2048  }
  0x12   :  { %4889 = vsyncadd [#allocation5], 4294965248 }
  0x13   :  { %4890 = dma.done.wait [#allocation7], 32  }
  0x14   :  { %4891 = vsyncadd [#allocation7], 4294967264 }
  0x15   :  { %4892 = dma.done.wait [#allocation11], 16  }
  0x16   :  { %4893 = vsyncadd [#allocation11], 4294967280 }
  0x17   :  { %4894 = dma.done.wait [#allocation8], 32  }
  0x18   :  { %4895 = vsyncadd [#allocation8], 4294967264 }
  0x19   :  { %4896 = dma.done.wait [#allocation14], 16  }
  0x1a   :  { %4897 = vsyncadd [#allocation14], 4294967280 }
  0x1b   :  { %85 = sfence }
  0x1c   :  { %v100_v0 = vld [vmem:[#allocation4] sm:$0xff]  ;;  %s4907_s2 = smov 2   ;;  %v114_v2 = vld [vmem:[#allocation4 + $0x10] sm:$0xff]  ;;  %v101_v3 = vld [vmem:[#allocation4 + $0x8] sm:$0xff]  ;;  %s4908_s3 = smov 22   ;;  %vm86_vm0 = vcmask 326656  }
  0x1d   :  { %v128_v1 = vld [vmem:[#allocation4 + $0x20] sm:$0xff]  ;;  %104 = vrot.lane.b32.xlu0 %v100_v0, %s4907_s2  ;;  %118 = vrot.lane.b32.xlu1 %v114_v2, %s4907_s2  ;;  %v129_v4 = vld [vmem:[#allocation4 + $0x28] sm:$0xff]  ;;  %v115_v5 = vld [vmem:[#allocation4 + $0x18] sm:$0xff]  ;;  %v4909_v9 = vmov 0.0   ;;  %vm89_vm1 = vcmask 322560   ;;  %vm110_vm2 = vcmask 146448  }
  0x1e   :  { %132 = vrot.lane.b32.xlu2 %v128_v1, %s4907_s2  ;;  %v142_v6 = vld [vmem:[#allocation4 + $0x30] sm:$0xff]  ;;  %v156_v7 = vld [vmem:[#allocation4 + $0x40] sm:$0xff]  ;;  %v157_v8 = vld [vmem:[#allocation4 + $0x48] sm:$0xff]  ;;  %94 = vst.msk [vmem:[#allocation2 + $0x30] sm:$0xff] %vm86_vm0, %v4909_v9  ;;  %vm166_vm3 = vcmask 310448   ;;  %s4489_s4 = sld [smem:[#allocation9 + $0x1]] }
  0x1f   :  { %v143_v10 = vld [vmem:[#allocation4 + $0x38] sm:$0xff]  ;;  %95 = vst.msk [vmem:[#allocation2 + $0x38] sm:$0xff] %vm86_vm0, %v4909_v9  ;;  %v170_v11 = vld [vmem:[#allocation4 + $0x50] sm:$0xff]  ;;  %v184_v12 = vld [vmem:[#allocation4 + $0x68] sm:$0xff]  ;;  %s4490_s14 = sld [smem:[#allocation9 + $0x25]]  ;;  %s4910_s15 = smov 127  }
  0x20   :  { %87 = vst.msk [vmem:[#allocation2] sm:$0xff] %vm86_vm0, %v4909_v9  ;;  %v183_v13 = vld [vmem:[#allocation4 + $0x60] sm:$0xff]  ;;  %v171_v16 = vld [vmem:[#allocation4 + $0x58] sm:$0xff]  ;;  %v196_v17 = vld [vmem:[#allocation4 + $0x70] sm:$0xff]  ;;  %s4491_s16 = sld [smem:[#allocation9 + $0x49]]  ;;  %s4911_s20 = smov 126  }
  0x21   :  { %88 = vst.msk [vmem:[#allocation2 + $0x8] sm:$0xff] %vm86_vm0, %v4909_v9  ;;  %v197_v18 = vld [vmem:[#allocation4 + $0x78] sm:$0xff]  ;;  %s4492_s17 = sld [smem:[#allocation9 + $0x6d]]  ;;  %vm2602_vm15 = vcmask 318472  }
  0x22   :  { %91 = vst.msk [vmem:[#allocation2 + $0x18] sm:$0xff] %vm86_vm0, %v4909_v9  ;;  %s4493_s18 = sld [smem:[#allocation9 + $0x2]] }
  0x23   :  { %92 = vst.msk [vmem:[#allocation2 + $0x20] sm:$0xff] %vm86_vm0, %v4909_v9  ;;  %s4494_s19 = sld [smem:[#allocation9 + $0x26]] }
  0x24   :  { %97 = vst.msk [vmem:[#allocation2 + $0x48] sm:$0xff] %vm86_vm0, %v4909_v9  ;;  %v275_v21 = vstv %s4489_s4  ;;  %s4495_s21 = sld [smem:[#allocation9 + $0x4a]] }
  0x25   :  { %106 = vrot.lane.b32.xlu0 %v101_v3, %s4907_s2  ;;  %120 = vrot.lane.b32.xlu1 %v115_v5, %s4907_s2  ;;  %98 = vst.msk [vmem:[#allocation2 + $0x50] sm:$0xff] %vm86_vm0, %v4909_v9  ;;  %v295_v25 = vstv %s4490_s14  ;;  %s4496_s22 = sld [smem:[#allocation9 + $0x6e]]  ;;  %vm2605_vm0 = vcmask 312328  }
  0x26   :  { %134 = vrot.lane.b32.xlu2 %v129_v4, %s4907_s2  ;;  %96 = vst.msk [vmem:[#allocation2 + $0x40] sm:$0xf] %vm89_vm1, %v4909_v9  ;;  %v315_v28 = vstv %s4491_s16  ;;  %s4501_s23 = sld [smem:[#allocation9 + $0x4]] }
  0x27   :  { %90 = vst.msk [vmem:[#allocation2 + $0x10] sm:$0xf] %vm89_vm1, %v4909_v9  ;;  %v335_v31 = vstv %s4492_s17  ;;  %s4502_s24 = sld [smem:[#allocation9 + $0x28]] }
  0x28   :  { %93 = vst.msk [vmem:[#allocation2 + $0x28] sm:$0xf] %vm89_vm1, %v4909_v9  ;;  %v355_v38 = vstv %s4493_s18  ;;  %s4503_s25 = sld [smem:[#allocation9 + $0x4c]] }
  0x29   :  { %99 = vst.msk [vmem:[#allocation2 + $0x58] sm:$0xf] %vm89_vm1, %v4909_v9  ;;  %v375_v42 = vstv %s4494_s19  ;;  %s4504_s28 = sld [smem:[#allocation9 + $0x70]]  ;;  %vm4370_vm1 = vcmask 293888  }
  0x2a   :  { %v395_v47 = vstv %s4495_s21  ;;  %s4505_s29 = sld [smem:[#allocation9 + $0x5]] }
  0x2b   :  { %v415_v52 = vstv %s4496_s22  ;;  %s4506_s30 = sld [smem:[#allocation9 + $0x29]] }
  0x2c   :  { %v470_v57 = vstv %s4501_s23  ;;  %s4507_s0 = sld [smem:[#allocation9 + $0x4d]] }
  0x2d   :  { %146 = vrot.lane.b32.xlu0 %v142_v6, %s4907_s2  ;;  %148 = vrot.lane.b32.xlu1 %v143_v10, %s4907_s2  ;;  %v490_v63 = vstv %s4502_s24  ;;  %s4508_s6 = sld [smem:[#allocation9 + $0x71]] }
  0x2e   :  { %160 = vrot.lane.b32.xlu2 %v156_v7, %s4908_s3  ;;  %v510_v6 = vstv %s4503_s25  ;;  %s4513_s7 = sld [smem:[#allocation9 + $0x7]] }
  0x2f   :  { %s4514_s8 = sld [smem:[#allocation9 + $0x2b]] }
  0x30   :  { %s4515_s9 = sld [smem:[#allocation9 + $0x4f]] }
  0x31   :  { %s242_s1 = sld [smem:[#allocation9]] }
  0x32   :  { %s4497_s10 = sld [smem:[#allocation9 + $0x3]] }
  0x33   :  { %s4516_s11 = sld [smem:[#allocation9 + $0x73]] }
  0x34   :  { %s4486_s12 = sld [smem:[#allocation9 + $0x24]] }
  0x35   :  { %162 = vrot.lane.b32.xlu0 %v157_v8, %s4908_s3  ;;  %174 = vrot.lane.b32.xlu1 %v170_v11, %s4908_s3  ;;  %s4498_s13 = sld [smem:[#allocation9 + $0x27]] }
  0x36   :  { %176 = vrot.lane.b32.xlu2 %v171_v16, %s4908_s3  ;;  %s4517_s2 = sld [smem:[#allocation9 + $0x8]] }
  0x37   :  { %s4499_s4 = sld [smem:[#allocation9 + $0x4b]] }
  0x38   :  { %s4518_s14 = sld [smem:[#allocation9 + $0x2c]] }
  0x39   :  { %s4488_s16 = sld [smem:[#allocation9 + $0x6c]] }
  0x3a   :  { %s4500_s17 = sld [smem:[#allocation9 + $0x6f]] }
  0x3b   :  { %s4519_s18 = sld [smem:[#allocation9 + $0x50]] }
  0x3c   :  { %s4520_s19 = sld [smem:[#allocation9 + $0x74]] }
  0x3d   :  { %189 = vrot.lane.b32.xlu1 %v184_v12, %s4908_s3  ;;  %187 = vrot.lane.b32.xlu0 %v183_v13, %s4908_s3  ;;  %v530_v13 = vstv %s4504_s28  ;;  %s4525_s21 = sld [smem:[#allocation9 + $0xa]] }
  0x3e   :  { %200 = vrot.lane.b32.xlu2 %v196_v17, %s4908_s3  ;;  %v550_v17 = vstv %s4505_s29  ;;  %s4526_s22 = sld [smem:[#allocation9 + $0x2e]] }
  0x3f   :  { %s4527_s23 = sld [smem:[#allocation9 + $0x52]] }
  0x40   :  { %s4509_s24 = sld [smem:[#allocation9 + $0x6]] }
  0x41   :  { %s4528_s25 = sld [smem:[#allocation9 + $0x76]] }
  0x42   :  { %s4510_s28 = sld [smem:[#allocation9 + $0x2a]] }
  0x43   :  { %s4529_s29 = sld [smem:[#allocation9 + $0xb]] }
  0x45   :  { %202 = vrot.lane.b32.xlu0 %v197_v18, %s4908_s3  ;;  %s4487_s3 = sld [smem:[#allocation9 + $0x48]] }
  0x78   :  { %v133_v14 = vpop.permute.xlu2 %132 }
  0x79   :  { %139 = vst.msk [vmem:[#allocation2 + $0x32] sm:$0xff] %vm110_vm2, %v133_v14 }
  0x80   :  { %v135_v15 = vpop.permute.xlu2 %134 }
  0x81   :  { %140 = vst.msk [vmem:[#allocation2 + $0x3a] sm:$0xff] %vm110_vm2, %v135_v15 }
  0x88   :  { %v161_v19 = vpop.permute.xlu2 %160 }
  0x8f   :  { %v105_v20 = vpop.permute.xlu0 %104  ;;  %v119_v45 = vpop.permute.xlu1 %118 }
  0x90   :  { %111 = vst.msk [vmem:[#allocation2 + $0x2] sm:$0xff] %vm110_vm2, %v105_v20  ;;  %v177_v61 = vpop.permute.xlu2 %176 }
  0x91   :  { %167 = vst.msk [vmem:[#allocation2 + $0x2] sm:$0xff] %vm166_vm3, %v161_v19 }
  0x92   :  { %125 = vst.msk [vmem:[#allocation2 + $0x1a] sm:$0xff] %vm110_vm2, %v119_v45 }
  0x97   :  { %v107_v22 = vpop.permute.xlu0 %106  ;;  %v121_v50 = vpop.permute.xlu1 %120 }
  0x98   :  { %v4986_v23 = vld [vmem:[#allocation2] sm:$0xff]  ;;  %112 = vst.msk [vmem:[#allocation2 + $0xa] sm:$0xff] %vm110_vm2, %v107_v22  ;;  %v201_v3 = vpop.permute.xlu2 %200  ;;  %v570_v22 = vstv %s4506_s30  ;;  %s4511_s30 = sld [smem:[#allocation9 + $0x4e]] }
  0x99   :  { %v276_v24 = vmul.f32 %v275_v21, %v4986_v23  ;;  %v296_v27 = vmul.f32 %v295_v25, %v4986_v23  ;;  %v316_v30 = vmul.f32 %v315_v28, %v4986_v23  ;;  %v336_v36 = vmul.f32 %v335_v31, %v4986_v23  ;;  %126 = vst.msk [vmem:[#allocation2 + $0x22] sm:$0xff] %vm110_vm2, %v121_v50  ;;  %v5034_v56 = vld [vmem:[#allocation2 + $0x1] sm:$0xff] }
  0x9a   :  { %v356_v40 = vmul.f32 %v355_v38, %v4986_v23  ;;  %v376_v44 = vmul.f32 %v375_v42, %v4986_v23  ;;  %v396_v49 = vmul.f32 %v395_v47, %v4986_v23  ;;  %v416_v54 = vmul.f32 %v415_v52, %v4986_v23  ;;  %181 = vst.msk [vmem:[#allocation2 + $0x22] sm:$0xff] %vm166_vm3, %v177_v61 }
  0x9b   :  { %282 = vrot.lane.b32.xlu1 %v276_v24, %s4910_s15  ;;  %v471_v60 = vmul.f32 %v470_v57, %v5034_v56  ;;  %v491_v2 = vmul.f32 %v490_v63, %v5034_v56  ;;  %v511_v10 = vmul.f32 %v510_v6, %v5034_v56  ;;  %v531_v16 = vmul.f32 %v530_v13, %v5034_v56 }
  0x9c   :  { %v551_v20 = vmul.f32 %v550_v17, %v5034_v56 }
  0x9f   :  { %v147_v26 = vpop.permute.xlu0 %146  ;;  %v149_v55 = vpop.permute.xlu1 %148 }
  0xa0   :  { %153 = vst.msk [vmem:[#allocation2 + $0x4a] sm:$0xff] %vm110_vm2, %v147_v26  ;;  %v571_v26 = vmul.f32 %v570_v22, %v5034_v56 }
  0xa1   :  { %154 = vst.msk [vmem:[#allocation2 + $0x52] sm:$0xff] %vm110_vm2, %v149_v55  ;;  %v5125_v55 = vstv %s4515_s9  ;;  %s4537_s9 = sld [smem:[#allocation9 + $0xd]] }
  0xa2   :  { %206 = vst.msk [vmem:[#allocation2 + $0x4a] sm:$0xff] %vm166_vm3, %v201_v3 }
  0xa3   :  { %302 = vrot.lane.b32.xlu1 %v296_v27, %s4910_s15  ;;  %v590_v27 = vstv %s4507_s0  ;;  %s4530_s0 = sld [smem:[#allocation9 + $0x2f]] }
  0xa7   :  { %v163_v29 = vpop.permute.xlu0 %162  ;;  %v175_v62 = vpop.permute.xlu1 %174 }
  0xa8   :  { %168 = vst.msk [vmem:[#allocation2 + $0xa] sm:$0xff] %vm166_vm3, %v163_v29 }
  0xa9   :  { %180 = vst.msk [vmem:[#allocation2 + $0x1a] sm:$0xff] %vm166_vm3, %v175_v62 }
  0xab   :  { %322 = vrot.lane.b32.xlu1 %v316_v30, %s4910_s15  ;;  %v591_v30 = vmul.f32 %v590_v27, %v5034_v56 }
  0xaf   :  { %v4997_v32 = vld [vmem:[#allocation2 + $0x8] sm:$0xff]  ;;  %v4999_v33 = vld [vmem:[#allocation2 + $0x10] sm:$0x3]  ;;  %v190_v4 = vpop.permute.xlu1 %189  ;;  %v188_v5 = vpop.permute.xlu0 %187 }
  0xb0   :  { %v278_v34 = vmul.f32 %v275_v21, %v4999_v33  ;;  %v277_v35 = vmul.f32 %v275_v21, %v4997_v32  ;;  %v298_v37 = vmul.f32 %v295_v25, %v4999_v33  ;;  %v297_v39 = vmul.f32 %v295_v25, %v4997_v32  ;;  %194 = vst.msk [vmem:[#allocation2 + $0x3a] sm:$0xff] %vm166_vm3, %v190_v4  ;;  %v5059_v11 = vld [vmem:[#allocation2 + $0x9] sm:$0xff]  ;;  %v5061_v12 = vld [vmem:[#allocation2 + $0x11] sm:$0x3] }
  0xb1   :  { %v318_v41 = vmul.f32 %v315_v28, %v4999_v33  ;;  %v317_v43 = vmul.f32 %v315_v28, %v4997_v32  ;;  %v338_v46 = vmul.f32 %v335_v31, %v4999_v33  ;;  %v337_v48 = vmul.f32 %v335_v31, %v4997_v32  ;;  %193 = vst.msk [vmem:[#allocation2 + $0x32] sm:$0xff] %vm166_vm3, %v188_v5  ;;  %v5146_v5 = vld [vmem:[#allocation2 + $0xa] sm:$0xff] }
  0xb2   :  { %286 = vrot.lane.b32.xlu0 %v278_v34, %s4910_s15  ;;  %284 = vrot.lane.b32.xlu2 %v277_v35, %s4910_s15  ;;  %v358_v51 = vmul.f32 %v355_v38, %v4999_v33  ;;  %v357_v53 = vmul.f32 %v355_v38, %v4997_v32  ;;  %v378_v58 = vmul.f32 %v375_v42, %v4999_v33  ;;  %v610_v35 = vstv %s4508_s6  ;;  %s4512_s6 = sld [smem:[#allocation9 + $0x72]] }
  0xb3   :  { %342 = vrot.lane.b32.xlu1 %v336_v36, %s4910_s15  ;;  %v377_v59 = vmul.f32 %v375_v42, %v4997_v32  ;;  %v398_v0 = vmul.f32 %v395_v47, %v4999_v33  ;;  %v397_v1 = vmul.f32 %v395_v47, %v4997_v32  ;;  %v418_v7 = vmul.f32 %v415_v52, %v4999_v33 }
  0xb4   :  { %v417_v8 = vmul.f32 %v415_v52, %v4997_v32  ;;  %v473_v14 = vmul.f32 %v470_v57, %v5061_v12  ;;  %v472_v15 = vmul.f32 %v470_v57, %v5059_v11  ;;  %v493_v18 = vmul.f32 %v490_v63, %v5061_v12 }
  0xb5   :  { %v492_v19 = vmul.f32 %v490_v63, %v5059_v11  ;;  %v513_v24 = vmul.f32 %v510_v6, %v5061_v12  ;;  %v512_v25 = vmul.f32 %v510_v6, %v5059_v11  ;;  %v533_v28 = vmul.f32 %v530_v13, %v5061_v12  ;;  %v5139_v63 = vld [vmem:[#allocation2 + $0x12] sm:$0x3] }
  0xb6   :  { %v532_v29 = vmul.f32 %v530_v13, %v5059_v11  ;;  %v553_v36 = vmul.f32 %v550_v17, %v5061_v12  ;;  %v611_v38 = vmul.f32 %v610_v35, %v5034_v56  ;;  %v665_v42 = vstv %s4513_s7  ;;  %s4531_s7 = sld [smem:[#allocation9 + $0x53]] }
  0xb7   :  { %v203_v21 = vpop.permute.xlu0 %202  ;;  %v592_v50 = vmul.f32 %v590_v27, %v5059_v11  ;;  %v5127_v57 = vstv %s242_s1  ;;  %v668_v13 = vmul.f32 %v665_v42, %v5139_v63  ;;  %s4538_s1 = sld [smem:[#allocation9 + $0x31]] }
  0xb8   :  { %207 = vst.msk [vmem:[#allocation2 + $0x52] sm:$0xff] %vm166_vm3, %v203_v21  ;;  %v244_v62 = vmul.f32 %v5127_v57, %v4986_v23 }
  0xba   :  { %306 = vrot.lane.b32.xlu0 %v298_v37, %s4910_s15  ;;  %304 = vrot.lane.b32.xlu2 %v297_v39, %s4910_s15  ;;  %v552_v37 = vmul.f32 %v550_v17, %v5059_v11 }
  0xbb   :  { %362 = vrot.lane.b32.xlu1 %v356_v40, %s4911_s20 }
  0xc2   :  { %326 = vrot.lane.b32.xlu0 %v318_v41, %s4910_s15  ;;  %324 = vrot.lane.b32.xlu2 %v317_v43, %s4910_s15  ;;  %v5098_v41 = vld [vmem:[#allocation2 + $0x2] sm:$0xff]  ;;  %v573_v43 = vmul.f32 %v570_v22, %v5061_v12 }
  0xc3   :  { %382 = vrot.lane.b32.xlu1 %v376_v44, %s4911_s20  ;;  %v572_v44 = vmul.f32 %v570_v22, %v5059_v11  ;;  %v666_v45 = vmul.f32 %v665_v42, %v5098_v41  ;;  %v706_v61 = vmul.f32 %v5125_v55, %v5098_v41 }
  0xca   :  { %346 = vrot.lane.b32.xlu0 %v338_v46, %s4910_s15  ;;  %344 = vrot.lane.b32.xlu2 %v337_v48, %s4910_s15  ;;  %v5110_v48 = vstv %s4514_s8  ;;  %s4532_s8 = sld [smem:[#allocation9 + $0x77]] }
  0xcb   :  { %402 = vrot.lane.b32.xlu1 %v396_v49, %s4911_s20  ;;  %v593_v49 = vmul.f32 %v590_v27, %v5061_v12 }
  0xd2   :  { %366 = vrot.lane.b32.xlu0 %v358_v51, %s4911_s20  ;;  %364 = vrot.lane.b32.xlu2 %v357_v53, %s4911_s20  ;;  %v686_v51 = vmul.f32 %v5110_v48, %v5098_v41 }
  0xd3   :  { %422 = vrot.lane.b32.xlu1 %v416_v54, %s4911_s20 }
  0xda   :  { %386 = vrot.lane.b32.xlu0 %v378_v58, %s4911_s20  ;;  %384 = vrot.lane.b32.xlu2 %v377_v59, %s4911_s20  ;;  %v613_v58 = vmul.f32 %v610_v35, %v5061_v12  ;;  %v612_v59 = vmul.f32 %v610_v35, %v5059_v11  ;;  %v688_v35 = vmul.f32 %v5110_v48, %v5139_v63 }
  0xdb   :  { %477 = vrot.lane.b32.xlu1 %v471_v60, %s4910_s15  ;;  %v245_v60 = vmul.f32 %v5127_v57, %v4997_v32 }
  0xe2   :  { %406 = vrot.lane.b32.xlu0 %v398_v0, %s4911_s20  ;;  %404 = vrot.lane.b32.xlu2 %v397_v1, %s4911_s20  ;;  %v5142_v1 = vstv %s4497_s10  ;;  %s4539_s10 = sld [smem:[#allocation9 + $0x55]] }
  0xe3   :  { %497 = vrot.lane.b32.xlu1 %v491_v2, %s4910_s15 }
  0xea   :  { %426 = vrot.lane.b32.xlu0 %v418_v7, %s4911_s20  ;;  %424 = vrot.lane.b32.xlu2 %v417_v8, %s4911_s20  ;;  %v440_v8 = vmul.f32 %v5142_v1, %v5059_v11 }
  0xeb   :  { %517 = vrot.lane.b32.xlu1 %v511_v10, %s4910_s15 }
  0xf2   :  { %481 = vrot.lane.b32.xlu0 %v473_v14, %s4910_s15  ;;  %479 = vrot.lane.b32.xlu2 %v472_v15, %s4910_s15  ;;  %v5151_v14 = vstv %s4516_s11  ;;  %v439_v15 = vmul.f32 %v5142_v1, %v5034_v56  ;;  %s4521_s11 = sld [smem:[#allocation9 + $0x9]] }
  0xf3   :  { %537 = vrot.lane.b32.xlu1 %v531_v16, %s4910_s15  ;;  %v5155_v16 = vstv %s4486_s12  ;;  %v726_v21 = vmul.f32 %v5151_v14, %v5098_v41  ;;  %s4540_s12 = sld [smem:[#allocation9 + $0x79]] }
  0xf4   :  { %v252_v22 = vmul.f32 %v5155_v16, %v4986_v23 }
  0xfa   :  { %501 = vrot.lane.b32.xlu0 %v493_v18, %s4910_s15  ;;  %499 = vrot.lane.b32.xlu2 %v492_v19, %s4910_s15  ;;  %v667_v18 = vmul.f32 %v665_v42, %v5146_v5 }
  0xfb   :  { %557 = vrot.lane.b32.xlu1 %v551_v20, %s4911_s20  ;;  %v253_v20 = vmul.f32 %v5155_v16, %v4997_v32 }
 0x102   :  { %521 = vrot.lane.b32.xlu0 %v513_v24, %s4910_s15  ;;  %519 = vrot.lane.b32.xlu2 %v512_v25, %s4910_s15  ;;  %v5172_v25 = vstv %s4498_s13  ;;  %s4522_s13 = sld [smem:[#allocation9 + $0x2d]] }
 0x103   :  { %577 = vrot.lane.b32.xlu1 %v571_v26, %s4911_s20 }
 0x10a   :  { %541 = vrot.lane.b32.xlu0 %v533_v28, %s4910_s15  ;;  %539 = vrot.lane.b32.xlu2 %v532_v29, %s4910_s15 }
 0x10b   :  { %597 = vrot.lane.b32.xlu1 %v591_v30, %s4911_s20 }
 0x10c   :  { %v285_v31 = vpop.permute.xlu2 %284 }
 0x10d   :  { %v283_v34 = vpop.permute.xlu1 %282  ;;  %v292_v0 = vadd.f32 %v285_v31, %v245_v60  ;;  %v448_v31 = vmul.f32 %v5172_v25, %v5059_v11 }
 0x10e   :  { %v291_v2 = vadd.f32 %v283_v34, %v244_v62 }
 0x112   :  { %561 = vrot.lane.b32.xlu0 %v553_v36, %s4911_s20  ;;  %559 = vrot.lane.b32.xlu2 %v552_v37, %s4911_s20  ;;  %v5181_v36 = vstv %s4517_s2  ;;  %v447_v37 = vmul.f32 %v5172_v25, %v5034_v56  ;;  %s4541_s2 = sld [smem:[#allocation9 + $0xe]] }
 0x113   :  { %617 = vrot.lane.b32.xlu1 %v611_v38, %s4911_s20  ;;  %v5185_v38 = vstv %s4487_s3  ;;  %s4523_s3 = sld [smem:[#allocation9 + $0x51]] }
 0x114   :  { %v5094_v39 = vpop.permute.xlu2 %304 }
 0x115   :  { %v5096_v40 = vpop.permute.xlu1 %302  ;;  %v312_v24 = vadd.f32 %v5094_v39, %v253_v20 }
 0x116   :  { %v311_v26 = vadd.f32 %v5096_v40, %v252_v22  ;;  %v687_v40 = vmul.f32 %v5110_v48, %v5146_v5  ;;  %v5203_v48 = vstv %s4499_s4  ;;  %s4542_s4 = sld [smem:[#allocation9 + $0x32]] }
 0x11a   :  { %581 = vrot.lane.b32.xlu0 %v573_v43, %s4911_s20  ;;  %579 = vrot.lane.b32.xlu2 %v572_v44, %s4911_s20  ;;  %v261_v43 = vmul.f32 %v5185_v38, %v4997_v32  ;;  %v746_v44 = vmul.f32 %v5181_v36, %v5098_v41 }
 0x11b   :  { %672 = vrot.lane.b32.xlu1 %v666_v45, %s4910_s15  ;;  %v260_v45 = vmul.f32 %v5185_v38, %v4986_v23 }
 0x11c   :  { %v5106_v46 = vpop.permute.xlu2 %324 }
 0x11d   :  { %v5108_v47 = vpop.permute.xlu1 %322 }
 0x122   :  { %601 = vrot.lane.b32.xlu0 %v593_v49, %s4911_s20  ;;  %599 = vrot.lane.b32.xlu2 %v592_v50, %s4911_s20  ;;  %v332_v49 = vadd.f32 %v5106_v46, %v261_v43  ;;  %v331_v50 = vadd.f32 %v5108_v47, %v260_v45  ;;  %v5212_v46 = vstv %s4518_s14  ;;  %v805_v45 = vstv %s4520_s19  ;;  %s4524_s14 = sld [smem:[#allocation9 + $0x75]] }
 0x123   :  { %692 = vrot.lane.b32.xlu1 %v686_v51, %s4910_s15  ;;  %s4550_s19 = sld [smem:[#allocation9 + $0x34]] }
 0x124   :  { %v5119_v52 = vpop.permute.xlu0 %286  ;;  %v5121_v53 = vpop.permute.xlu2 %344 }
 0x125   :  { %v5123_v54 = vpop.permute.xlu1 %342 }
 0x12a   :  { %621 = vrot.lane.b32.xlu0 %v613_v58, %s4911_s20  ;;  %619 = vrot.lane.b32.xlu2 %v612_v59, %s4911_s20 }
 0x12b   :  { %712 = vrot.lane.b32.xlu1 %v706_v61, %s4910_s15  ;;  %v456_v61 = vmul.f32 %v5203_v48, %v5059_v11 }
 0x12c   :  { %v5144_v3 = vpop.permute.xlu0 %306  ;;  %v365_v4 = vpop.permute.xlu2 %364 }
 0x12d   :  { %v372_v6 = vadd.f32 %v365_v4, %v292_v0  ;;  %v363_v7 = vpop.permute.xlu1 %362  ;;  %v708_v0 = vmul.f32 %v5125_v55, %v5139_v63  ;;  %v5216_v4 = vstv %s4488_s16  ;;  %s4543_s16 = sld [smem:[#allocation9 + $0x56]] }
 0x12e   :  { %v371_v10 = vadd.f32 %v363_v7, %v291_v2  ;;  %v455_v2 = vmul.f32 %v5203_v48, %v5034_v56 }
 0x12f   :  { %v5157_v17 = vadd.f32 %v440_v8, %v372_v6  ;;  %v707_v6 = vmul.f32 %v5125_v55, %v5146_v5  ;;  %v246_v8 = vmul.f32 %v5127_v57, %v4999_v33  ;;  %v462_v57 = vstv %s4500_s17  ;;  %s4544_s17 = sld [smem:[#allocation9 + $0x7a]] }
 0x130   :  { %v5160_v19 = vadd.f32 %v439_v15, %v371_v10  ;;  %v269_v10 = vmul.f32 %v5216_v4, %v4997_v32  ;;  %v268_v15 = vmul.f32 %v5216_v4, %v4986_v23  ;;  %v441_v23 = vmul.f32 %v5142_v1, %v5061_v12 }
 0x131   :  { %v293_v55 = vadd.f32 %v5119_v52, %v246_v8  ;;  %v728_v52 = vmul.f32 %v5151_v14, %v5139_v63  ;;  %v270_v8 = vmul.f32 %v5216_v4, %v4999_v33  ;;  %v880_v4 = vstv %s4526_s22  ;;  %s4533_s22 = sld [smem:[#allocation9 + $0xc]] }
 0x132   :  { %676 = vrot.lane.b32.xlu0 %v668_v13, %s4910_s15  ;;  %674 = vrot.lane.b32.xlu2 %v667_v18, %s4910_s15  ;;  %v766_v13 = vmul.f32 %v5212_v46, %v5098_v41  ;;  %v352_v18 = vadd.f32 %v5121_v53, %v269_v10  ;;  %v351_v20 = vadd.f32 %v5123_v54, %v268_v15  ;;  %v785_v53 = vstv %s4519_s18  ;;  %s4549_s18 = sld [smem:[#allocation9 + $0x10]] }
 0x133   :  { %732 = vrot.lane.b32.xlu1 %v726_v21, %s4910_s15  ;;  %v786_v1 = vmul.f32 %v785_v53, %v5098_v41 }
 0x134   :  { %v5175_v27 = vpop.permute.xlu0 %326  ;;  %v385_v28 = vpop.permute.xlu2 %384 }
 0x135   :  { %v392_v29 = vadd.f32 %v385_v28, %v312_v24  ;;  %v383_v30 = vpop.permute.xlu1 %382  ;;  %v464_v28 = vmul.f32 %v462_v57, %v5059_v11  ;;  %v254_v11 = vmul.f32 %v5155_v16, %v4999_v33  ;;  %v748_v16 = vmul.f32 %v5181_v36, %v5139_v63 }
 0x136   :  { %v391_v34 = vadd.f32 %v383_v30, %v311_v26  ;;  %v463_v30 = vmul.f32 %v462_v57, %v5034_v56 }
 0x137   :  { %v5187_v39 = vadd.f32 %v448_v31, %v392_v29  ;;  %v313_v56 = vadd.f32 %v5144_v3, %v254_v11  ;;  %v262_v3 = vmul.f32 %v5185_v38, %v4999_v33  ;;  %v5280_v38 = vld [vmem:[#allocation2 + $0x18] sm:$0xff]  ;;  %v788_v33 = vmul.f32 %v785_v53, %v5139_v63  ;;  %v5331_v11 = vld [vmem:[#allocation2 + $0x20] sm:$0xff] }
 0x138   :  { %v5191_v42 = vadd.f32 %v447_v37, %v391_v34  ;;  %v727_v34 = vmul.f32 %v5151_v14, %v5146_v5  ;;  %v449_v14 = vmul.f32 %v5172_v25, %v5061_v12 }
 0x139   :  { %v333_v25 = vadd.f32 %v5175_v27, %v262_v3  ;;  %v767_v27 = vmul.f32 %v5212_v46, %v5146_v5  ;;  %v5352_v3 = vstv %s4510_s28  ;;  %s4535_s28 = sld [smem:[#allocation9 + $0x54]] }
 0x13a   :  { %696 = vrot.lane.b32.xlu0 %v688_v35, %s4910_s15  ;;  %694 = vrot.lane.b32.xlu2 %v687_v40, %s4910_s15 }
 0x13b   :  { %752 = vrot.lane.b32.xlu1 %v746_v44, %s4911_s20 }
 0x13c   :  { %v5206_v51 = vpop.permute.xlu0 %346  ;;  %v405_v58 = vpop.permute.xlu2 %404 }
 0x13d   :  { %v412_v59 = vadd.f32 %v405_v58, %v332_v49  ;;  %v403_v60 = vpop.permute.xlu1 %402  ;;  %v806_v58 = vmul.f32 %v805_v45, %v5098_v41 }
 0x13e   :  { %v411_v62 = vadd.f32 %v403_v60, %v331_v50  ;;  %v747_v50 = vmul.f32 %v5181_v36, %v5146_v5  ;;  %v457_v36 = vmul.f32 %v5203_v48, %v5061_v12  ;;  %v353_v48 = vadd.f32 %v5206_v51, %v270_v8 }
 0x13f   :  { %v5218_v47 = vadd.f32 %v456_v61, %v412_v59  ;;  %v881_v51 = vmul.f32 %v880_v4, %v5280_v38 }
 0x140   :  { %v5222_v7 = vadd.f32 %v455_v2, %v411_v62  ;;  %v860_v2 = vstv %s4525_s21  ;;  %s4551_s21 = sld [smem:[#allocation9 + $0x58]] }
 0x141   :  { %v861_v10 = vmul.f32 %v860_v2, %v5280_v38 }
 0x142   :  { %716 = vrot.lane.b32.xlu0 %v708_v0, %s4910_s15  ;;  %714 = vrot.lane.b32.xlu2 %v707_v6, %s4910_s15  ;;  %v768_v0 = vmul.f32 %v5212_v46, %v5139_v63  ;;  %v465_v46 = vmul.f32 %v462_v57, %v5061_v12 }
 0x143   :  { %772 = vrot.lane.b32.xlu1 %v766_v13, %s4911_s20 }
 0x144   :  { %v367_v32 = vpop.permute.xlu0 %366  ;;  %v425_v21 = vpop.permute.xlu2 %424 }
 0x145   :  { %v373_v22 = vadd.f32 %v367_v32, %v293_v55  ;;  %v432_v24 = vadd.f32 %v425_v21, %v352_v18  ;;  %v423_v26 = vpop.permute.xlu1 %422  ;;  %v787_v32 = vmul.f32 %v785_v53, %v5146_v5 }
 0x146   :  { %v431_v29 = vadd.f32 %v423_v26, %v351_v20  ;;  %v807_v26 = vmul.f32 %v805_v45, %v5146_v5 }
 0x147   :  { %v5244_v31 = vadd.f32 %v441_v23, %v373_v22  ;;  %v5246_v54 = vadd.f32 %v464_v28, %v432_v24  ;;  %v808_v22 = vmul.f32 %v805_v45, %v5139_v63  ;;  %v5315_v24 = vstv %s4527_s23  ;;  %s4552_s23 = sld [smem:[#allocation9 + $0x7c]] }
 0x148   :  { %v5250_v35 = vadd.f32 %v463_v30, %v431_v29  ;;  %v901_v23 = vmul.f32 %v5315_v24, %v5280_v38  ;;  %v5324_v29 = vstv %s4509_s24  ;;  %s4534_s24 = sld [smem:[#allocation9 + $0x30]] }
 0x14a   :  { %736 = vrot.lane.b32.xlu0 %v728_v52, %s4910_s15  ;;  %734 = vrot.lane.b32.xlu2 %v727_v34, %s4910_s15  ;;  %v5329_v34 = vld [vmem:[#allocation2 + $0x28] sm:$0x3] }
 0x14b   :  { %792 = vrot.lane.b32.xlu1 %v786_v1, %s4911_s20  ;;  %v883_v8 = vmul.f32 %v880_v4, %v5329_v34 }
 0x14c   :  { %v387_v37 = vpop.permute.xlu0 %386  ;;  %v480_v40 = vpop.permute.xlu2 %479 }
 0x14d   :  { %v393_v43 = vadd.f32 %v387_v37, %v313_v56  ;;  %v478_v44 = vpop.permute.xlu1 %477  ;;  %v487_v28 = vadd.f32 %v480_v40, %v5157_v17  ;;  %v635_v37 = vmul.f32 %v5324_v29, %v5146_v5  ;;  %v5335_v40 = vstv %s4528_s25  ;;  %s4553_s25 = sld [smem:[#allocation9 + $0x11]] }
 0x14e   :  { %v486_v52 = vadd.f32 %v478_v44, %v5160_v19  ;;  %v863_v44 = vmul.f32 %v860_v2, %v5329_v34  ;;  %v921_v45 = vmul.f32 %v5335_v40, %v5280_v38 }
 0x14f   :  { %v5263_v49 = vadd.f32 %v449_v14, %v393_v43  ;;  %v634_v43 = vmul.f32 %v5324_v29, %v5098_v41  ;;  %v862_v14 = vmul.f32 %v860_v2, %v5331_v11 }
 0x152   :  { %756 = vrot.lane.b32.xlu0 %v748_v16, %s4911_s20  ;;  %754 = vrot.lane.b32.xlu2 %v747_v50, %s4911_s20 }
 0x153   :  { %812 = vrot.lane.b32.xlu1 %v806_v58, %s4911_s20 }
 0x154   :  { %v407_v59 = vpop.permute.xlu0 %406  ;;  %v5274_v60 = vpop.permute.xlu2 %499 }
 0x155   :  { %v413_v61 = vadd.f32 %v407_v59, %v333_v25  ;;  %v5276_v62 = vpop.permute.xlu1 %497  ;;  %v507_v50 = vadd.f32 %v5274_v60, %v5187_v39  ;;  %v642_v39 = vmul.f32 %v5352_v3, %v5098_v41 }
 0x156   :  { %v506_v58 = vadd.f32 %v5276_v62, %v5191_v42  ;;  %v882_v42 = vmul.f32 %v880_v4, %v5331_v11 }
 0x157   :  { %v5284_v6 = vadd.f32 %v457_v36, %v413_v61 }
 0x15a   :  { %776 = vrot.lane.b32.xlu0 %v768_v0, %s4911_s20  ;;  %774 = vrot.lane.b32.xlu2 %v767_v27, %s4911_s20  ;;  %v643_v0 = vmul.f32 %v5352_v3, %v5146_v5  ;;  %v940_v27 = vstv %s4529_s29  ;;  %s4554_s29 = sld [smem:[#allocation9 + $0x35]] }
 0x15b   :  { %867 = vrot.lane.b32.xlu1 %v861_v10, %s4910_s15  ;;  %v941_v10 = vmul.f32 %v940_v27, %v5280_v38 }
 0x15c   :  { %v427_v13 = vpop.permute.xlu0 %426  ;;  %v5295_v15 = vpop.permute.xlu2 %519 }
 0x15d   :  { %v433_v55 = vadd.f32 %v427_v13, %v353_v48  ;;  %v5297_v18 = vpop.permute.xlu1 %517  ;;  %v527_v48 = vadd.f32 %v5295_v15, %v5218_v47  ;;  %v5374_v13 = vstv %s4511_s30  ;;  %s4536_s30 = sld [smem:[#allocation9 + $0x78]] }
 0x15e   :  { %v650_v47 = vmul.f32 %v5374_v13, %v5098_v41 }
 0x15f   :  { %v5301_v20 = vadd.f32 %v465_v46, %v433_v55  ;;  %v526_v55 = vadd.f32 %v5297_v18, %v5222_v7  ;;  %v902_v7 = vmul.f32 %v5315_v24, %v5331_v11 }
 0x162   :  { %796 = vrot.lane.b32.xlu0 %v788_v33, %s4911_s20  ;;  %794 = vrot.lane.b32.xlu2 %v787_v32, %s4911_s20 }
 0x163   :  { %887 = vrot.lane.b32.xlu1 %v881_v51, %s4910_s15  ;;  %v651_v51 = vmul.f32 %v5374_v13, %v5146_v5 }
 0x164   :  { %v5308_v21 = vpop.permute.xlu0 %481  ;;  %v5310_v12 = vpop.permute.xlu2 %539 }
 0x165   :  { %v5312_v57 = vpop.permute.xlu1 %537 }
 0x16a   :  { %816 = vrot.lane.b32.xlu0 %v808_v22, %s4911_s20  ;;  %814 = vrot.lane.b32.xlu2 %v807_v26, %s4911_s20  ;;  %v960_v26 = vstv %s4530_s0  ;;  %s4555_s0 = sld [smem:[#allocation9 + $0x59]] }
 0x16b   :  { %907 = vrot.lane.b32.xlu1 %v901_v23, %s4910_s15  ;;  %v903_v23 = vmul.f32 %v5315_v24, %v5329_v34 }
 0x16c   :  { %v5327_v53 = vpop.permute.xlu0 %501  ;;  %v560_v30 = vpop.permute.xlu2 %559 }
 0x16d   :  { %v567_v1 = vadd.f32 %v560_v30, %v487_v28  ;;  %v558_v56 = vpop.permute.xlu1 %557  ;;  %v961_v28 = vmul.f32 %v960_v26, %v5280_v38  ;;  %v5398_v30 = vstv %s4512_s6  ;;  %s4556_s6 = sld [smem:[#allocation9 + $0x7d]] }
 0x16e   :  { %v566_v17 = vadd.f32 %v558_v56, %v486_v52  ;;  %v547_v52 = vadd.f32 %v5310_v12, %v5246_v54  ;;  %v658_v54 = vmul.f32 %v5398_v30, %v5098_v41 }
 0x16f   :  { %v5339_v19 = vadd.f32 %v635_v37, %v567_v1  ;;  %v546_v1 = vadd.f32 %v5312_v57, %v5250_v35  ;;  %v922_v35 = vmul.f32 %v5335_v40, %v5331_v11 }
 0x170   :  { %v5343_v16 = vadd.f32 %v634_v43, %v566_v17  ;;  %v659_v43 = vmul.f32 %v5398_v30, %v5146_v5 }
 0x172   :  { %871 = vrot.lane.b32.xlu0 %v863_v44, %s4910_s15  ;;  %869 = vrot.lane.b32.xlu2 %v862_v14, %s4910_s15  ;;  %v980_v14 = vstv %s4531_s7  ;;  %s4561_s7 = sld [smem:[#allocation9 + $0x13]] }
 0x173   :  { %927 = vrot.lane.b32.xlu1 %v921_v45, %s4910_s15  ;;  %v923_v45 = vmul.f32 %v5335_v40, %v5329_v34  ;;  %v942_v40 = vmul.f32 %v940_v27, %v5331_v11 }
 0x174   :  { %v5356_v25 = vpop.permute.xlu0 %521  ;;  %v580_v59 = vpop.permute.xlu2 %579 }
 0x175   :  { %v587_v61 = vadd.f32 %v580_v59, %v507_v50  ;;  %v578_v36 = vpop.permute.xlu1 %577  ;;  %v981_v50 = vmul.f32 %v980_v14, %v5280_v38  ;;  %v1000_v59 = vstv %s4532_s8  ;;  %s4562_s8 = sld [smem:[#allocation9 + $0x37]] }
 0x176   :  { %v586_v2 = vadd.f32 %v578_v36, %v506_v58  ;;  %v1001_v36 = vmul.f32 %v1000_v59, %v5280_v38 }
 0x177   :  { %v5362_v60 = vadd.f32 %v643_v0, %v587_v61  ;;  %v943_v61 = vmul.f32 %v940_v27, %v5329_v34  ;;  %v962_v27 = vmul.f32 %v960_v26, %v5331_v11 }
 0x178   :  { %v5366_v62 = vadd.f32 %v642_v39, %v586_v2 }
 0x17a   :  { %891 = vrot.lane.b32.xlu0 %v883_v8, %s4910_s15  ;;  %889 = vrot.lane.b32.xlu2 %v882_v42, %s4910_s15  ;;  %v5430_v8 = vld [vmem:[#allocation2 + $0x19] sm:$0xff]  ;;  %v1055_v42 = vstv %s4537_s9  ;;  %s4563_s9 = sld [smem:[#allocation9 + $0x5b]] }
 0x17b   :  { %947 = vrot.lane.b32.xlu1 %v941_v10, %s4911_s20  ;;  %v963_v10 = vmul.f32 %v960_v26, %v5329_v34 }
 0x17c   :  { %v5378_v46 = vpop.permute.xlu0 %541  ;;  %v600_v33 = vpop.permute.xlu2 %599 }
 0x17d   :  { %v607_v4 = vadd.f32 %v600_v33, %v527_v48  ;;  %v598_v32 = vpop.permute.xlu1 %597  ;;  %v1056_v48 = vmul.f32 %v1055_v42, %v5430_v8 }
 0x17e   :  { %v606_v22 = vadd.f32 %v598_v32, %v526_v55  ;;  %v1075_v32 = vstv %s4538_s1  ;;  %s4545_s1 = sld [smem:[#allocation9 + $0xf]] }
 0x17f   :  { %v5384_v15 = vadd.f32 %v651_v51, %v607_v4  ;;  %v983_v51 = vmul.f32 %v980_v14, %v5329_v34  ;;  %v1076_v26 = vmul.f32 %v1075_v32, %v5430_v8 }
 0x180   :  { %v5390_v18 = vadd.f32 %v650_v47, %v606_v22  ;;  %v982_v22 = vmul.f32 %v980_v14, %v5331_v11 }
 0x182   :  { %911 = vrot.lane.b32.xlu0 %v903_v23, %s4910_s15  ;;  %909 = vrot.lane.b32.xlu2 %v902_v7, %s4910_s15 }
 0x183   :  { %967 = vrot.lane.b32.xlu1 %v961_v28, %s4911_s20  ;;  %v5456_v28 = vstv %s4539_s10  ;;  %s4564_s10 = sld [smem:[#allocation9 + $0x7f]] }
 0x184   :  { %v5402_v56 = vpop.permute.xlu0 %561  ;;  %v620_v24 = vpop.permute.xlu2 %619 }
 0x185   :  { %v627_v37 = vadd.f32 %v620_v24, %v547_v52  ;;  %v618_v17 = vpop.permute.xlu1 %617  ;;  %v1003_v52 = vmul.f32 %v1000_v59, %v5329_v34  ;;  %v1096_v24 = vmul.f32 %v5456_v28, %v5430_v8 }
 0x186   :  { %v626_v44 = vadd.f32 %v618_v17, %v546_v1  ;;  %v1002_v1 = vmul.f32 %v1000_v59, %v5331_v11 }
 0x187   :  { %v5408_v12 = vadd.f32 %v659_v43, %v627_v37  ;;  %v5464_v37 = vstv %s4521_s11  ;;  %s4546_s11 = sld [smem:[#allocation9 + $0x33]] }
 0x188   :  { %v5414_v57 = vadd.f32 %v658_v54, %v626_v44  ;;  %v5471_v54 = vld [vmem:[#allocation2 + $0x29] sm:$0x3]  ;;  %v830_v59 = vmul.f32 %v5464_v37, %v5331_v11 }
 0x18a   :  { %931 = vrot.lane.b32.xlu0 %v923_v45, %s4910_s15  ;;  %929 = vrot.lane.b32.xlu2 %v922_v35, %s4910_s15  ;;  %v5473_v45 = vld [vmem:[#allocation2 + $0x21] sm:$0xff] }
 0x18b   :  { %987 = vrot.lane.b32.xlu1 %v981_v50, %s4911_s20 }
 0x18c   :  { %v5420_v5 = vpop.permute.xlu0 %581  ;;  %v675_v41 = vpop.permute.xlu2 %674 }
 0x18d   :  { %v673_v58 = vpop.permute.xlu1 %672  ;;  %v682_v17 = vadd.f32 %v675_v41, %v5339_v19  ;;  %v829_v19 = vmul.f32 %v5464_v37, %v5280_v38  ;;  %v1058_v41 = vmul.f32 %v1055_v42, %v5471_v54 }
 0x18e   :  { %v681_v43 = vadd.f32 %v673_v58, %v5343_v16  ;;  %v1057_v58 = vmul.f32 %v1055_v42, %v5473_v45 }
 0x192   :  { %951 = vrot.lane.b32.xlu0 %v943_v61, %s4911_s20  ;;  %949 = vrot.lane.b32.xlu2 %v942_v40, %s4911_s20  ;;  %v5477_v40 = vstv %s4540_s12  ;;  %s4565_s12 = sld [smem:[#allocation9 + $0x14]] }
 0x193   :  { %1007 = vrot.lane.b32.xlu1 %v1001_v36, %s4911_s20 }
 0x194   :  { %v5428_v0 = vpop.permute.xlu0 %601  ;;  %v695_v2 = vpop.permute.xlu2 %694 }
 0x195   :  { %v693_v39 = vpop.permute.xlu1 %692 }
 0x19a   :  { %971 = vrot.lane.b32.xlu0 %v963_v10, %s4911_s20  ;;  %969 = vrot.lane.b32.xlu2 %v962_v27, %s4911_s20  ;;  %v1116_v10 = vmul.f32 %v5477_v40, %v5430_v8  ;;  %v5491_v27 = vstv %s4522_s13  ;;  %s4547_s13 = sld [smem:[#allocation9 + $0x57]] }
 0x19b   :  { %1062 = vrot.lane.b32.xlu1 %v1056_v48, %s4910_s15  ;;  %v702_v48 = vadd.f32 %v695_v2, %v5362_v60  ;;  %v1078_v2 = vmul.f32 %v1075_v32, %v5471_v54 }
 0x19c   :  { %v5438_v55 = vpop.permute.xlu0 %621  ;;  %v5440_v33 = vpop.permute.xlu2 %714 }
 0x19d   :  { %v5442_v4 = vpop.permute.xlu1 %712 }
 0x1a2   :  { %991 = vrot.lane.b32.xlu0 %v983_v51, %s4911_s20  ;;  %989 = vrot.lane.b32.xlu2 %v982_v22, %s4911_s20  ;;  %v701_v51 = vadd.f32 %v693_v39, %v5366_v62  ;;  %v1077_v62 = vmul.f32 %v1075_v32, %v5473_v45  ;;  %v721_v32 = vadd.f32 %v5442_v4, %v5390_v18 }
 0x1a3   :  { %1082 = vrot.lane.b32.xlu1 %v1076_v26, %s4910_s15 }
 0x1a4   :  { %v5450_v47 = vpop.permute.xlu0 %676  ;;  %v5452_v23 = vpop.permute.xlu2 %734 }
 0x1a5   :  { %v5454_v7 = vpop.permute.xlu1 %732 }
 0x1aa   :  { %1011 = vrot.lane.b32.xlu0 %v1003_v52, %s4911_s20  ;;  %1009 = vrot.lane.b32.xlu2 %v1002_v1, %s4911_s20  ;;  %v838_v1 = vmul.f32 %v5491_v27, %v5331_v11 }
 0x1ab   :  { %1102 = vrot.lane.b32.xlu1 %v1096_v24, %s4910_s15 }
 0x1ac   :  { %v5469_v44 = vpop.permute.xlu0 %696  ;;  %v755_v14 = vpop.permute.xlu2 %754 }
 0x1ad   :  { %v762_v35 = vadd.f32 %v755_v14, %v682_v17  ;;  %v753_v50 = vpop.permute.xlu1 %752  ;;  %v5500_v17 = vstv %s4541_s2  ;;  %s4566_s2 = sld [smem:[#allocation9 + $0x38]] }
 0x1ae   :  { %v761_v61 = vadd.f32 %v753_v50, %v681_v43  ;;  %v837_v43 = vmul.f32 %v5491_v27, %v5280_v38  ;;  %v1136_v14 = vmul.f32 %v5500_v17, %v5430_v8  ;;  %v488_v50 = vadd.f32 %v5308_v21, %v5244_v31 }
 0x1af   :  { %v5481_v16 = vadd.f32 %v830_v59, %v762_v35  ;;  %v5514_v35 = vstv %s4523_s3  ;;  %v722_v59 = vadd.f32 %v5440_v33, %v5384_v15  ;;  %v5530_v15 = vstv %s4542_s4  ;;  %s4548_s3 = sld [smem:[#allocation9 + $0x7b]] }
 0x1b0   :  { %v5485_v36 = vadd.f32 %v829_v19, %v761_v61  ;;  %v846_v31 = vmul.f32 %v5514_v35, %v5331_v11  ;;  %v845_v18 = vmul.f32 %v5514_v35, %v5280_v38  ;;  %s4567_s4 = sld [smem:[#allocation9 + $0x5c]] }
 0x1b2   :  { %1066 = vrot.lane.b32.xlu0 %v1058_v41, %s4910_s15  ;;  %1064 = vrot.lane.b32.xlu2 %v1057_v58, %s4910_s15  ;;  %v568_v41 = vadd.f32 %v5402_v56, %v488_v50  ;;  %v636_v58 = vmul.f32 %v5324_v29, %v5139_v63  ;;  %v1098_v56 = vmul.f32 %v5456_v28, %v5471_v54 }
 0x1b3   :  { %1122 = vrot.lane.b32.xlu1 %v1116_v10, %s4910_s15  ;;  %v1097_v29 = vmul.f32 %v5456_v28, %v5473_v45  ;;  %v742_v28 = vadd.f32 %v5452_v23, %v5408_v12 }
 0x1b4   :  { %v5496_v22 = vpop.permute.xlu0 %716  ;;  %v775_v42 = vpop.permute.xlu2 %774 }
 0x1b5   :  { %v782_v26 = vadd.f32 %v775_v42, %v702_v48  ;;  %v773_v52 = vpop.permute.xlu1 %772  ;;  %v1156_v42 = vmul.f32 %v5530_v15, %v5430_v8 }
 0x1b6   :  { %v781_v24 = vadd.f32 %v773_v52, %v701_v51  ;;  %v639_v51 = vadd.f32 %v636_v58, %v568_v41  ;;  %v508_v52 = vadd.f32 %v5327_v53, %v5263_v49  ;;  %v644_v53 = vmul.f32 %v5352_v3, %v5139_v63 }
 0x1b7   :  { %v5504_v60 = vadd.f32 %v838_v1, %v782_v26  ;;  %v5544_v26 = vstv %s4524_s14  ;;  %s4568_s14 = sld [smem:[#allocation9 + $0x80]] }
 0x1b8   :  { %v5508_v39 = vadd.f32 %v837_v43, %v781_v24  ;;  %v683_v1 = vadd.f32 %v5450_v47, %v639_v51  ;;  %v741_v24 = vadd.f32 %v5454_v7, %v5414_v57  ;;  %v588_v49 = vadd.f32 %v5420_v5, %v508_v52 }
 0x1b9   :  { %v853_v57 = vmul.f32 %v5544_v26, %v5280_v38  ;;  %v1117_v5 = vmul.f32 %v5477_v40, %v5473_v45  ;;  %v528_v38 = vadd.f32 %v5356_v25, %v5284_v6  ;;  %v1138_v25 = vmul.f32 %v5500_v17, %v5471_v54 }
 0x1ba   :  { %1086 = vrot.lane.b32.xlu0 %v1078_v2, %s4910_s15  ;;  %1084 = vrot.lane.b32.xlu2 %v1077_v62, %s4910_s15  ;;  %v831_v62 = vmul.f32 %v5464_v37, %v5329_v34 }
 0x1bb   :  { %1142 = vrot.lane.b32.xlu1 %v1136_v14, %s4911_s20  ;;  %v854_v14 = vmul.f32 %v5544_v26, %v5331_v11  ;;  %v1118_v11 = vmul.f32 %v5477_v40, %v5471_v54  ;;  %v608_v40 = vadd.f32 %v5428_v0, %v528_v38 }
 0x1bc   :  { %v5523_v61 = vpop.permute.xlu0 %736  ;;  %v795_v19 = vpop.permute.xlu2 %794 }
 0x1bd   :  { %v802_v10 = vadd.f32 %v795_v19, %v722_v59  ;;  %v793_v48 = vpop.permute.xlu1 %792  ;;  %v1175_v59 = vstv %s4543_s16  ;;  %s4573_s16 = sld [smem:[#allocation9 + $0x16]] }
 0x1be   :  { %v801_v21 = vadd.f32 %v793_v48, %v721_v32  ;;  %v647_v32 = vadd.f32 %v644_v53, %v588_v49  ;;  %v1176_v19 = vmul.f32 %v1175_v59, %v5430_v8  ;;  %v652_v48 = vmul.f32 %v5374_v13, %v5139_v63 }
 0x1bf   :  { %v5534_v33 = vadd.f32 %v846_v31, %v802_v10  ;;  %v548_v13 = vadd.f32 %v5378_v46, %v5301_v20  ;;  %v1250_v20 = vstv %s4549_s18  ;;  %v1270_v53 = vstv %s4550_s19  ;;  %s4575_s18 = sld [smem:[#allocation9 + $0x5e]] }
 0x1c0   :  { %v5540_v4 = vadd.f32 %v845_v18, %v801_v21  ;;  %v703_v41 = vadd.f32 %v5469_v44, %v647_v32  ;;  %v839_v18 = vmul.f32 %v5491_v27, %v5329_v34  ;;  %v1137_v44 = vmul.f32 %v5500_v17, %v5473_v45  ;;  %s4557_s19 = sld [smem:[#allocation9 + $0x12]] }
 0x1c1   :  { %v655_v0 = vadd.f32 %v652_v48, %v608_v40  ;;  %v628_v52 = vadd.f32 %v5438_v55, %v548_v13  ;;  %v660_v17 = vmul.f32 %v5398_v30, %v5139_v63  ;;  %v1157_v55 = vmul.f32 %v5530_v15, %v5473_v45  ;;  %v5665_v48 = vld [vmem:[#allocation2 + $0x22] sm:$0xff] }
 0x1c2   :  { %1106 = vrot.lane.b32.xlu0 %v1098_v56, %s4910_s15  ;;  %1104 = vrot.lane.b32.xlu2 %v1097_v29, %s4910_s15  ;;  %v1195_v56 = vstv %s4544_s17  ;;  %v5654_v32 = vstv %s4533_s22  ;;  %s4574_s17 = sld [smem:[#allocation9 + $0x3a]] }
 0x1c3   :  { %1162 = vrot.lane.b32.xlu1 %v1156_v42, %s4911_s20  ;;  %v1196_v29 = vmul.f32 %v1195_v56, %v5430_v8  ;;  %v723_v27 = vadd.f32 %v5496_v22, %v655_v0  ;;  %v1158_v22 = vmul.f32 %v5530_v15, %v5471_v54  ;;  %v855_v15 = vmul.f32 %v5544_v26, %v5329_v34  ;;  %s4558_s22 = sld [smem:[#allocation9 + $0x36]] }
 0x1c4   :  { %v757_v43 = vpop.permute.xlu0 %756  ;;  %v815_v2 = vpop.permute.xlu2 %814  ;;  %v5670_v0 = vstv %s4552_s23  ;;  %v5683_v13 = vstv %s4534_s24  ;;  %s4577_s23 = sld [smem:[#allocation9 + $0x17]] }
 0x1c5   :  { %v763_v47 = vadd.f32 %v757_v43, %v683_v1  ;;  %v822_v12 = vadd.f32 %v815_v2, %v742_v28  ;;  %v813_v23 = vpop.permute.xlu1 %812  ;;  %v5613_v43 = vld [vmem:[#allocation2 + $0x1a] sm:$0xff]  ;;  %v663_v2 = vadd.f32 %v660_v17, %v628_v52  ;;  %s4559_s24 = sld [smem:[#allocation9 + $0x5a]] }
 0x1c6   :  { %v821_v50 = vadd.f32 %v813_v23, %v741_v24  ;;  %v847_v24 = vmul.f32 %v5514_v35, %v5329_v34  ;;  %v1251_v63 = vmul.f32 %v1250_v20, %v5613_v43  ;;  %v1177_v23 = vmul.f32 %v1175_v59, %v5473_v45 }
 0x1c7   :  { %v5565_v7 = vadd.f32 %v831_v62, %v763_v47  ;;  %v5567_v37 = vadd.f32 %v854_v14, %v822_v12  ;;  %v743_v30 = vadd.f32 %v5523_v61, %v663_v2  ;;  %v1178_v12 = vmul.f32 %v1175_v59, %v5471_v54 }
 0x1c8   :  { %v5573_v3 = vadd.f32 %v853_v57, %v821_v50  ;;  %v1271_v61 = vmul.f32 %v1270_v53, %v5613_v43  ;;  %v5646_v57 = vstv %s4551_s21  ;;  %v1198_v59 = vmul.f32 %v1195_v56, %v5471_v54  ;;  %s4576_s21 = sld [smem:[#allocation9 + $0x82]] }
 0x1c9   :  { %v5695_v2 = vstv %s4553_s25  ;;  %s4578_s25 = sld [smem:[#allocation9 + $0x3b]] }
 0x1ca   :  { %1126 = vrot.lane.b32.xlu0 %v1118_v11, %s4910_s15  ;;  %1124 = vrot.lane.b32.xlu2 %v1117_v5, %s4910_s15  ;;  %v1197_v11 = vmul.f32 %v1195_v56, %v5473_v45  ;;  %v1291_v5 = vmul.f32 %v5646_v57, %v5613_v43  ;;  %v1025_v56 = vmul.f32 %v5654_v32, %v5473_v45 }
 0x1cb   :  { %1182 = vrot.lane.b32.xlu1 %v1176_v19, %s4911_s20  ;;  %v5656_v19 = vld [vmem:[#allocation2 + $0x2a] sm:$0x3] }
 0x1cc   :  { %v777_v58 = vpop.permute.xlu0 %776  ;;  %v5582_v10 = vpop.permute.xlu2 %869 }
 0x1cd   :  { %v783_v31 = vadd.f32 %v777_v58, %v703_v41  ;;  %v5587_v21 = vpop.permute.xlu1 %867  ;;  %v877_v38 = vadd.f32 %v5582_v10, %v5481_v16  ;;  %v1024_v16 = vmul.f32 %v5654_v32, %v5430_v8  ;;  %v1252_v10 = vmul.f32 %v1250_v20, %v5665_v48 }
 0x1ce   :  { %v876_v41 = vadd.f32 %v5587_v21, %v5485_v36 }
 0x1cf   :  { %v5591_v6 = vadd.f32 %v839_v18, %v783_v31 }
 0x1d2   :  { %1146 = vrot.lane.b32.xlu0 %v1138_v25, %s4911_s20  ;;  %1144 = vrot.lane.b32.xlu2 %v1137_v44, %s4911_s20  ;;  %v1253_v44 = vmul.f32 %v1250_v20, %v5656_v19  ;;  %v1033_v20 = vmul.f32 %v5683_v13, %v5473_v45 }
 0x1d3   :  { %1202 = vrot.lane.b32.xlu1 %v1196_v29, %s4911_s20  ;;  %v1311_v29 = vmul.f32 %v5670_v0, %v5613_v43 }
 0x1d4   :  { %v797_v51 = vpop.permute.xlu0 %796  ;;  %v5604_v42 = vpop.permute.xlu2 %889 }
 0x1d5   :  { %v803_v1 = vadd.f32 %v797_v51, %v723_v27  ;;  %v5609_v28 = vpop.permute.xlu1 %887  ;;  %v897_v27 = vadd.f32 %v5604_v42, %v5504_v60  ;;  %v1032_v60 = vmul.f32 %v5683_v13, %v5430_v8 }
 0x1d6   :  { %v896_v51 = vadd.f32 %v5609_v28, %v5508_v39  ;;  %v1272_v39 = vmul.f32 %v1270_v53, %v5665_v48 }
 0x1d7   :  { %v5615_v46 = vadd.f32 %v847_v24, %v803_v1 }
 0x1da   :  { %1166 = vrot.lane.b32.xlu0 %v1158_v22, %s4911_s20  ;;  %1164 = vrot.lane.b32.xlu2 %v1157_v55, %s4911_s20  ;;  %v1273_v55 = vmul.f32 %v1270_v53, %v5656_v19 }
 0x1db   :  { %1257 = vrot.lane.b32.xlu1 %v1251_v63, %s4910_s15  ;;  %v1331_v63 = vmul.f32 %v5695_v2, %v5613_v43 }
 0x1dc   :  { %v817_v35 = vpop.permute.xlu0 %816  ;;  %v5626_v62 = vpop.permute.xlu2 %909 }
 0x1dd   :  { %v823_v14 = vadd.f32 %v817_v35, %v743_v30  ;;  %v5628_v49 = vpop.permute.xlu1 %907  ;;  %v5708_v30 = vstv %s4535_s28  ;;  %v917_v35 = vadd.f32 %v5626_v62, %v5534_v33  ;;  %s4560_s28 = sld [smem:[#allocation9 + $0x7e]] }
 0x1de   :  { %v1040_v33 = vmul.f32 %v5708_v30, %v5430_v8 }
 0x1df   :  { %v5632_v47 = vadd.f32 %v855_v15, %v823_v14  ;;  %v916_v14 = vadd.f32 %v5628_v49, %v5540_v4  ;;  %v1292_v4 = vmul.f32 %v5646_v57, %v5665_v48 }
 0x1e2   :  { %1186 = vrot.lane.b32.xlu0 %v1178_v12, %s4911_s20  ;;  %1184 = vrot.lane.b32.xlu2 %v1177_v23, %s4911_s20 }
 0x1e3   :  { %1277 = vrot.lane.b32.xlu1 %v1271_v61, %s4910_s15  ;;  %v1041_v61 = vmul.f32 %v5708_v30, %v5473_v45 }
 0x1e4   :  { %v5640_v50 = vpop.permute.xlu0 %871  ;;  %v5642_v34 = vpop.permute.xlu2 %929 }
 0x1e5   :  { %v5644_v26 = vpop.permute.xlu1 %927 }
 0x1ea   :  { %1206 = vrot.lane.b32.xlu0 %v1198_v59, %s4911_s20  ;;  %1204 = vrot.lane.b32.xlu2 %v1197_v11, %s4911_s20  ;;  %v1293_v11 = vmul.f32 %v5646_v57, %v5656_v19  ;;  %v936_v57 = vadd.f32 %v5644_v26, %v5573_v3  ;;  %v1312_v26 = vmul.f32 %v5670_v0, %v5665_v48 }
 0x1eb   :  { %1297 = vrot.lane.b32.xlu1 %v1291_v5, %s4910_s15  ;;  %v1350_v5 = vstv %s4554_s29  ;;  %s4579_s29 = sld [smem:[#allocation9 + $0x5f]] }
 0x1ec   :  { %v5663_v58 = vpop.permute.xlu0 %891  ;;  %v950_v40 = vpop.permute.xlu2 %949 }
 0x1ed   :  { %v957_v31 = vadd.f32 %v950_v40, %v877_v38  ;;  %v948_v18 = vpop.permute.xlu1 %947  ;;  %v1351_v38 = vmul.f32 %v1350_v5, %v5613_v43  ;;  %v878_v40 = vadd.f32 %v5640_v50, %v5565_v7  ;;  %v1313_v7 = vmul.f32 %v5670_v0, %v5656_v19 }
 0x1ee   :  { %v956_v25 = vadd.f32 %v948_v18, %v876_v41  ;;  %v1047_v41 = vstv %s4536_s30  ;;  %v1034_v0 = vmul.f32 %v5683_v13, %v5471_v54  ;;  %s4580_s30 = sld [smem:[#allocation9 + $0x83]] }
 0x1ef   :  { %v5674_v36 = vadd.f32 %v1025_v56, %v957_v31  ;;  %v937_v31 = vadd.f32 %v5642_v34, %v5567_v37  ;;  %v1370_v37 = vstv %s4555_s0  ;;  %v1048_v50 = vmul.f32 %v1047_v41, %v5430_v8  ;;  %s4585_s0 = sld [smem:[#allocation9 + $0x19]] }
 0x1f0   :  { %v5677_v21 = vadd.f32 %v1024_v16, %v956_v25 }
 0x1f2   :  { %1261 = vrot.lane.b32.xlu0 %v1253_v44, %s4910_s15  ;;  %1259 = vrot.lane.b32.xlu2 %v1252_v10, %s4910_s15  ;;  %v1026_v10 = vmul.f32 %v5654_v32, %v5471_v54  ;;  %v1371_v32 = vmul.f32 %v1370_v37, %v5613_v43 }
 0x1f3   :  { %1317 = vrot.lane.b32.xlu1 %v1311_v29, %s4910_s15  ;;  %v1049_v29 = vmul.f32 %v1047_v41, %v5473_v45  ;;  %v898_v45 = vadd.f32 %v5663_v58, %v5591_v6 }
 0x1f4   :  { %v5690_v52 = vpop.permute.xlu0 %911  ;;  %v970_v17 = vpop.permute.xlu2 %969 }
 0x1f5   :  { %v977_v1 = vadd.f32 %v970_v17, %v897_v27  ;;  %v968_v24 = vpop.permute.xlu1 %967  ;;  %v918_v58 = vadd.f32 %v5690_v52, %v5615_v46  ;;  %v1445_v46 = vstv %s4561_s7  ;;  %s4587_s7 = sld [smem:[#allocation9 + $0x61]] }
 0x1f6   :  { %v976_v22 = vadd.f32 %v968_v24, %v896_v51 }
 0x1f7   :  { %v5699_v42 = vadd.f32 %v1033_v20, %v977_v1  ;;  %v1333_v20 = vmul.f32 %v5695_v2, %v5656_v19 }
 0x1f8   :  { %v5702_v28 = vadd.f32 %v1032_v60, %v976_v22  ;;  %v1390_v22 = vstv %s4556_s6  ;;  %v1332_v60 = vmul.f32 %v5695_v2, %v5665_v48  ;;  %v1042_v2 = vmul.f32 %v5708_v30, %v5471_v54  ;;  %s4586_s6 = sld [smem:[#allocation9 + $0x3d]] }
 0x1f9   :  { %v1391_v6 = vmul.f32 %v1390_v22, %v5613_v43 }
 0x1fa   :  { %1281 = vrot.lane.b32.xlu0 %v1273_v55, %s4910_s15  ;;  %1279 = vrot.lane.b32.xlu2 %v1272_v39, %s4910_s15 }
 0x1fb   :  { %1337 = vrot.lane.b32.xlu1 %v1331_v63, %s4911_s20 }
 0x1fc   :  { %v5715_v15 = vpop.permute.xlu0 %931  ;;  %v990_v53 = vpop.permute.xlu2 %989 }
 0x1fd   :  { %v997_v12 = vadd.f32 %v990_v53, %v917_v35  ;;  %v988_v23 = vpop.permute.xlu1 %987  ;;  %v1353_v53 = vmul.f32 %v1350_v5, %v5656_v19 }
 0x1fe   :  { %v996_v59 = vadd.f32 %v988_v23, %v916_v14  ;;  %v5779_v14 = vld [vmem:[#allocation2 + $0x30] sm:$0xff]  ;;  %v1352_v23 = vmul.f32 %v1350_v5, %v5665_v48  ;;  %v1050_v5 = vmul.f32 %v1047_v41, %v5471_v54 }
 0x1ff   :  { %v5723_v62 = vadd.f32 %v1041_v61, %v997_v12  ;;  %v1446_v52 = vmul.f32 %v1445_v46, %v5779_v14  ;;  %v938_v61 = vadd.f32 %v5715_v15, %v5632_v47 }
 0x200   :  { %v5727_v49 = vadd.f32 %v1040_v33, %v996_v59 }
 0x202   :  { %1301 = vrot.lane.b32.xlu0 %v1293_v11, %s4910_s15  ;;  %1299 = vrot.lane.b32.xlu2 %v1292_v4, %s4910_s15  ;;  %v1373_v4 = vmul.f32 %v1370_v37, %v5656_v19 }
 0x203   :  { %1357 = vrot.lane.b32.xlu1 %v1351_v38, %s4911_s20 }
 0x204   :  { %v952_v18 = vpop.permute.xlu0 %951  ;;  %v1010_v56 = vpop.permute.xlu2 %1009 }
 0x205   :  { %v958_v25 = vadd.f32 %v952_v18, %v878_v40  ;;  %v1017_v44 = vadd.f32 %v1010_v56, %v937_v31  ;;  %v1008_v16 = vpop.permute.xlu1 %1007  ;;  %v1372_v40 = vmul.f32 %v1370_v37, %v5665_v48  ;;  %v1465_v31 = vstv %s4562_s8  ;;  %v5827_v37 = vld [vmem:[#allocation2 + $0x38] sm:$0xff]  ;;  %s4569_s8 = sld [smem:[#allocation9 + $0x15]] }
 0x206   :  { %v1016_v27 = vadd.f32 %v1008_v16, %v936_v57  ;;  %v1466_v47 = vmul.f32 %v1465_v31, %v5779_v14  ;;  %v1393_v57 = vmul.f32 %v1390_v22, %v5656_v19  ;;  %v1392_v18 = vmul.f32 %v1390_v22, %v5665_v48 }
 0x207   :  { %v5745_v34 = vadd.f32 %v1026_v10, %v958_v25  ;;  %v5747_v3 = vadd.f32 %v1049_v29, %v1017_v44  ;;  %v5812_v56 = vstv %s4563_s9  ;;  %v5820_v16 = vstv %s4545_s1  ;;  %s4588_s9 = sld [smem:[#allocation9 + $0x85]] }
 0x208   :  { %v5751_v51 = vadd.f32 %v1048_v50, %v1016_v27  ;;  %v1486_v25 = vmul.f32 %v5812_v56, %v5779_v14  ;;  %v5845_v22 = vstv %s4546_s11  ;;  %s4570_s1 = sld [smem:[#allocation9 + $0x39]] }
 0x209   :  { %s4571_s11 = sld [smem:[#allocation9 + $0x5d]] }
 0x20a   :  { %1321 = vrot.lane.b32.xlu0 %v1313_v7, %s4910_s15  ;;  %1319 = vrot.lane.b32.xlu2 %v1312_v26, %s4910_s15  ;;  %v5825_v7 = vld [vmem:[#allocation2 + $0x40] sm:$0x3] }
 0x20b   :  { %1377 = vrot.lane.b32.xlu1 %v1371_v32, %s4911_s20  ;;  %v1220_v32 = vmul.f32 %v5820_v16, %v5665_v48 }
 0x20c   :  { %v972_v8 = vpop.permute.xlu0 %971  ;;  %v1065_v17 = vpop.permute.xlu2 %1064 }
 0x20d   :  { %v978_v1 = vadd.f32 %v972_v8, %v898_v45  ;;  %v1063_v24 = vpop.permute.xlu1 %1062  ;;  %v1072_v44 = vadd.f32 %v1065_v17, %v5674_v36  ;;  %v1219_v45 = vmul.f32 %v5820_v16, %v5613_v43  ;;  %v1447_v17 = vmul.f32 %v1445_v46, %v5827_v37 }
 0x20e   :  { %v1071_v10 = vadd.f32 %v1063_v24, %v5677_v21  ;;  %v1448_v21 = vmul.f32 %v1445_v46, %v5825_v7  ;;  %v1467_v46 = vmul.f32 %v1465_v31, %v5827_v37 }
 0x20f   :  { %v5763_v55 = vadd.f32 %v1034_v0, %v978_v1  ;;  %v1505_v1 = vstv %s4564_s10  ;;  %s4589_s10 = sld [smem:[#allocation9 + $0x1a]] }
 0x210   :  { %v1506_v0 = vmul.f32 %v1505_v1, %v5779_v14 }
 0x212   :  { %1341 = vrot.lane.b32.xlu0 %v1333_v20, %s4911_s20  ;;  %1339 = vrot.lane.b32.xlu2 %v1332_v60, %s4911_s20 }
 0x213   :  { %1397 = vrot.lane.b32.xlu1 %v1391_v6, %s4911_s20 }
 0x214   :  { %v992_v13 = vpop.permute.xlu0 %991  ;;  %v5773_v39 = vpop.permute.xlu2 %1084 }
 0x215   :  { %v998_v63 = vadd.f32 %v992_v13, %v918_v58  ;;  %v5775_v35 = vpop.permute.xlu1 %1082  ;;  %v1092_v20 = vadd.f32 %v5773_v39, %v5699_v42  ;;  %v1227_v42 = vmul.f32 %v5845_v22, %v5613_v43 }
 0x216   :  { %v1091_v60 = vadd.f32 %v5775_v35, %v5702_v28 }
 0x217   :  { %v5782_v12 = vadd.f32 %v1042_v2, %v998_v63  ;;  %v1228_v2 = vmul.f32 %v5845_v22, %v5665_v48 }
 0x21a   :  { %1361 = vrot.lane.b32.xlu0 %v1353_v53, %s4911_s20  ;;  %1359 = vrot.lane.b32.xlu2 %v1352_v23, %s4911_s20  ;;  %v1468_v23 = vmul.f32 %v1465_v31, %v5825_v7 }
 0x21b   :  { %1452 = vrot.lane.b32.xlu1 %v1446_v52, %s4910_s15  ;;  %v1525_v52 = vstv %s4565_s12  ;;  %s4590_s12 = sld [smem:[#allocation9 + $0x3e]] }
 0x21c   :  { %v1012_v30 = vpop.permute.xlu0 %1011  ;;  %v5791_v59 = vpop.permute.xlu2 %1104  ;;  %v1526_v35 = vmul.f32 %v1525_v52, %v5779_v14 }
 0x21d   :  { %v1018_v11 = vadd.f32 %v1012_v30, %v938_v61  ;;  %v5793_v33 = vpop.permute.xlu1 %1102  ;;  %v1112_v61 = vadd.f32 %v5791_v59, %v5723_v62  ;;  %v5867_v30 = vstv %s4547_s13  ;;  %s4572_s13 = sld [smem:[#allocation9 + $0x81]] }
 0x21e   :  { %v1235_v62 = vmul.f32 %v5867_v30, %v5613_v43 }
 0x21f   :  { %v5797_v38 = vadd.f32 %v1050_v5, %v1018_v11  ;;  %v1111_v11 = vadd.f32 %v5793_v33, %v5727_v49  ;;  %v1487_v49 = vmul.f32 %v5812_v56, %v5827_v37  ;;  %v1545_v33 = vstv %s4566_s2  ;;  %s4591_s2 = sld [smem:[#allocation9 + $0x62]] }
 0x222   :  { %1381 = vrot.lane.b32.xlu0 %v1373_v4, %s4911_s20  ;;  %1379 = vrot.lane.b32.xlu2 %v1372_v40, %s4911_s20 }
 0x223   :  { %1472 = vrot.lane.b32.xlu1 %v1466_v47, %s4910_s15  ;;  %v1236_v47 = vmul.f32 %v5867_v30, %v5665_v48 }
 0x224   :  { %v5804_v15 = vpop.permute.xlu0 %1066  ;;  %v5806_v54 = vpop.permute.xlu2 %1124 }
 0x225   :  { %v5808_v41 = vpop.permute.xlu1 %1122 }
 0x22a   :  { %1401 = vrot.lane.b32.xlu0 %v1393_v57, %s4911_s20  ;;  %1399 = vrot.lane.b32.xlu2 %v1392_v18, %s4911_s20  ;;  %v1488_v18 = vmul.f32 %v5812_v56, %v5825_v7  ;;  %v1131_v56 = vadd.f32 %v5808_v41, %v5751_v51 }
 0x22b   :  { %1492 = vrot.lane.b32.xlu1 %v1486_v25, %s4910_s15 }
 0x22c   :  { %v5823_v29 = vpop.permute.xlu0 %1086  ;;  %v1145_v27 = vpop.permute.xlu2 %1144 }
 0x22d   :  { %v1152_v50 = vadd.f32 %v1145_v27, %v1072_v44  ;;  %v1143_v26 = vpop.permute.xlu1 %1142  ;;  %v1546_v44 = vmul.f32 %v1545_v33, %v5779_v14  ;;  %v5891_v27 = vstv %s4548_s3  ;;  %s4592_s3 = sld [smem:[#allocation9 + $0x86]] }
 0x22e   :  { %v1151_v36 = vadd.f32 %v1143_v26, %v1071_v10  ;;  %v1132_v10 = vadd.f32 %v5806_v54, %v5747_v3  ;;  %v1508_v54 = vmul.f32 %v1505_v1, %v5825_v7 }
 0x22f   :  { %v5833_v8 = vadd.f32 %v1220_v32, %v1152_v50 }
 0x230   :  { %v5837_v24 = vadd.f32 %v1219_v45, %v1151_v36  ;;  %v1244_v45 = vmul.f32 %v5891_v27, %v5665_v48 }
 0x232   :  { %1456 = vrot.lane.b32.xlu0 %v1448_v21, %s4910_s15  ;;  %1454 = vrot.lane.b32.xlu2 %v1447_v17, %s4910_s15  ;;  %v1243_v17 = vmul.f32 %v5891_v27, %v5613_v43 }
 0x233   :  { %1512 = vrot.lane.b32.xlu1 %v1506_v0, %s4910_s15  ;;  %v1507_v0 = vmul.f32 %v1505_v1, %v5827_v37  ;;  %v1527_v1 = vmul.f32 %v1525_v52, %v5827_v37 }
 0x234   :  { %v5849_v6 = vpop.permute.xlu0 %1106  ;;  %v1165_v58 = vpop.permute.xlu2 %1164 }
 0x235   :  { %v1172_v13 = vadd.f32 %v1165_v58, %v1092_v20  ;;  %v1163_v63 = vpop.permute.xlu1 %1162  ;;  %v1565_v20 = vstv %s4567_s4  ;;  %v1528_v58 = vmul.f32 %v1525_v52, %v5825_v7  ;;  %v1547_v52 = vmul.f32 %v1545_v33, %v5827_v37  ;;  %s4597_s4 = sld [smem:[#allocation9 + $0x1c]] }
 0x236   :  { %v1171_v53 = vadd.f32 %v1163_v63, %v1091_v60  ;;  %v1566_v41 = vmul.f32 %v1565_v20, %v5779_v14 }
 0x237   :  { %v5855_v39 = vadd.f32 %v1228_v2, %v1172_v13  ;;  %v1585_v13 = vstv %s4568_s14  ;;  %s4598_s14 = sld [smem:[#allocation9 + $0x40]] }
 0x238   :  { %v5859_v28 = vadd.f32 %v1227_v42, %v1171_v53  ;;  %v1586_v63 = vmul.f32 %v1585_v13, %v5779_v14 }
 0x23a   :  { %1476 = vrot.lane.b32.xlu0 %v1468_v23, %s4910_s15  ;;  %1474 = vrot.lane.b32.xlu2 %v1467_v46, %s4910_s15  ;;  %v5921_v23 = vld [vmem:[#allocation2 + $0x31] sm:$0xff]  ;;  %v1548_v46 = vmul.f32 %v1545_v33, %v5825_v7 }
 0x23b   :  { %1532 = vrot.lane.b32.xlu1 %v1526_v35, %s4911_s20  ;;  %v1640_v35 = vstv %s4573_s16  ;;  %s4599_s16 = sld [smem:[#allocation9 + $0x64]] }
 0x23c   :  { %v5871_v5 = vpop.permute.xlu0 %1126  ;;  %v1185_v4 = vpop.permute.xlu2 %1184 }
 0x23d   :  { %v1192_v40 = vadd.f32 %v1185_v4, %v1112_v61  ;;  %v1183_v31 = vpop.permute.xlu1 %1182  ;;  %v1641_v61 = vmul.f32 %v1640_v35, %v5921_v23 }
 0x23e   :  { %v1191_v57 = vadd.f32 %v1183_v31, %v1111_v11  ;;  %v1568_v31 = vmul.f32 %v1565_v20, %v5825_v7 }
 0x23f   :  { %v5877_v59 = vadd.f32 %v1236_v47, %v1192_v40  ;;  %v1567_v47 = vmul.f32 %v1565_v20, %v5827_v37 }
 0x240   :  { %v5883_v25 = vadd.f32 %v1235_v62, %v1191_v57  ;;  %v1660_v57 = vstv %s4574_s17  ;;  %s4581_s17 = sld [smem:[#allocation9 + $0x18]] }
 0x241   :  { %v1661_v62 = vmul.f32 %v1660_v57, %v5921_v23 }
 0x242   :  { %1496 = vrot.lane.b32.xlu0 %v1488_v18, %s4910_s15  ;;  %1494 = vrot.lane.b32.xlu2 %v1487_v49, %s4910_s15 }
 0x243   :  { %1552 = vrot.lane.b32.xlu1 %v1546_v44, %s4911_s20  ;;  %v1588_v44 = vmul.f32 %v1585_v13, %v5825_v7 }
 0x244   :  { %v5895_v50 = vpop.permute.xlu0 %1146  ;;  %v1205_v26 = vpop.permute.xlu2 %1204 }
 0x245   :  { %v1212_v32 = vadd.f32 %v1205_v26, %v1132_v10  ;;  %v1203_v36 = vpop.permute.xlu1 %1202  ;;  %v1587_v10 = vmul.f32 %v1585_v13, %v5827_v37  ;;  %v5974_v13 = vstv %s4576_s21  ;;  %s4601_s21 = sld [smem:[#allocation9 + $0x1d]] }
 0x246   :  { %v1211_v21 = vadd.f32 %v1203_v36, %v1131_v56  ;;  %v5949_v56 = vstv %s4575_s18  ;;  %s4600_s18 = sld [smem:[#allocation9 + $0x88]] }
 0x247   :  { %v5901_v3 = vadd.f32 %v1244_v45, %v1212_v32  ;;  %v1681_v26 = vmul.f32 %v5949_v56, %v5921_v23  ;;  %v5955_v32 = vstv %s4557_s19  ;;  %s4582_s19 = sld [smem:[#allocation9 + $0x3c]] }
 0x248   :  { %v5905_v51 = vadd.f32 %v1243_v17, %v1211_v21 }
 0x24a   :  { %1516 = vrot.lane.b32.xlu0 %v1508_v54, %s4910_s15  ;;  %1514 = vrot.lane.b32.xlu2 %v1507_v0, %s4910_s15  ;;  %v5962_v54 = vld [vmem:[#allocation2 + $0x41] sm:$0x3]  ;;  %v5964_v0 = vld [vmem:[#allocation2 + $0x39] sm:$0xff] }
 0x24b   :  { %1572 = vrot.lane.b32.xlu1 %v1566_v41, %s4911_s20 }
 0x24c   :  { %v5911_v48 = vpop.permute.xlu0 %1166  ;;  %v1260_v43 = vpop.permute.xlu2 %1259 }
 0x24d   :  { %v1258_v60 = vpop.permute.xlu1 %1257  ;;  %v1267_v36 = vadd.f32 %v1260_v43, %v5833_v8  ;;  %v1414_v8 = vmul.f32 %v5955_v32, %v5779_v14 }
 0x24e   :  { %v1266_v45 = vadd.f32 %v1258_v60, %v5837_v24  ;;  %v1643_v24 = vmul.f32 %v1640_v35, %v5962_v54  ;;  %v1642_v60 = vmul.f32 %v1640_v35, %v5964_v0 }
 0x252   :  { %1536 = vrot.lane.b32.xlu0 %v1528_v58, %s4911_s20  ;;  %1534 = vrot.lane.b32.xlu2 %v1527_v1, %s4911_s20  ;;  %v1415_v58 = vmul.f32 %v5955_v32, %v5827_v37 }
 0x253   :  { %1592 = vrot.lane.b32.xlu1 %v1586_v63, %s4911_s20 }
 0x254   :  { %v5919_v2 = vpop.permute.xlu0 %1186  ;;  %v1280_v53 = vpop.permute.xlu2 %1279 }
 0x255   :  { %v1278_v42 = vpop.permute.xlu1 %1277 }
 0x256   :  { %v1286_v35 = vadd.f32 %v1278_v42, %v5859_v28 }
 0x25a   :  { %1556 = vrot.lane.b32.xlu0 %v1548_v46, %s4911_s20  ;;  %1554 = vrot.lane.b32.xlu2 %v1547_v52, %s4911_s20  ;;  %v1701_v46 = vmul.f32 %v5974_v13, %v5921_v23  ;;  %v5982_v52 = vstv %s4558_s22  ;;  %s4583_s22 = sld [smem:[#allocation9 + $0x60]] }
 0x25b   :  { %1647 = vrot.lane.b32.xlu1 %v1641_v61, %s4910_s15  ;;  %v1287_v61 = vadd.f32 %v1280_v53, %v5855_v39  ;;  %v1663_v39 = vmul.f32 %v1660_v57, %v5962_v54  ;;  %v1662_v53 = vmul.f32 %v1660_v57, %v5964_v0 }
 0x25c   :  { %v5929_v11 = vpop.permute.xlu0 %1206  ;;  %v5931_v4 = vpop.permute.xlu2 %1299 }
 0x25d   :  { %v5933_v40 = vpop.permute.xlu1 %1297  ;;  %v1307_v57 = vadd.f32 %v5931_v4, %v5877_v59 }
 0x262   :  { %1576 = vrot.lane.b32.xlu0 %v1568_v31, %s4911_s20  ;;  %1574 = vrot.lane.b32.xlu2 %v1567_v47, %s4911_s20 }
 0x263   :  { %1667 = vrot.lane.b32.xlu1 %v1661_v62, %s4910_s15 }
 0x264   :  { %v5941_v18 = vpop.permute.xlu0 %1261  ;;  %v5943_v49 = vpop.permute.xlu2 %1319 }
 0x265   :  { %v5945_v33 = vpop.permute.xlu1 %1317 }
 0x26a   :  { %1596 = vrot.lane.b32.xlu0 %v1588_v44, %s4911_s20  ;;  %1594 = vrot.lane.b32.xlu2 %v1587_v10, %s4911_s20  ;;  %v1423_v10 = vmul.f32 %v5982_v52, %v5827_v37 }
 0x26b   :  { %1687 = vrot.lane.b32.xlu1 %v1681_v26, %s4910_s15 }
 0x26c   :  { %v5960_v21 = vpop.permute.xlu0 %1281  ;;  %v1340_v17 = vpop.permute.xlu2 %1339 }
 0x26d   :  { %v1347_v20 = vadd.f32 %v1340_v17, %v1267_v36  ;;  %v1338_v41 = vpop.permute.xlu1 %1337  ;;  %v1422_v36 = vmul.f32 %v5982_v52, %v5779_v14  ;;  %v5997_v17 = vstv %s4577_s23  ;;  %s4602_s23 = sld [smem:[#allocation9 + $0x41]] }
 0x26e   :  { %v1346_v1 = vadd.f32 %v1338_v41, %v1266_v45  ;;  %v1721_v42 = vmul.f32 %v5997_v17, %v5921_v23  ;;  %v1073_v41 = vadd.f32 %v5804_v15, %v5745_v34 }
 0x26f   :  { %v5970_v43 = vadd.f32 %v1415_v58, %v1347_v20  ;;  %v6005_v20 = vstv %s4559_s24  ;;  %v1306_v58 = vadd.f32 %v5933_v40, %v5883_v25  ;;  %v1683_v25 = vmul.f32 %v5949_v56, %v5962_v54  ;;  %s4584_s24 = sld [smem:[#allocation9 + $0x84]] }
 0x270   :  { %v5976_v63 = vadd.f32 %v1414_v8, %v1346_v1  ;;  %v1431_v34 = vmul.f32 %v6005_v20, %v5827_v37  ;;  %v1430_v59 = vmul.f32 %v6005_v20, %v5779_v14  ;;  %v6029_v40 = vstv %s4578_s25  ;;  %s4603_s25 = sld [smem:[#allocation9 + $0x65]] }
 0x272   :  { %1651 = vrot.lane.b32.xlu0 %v1643_v24, %s4910_s15  ;;  %1649 = vrot.lane.b32.xlu2 %v1642_v60, %s4910_s15  ;;  %v1153_v24 = vadd.f32 %v5895_v50, %v1073_v41  ;;  %v1221_v60 = vmul.f32 %v5820_v16, %v5656_v19  ;;  %v1682_v50 = vmul.f32 %v5949_v56, %v5964_v0 }
 0x273   :  { %1707 = vrot.lane.b32.xlu1 %v1701_v46, %s4910_s15 }
 0x274   :  { %v5987_v31 = vpop.permute.xlu0 %1301  ;;  %v1360_v47 = vpop.permute.xlu2 %1359 }
 0x275   :  { %v1367_v62 = vadd.f32 %v1360_v47, %v1287_v61  ;;  %v1358_v44 = vpop.permute.xlu1 %1357  ;;  %v1741_v47 = vmul.f32 %v6029_v40, %v5921_v23 }
 0x276   :  { %v1366_v26 = vadd.f32 %v1358_v44, %v1286_v35  ;;  %v1224_v35 = vadd.f32 %v1221_v60, %v1153_v24  ;;  %v1093_v44 = vadd.f32 %v5823_v29, %v5763_v55  ;;  %v1229_v29 = vmul.f32 %v5845_v22, %v5656_v19 }
 0x277   :  { %v5993_v45 = vadd.f32 %v1423_v10, %v1367_v62  ;;  %v6035_v62 = vstv %s4560_s28  ;;  %v1327_v10 = vadd.f32 %v5943_v49, %v5901_v3  ;;  %s4604_s28 = sld [smem:[#allocation9 + $0x89]] }
 0x278   :  { %v5999_v28 = vadd.f32 %v1422_v36, %v1366_v26  ;;  %v1268_v56 = vadd.f32 %v5941_v18, %v1224_v35  ;;  %v1326_v26 = vadd.f32 %v5945_v33, %v5905_v51  ;;  %v1173_v55 = vadd.f32 %v5911_v48, %v1093_v44 }
 0x279   :  { %v1438_v51 = vmul.f32 %v6035_v62, %v5779_v14  ;;  %v1760_v48 = vstv %s4579_s29  ;;  %v1113_v14 = vadd.f32 %v5849_v6, %v5782_v12  ;;  %v1723_v12 = vmul.f32 %v5997_v17, %v5962_v54  ;;  %s4609_s29 = sld [smem:[#allocation9 + $0x1f]] }
 0x27a   :  { %1671 = vrot.lane.b32.xlu0 %v1663_v39, %s4910_s15  ;;  %1669 = vrot.lane.b32.xlu2 %v1662_v53, %s4910_s15  ;;  %v1416_v53 = vmul.f32 %v5955_v32, %v5825_v7  ;;  %v1703_v32 = vmul.f32 %v5974_v13, %v5962_v54  ;;  %v1722_v6 = vmul.f32 %v5997_v17, %v5964_v0 }
 0x27b   :  { %1727 = vrot.lane.b32.xlu1 %v1721_v42, %s4911_s20  ;;  %v1439_v42 = vmul.f32 %v6035_v62, %v5827_v37  ;;  %v1702_v37 = vmul.f32 %v5974_v13, %v5964_v0  ;;  %v1245_v44 = vmul.f32 %v5891_v27, %v5656_v19 }
 0x27c   :  { %v6014_v1 = vpop.permute.xlu0 %1321  ;;  %v1380_v8 = vpop.permute.xlu2 %1379 }
 0x27d   :  { %v1387_v46 = vadd.f32 %v1380_v8, %v1307_v57  ;;  %v1378_v61 = vpop.permute.xlu1 %1377  ;;  %v1761_v8 = vmul.f32 %v1760_v48, %v5921_v23 }
 0x27e   :  { %v1386_v15 = vadd.f32 %v1378_v61, %v1306_v58  ;;  %v1232_v58 = vadd.f32 %v1229_v29, %v1173_v55  ;;  %v1237_v61 = vmul.f32 %v5867_v30, %v5656_v19  ;;  %v1133_v30 = vadd.f32 %v5871_v5, %v5797_v38 }
 0x27f   :  { %v6023_v4 = vadd.f32 %v1431_v34, %v1387_v46  ;;  %v1193_v46 = vadd.f32 %v5919_v2, %v1113_v14  ;;  %v1743_v5 = vmul.f32 %v6029_v40, %v5962_v54 }
 0x280   :  { %v6031_v16 = vadd.f32 %v1430_v59, %v1386_v15  ;;  %v1288_v24 = vadd.f32 %v5960_v21, %v1232_v58  ;;  %v1424_v59 = vmul.f32 %v5982_v52, %v5825_v7  ;;  %v1780_v21 = vstv %s4580_s30  ;;  %s4610_s30 = sld [smem:[#allocation9 + $0x43]] }
 0x281   :  { %v1240_v2 = vadd.f32 %v1237_v61, %v1193_v46  ;;  %v1213_v17 = vadd.f32 %v5929_v11, %v1133_v30  ;;  %v1835_v11 = vstv %s4585_s0  ;;  %v6145_v58 = vstv %s4569_s8  ;;  %v6156_v61 = vld [vmem:[#allocation2 + $0x3a] sm:$0xff]  ;;  %s4611_s0 = sld [smem:[#allocation9 + $0x67]] }
 0x282   :  { %1691 = vrot.lane.b32.xlu0 %v1683_v25, %s4910_s15  ;;  %1689 = vrot.lane.b32.xlu2 %v1682_v50, %s4910_s15  ;;  %v1781_v50 = vmul.f32 %v1780_v21, %v5921_v23  ;;  %v6174_v30 = vstv %s4570_s1  ;;  %s4594_s8 = sld [smem:[#allocation9 + $0x3f]] }
 0x283   :  { %1747 = vrot.lane.b32.xlu1 %v1741_v47, %s4911_s20  ;;  %v1308_v52 = vadd.f32 %v5987_v31, %v1240_v2  ;;  %v1742_v31 = vmul.f32 %v6029_v40, %v5964_v0  ;;  %v1440_v40 = vmul.f32 %v6035_v62, %v5825_v7  ;;  %s4595_s1 = sld [smem:[#allocation9 + $0x63]] }
 0x284   :  { %v1342_v36 = vpop.permute.xlu0 %1341  ;;  %v1400_v39 = vpop.permute.xlu2 %1399 }
 0x285   :  { %v1348_v18 = vadd.f32 %v1342_v36, %v1268_v56  ;;  %v1407_v3 = vadd.f32 %v1400_v39, %v1327_v10  ;;  %v1398_v49 = vpop.permute.xlu1 %1397  ;;  %v6104_v36 = vld [vmem:[#allocation2 + $0x32] sm:$0xff]  ;;  %v1248_v39 = vadd.f32 %v1245_v44, %v1213_v17 }
 0x286   :  { %v1406_v41 = vadd.f32 %v1398_v49, %v1326_v26  ;;  %v1432_v26 = vmul.f32 %v6005_v20, %v5825_v7  ;;  %v1836_v19 = vmul.f32 %v1835_v11, %v6104_v36  ;;  %v1855_v49 = vstv %s4586_s6  ;;  %s4593_s6 = sld [smem:[#allocation9 + $0x1b]] }
 0x287   :  { %v6056_v33 = vadd.f32 %v1416_v53, %v1348_v18  ;;  %v6058_v57 = vadd.f32 %v1439_v42, %v1407_v3  ;;  %v1328_v27 = vadd.f32 %v6014_v1, %v1248_v39  ;;  %v1763_v18 = vmul.f32 %v1760_v48, %v5962_v54 }
 0x288   :  { %v6064_v22 = vadd.f32 %v1438_v51, %v1406_v41  ;;  %v1762_v3 = vmul.f32 %v1760_v48, %v5964_v0  ;;  %v1856_v1 = vmul.f32 %v1855_v49, %v6104_v36  ;;  %v1783_v51 = vmul.f32 %v1780_v21, %v5962_v54 }
 0x289   :  { %v1617_v39 = vmul.f32 %v6174_v30, %v5921_v23 }
 0x28a   :  { %1711 = vrot.lane.b32.xlu0 %v1703_v32, %s4910_s15  ;;  %1709 = vrot.lane.b32.xlu2 %v1702_v37, %s4910_s15  ;;  %v1782_v32 = vmul.f32 %v1780_v21, %v5964_v0  ;;  %v6139_v37 = vstv %s4587_s7  ;;  %s4612_s7 = sld [smem:[#allocation9 + $0x8b]] }
 0x28b   :  { %1767 = vrot.lane.b32.xlu1 %v1761_v8, %s4911_s20  ;;  %v1876_v48 = vmul.f32 %v6139_v37, %v6104_v36  ;;  %v6147_v8 = vld [vmem:[#allocation2 + $0x42] sm:$0x3] }
 0x28c   :  { %v1362_v60 = vpop.permute.xlu0 %1361  ;;  %v6073_v13 = vpop.permute.xlu2 %1454  ;;  %v1838_v21 = vmul.f32 %v1835_v11, %v6147_v8 }
 0x28d   :  { %v1368_v34 = vadd.f32 %v1362_v60, %v1288_v24  ;;  %v6078_v15 = vpop.permute.xlu1 %1452  ;;  %v1462_v14 = vadd.f32 %v6073_v13, %v5970_v43  ;;  %v1609_v43 = vmul.f32 %v6145_v58, %v5921_v23 }
 0x28e   :  { %v1461_v24 = vadd.f32 %v6078_v15, %v5976_v63  ;;  %v1837_v63 = vmul.f32 %v1835_v11, %v6156_v61  ;;  %v6166_v15 = vstv %s4588_s9  ;;  %v1858_v11 = vmul.f32 %v1855_v49, %v6147_v8  ;;  %s4613_s9 = sld [smem:[#allocation9 + $0x20]] }
 0x28f   :  { %v6082_v25 = vadd.f32 %v1424_v59, %v1368_v34 }
 0x292   :  { %1731 = vrot.lane.b32.xlu0 %v1723_v12, %s4911_s20  ;;  %1729 = vrot.lane.b32.xlu2 %v1722_v6, %s4911_s20  ;;  %v1610_v12 = vmul.f32 %v6145_v58, %v5964_v0 }
 0x293   :  { %1787 = vrot.lane.b32.xlu1 %v1781_v50, %s4911_s20  ;;  %v1896_v50 = vmul.f32 %v6166_v15, %v6104_v36 }
 0x294   :  { %v1382_v35 = vpop.permute.xlu0 %1381  ;;  %v6095_v47 = vpop.permute.xlu2 %1474 }
 0x295   :  { %v1388_v56 = vadd.f32 %v1382_v35, %v1308_v52  ;;  %v6100_v10 = vpop.permute.xlu1 %1472  ;;  %v1482_v52 = vadd.f32 %v6095_v47, %v5993_v45  ;;  %v1857_v47 = vmul.f32 %v1855_v49, %v6156_v61 }
 0x296   :  { %v1481_v35 = vadd.f32 %v6100_v10, %v5999_v28 }
 0x297   :  { %v6106_v38 = vadd.f32 %v1432_v26, %v1388_v56 }
 0x29a   :  { %1751 = vrot.lane.b32.xlu0 %v1743_v5, %s4911_s20  ;;  %1749 = vrot.lane.b32.xlu2 %v1742_v31, %s4911_s20  ;;  %v1618_v5 = vmul.f32 %v6174_v30, %v5964_v0 }
 0x29b   :  { %1842 = vrot.lane.b32.xlu1 %v1836_v19, %s4910_s15  ;;  %v1915_v19 = vstv %s4589_s10  ;;  %s4614_s10 = sld [smem:[#allocation9 + $0x44]] }
 0x29c   :  { %v1402_v20 = vpop.permute.xlu0 %1401  ;;  %v6117_v53 = vpop.permute.xlu2 %1494  ;;  %v1916_v10 = vmul.f32 %v1915_v19, %v6104_v36 }
 0x29d   :  { %v1408_v42 = vadd.f32 %v1402_v20, %v1328_v27  ;;  %v6119_v55 = vpop.permute.xlu1 %1492  ;;  %v6196_v27 = vstv %s4571_s11  ;;  %v1502_v20 = vadd.f32 %v6117_v53, %v6023_v4  ;;  %s4596_s11 = sld [smem:[#allocation9 + $0x87]] }
 0x29e   :  { %v1625_v4 = vmul.f32 %v6196_v27, %v5921_v23 }
 0x29f   :  { %v6123_v29 = vadd.f32 %v1440_v40, %v1408_v42  ;;  %v1501_v42 = vadd.f32 %v6119_v55, %v6031_v16  ;;  %v1877_v16 = vmul.f32 %v6139_v37, %v6156_v61  ;;  %v1935_v55 = vstv %s4590_s12  ;;  %s4615_s12 = sld [smem:[#allocation9 + $0x68]] }
 0x2a2   :  { %1771 = vrot.lane.b32.xlu0 %v1763_v18, %s4911_s20  ;;  %1769 = vrot.lane.b32.xlu2 %v1762_v3, %s4911_s20 }
 0x2a3   :  { %1862 = vrot.lane.b32.xlu1 %v1856_v1, %s4910_s15  ;;  %v1626_v1 = vmul.f32 %v6196_v27, %v5964_v0 }
 0x2a4   :  { %v6131_v41 = vpop.permute.xlu0 %1456  ;;  %v6133_v7 = vpop.permute.xlu2 %1514 }
 0x2a5   :  { %v6135_v62 = vpop.permute.xlu1 %1512 }
 0x2aa   :  { %1791 = vrot.lane.b32.xlu0 %v1783_v51, %s4911_s20  ;;  %1789 = vrot.lane.b32.xlu2 %v1782_v32, %s4911_s20  ;;  %v1878_v32 = vmul.f32 %v6139_v37, %v6147_v8  ;;  %v1521_v37 = vadd.f32 %v6135_v62, %v6064_v22  ;;  %v1897_v22 = vmul.f32 %v6166_v15, %v6156_v61  ;;  %v1955_v62 = vstv %s4591_s2  ;;  %s4621_s2 = sld [smem:[#allocation9 + $0x22]] }
 0x2ab   :  { %1882 = vrot.lane.b32.xlu1 %v1876_v48, %s4910_s15 }
 0x2ac   :  { %v6154_v60 = vpop.permute.xlu0 %1476  ;;  %v1535_v46 = vpop.permute.xlu2 %1534 }
 0x2ad   :  { %v1542_v34 = vadd.f32 %v1535_v46, %v1462_v14  ;;  %v1533_v59 = vpop.permute.xlu1 %1532  ;;  %v1936_v14 = vmul.f32 %v1935_v55, %v6104_v36  ;;  %v1463_v46 = vadd.f32 %v6131_v41, %v6056_v33  ;;  %v1898_v33 = vmul.f32 %v6166_v15, %v6147_v8 }
 0x2ae   :  { %v1541_v6 = vadd.f32 %v1533_v59, %v1461_v24  ;;  %v1632_v24 = vstv %s4572_s13  ;;  %v1619_v15 = vmul.f32 %v6174_v30, %v5962_v54  ;;  %s4616_s13 = sld [smem:[#allocation9 + $0x8c]] }
 0x2af   :  { %v6163_v13 = vadd.f32 %v1610_v12, %v1542_v34  ;;  %v1522_v34 = vadd.f32 %v6133_v7, %v6058_v57  ;;  %v1633_v57 = vmul.f32 %v1632_v24, %v5921_v23  ;;  %v1483_v23 = vadd.f32 %v6154_v60, %v6082_v25 }
 0x2b0   :  { %v6168_v2 = vadd.f32 %v1609_v43, %v1541_v6 }
 0x2b2   :  { %1846 = vrot.lane.b32.xlu0 %v1838_v21, %s4910_s15  ;;  %1844 = vrot.lane.b32.xlu2 %v1837_v63, %s4910_s15  ;;  %v1611_v63 = vmul.f32 %v6145_v58, %v5962_v54  ;;  %v1956_v58 = vmul.f32 %v1955_v62, %v6104_v36 }
 0x2b3   :  { %1902 = vrot.lane.b32.xlu1 %v1896_v50, %s4910_s15  ;;  %v1634_v50 = vmul.f32 %v1632_v24, %v5964_v0 }
 0x2b4   :  { %v6181_v17 = vpop.permute.xlu0 %1496  ;;  %v1555_v44 = vpop.permute.xlu2 %1554 }
 0x2b5   :  { %v1562_v56 = vadd.f32 %v1555_v44, %v1482_v52  ;;  %v1553_v26 = vpop.permute.xlu1 %1552  ;;  %v1503_v25 = vadd.f32 %v6181_v17, %v6106_v38  ;;  %v1937_v38 = vmul.f32 %v1935_v55, %v6156_v61 }
 0x2b6   :  { %v1561_v31 = vadd.f32 %v1553_v26, %v1481_v35 }
 0x2b7   :  { %v6188_v45 = vadd.f32 %v1618_v5, %v1562_v56  ;;  %v1918_v5 = vmul.f32 %v1915_v19, %v6147_v8 }
 0x2b8   :  { %v6191_v28 = vadd.f32 %v1617_v39, %v1561_v31  ;;  %v1975_v39 = vstv %s4592_s3  ;;  %s4622_s3 = sld [smem:[#allocation9 + $0x46]] }
 0x2ba   :  { %1866 = vrot.lane.b32.xlu0 %v1858_v11, %s4910_s15  ;;  %1864 = vrot.lane.b32.xlu2 %v1857_v47, %s4910_s15  ;;  %v1917_v11 = vmul.f32 %v1915_v19, %v6156_v61  ;;  %v1976_v47 = vmul.f32 %v1975_v39, %v6104_v36  ;;  %v1627_v19 = vmul.f32 %v6196_v27, %v5962_v54 }
 0x2bb   :  { %1922 = vrot.lane.b32.xlu1 %v1916_v10, %s4911_s20 }
 0x2bc   :  { %v6203_v40 = vpop.permute.xlu0 %1516  ;;  %v1575_v18 = vpop.permute.xlu2 %1574 }
 0x2bd   :  { %v1582_v3 = vadd.f32 %v1575_v18, %v1502_v20  ;;  %v1573_v49 = vpop.permute.xlu1 %1572  ;;  %v1938_v18 = vmul.f32 %v1935_v55, %v6147_v8  ;;  %v1958_v55 = vmul.f32 %v1955_v62, %v6147_v8 }
 0x2be   :  { %v1581_v51 = vadd.f32 %v1573_v49, %v1501_v42  ;;  %v6265_v42 = vld [vmem:[#allocation2 + $0x48] sm:$0xff] }
 0x2bf   :  { %v6211_v53 = vadd.f32 %v1626_v1, %v1582_v3  ;;  %v2030_v3 = vstv %s4597_s4  ;;  %v1523_v1 = vadd.f32 %v6203_v40, %v6123_v29  ;;  %s4623_s4 = sld [smem:[#allocation9 + $0x6a]] }
 0x2c0   :  { %v6215_v48 = vadd.f32 %v1625_v4, %v1581_v51  ;;  %v2031_v17 = vmul.f32 %v2030_v3, %v6265_v42 }
 0x2c2   :  { %1886 = vrot.lane.b32.xlu0 %v1878_v32, %s4910_s15  ;;  %1884 = vrot.lane.b32.xlu2 %v1877_v16, %s4910_s15  ;;  %v1635_v16 = vmul.f32 %v1632_v24, %v5962_v54 }
 0x2c3   :  { %1942 = vrot.lane.b32.xlu1 %v1936_v14, %s4911_s20  ;;  %v2050_v14 = vstv %s4598_s14  ;;  %s4605_s14 = sld [smem:[#allocation9 + $0x1e]] }
 0x2c4   :  { %v1537_v59 = vpop.permute.xlu0 %1536  ;;  %v1595_v12 = vpop.permute.xlu2 %1594  ;;  %v2051_v29 = vmul.f32 %v2050_v14, %v6265_v42 }
 0x2c5   :  { %v1543_v6 = vadd.f32 %v1537_v59, %v1463_v46  ;;  %v1602_v21 = vadd.f32 %v1595_v12, %v1522_v34  ;;  %v1593_v43 = vpop.permute.xlu1 %1592  ;;  %v1957_v34 = vmul.f32 %v1955_v62, %v6156_v61  ;;  %v6297_v59 = vstv %s4599_s16  ;;  %s4624_s16 = sld [smem:[#allocation9 + $0x8e]] }
 0x2c6   :  { %v1601_v52 = vadd.f32 %v1593_v43, %v1521_v37  ;;  %v1978_v37 = vmul.f32 %v1975_v39, %v6147_v8  ;;  %v1977_v12 = vmul.f32 %v1975_v39, %v6156_v61 }
 0x2c7   :  { %v6233_v41 = vadd.f32 %v1611_v63, %v1543_v6  ;;  %v6235_v7 = vadd.f32 %v1634_v50, %v1602_v21  ;;  %v2071_v6 = vmul.f32 %v6297_v59, %v6265_v42  ;;  %v6304_v21 = vstv %s4581_s17  ;;  %s4606_s17 = sld [smem:[#allocation9 + $0x42]] }
 0x2c8   :  { %v6239_v35 = vadd.f32 %v1633_v57, %v1601_v52  ;;  %v6313_v57 = vld [vmem:[#allocation2 + $0x58] sm:$0x3] }
 0x2ca   :  { %1906 = vrot.lane.b32.xlu0 %v1898_v33, %s4910_s15  ;;  %1904 = vrot.lane.b32.xlu2 %v1897_v22, %s4910_s15  ;;  %v6311_v33 = vld [vmem:[#allocation2 + $0x50] sm:$0xff] }
 0x2cb   :  { %1962 = vrot.lane.b32.xlu1 %v1956_v58, %s4911_s20  ;;  %v1805_v58 = vmul.f32 %v6304_v21, %v6156_v61 }
 0x2cc   :  { %v1557_v0 = vpop.permute.xlu0 %1556  ;;  %v1650_v44 = vpop.permute.xlu2 %1649 }
 0x2cd   :  { %v1563_v56 = vadd.f32 %v1557_v0, %v1483_v23  ;;  %v1648_v26 = vpop.permute.xlu1 %1647  ;;  %v1657_v43 = vadd.f32 %v1650_v44, %v6163_v13  ;;  %v6317_v0 = vstv %s4600_s18  ;;  %v1804_v13 = vmul.f32 %v6304_v21, %v6104_v36  ;;  %s4625_s18 = sld [smem:[#allocation9 + $0x23]] }
 0x2ce   :  { %v1656_v63 = vadd.f32 %v1648_v26, %v6168_v2  ;;  %v2033_v44 = vmul.f32 %v2030_v3, %v6313_v57 }
 0x2cf   :  { %v6250_v31 = vadd.f32 %v1619_v15, %v1563_v56  ;;  %v2032_v56 = vmul.f32 %v2030_v3, %v6311_v33  ;;  %v2091_v15 = vmul.f32 %v6317_v0, %v6265_v42  ;;  %v2110_v3 = vstv %s4601_s21  ;;  %s4626_s21 = sld [smem:[#allocation9 + $0x47]] }
 0x2d2   :  { %1926 = vrot.lane.b32.xlu0 %v1918_v5, %s4911_s20  ;;  %1924 = vrot.lane.b32.xlu2 %v1917_v11, %s4911_s20  ;;  %v6331_v5 = vstv %s4582_s19  ;;  %s4607_s19 = sld [smem:[#allocation9 + $0x66]] }
 0x2d3   :  { %1982 = vrot.lane.b32.xlu1 %v1976_v47, %s4911_s20 }
 0x2d4   :  { %v1577_v60 = vpop.permute.xlu0 %1576  ;;  %v6259_v30 = vpop.permute.xlu2 %1669 }
 0x2d5   :  { %v1583_v10 = vadd.f32 %v1577_v60, %v1503_v25  ;;  %v6261_v20 = vpop.permute.xlu1 %1667  ;;  %v1677_v11 = vadd.f32 %v6259_v30, %v6188_v45  ;;  %v2053_v30 = vmul.f32 %v2050_v14, %v6313_v57 }
 0x2d6   :  { %v1676_v39 = vadd.f32 %v6261_v20, %v6191_v28  ;;  %v2052_v28 = vmul.f32 %v2050_v14, %v6311_v33 }
 0x2d7   :  { %v6268_v49 = vadd.f32 %v1627_v19, %v1583_v10  ;;  %v1813_v19 = vmul.f32 %v6331_v5, %v6156_v61 }
 0x2da   :  { %1946 = vrot.lane.b32.xlu0 %v1938_v18, %s4911_s20  ;;  %1944 = vrot.lane.b32.xlu2 %v1937_v38, %s4911_s20  ;;  %v1812_v38 = vmul.f32 %v6331_v5, %v6104_v36 }
 0x2db   :  { %2037 = vrot.lane.b32.xlu1 %v2031_v17, %s4910_s15  ;;  %v2111_v17 = vmul.f32 %v2110_v3, %v6265_v42 }
 0x2dc   :  { %v1597_v27 = vpop.permute.xlu0 %1596  ;;  %v6277_v51 = vpop.permute.xlu2 %1689 }
 0x2dd   :  { %v1603_v32 = vadd.f32 %v1597_v27, %v1523_v1  ;;  %v6279_v4 = vpop.permute.xlu1 %1687  ;;  %v6353_v1 = vstv %s4583_s22  ;;  %v1697_v27 = vadd.f32 %v6277_v51, %v6211_v53  ;;  %v2073_v51 = vmul.f32 %v6297_v59, %v6313_v57  ;;  %s4608_s22 = sld [smem:[#allocation9 + $0x8a]] }
 0x2df   :  { %v6283_v46 = vadd.f32 %v1635_v16, %v1603_v32  ;;  %v1696_v32 = vadd.f32 %v6279_v4, %v6215_v48  ;;  %v2072_v48 = vmul.f32 %v6297_v59, %v6311_v33 }
 0x2e2   :  { %1966 = vrot.lane.b32.xlu0 %v1958_v55, %s4911_s20  ;;  %1964 = vrot.lane.b32.xlu2 %v1957_v34, %s4911_s20 }
 0x2e3   :  { %2057 = vrot.lane.b32.xlu1 %v2051_v29, %s4910_s15  ;;  %v1821_v29 = vmul.f32 %v6353_v1, %v6156_v61 }
 0x2e4   :  { %v6290_v40 = vpop.permute.xlu0 %1651  ;;  %v6292_v54 = vpop.permute.xlu2 %1709 }
 0x2e5   :  { %v6294_v24 = vpop.permute.xlu1 %1707 }
 0x2ea   :  { %1986 = vrot.lane.b32.xlu0 %v1978_v37, %s4911_s20  ;;  %1984 = vrot.lane.b32.xlu2 %v1977_v12, %s4911_s20  ;;  %v2130_v12 = vstv %s4602_s23  ;;  %s4627_s23 = sld [smem:[#allocation9 + $0x6b]] }
 0x2eb   :  { %2077 = vrot.lane.b32.xlu1 %v2071_v6, %s4910_s15  ;;  %v1820_v6 = vmul.f32 %v6353_v1, %v6104_v36 }
 0x2ec   :  { %v6309_v50 = vpop.permute.xlu0 %1671  ;;  %v1730_v52 = vpop.permute.xlu2 %1729 }
 0x2ed   :  { %v1737_v22 = vadd.f32 %v1730_v52, %v1657_v43  ;;  %v1728_v62 = vpop.permute.xlu1 %1727  ;;  %v2131_v43 = vmul.f32 %v2130_v12, %v6265_v42  ;;  %v1717_v52 = vadd.f32 %v6292_v54, %v6235_v7  ;;  %v2093_v54 = vmul.f32 %v6317_v0, %v6313_v57 }
 0x2ee   :  { %v1736_v23 = vadd.f32 %v1728_v62, %v1656_v63  ;;  %v6377_v63 = vstv %s4584_s24  ;;  %s4628_s24 = sld [smem:[#allocation9 + $0x8f]] }
 0x2ef   :  { %v6321_v2 = vadd.f32 %v1805_v58, %v1737_v22  ;;  %v1716_v22 = vadd.f32 %v6294_v24, %v6239_v35  ;;  %v2092_v35 = vmul.f32 %v6317_v0, %v6311_v33  ;;  %v2112_v0 = vmul.f32 %v2110_v3, %v6311_v33 }
 0x2f0   :  { %v6325_v26 = vadd.f32 %v1804_v13, %v1736_v23  ;;  %v1829_v13 = vmul.f32 %v6377_v63, %v6156_v61 }
 0x2f2   :  { %2041 = vrot.lane.b32.xlu0 %v2033_v44, %s4910_s15  ;;  %2039 = vrot.lane.b32.xlu2 %v2032_v56, %s4910_s15  ;;  %v2150_v56 = vstv %s4603_s25  ;;  %s4617_s25 = sld [smem:[#allocation9 + $0x21]] }
 0x2f3   :  { %2097 = vrot.lane.b32.xlu1 %v2091_v15, %s4910_s15  ;;  %v1828_v15 = vmul.f32 %v6377_v63, %v6104_v36 }
 0x2f4   :  { %v6338_v47 = vpop.permute.xlu0 %1691  ;;  %v1750_v25 = vpop.permute.xlu2 %1749 }
 0x2f5   :  { %v1757_v60 = vadd.f32 %v1750_v25, %v1677_v11  ;;  %v1748_v10 = vpop.permute.xlu1 %1747  ;;  %v2151_v11 = vmul.f32 %v2150_v56, %v6265_v42  ;;  %v2170_v25 = vstv %s4604_s28  ;;  %s4618_s28 = sld [smem:[#allocation9 + $0x45]] }
 0x2f6   :  { %v1756_v18 = vadd.f32 %v1748_v10, %v1676_v39  ;;  %v2171_v10 = vmul.f32 %v2170_v25, %v6265_v42 }
 0x2f7   :  { %v6344_v45 = vadd.f32 %v1813_v19, %v1757_v60  ;;  %v2113_v60 = vmul.f32 %v2110_v3, %v6313_v57  ;;  %v2132_v3 = vmul.f32 %v2130_v12, %v6311_v33 }
 0x2f8   :  { %v6348_v20 = vadd.f32 %v1812_v38, %v1756_v18 }
 0x2fa   :  { %2061 = vrot.lane.b32.xlu0 %v2053_v30, %s4910_s15  ;;  %2059 = vrot.lane.b32.xlu2 %v2052_v28, %s4910_s15  ;;  %v6412_v30 = vld [vmem:[#allocation2 + $0x49] sm:$0xff]  ;;  %v2225_v28 = vstv %s4609_s29  ;;  %s4619_s29 = sld [smem:[#allocation9 + $0x69]] }
 0x2fb   :  { %2117 = vrot.lane.b32.xlu1 %v2111_v17, %s4911_s20  ;;  %v2133_v17 = vmul.f32 %v2130_v12, %v6313_v57 }
 0x2fc   :  { %v6360_v16 = vpop.permute.xlu0 %1711  ;;  %v1770_v55 = vpop.permute.xlu2 %1769 }
 0x2fd   :  { %v1777_v14 = vadd.f32 %v1770_v55, %v1697_v27  ;;  %v1768_v34 = vpop.permute.xlu1 %1767  ;;  %v2226_v27 = vmul.f32 %v2225_v28, %v6412_v30 }
 0x2fe   :  { %v1776_v37 = vadd.f32 %v1768_v34, %v1696_v32  ;;  %v2245_v34 = vstv %s4610_s30  ;;  %s4620_s30 = sld [smem:[#allocation9 + $0x8d]] }
 0x2ff   :  { %v6366_v53 = vadd.f32 %v1821_v29, %v1777_v14  ;;  %v2153_v29 = vmul.f32 %v2150_v56, %v6313_v57  ;;  %v2246_v12 = vmul.f32 %v2245_v34, %v6412_v30 }
 0x300   :  { %v6372_v4 = vadd.f32 %v1820_v6, %v1776_v37  ;;  %v2152_v37 = vmul.f32 %v2150_v56, %v6311_v33 }
 0x302   :  { %2081 = vrot.lane.b32.xlu0 %v2073_v51, %s4910_s15  ;;  %2079 = vrot.lane.b32.xlu2 %v2072_v48, %s4910_s15 }
 0x303   :  { %2137 = vrot.lane.b32.xlu1 %v2131_v43, %s4911_s20  ;;  %v6438_v43 = vstv %s4611_s0  ;;  %s2579_s0 = sld [smem:[#allocation10]] }
 0x304   :  { %v6384_v62 = vpop.permute.xlu0 %1731  ;;  %v1790_v59 = vpop.permute.xlu2 %1789 }
 0x305   :  { %v1797_v58 = vadd.f32 %v1790_v59, %v1717_v52  ;;  %v1788_v23 = vpop.permute.xlu1 %1787  ;;  %v2173_v52 = vmul.f32 %v2170_v25, %v6313_v57  ;;  %v2266_v59 = vmul.f32 %v6438_v43, %v6412_v30 }
 0x306   :  { %v1796_v44 = vadd.f32 %v1788_v23, %v1716_v22  ;;  %v2172_v22 = vmul.f32 %v2170_v25, %v6311_v33 }
 0x307   :  { %v6390_v7 = vadd.f32 %v1829_v13, %v1797_v58  ;;  %v6446_v58 = vstv %s4593_s6  ;;  %s4629_s6 = sld [smem:[#allocation10 + $0x1]] }
 0x308   :  { %v6396_v24 = vadd.f32 %v1828_v15, %v1796_v44  ;;  %v6453_v15 = vld [vmem:[#allocation2 + $0x51] sm:$0xff]  ;;  %v2000_v25 = vmul.f32 %v6446_v58, %v6311_v33 }
 0x30a   :  { %2101 = vrot.lane.b32.xlu0 %v2093_v54, %s4910_s15  ;;  %2099 = vrot.lane.b32.xlu2 %v2092_v35, %s4910_s15  ;;  %v6455_v54 = vld [vmem:[#allocation2 + $0x59] sm:$0x3] }
 0x30b   :  { %2157 = vrot.lane.b32.xlu1 %v2151_v11, %s4911_s20 }
 0x30c   :  { %v6402_v61 = vpop.permute.xlu0 %1751  ;;  %v1845_v36 = vpop.permute.xlu2 %1844 }
 0x30d   :  { %v1843_v39 = vpop.permute.xlu1 %1842  ;;  %v1852_v23 = vadd.f32 %v1845_v36, %v6321_v2  ;;  %v1999_v2 = vmul.f32 %v6446_v58, %v6265_v42  ;;  %v2228_v36 = vmul.f32 %v2225_v28, %v6455_v54 }
 0x30e   :  { %v1851_v13 = vadd.f32 %v1843_v39, %v6325_v26  ;;  %v2227_v39 = vmul.f32 %v2225_v28, %v6453_v15 }
 0x312   :  { %2121 = vrot.lane.b32.xlu0 %v2113_v60, %s4911_s20  ;;  %2119 = vrot.lane.b32.xlu2 %v2112_v0, %s4911_s20  ;;  %v6459_v0 = vstv %s4612_s7  ;;  %s4630_s7 = sld [smem:[#allocation10 + $0x2]] }
 0x313   :  { %2177 = vrot.lane.b32.xlu1 %v2171_v10, %s4911_s20 }
 0x314   :  { %v6410_v19 = vpop.permute.xlu0 %1771  ;;  %v1865_v18 = vpop.permute.xlu2 %1864 }
 0x315   :  { %v1863_v38 = vpop.permute.xlu1 %1862 }
 0x31a   :  { %2141 = vrot.lane.b32.xlu0 %v2133_v17, %s4911_s20  ;;  %2139 = vrot.lane.b32.xlu2 %v2132_v3, %s4911_s20  ;;  %v2286_v17 = vmul.f32 %v6459_v0, %v6412_v30  ;;  %v6473_v3 = vstv %s4594_s8  ;;  %s4912_s8 = smov 1  }
 0x31b   :  { %2232 = vrot.lane.b32.xlu1 %v2226_v27, %s4910_s15  ;;  %v1872_v27 = vadd.f32 %v1865_v18, %v6344_v45  ;;  %v2248_v18 = vmul.f32 %v2245_v34, %v6455_v54 }
 0x31c   :  { %v6420_v32 = vpop.permute.xlu0 %1791  ;;  %v6422_v55 = vpop.permute.xlu2 %1884 }
 0x31d   :  { %v6424_v14 = vpop.permute.xlu1 %1882 }
 0x322   :  { %2161 = vrot.lane.b32.xlu0 %v2153_v29, %s4911_s20  ;;  %2159 = vrot.lane.b32.xlu2 %v2152_v37, %s4911_s20  ;;  %v1871_v29 = vadd.f32 %v1863_v38, %v6348_v20  ;;  %v2247_v20 = vmul.f32 %v2245_v34, %v6453_v15  ;;  %v1891_v34 = vadd.f32 %v6424_v14, %v6372_v4 }
 0x323   :  { %2252 = vrot.lane.b32.xlu1 %v2246_v12, %s4910_s15 }
 0x324   :  { %v6432_v6 = vpop.permute.xlu0 %1846  ;;  %v6434_v51 = vpop.permute.xlu2 %1904 }
 0x325   :  { %v6436_v48 = vpop.permute.xlu1 %1902 }
 0x32a   :  { %2181 = vrot.lane.b32.xlu0 %v2173_v52, %s4911_s20  ;;  %2179 = vrot.lane.b32.xlu2 %v2172_v22, %s4911_s20  ;;  %v2008_v22 = vmul.f32 %v6473_v3, %v6311_v33 }
 0x32b   :  { %2272 = vrot.lane.b32.xlu1 %v2266_v59, %s4910_s15 }
 0x32c   :  { %v6451_v44 = vpop.permute.xlu0 %1866  ;;  %v1925_v56 = vpop.permute.xlu2 %1924 }
 0x32d   :  { %v1932_v35 = vadd.f32 %v1925_v56, %v1852_v23  ;;  %v1923_v11 = vpop.permute.xlu1 %1922  ;;  %v6482_v23 = vstv %s4613_s9  ;;  %s4631_s9 = sld [smem:[#allocation10 + $0x3]] }
 0x32e   :  { %v1931_v60 = vadd.f32 %v1923_v11, %v1851_v13  ;;  %v2007_v13 = vmul.f32 %v6473_v3, %v6265_v42  ;;  %v2306_v56 = vmul.f32 %v6482_v23, %v6412_v30  ;;  %v1658_v11 = vadd.f32 %v6290_v40, %v6233_v41 }
 0x32f   :  { %v6463_v26 = vadd.f32 %v2000_v25, %v1932_v35  ;;  %v6496_v35 = vstv %s4595_s1  ;;  %v1892_v25 = vadd.f32 %v6422_v55, %v6366_v53  ;;  %v6512_v53 = vstv %s4614_s10  ;;  %s4635_s1 = sld [smem:[#allocation12 + $0x1]] }
 0x330   :  { %v6467_v10 = vadd.f32 %v1999_v2, %v1931_v60  ;;  %v2016_v41 = vmul.f32 %v6496_v35, %v6311_v33  ;;  %v2015_v4 = vmul.f32 %v6496_v35, %v6265_v42  ;;  %s4637_s10 = sld [smem:[#allocation12 + $0x49]] }
 0x332   :  { %2236 = vrot.lane.b32.xlu0 %v2228_v36, %s4910_s15  ;;  %2234 = vrot.lane.b32.xlu2 %v2227_v39, %s4910_s15  ;;  %v1738_v36 = vadd.f32 %v6384_v62, %v1658_v11  ;;  %v1806_v39 = vmul.f32 %v6304_v21, %v6147_v8  ;;  %v2268_v62 = vmul.f32 %v6438_v43, %v6455_v54 }
 0x333   :  { %2292 = vrot.lane.b32.xlu1 %v2286_v17, %s4910_s15  ;;  %v2267_v21 = vmul.f32 %v6438_v43, %v6453_v15  ;;  %v1912_v43 = vadd.f32 %v6434_v51, %v6390_v7 }
 0x334   :  { %v6478_v37 = vpop.permute.xlu0 %1886  ;;  %v1945_v28 = vpop.permute.xlu2 %1944 }
 0x335   :  { %v1952_v12 = vadd.f32 %v1945_v28, %v1872_v27  ;;  %v1943_v52 = vpop.permute.xlu1 %1942  ;;  %v2326_v28 = vmul.f32 %v6512_v53, %v6412_v30 }
 0x336   :  { %v1951_v59 = vadd.f32 %v1943_v52, %v1871_v29  ;;  %v1809_v29 = vadd.f32 %v1806_v39, %v1738_v36  ;;  %v1678_v52 = vadd.f32 %v6309_v50, %v6250_v31  ;;  %v1814_v50 = vmul.f32 %v6331_v5, %v6147_v8 }
 0x337   :  { %v6486_v45 = vadd.f32 %v2008_v22, %v1952_v12  ;;  %v6526_v12 = vstv %s4596_s11  ;;  %s4636_s11 = sld [smem:[#allocation12 + $0x25]] }
 0x338   :  { %v6490_v38 = vadd.f32 %v2007_v13, %v1951_v59  ;;  %v1853_v22 = vadd.f32 %v6432_v6, %v1809_v29  ;;  %v1911_v59 = vadd.f32 %v6436_v48, %v6396_v24  ;;  %v1758_v31 = vadd.f32 %v6402_v61, %v1678_v52 }
 0x339   :  { %v2023_v24 = vmul.f32 %v6526_v12, %v6265_v42  ;;  %v2287_v61 = vmul.f32 %v6459_v0, %v6453_v15  ;;  %v1698_v42 = vadd.f32 %v6338_v47, %v6268_v49  ;;  %v2308_v47 = vmul.f32 %v6482_v23, %v6455_v54 }
 0x33a   :  { %2256 = vrot.lane.b32.xlu0 %v2248_v18, %s4910_s15  ;;  %2254 = vrot.lane.b32.xlu2 %v2247_v20, %s4910_s15  ;;  %v2001_v20 = vmul.f32 %v6446_v58, %v6313_v57 }
 0x33b   :  { %2312 = vrot.lane.b32.xlu1 %v2306_v56, %s4911_s20  ;;  %v2024_v56 = vmul.f32 %v6526_v12, %v6311_v33  ;;  %v2288_v33 = vmul.f32 %v6459_v0, %v6455_v54  ;;  %v1778_v0 = vadd.f32 %v6410_v19, %v1698_v42 }
 0x33c   :  { %v6505_v60 = vpop.permute.xlu0 %1906  ;;  %v1965_v2 = vpop.permute.xlu2 %1964 }
 0x33d   :  { %v1972_v17 = vadd.f32 %v1965_v2, %v1892_v25  ;;  %v1963_v27 = vpop.permute.xlu1 %1962  ;;  %v2345_v25 = vstv %s4615_s12  ;;  %s6944_s12 = sld [smem:[#allocation12 + $0x6d]] }
 0x33e   :  { %v1971_v40 = vadd.f32 %v1963_v27, %v1891_v34  ;;  %v1817_v34 = vadd.f32 %v1814_v50, %v1758_v31  ;;  %v2346_v2 = vmul.f32 %v2345_v25, %v6412_v30  ;;  %v1822_v27 = vmul.f32 %v6353_v1, %v6147_v8 }
 0x33f   :  { %v6516_v55 = vadd.f32 %v2016_v41, %v1972_v17  ;;  %v1718_v1 = vadd.f32 %v6360_v16, %v6283_v46  ;;  %v2420_v46 = vstv %s4621_s2  ;;  %v2440_v50 = vstv %s4622_s3  ;;  %s4639_s2 = sld [smem:[#allocation12 + $0x2]] }
 0x340   :  { %v6522_v14 = vadd.f32 %v2015_v4, %v1971_v40  ;;  %v1873_v36 = vadd.f32 %v6451_v44, %v1817_v34  ;;  %v2009_v4 = vmul.f32 %v6473_v3, %v6313_v57  ;;  %v2307_v44 = vmul.f32 %v6482_v23, %v6453_v15  ;;  %s6963_s3 = sld [smem:[#allocation12 + $0x4a]] }
 0x341   :  { %v1825_v19 = vadd.f32 %v1822_v27, %v1778_v0  ;;  %v1798_v52 = vadd.f32 %v6420_v32, %v1718_v1  ;;  %v1830_v23 = vmul.f32 %v6377_v63, %v6147_v8  ;;  %v2327_v32 = vmul.f32 %v6512_v53, %v6453_v15  ;;  %v6647_v27 = vld [vmem:[#allocation2 + $0x52] sm:$0xff] }
 0x342   :  { %2276 = vrot.lane.b32.xlu0 %v2268_v62, %s4910_s15  ;;  %2274 = vrot.lane.b32.xlu2 %v2267_v21, %s4910_s15  ;;  %v2365_v62 = vstv %s4616_s13  ;;  %v6636_v34 = vstv %s4605_s14  ;;  %s4640_s13 = sld [smem:[#allocation12 + $0x26]] }
 0x343   :  { %2332 = vrot.lane.b32.xlu1 %v2326_v28, %s4911_s20  ;;  %v2366_v21 = vmul.f32 %v2365_v62, %v6412_v30  ;;  %v1893_v3 = vadd.f32 %v6478_v37, %v1825_v19  ;;  %v2328_v37 = vmul.f32 %v6512_v53, %v6455_v54  ;;  %v2025_v53 = vmul.f32 %v6526_v12, %v6313_v57  ;;  %s4642_s14 = sld [smem:[#allocation12 + $0x6e]] }
 0x344   :  { %v1927_v13 = vpop.permute.xlu0 %1926  ;;  %v1985_v18 = vpop.permute.xlu2 %1984  ;;  %v6652_v19 = vstv %s4624_s16  ;;  %v6665_v1 = vstv %s4606_s17  ;;  %s4648_s16 = sld [smem:[#allocation12 + $0x28]] }
 0x345   :  { %v1933_v6 = vadd.f32 %v1927_v13, %v1853_v22  ;;  %v1992_v7 = vadd.f32 %v1985_v18, %v1912_v43  ;;  %v1983_v51 = vpop.permute.xlu1 %1982  ;;  %v6595_v13 = vld [vmem:[#allocation2 + $0x4a] sm:$0xff]  ;;  %v1833_v18 = vadd.f32 %v1830_v23, %v1798_v52  ;;  %s4650_s17 = sld [smem:[#allocation12 + $0x70]] }
 0x346   :  { %v1991_v11 = vadd.f32 %v1983_v51, %v1911_v59  ;;  %v2017_v59 = vmul.f32 %v6496_v35, %v6313_v57  ;;  %v2421_v8 = vmul.f32 %v2420_v46, %v6595_v13  ;;  %v2347_v51 = vmul.f32 %v2345_v25, %v6453_v15 }
 0x347   :  { %v6547_v48 = vadd.f32 %v2001_v20, %v1933_v6  ;;  %v6549_v58 = vadd.f32 %v2024_v56, %v1992_v7  ;;  %v1913_v63 = vadd.f32 %v6505_v60, %v1833_v18  ;;  %v2348_v7 = vmul.f32 %v2345_v25, %v6455_v54 }
 0x348   :  { %v6555_v5 = vadd.f32 %v2023_v24, %v1991_v11  ;;  %v2441_v60 = vmul.f32 %v2440_v50, %v6595_v13  ;;  %v6628_v24 = vstv %s4623_s4  ;;  %v2368_v25 = vmul.f32 %v2365_v62, %v6455_v54  ;;  %s4647_s4 = sld [smem:[#allocation12 + $0x4]] }
 0x349   :  { %v6677_v18 = vstv %s4625_s18  ;;  %s4649_s18 = sld [smem:[#allocation12 + $0x4c]] }
 0x34a   :  { %2296 = vrot.lane.b32.xlu0 %v2288_v33, %s4910_s15  ;;  %2294 = vrot.lane.b32.xlu2 %v2287_v61, %s4910_s15  ;;  %v2367_v33 = vmul.f32 %v2365_v62, %v6453_v15  ;;  %v2461_v61 = vmul.f32 %v6628_v24, %v6595_v13  ;;  %v2195_v62 = vmul.f32 %v6636_v34, %v6453_v15 }
 0x34b   :  { %2352 = vrot.lane.b32.xlu1 %v2346_v2, %s4911_s20  ;;  %v6638_v2 = vld [vmem:[#allocation2 + $0x5a] sm:$0x3] }
 0x34c   :  { %v1947_v39 = vpop.permute.xlu0 %1946  ;;  %v6564_v17 = vpop.permute.xlu2 %2039 }
 0x34d   :  { %v1953_v41 = vadd.f32 %v1947_v39, %v1873_v36  ;;  %v6569_v40 = vpop.permute.xlu1 %2037  ;;  %v2047_v42 = vadd.f32 %v6564_v17, %v6463_v26  ;;  %v2194_v26 = vmul.f32 %v6636_v34, %v6412_v30  ;;  %v2422_v17 = vmul.f32 %v2420_v46, %v6647_v27 }
 0x34e   :  { %v2046_v36 = vadd.f32 %v6569_v40, %v6467_v10 }
 0x34f   :  { %v6573_v49 = vadd.f32 %v2009_v4, %v1953_v41 }
 0x352   :  { %2316 = vrot.lane.b32.xlu0 %v2308_v47, %s4911_s20  ;;  %2314 = vrot.lane.b32.xlu2 %v2307_v44, %s4911_s20  ;;  %v2423_v44 = vmul.f32 %v2420_v46, %v6638_v2  ;;  %v2203_v46 = vmul.f32 %v6665_v1, %v6453_v15 }
 0x353   :  { %2372 = vrot.lane.b32.xlu1 %v2366_v21, %s4911_s20  ;;  %v2481_v21 = vmul.f32 %v6652_v19, %v6595_v13 }
 0x354   :  { %v1967_v29 = vpop.permute.xlu0 %1966  ;;  %v6586_v28 = vpop.permute.xlu2 %2059 }
 0x355   :  { %v1973_v22 = vadd.f32 %v1967_v29, %v1893_v3  ;;  %v6591_v43 = vpop.permute.xlu1 %2057  ;;  %v2067_v3 = vadd.f32 %v6586_v28, %v6486_v45  ;;  %v2202_v45 = vmul.f32 %v6665_v1, %v6412_v30 }
 0x356   :  { %v2066_v29 = vadd.f32 %v6591_v43, %v6490_v38  ;;  %v2442_v38 = vmul.f32 %v2440_v50, %v6647_v27 }
 0x357   :  { %v6597_v16 = vadd.f32 %v2017_v59, %v1973_v22 }
 0x35a   :  { %2336 = vrot.lane.b32.xlu0 %v2328_v37, %s4911_s20  ;;  %2334 = vrot.lane.b32.xlu2 %v2327_v32, %s4911_s20  ;;  %v2443_v32 = vmul.f32 %v2440_v50, %v6638_v2 }
 0x35b   :  { %2427 = vrot.lane.b32.xlu1 %v2421_v8, %s4910_s15  ;;  %v2501_v8 = vmul.f32 %v6677_v18, %v6595_v13 }
 0x35c   :  { %v1987_v35 = vpop.permute.xlu0 %1986  ;;  %v6608_v20 = vpop.permute.xlu2 %2079 }
 0x35d   :  { %v1993_v56 = vadd.f32 %v1987_v35, %v1913_v63  ;;  %v6610_v31 = vpop.permute.xlu1 %2077  ;;  %v6690_v63 = vstv %s4607_s19  ;;  %v2087_v35 = vadd.f32 %v6608_v20, %v6516_v55  ;;  %s4651_s19 = sld [smem:[#allocation12 + $0x5]] }
 0x35e   :  { %v2210_v55 = vmul.f32 %v6690_v63, %v6412_v30 }
 0x35f   :  { %v6614_v6 = vadd.f32 %v2025_v53, %v1993_v56  ;;  %v2086_v56 = vadd.f32 %v6610_v31, %v6522_v14  ;;  %v2462_v14 = vmul.f32 %v6628_v24, %v6647_v27 }
 0x362   :  { %2356 = vrot.lane.b32.xlu0 %v2348_v7, %s4911_s20  ;;  %2354 = vrot.lane.b32.xlu2 %v2347_v51, %s4911_s20 }
 0x363   :  { %2447 = vrot.lane.b32.xlu1 %v2441_v60, %s4910_s15  ;;  %v2211_v60 = vmul.f32 %v6690_v63, %v6453_v15 }
 0x364   :  { %v6622_v11 = vpop.permute.xlu0 %2041  ;;  %v6624_v57 = vpop.permute.xlu2 %2099 }
 0x365   :  { %v6626_v12 = vpop.permute.xlu1 %2097 }
 0x36a   :  { %2376 = vrot.lane.b32.xlu0 %v2368_v25, %s4911_s20  ;;  %2374 = vrot.lane.b32.xlu2 %v2367_v33, %s4911_s20  ;;  %v2463_v33 = vmul.f32 %v6628_v24, %v6638_v2  ;;  %v2106_v24 = vadd.f32 %v6626_v12, %v6555_v5  ;;  %v2482_v12 = vmul.f32 %v6652_v19, %v6647_v27 }
 0x36b   :  { %2467 = vrot.lane.b32.xlu1 %v2461_v61, %s4910_s15  ;;  %v2520_v61 = vstv %s4626_s21  ;;  %s4653_s21 = sld [smem:[#allocation12 + $0x4d]] }
 0x36c   :  { %v6645_v39 = vpop.permute.xlu0 %2061  ;;  %v2120_v0 = vpop.permute.xlu2 %2119 }
 0x36d   :  { %v2127_v41 = vadd.f32 %v2120_v0, %v2047_v42  ;;  %v2118_v4 = vpop.permute.xlu1 %2117  ;;  %v2521_v42 = vmul.f32 %v2520_v61, %v6595_v13  ;;  %v2048_v0 = vadd.f32 %v6622_v11, %v6547_v48  ;;  %v2483_v48 = vmul.f32 %v6652_v19, %v6638_v2 }
 0x36e   :  { %v2126_v47 = vadd.f32 %v2118_v4, %v2046_v36  ;;  %v2217_v36 = vstv %s4608_s22  ;;  %v2204_v19 = vmul.f32 %v6665_v1, %v6455_v54  ;;  %s4652_s22 = sld [smem:[#allocation12 + $0x29]] }
 0x36f   :  { %v6656_v10 = vadd.f32 %v2195_v62, %v2127_v41  ;;  %v2107_v41 = vadd.f32 %v6624_v57, %v6549_v58  ;;  %v2540_v58 = vstv %s4627_s23  ;;  %v2218_v11 = vmul.f32 %v2217_v36, %v6412_v30  ;;  %s4654_s23 = sld [smem:[#allocation12 + $0x71]] }
 0x370   :  { %v6659_v40 = vadd.f32 %v2194_v26, %v2126_v47 }
 0x372   :  { %2431 = vrot.lane.b32.xlu0 %v2423_v44, %s4910_s15  ;;  %2429 = vrot.lane.b32.xlu2 %v2422_v17, %s4910_s15  ;;  %v2196_v17 = vmul.f32 %v6636_v34, %v6455_v54  ;;  %v2541_v34 = vmul.f32 %v2540_v58, %v6595_v13 }
 0x373   :  { %2487 = vrot.lane.b32.xlu1 %v2481_v21, %s4910_s15  ;;  %v2219_v21 = vmul.f32 %v2217_v36, %v6453_v15  ;;  %v2068_v15 = vadd.f32 %v6645_v39, %v6573_v49 }
 0x374   :  { %v6672_v52 = vpop.permute.xlu0 %2081  ;;  %v2140_v23 = vpop.permute.xlu2 %2139 }
 0x375   :  { %v2147_v22 = vadd.f32 %v2140_v23, %v2067_v3  ;;  %v2138_v59 = vpop.permute.xlu1 %2137  ;;  %v2088_v39 = vadd.f32 %v6672_v52, %v6597_v16 }
 0x376   :  { %v2146_v37 = vadd.f32 %v2138_v59, %v2066_v29 }
 0x377   :  { %v6681_v28 = vadd.f32 %v2203_v46, %v2147_v22  ;;  %v2503_v46 = vmul.f32 %v6677_v18, %v6638_v2 }
 0x378   :  { %v6684_v43 = vadd.f32 %v2202_v45, %v2146_v37  ;;  %v2560_v37 = vstv %s4628_s24  ;;  %v2502_v45 = vmul.f32 %v6677_v18, %v6647_v27  ;;  %v2523_v18 = vmul.f32 %v2520_v61, %v6638_v2  ;;  %s4660_s24 = sld [smem:[#allocation12 + $0x2b]] }
 0x379   :  { %v2561_v49 = vmul.f32 %v2560_v37, %v6595_v13 }
 0x37a   :  { %2451 = vrot.lane.b32.xlu0 %v2443_v32, %s4910_s15  ;;  %2449 = vrot.lane.b32.xlu2 %v2442_v38, %s4910_s15 }
 0x37b   :  { %2507 = vrot.lane.b32.xlu1 %v2501_v8, %s4911_s20 }
 0x37c   :  { %v6697_v53 = vpop.permute.xlu0 %2101  ;;  %v2160_v50 = vpop.permute.xlu2 %2159 }
 0x37d   :  { %v2167_v7 = vadd.f32 %v2160_v50, %v2087_v35  ;;  %v2158_v51 = vpop.permute.xlu1 %2157  ;;  %v2108_v16 = vadd.f32 %v6697_v53, %v6614_v6 }
 0x37e   :  { %v2166_v25 = vadd.f32 %v2158_v51, %v2086_v56  ;;  %v2212_v56 = vmul.f32 %v6690_v63, %v6455_v54  ;;  %v2543_v63 = vmul.f32 %v2540_v58, %v6638_v2 }
 0x37f   :  { %v6705_v20 = vadd.f32 %v2211_v60, %v2167_v7  ;;  %v2522_v7 = vmul.f32 %v2520_v61, %v6647_v27 }
 0x380   :  { %v6709_v31 = vadd.f32 %v2210_v55, %v2166_v25 }
 0x382   :  { %2471 = vrot.lane.b32.xlu0 %v2463_v33, %s4910_s15  ;;  %2469 = vrot.lane.b32.xlu2 %v2462_v14, %s4910_s15  ;;  %v2220_v33 = vmul.f32 %v2217_v36, %v6455_v54  ;;  %v2542_v14 = vmul.f32 %v2540_v58, %v6647_v27  ;;  %v6779_v36 = vstv %s4617_s25  ;;  %s4659_s25 = sld [smem:[#allocation12 + $0x7]] }
 0x383   :  { %2527 = vrot.lane.b32.xlu1 %v2521_v42, %s4911_s20  ;;  %v2563_v42 = vmul.f32 %v2560_v37, %v6638_v2 }
 0x384   :  { %v2122_v4 = vpop.permute.xlu0 %2121  ;;  %v2180_v62 = vpop.permute.xlu2 %2179 }
 0x385   :  { %v2128_v47 = vadd.f32 %v2122_v4, %v2048_v0  ;;  %v2187_v44 = vadd.f32 %v2180_v62, %v2107_v41  ;;  %v2178_v26 = vpop.permute.xlu1 %2177  ;;  %v2562_v0 = vmul.f32 %v2560_v37, %v6647_v27 }
 0x386   :  { %v2186_v3 = vadd.f32 %v2178_v26, %v2106_v24 }
 0x387   :  { %v6727_v57 = vadd.f32 %v2196_v17, %v2128_v47  ;;  %v6729_v5 = vadd.f32 %v2219_v21, %v2187_v44  ;;  %v2390_v44 = vmul.f32 %v6779_v36, %v6647_v27  ;;  %v2389_v17 = vmul.f32 %v6779_v36, %v6595_v13 }
 0x388   :  { %v6733_v29 = vadd.f32 %v2218_v11, %v2186_v3 }
 0x38a   :  { %2491 = vrot.lane.b32.xlu0 %v2483_v48, %s4910_s15  ;;  %2489 = vrot.lane.b32.xlu2 %v2482_v12, %s4910_s15  ;;  %v6791_v48 = vstv %s4618_s28  ;;  %s4661_s28 = sld [smem:[#allocation12 + $0x4f]] }
 0x38b   :  { %2547 = vrot.lane.b32.xlu1 %v2541_v34, %s4911_s20 }
 0x38c   :  { %v2142_v30 = vpop.permute.xlu0 %2141  ;;  %v2235_v23 = vpop.permute.xlu2 %2234 }
 0x38d   :  { %v2148_v22 = vadd.f32 %v2142_v30, %v2068_v15  ;;  %v2233_v59 = vpop.permute.xlu1 %2232  ;;  %v2242_v54 = vadd.f32 %v2235_v23, %v6656_v10  ;;  %v2398_v15 = vmul.f32 %v6791_v48, %v6647_v27  ;;  %v2397_v23 = vmul.f32 %v6791_v48, %v6595_v13 }
 0x38e   :  { %v2241_v41 = vadd.f32 %v2233_v59, %v6659_v40 }
 0x38f   :  { %v6745_v32 = vadd.f32 %v2204_v19, %v2148_v22  ;;  %v6805_v19 = vstv %s4619_s29  ;;  %s4663_s29 = sld [smem:[#allocation12 + $0x8]] }
 0x392   :  { %2511 = vrot.lane.b32.xlu0 %v2503_v46, %s4911_s20  ;;  %2509 = vrot.lane.b32.xlu2 %v2502_v45, %s4911_s20 }
 0x393   :  { %2567 = vrot.lane.b32.xlu1 %v2561_v49, %s4911_s20 }
 0x394   :  { %v2162_v1 = vpop.permute.xlu0 %2161  ;;  %v2255_v38 = vpop.permute.xlu2 %2254 }
 0x395   :  { %v2168_v8 = vadd.f32 %v2162_v1, %v2088_v39  ;;  %v2253_v35 = vpop.permute.xlu1 %2252  ;;  %v2262_v10 = vadd.f32 %v2255_v38, %v6681_v28  ;;  %v2406_v39 = vmul.f32 %v6805_v19, %v6647_v27  ;;  %v2405_v38 = vmul.f32 %v6805_v19, %v6595_v13 }
 0x396   :  { %v2261_v40 = vadd.f32 %v2253_v35, %v6684_v43 }
 0x397   :  { %v6758_v50 = vadd.f32 %v2212_v56, %v2168_v8  ;;  %v6819_v56 = vstv %s4620_s30  ;;  %s4662_s30 = sld [smem:[#allocation12 + $0x73]] }
 0x39a   :  { %2531 = vrot.lane.b32.xlu0 %v2523_v18, %s4911_s20  ;;  %2529 = vrot.lane.b32.xlu2 %v2522_v7, %s4911_s20 }
 0x39c   :  { %v2182_v52 = vpop.permute.xlu0 %2181  ;;  %v2275_v51 = vpop.permute.xlu2 %2274 }
 0x39d   :  { %v2188_v60 = vadd.f32 %v2182_v52, %v2108_v16  ;;  %v2273_v25 = vpop.permute.xlu1 %2272  ;;  %v2282_v59 = vadd.f32 %v2275_v51, %v6705_v20  ;;  %v2414_v51 = vmul.f32 %v6819_v56, %v6647_v27  ;;  %v208_v27 = vlaneseq }
 0x39e   :  { %v2281_v43 = vadd.f32 %v2273_v25, %v6709_v31  ;;  %v2413_v25 = vmul.f32 %v6819_v56, %v6595_v13 }
 0x39f   :  { %v6767_v55 = vadd.f32 %v2220_v33, %v2188_v60 }
 0x3a2   :  { %2551 = vrot.lane.b32.xlu0 %v2543_v63, %s4911_s20  ;;  %2549 = vrot.lane.b32.xlu2 %v2542_v14, %s4911_s20 }
 0x3a4   :  { %v6772_v61 = vpop.permute.xlu0 %2236  ;;  %v2295_v6 = vpop.permute.xlu2 %2294 }
 0x3a5   :  { %v2293_v53 = vpop.permute.xlu1 %2292  ;;  %v2302_v35 = vadd.f32 %v2295_v6, %v6729_v5 }
 0x3a6   :  { %v2301_v31 = vadd.f32 %v2293_v53, %v6733_v29 }
 0x3aa   :  { %2571 = vrot.lane.b32.xlu0 %v2563_v42, %s4911_s20  ;;  %2569 = vrot.lane.b32.xlu2 %v2562_v0, %s4911_s20 }
 0x3ac   :  { %v6782_v24 = vpop.permute.xlu0 %2256  ;;  %v2315_v4 = vpop.permute.xlu2 %2314 }
 0x3ad   :  { %v2322_v62 = vadd.f32 %v2315_v4, %v2242_v54  ;;  %v2313_v47 = vpop.permute.xlu1 %2312  ;;  %v213_v4 = vand.u32 127, %v208_v27 }
 0x3ae   :  { %v2321_v26 = vadd.f32 %v2313_v47, %v2241_v41 }
 0x3af   :  { %v2393_v21 = vadd.f32 %v2390_v44, %v2322_v62  ;;  %vm223_vm4 = vcmp.ge.s32.totalorder %v213_v4, 1  ;;  %vm224_vm5 = vcmp.le.s32.totalorder %v213_v4, 16  ;;  %vm226_vm6 = vcmp.ge.s32.totalorder %v213_v4, 21 }
 0x3b0   :  { %v6788_v3 = vadd.f32 %v2389_v17, %v2321_v26  ;;  %vm227_vm7 = vcmp.le.s32.totalorder %v213_v4, 36  ;;  %vm225_vm8 = vmand %vm223_vm4, %vm224_vm5  ;;  %v209_v44 = vshrl.u32 %v208_v27, 7  ;;  %v6885_v4 = vstv %s4630_s7  ;;  %s4665_s7 = sld [smem:[#allocation12 + $0x50]] }
 0x3b1   :  { %vm228_vm9 = vmand %vm226_vm6, %vm227_vm7 }
 0x3b2   :  { %vm6844_vm10 = vmor %vm225_vm8, %vm228_vm9  ;;  %vm214_vm11 = vcmp.ge.s32.totalorder %v209_v44, 1 }
 0x3b3   :  { %vm230_vm12 = vmand %vm214_vm11, %vm6844_vm10 }
 0x3b4   :  { %v6794_v58 = vpop.permute.xlu0 %2276  ;;  %v2335_v11 = vpop.permute.xlu2 %2334 }
 0x3b5   :  { %v2342_v12 = vadd.f32 %v2335_v11, %v2262_v10  ;;  %v2333_v34 = vpop.permute.xlu1 %2332  ;;  %v6851_v11 = vstv %s2579_s0  ;;  %v2283_v17 = vadd.f32 %v6794_v58, %v6758_v50  ;;  %s4664_s0 = sld [smem:[#allocation12 + $0x2c]] }
 0x3b6   :  { %v2341_v30 = vadd.f32 %v2333_v34, %v2261_v40 }
 0x3b7   :  { %v6800_v22 = vadd.f32 %v2398_v15, %v2342_v12 }
 0x3b8   :  { %v6802_v28 = vadd.f32 %v2397_v23, %v2341_v30  ;;  %v6859_v23 = vsel %vm6844_vm10, 1.0, %v4909_v9 }
 0x3bc   :  { %v6808_v46 = vpop.permute.xlu0 %2296  ;;  %v2355_v37 = vpop.permute.xlu2 %2354 }
 0x3bd   :  { %v2362_v45 = vadd.f32 %v2355_v37, %v2282_v59  ;;  %v2353_v49 = vpop.permute.xlu1 %2352 }
 0x3be   :  { %v2361_v1 = vadd.f32 %v2353_v49, %v2281_v43  ;;  %v6863_v43 = vsel %vm230_vm12, 1.0, %v4909_v9 }
 0x3bf   :  { %v6814_v8 = vadd.f32 %v2406_v39, %v2362_v45 }
 0x3c0   :  { %v6816_v20 = vadd.f32 %v2405_v38, %v2361_v1 }
 0x3c4   :  { %v6822_v18 = vpop.permute.xlu0 %2316  ;;  %v2375_v7 = vpop.permute.xlu2 %2374 }
 0x3c5   :  { %v2382_v16 = vadd.f32 %v2375_v7, %v2302_v35  ;;  %v2373_v52 = vpop.permute.xlu1 %2372  ;;  %v6871_v35 = vstv %s4629_s6  ;;  %s4666_s6 = sld [smem:[#allocation12 + $0x74]] }
 0x3c6   :  { %v2381_v60 = vadd.f32 %v2373_v52, %v2301_v31 }
 0x3c7   :  { %v6828_v33 = vadd.f32 %v2414_v51, %v2382_v16 }
 0x3c8   :  { %v6830_v63 = vadd.f32 %v2413_v25, %v2381_v60  ;;  %v2243_v25 = vadd.f32 %v6772_v61, %v6727_v57 }
 0x3cc   :  { %v6832_v5 = vpop.permute.xlu0 %2336  ;;  %v2430_v14 = vpop.permute.xlu2 %2429 }
 0x3cd   :  { %v2428_v29 = vpop.permute.xlu1 %2427  ;;  %v2437_v26 = vadd.f32 %v2430_v14, %v2393_v21 }
 0x3ce   :  { %v2436_v10 = vadd.f32 %v2428_v29, %v6788_v3 }
 0x3d4   :  { %v6834_v6 = vpop.permute.xlu0 %2356  ;;  %v2450_v53 = vpop.permute.xlu2 %2449 }
 0x3d5   :  { %v2448_v42 = vpop.permute.xlu1 %2447  ;;  %v2457_v45 = vadd.f32 %v2450_v53, %v6800_v22 }
 0x3d6   :  { %v2456_v39 = vadd.f32 %v2448_v42, %v6802_v28 }
 0x3dc   :  { %v6836_v0 = vpop.permute.xlu0 %2376  ;;  %v2470_v54 = vpop.permute.xlu2 %2469 }
 0x3dd   :  { %v2468_v41 = vpop.permute.xlu1 %2467  ;;  %v2477_v14 = vadd.f32 %v2470_v54, %v6814_v8 }
 0x3de   :  { %v2476_v53 = vadd.f32 %v2468_v41, %v6816_v20  ;;  %v211_v20 = vadd.s32 16, %v209_v44 }
 0x3e0   :  { %vm219_vm13 = vcmp.le.s32.totalorder %v211_v20, 16 }
 0x3e1   :  { %vm232_vm14 = vmand %vm219_vm13, %vm6844_vm10 }
 0x3e4   :  { %v6838_v62 = vpop.permute.xlu0 %2431  ;;  %v6840_v13 = vpop.permute.xlu2 %2489 }
 0x3e5   :  { %v6842_v47 = vpop.permute.xlu1 %2487 }
 0x3e6   :  { %v2496_v44 = vadd.f32 %v6842_v47, %v6830_v63 }
 0x3ec   :  { %v6849_v40 = vpop.permute.xlu0 %2451  ;;  %v2510_v12 = vpop.permute.xlu2 %2509 }
 0x3ed   :  { %v2517_v34 = vadd.f32 %v2510_v12, %v2437_v26  ;;  %v2508_v15 = vpop.permute.xlu1 %2507  ;;  %v2391_v12 = vmul.f32 %v6779_v36, %v6638_v2 }
 0x3ee   :  { %v2516_v30 = vadd.f32 %v2508_v15, %v2436_v10  ;;  %v2323_v10 = vadd.f32 %v6822_v18, %v2243_v25  ;;  %v2263_v18 = vadd.f32 %v6782_v24, %v6745_v32  ;;  %v2399_v32 = vmul.f32 %v6791_v48, %v6638_v2 }
 0x3ef   :  { %v2582_v21 = vadd.f32 %v6851_v11, %v2517_v34 }
 0x3f0   :  { %v2581_v3 = vadd.f32 %v6851_v11, %v2516_v30  ;;  %v2394_v34 = vadd.f32 %v2391_v12, %v2323_v10 }
 0x3f1   :  { %v2585_v59 = vmax.f32 %v2582_v21, 0.0  ;;  %v2497_v21 = vadd.f32 %v6840_v13, %v6828_v33 }
 0x3f2   :  { %v2584_v37 = vmax.f32 %v2581_v3, 0.0  ;;  %v2438_v36 = vadd.f32 %v6838_v62, %v2394_v34 }
 0x3f3   :  { %v2588_v49 = vmul.f32 %v6859_v23, %v2585_v59 }
 0x3f4   :  { %v2587_v1 = vmul.f32 %v6863_v43, %v2584_v37  ;;  %v6869_v38 = vpop.permute.xlu0 %2471  ;;  %v2530_v31 = vpop.permute.xlu2 %2529 }
 0x3f5   :  { %v2537_v7 = vadd.f32 %v2530_v31, %v2457_v45  ;;  %2595 = vrot.lane.b32.xlu2 %v2588_v49, %s4912_s8  ;;  %v2528_v16 = vpop.permute.xlu1 %2527  ;;  %v2662_v45 = vstv %s4631_s9  ;;  %s7067_s9 = sld [smem:[#allocation12 + $0x24]] }
 0x3f6   :  { %v2536_v52 = vadd.f32 %v2528_v16, %v2456_v39  ;;  %2593 = vrot.lane.b32.xlu1 %v2587_v1, %s4912_s8  ;;  %v2343_v39 = vadd.f32 %v6832_v5, %v2263_v18  ;;  %v4485_v1 = vsel %vm232_vm14, 1.0, %v4909_v9  ;;  %v2407_v9 = vmul.f32 %v6805_v19, %v6638_v2 }
 0x3f7   :  { %v2610_v22 = vadd.f32 %v6871_v35, %v2537_v7 }
 0x3f8   :  { %v2609_v28 = vadd.f32 %v6871_v35, %v2536_v52  ;;  %v2402_v31 = vadd.f32 %v2399_v32, %v2343_v39  ;;  %v2785_v32 = vstv %s4640_s13  ;;  %s7083_s13 = sld [smem:[#allocation12 + $0x3]] }
 0x3f9   :  { %v2613_v51 = vmax.f32 %v2610_v22, 0.0 }
 0x3fa   :  { %v2612_v60 = vmax.f32 %v2609_v28, 0.0  ;;  %v2458_v52 = vadd.f32 %v6849_v40, %v2402_v31 }
 0x3fb   :  { %v2616_v29 = vmul.f32 %v6859_v23, %v2613_v51 }
 0x3fc   :  { %v2615_v42 = vmul.f32 %v6863_v43, %v2612_v60  ;;  %v6883_v27 = vpop.permute.xlu0 %2491  ;;  %v2550_v26 = vpop.permute.xlu2 %2549 }
 0x3fd   :  { %v2557_v57 = vadd.f32 %v2550_v26, %v2477_v14  ;;  %2623 = vrot.lane.b32.xlu2 %v2616_v29, %s4912_s8  ;;  %v2548_v61 = vpop.permute.xlu1 %2547  ;;  %v2415_v29 = vmul.f32 %v6819_v56, %v6638_v2  ;;  %v2715_v56 = vstv %s4635_s1  ;;  %s7071_s1 = sld [smem:[#allocation12]] }
 0x3fe   :  { %v2556_v8 = vadd.f32 %v2548_v61, %v2476_v53  ;;  %2621 = vrot.lane.b32.xlu1 %v2615_v42, %s4912_s8 }
 0x3ff   :  { %v2637_v54 = vadd.f32 %v6885_v4, %v2557_v57 }
 0x400   :  { %v2636_v41 = vadd.f32 %v6885_v4, %v2556_v8 }
 0x401   :  { %v2640_v15 = vmax.f32 %v2637_v54, 0.0 }
 0x402   :  { %v2639_v30 = vmax.f32 %v2636_v41, 0.0 }
 0x403   :  { %v2643_v3 = vmul.f32 %v6859_v23, %v2640_v15  ;;  %v2743_v15 = vstv %s4637_s10  ;;  %s7074_s10 = sld [smem:[#allocation12 + $0x52]] }
 0x404   :  { %v2642_v59 = vmul.f32 %v6863_v43, %v2639_v30  ;;  %v2512_v37 = vpop.permute.xlu0 %2511  ;;  %v2570_v49 = vpop.permute.xlu2 %2569  ;;  %v2729_v30 = vstv %s4636_s11  ;;  %s7076_s11 = sld [smem:[#allocation12 + $0x2e]] }
 0x405   :  { %v2518_v24 = vadd.f32 %v2512_v37, %v2438_v36  ;;  %v2577_v33 = vadd.f32 %v2570_v49, %v2497_v21  ;;  %2650 = vrot.lane.b32.xlu2 %v2643_v3, %s4912_s8  ;;  %v2568_v62 = vpop.permute.xlu1 %2567  ;;  %v2757_v3 = vstv %s6944_s12  ;;  %s7078_s12 = sld [smem:[#allocation12 + $0x48]] }
 0x406   :  { %v2576_v13 = vadd.f32 %v2568_v62, %v2496_v44  ;;  %2648 = vrot.lane.b32.xlu1 %v2642_v59, %s4912_s8 }
 0x407   :  { %v2583_v63 = vadd.f32 %v6851_v11, %v2518_v24  ;;  %v2664_v47 = vadd.f32 %v2662_v45, %v2577_v33  ;;  %v2363_v11 = vadd.f32 %v6834_v6, %v2283_v17  ;;  %v2771_v24 = vstv %s4639_s2  ;;  %s7087_s2 = sld [smem:[#allocation12 + $0x27]] }
 0x408   :  { %v2663_v5 = vadd.f32 %v2662_v45, %v2576_v13  ;;  %v2813_v17 = vstv %s4642_s14  ;;  %s7119_s14 = sld [smem:[#allocation12 + $0x2f]] }
 0x409   :  { %v2586_v7 = vmax.f32 %v2583_v63, 0.0  ;;  %v2667_v48 = vmax.f32 %v2664_v47, 0.0  ;;  %v2410_v58 = vadd.f32 %v2407_v9, %v2363_v11  ;;  %v2799_v63 = vstv %s6963_s3  ;;  %s7096_s3 = sld [smem:[#allocation12 + $0x76]] }
 0x40a   :  { %v2666_v16 = vmax.f32 %v2663_v5, 0.0  ;;  %v2867_v11 = vstv %s4648_s16  ;;  %s7123_s16 = sld [smem:[#allocation12 + $0xb]] }
 0x40b   :  { %v2589_v22 = vmul.f32 %v4485_v1, %v2586_v7  ;;  %v2670_v28 = vmul.f32 %v6859_v23, %v2667_v48  ;;  %v2303_v23 = vadd.f32 %v6808_v46, %v6767_v55  ;;  %v2853_v48 = vstv %s4647_s4  ;;  %s7114_s4 = sld [smem:[#allocation12 + $0x4b]] }
 0x40c   :  { %v2669_v51 = vmul.f32 %v6863_v43, %v2666_v16  ;;  %v2532_v60 = vpop.permute.xlu0 %2531  ;;  %v2478_v43 = vadd.f32 %v6869_v38, %v2410_v58  ;;  %v2895_v58 = vstv %s4650_s17  ;;  %s7127_s17 = sld [smem:[#allocation12 + $0x6c]] }
 0x40d   :  { %v2538_v25 = vadd.f32 %v2532_v60, %v2458_v52  ;;  %2597 = vrot.lane.b32.xlu0 %v2589_v22, %s4912_s8  ;;  %2677 = vrot.lane.b32.xlu2 %v2670_v28, %s4912_s8  ;;  %v2383_v19 = vadd.f32 %v6836_v0, %v2303_v23 }
 0x40e   :  { %2675 = vrot.lane.b32.xlu1 %v2669_v51, %s4912_s8 }
 0x40f   :  { %v2611_v50 = vadd.f32 %v6871_v35, %v2538_v25  ;;  %v2418_v35 = vadd.f32 %v2415_v29, %v2383_v19 }
 0x411   :  { %v2614_v40 = vmax.f32 %v2611_v50, 0.0  ;;  %v2498_v10 = vadd.f32 %v6883_v27, %v2418_v35  ;;  %v2923_v35 = vstv %s4652_s22  ;;  %s7173_s22 = sld [smem:[#allocation12 + $0x77]] }
 0x413   :  { %v2617_v6 = vmul.f32 %v4485_v1, %v2614_v40  ;;  %v2881_v40 = vstv %s4649_s18  ;;  %s7136_s18 = sld [smem:[#allocation12 + $0x6f]] }
 0x414   :  { %v2552_v14 = vpop.permute.xlu0 %2551 }
 0x415   :  { %v2558_v53 = vadd.f32 %v2552_v14, %v2478_v43  ;;  %2625 = vrot.lane.b32.xlu0 %v2617_v6, %s4912_s8  ;;  %v2909_v14 = vstv %s4651_s19  ;;  %s7145_s19 = sld [smem:[#allocation12 + $0x53]] }
 0x417   :  { %v2638_v42 = vadd.f32 %v6885_v4, %v2558_v53 }
 0x419   :  { %v2641_v26 = vmax.f32 %v2638_v42, 0.0  ;;  %v2937_v42 = vstv %s4653_s21  ;;  %s7168_s21 = sld [smem:[#allocation12 + $0xd]] }
 0x41b   :  { %v2644_v12 = vmul.f32 %v4485_v1, %v2641_v26 }
 0x41c   :  { %v2572_v55 = vpop.permute.xlu0 %2571 }
 0x41d   :  { %v2578_v46 = vadd.f32 %v2572_v55, %v2498_v10  ;;  %2652 = vrot.lane.b32.xlu0 %v2644_v12, %s4912_s8  ;;  %v2951_v55 = vstv %s4654_s23  ;;  %s7188_s23 = sld [smem:[#allocation12 + $0x31]] }
 0x41f   :  { %v2665_v38 = vadd.f32 %v2662_v45, %v2578_v46 }
 0x421   :  { %v2668_v57 = vmax.f32 %v2665_v38, 0.0 }
 0x423   :  { %v2671_v0 = vmul.f32 %v4485_v1, %v2668_v57 }
 0x425   :  { %2679 = vrot.lane.b32.xlu0 %v2671_v0, %s4912_s8  ;;  %s7057_s8 = sld [smem:[#allocation12 + $0xa]] }
 0x44f   :  { %v2596_v2 = vpop.permute.xlu2 %2595 }
 0x450   :  { %2604 = vst.msk [vmem:[#allocation3 + $0x9] sm:$0xff] %vm2602_vm15, %v2596_v2  ;;  %v3005_v2 = vstv %s4660_s24  ;;  %s7196_s24 = sld [smem:[#allocation12 + $0x79]] }
 0x457   :  { %v6936_v4 = vld [vmem:[#allocation3 + $0x9] sm:$0xff]  ;;  %v2624_v61 = vpop.permute.xlu2 %2623 }
 0x458   :  { %2632 = vst.msk [vmem:[#allocation3 + $0x21] sm:$0xff] %vm2602_vm15, %v2624_v61  ;;  %v2717_v27 = vmul.f32 %v2715_v56, %v6936_v4  ;;  %v2759_v59 = vmul.f32 %v2757_v3, %v6936_v4  ;;  %v2745_v37 = vmul.f32 %v2743_v15, %v6936_v4  ;;  %v2731_v45 = vmul.f32 %v2729_v30, %v6936_v4 }
 0x459   :  { %v2801_v1 = vmul.f32 %v2799_v63, %v6936_v4  ;;  %v2787_v5 = vmul.f32 %v2785_v32, %v6936_v4  ;;  %v2773_v31 = vmul.f32 %v2771_v24, %v6936_v4  ;;  %v2815_v50 = vmul.f32 %v2813_v17, %v6936_v4 }
 0x45a   :  { %2722 = vrot.lane.b32.xlu2 %v2717_v27, %s4910_s15 }
 0x45f   :  { %v2651_v8 = vpop.permute.xlu2 %2650 }
 0x460   :  { %2659 = vst.msk [vmem:[#allocation3 + $0x39] sm:$0xff] %vm2602_vm15, %v2651_v8 }
 0x467   :  { %v2678_v20 = vpop.permute.xlu2 %2677 }
 0x468   :  { %2686 = vst.msk [vmem:[#allocation3 + $0x51] sm:$0xff] %vm2602_vm15, %v2678_v20  ;;  %v2594_v54 = vpop.permute.xlu1 %2593 }
 0x469   :  { %2603 = vst.msk [vmem:[#allocation3 + $0x1] sm:$0xff] %vm2602_vm15, %v2594_v54 }
 0x470   :  { %v6946_v41 = vld [vmem:[#allocation3 + $0x1] sm:$0xff]  ;;  %v2622_v34 = vpop.permute.xlu1 %2621 }
 0x471   :  { %2631 = vst.msk [vmem:[#allocation3 + $0x19] sm:$0xff] %vm2602_vm15, %v2622_v34  ;;  %v2744_v18 = vmul.f32 %v2743_v15, %v6946_v41  ;;  %v2730_v36 = vmul.f32 %v2729_v30, %v6946_v41  ;;  %v2716_v21 = vmul.f32 %v2715_v56, %v6946_v41  ;;  %v2786_v33 = vmul.f32 %v2785_v32, %v6946_v41  ;;  %v6981_v7 = vld [vmem:[#allocation3 + $0x2] sm:$0xff] }
 0x472   :  { %v2772_v62 = vmul.f32 %v2771_v24, %v6946_v41  ;;  %v2758_v13 = vmul.f32 %v2757_v3, %v6946_v41  ;;  %v2854_v52 = vmul.f32 %v2853_v48, %v6981_v7  ;;  %v2814_v22 = vmul.f32 %v2813_v17, %v6946_v41  ;;  %v7023_v0 = vld [vmem:[#allocation3 + $0x3] sm:$0xff] }
 0x473   :  { %2748 = vrot.lane.b32.xlu2 %v2744_v18, %s4910_s15  ;;  %2734 = vrot.lane.b32.xlu0 %v2730_v36, %s4910_s15  ;;  %v2800_v28 = vmul.f32 %v2799_v63, %v6946_v41  ;;  %v2896_v23 = vmul.f32 %v2895_v58, %v6981_v7  ;;  %v2882_v43 = vmul.f32 %v2881_v40, %v6981_v7  ;;  %v2991_v56 = vstv %s4659_s25  ;;  %s7198_s25 = sld [smem:[#allocation12 + $0x6]] }
 0x474   :  { %2720 = vrot.lane.b32.xlu1 %v2716_v21, %s4910_s15  ;;  %v2868_v6 = vmul.f32 %v2867_v11, %v6981_v7  ;;  %v2938_v26 = vmul.f32 %v2937_v42, %v6981_v7  ;;  %v2924_v10 = vmul.f32 %v2923_v35, %v6981_v7  ;;  %v2910_v12 = vmul.f32 %v2909_v14, %v6981_v7 }
 0x475   :  { %v3006_v61 = vmul.f32 %v3005_v2, %v7023_v0  ;;  %v2992_v27 = vmul.f32 %v2991_v56, %v7023_v0  ;;  %v2952_v8 = vmul.f32 %v2951_v55, %v6981_v7  ;;  %v3019_v34 = vstv %s4661_s28  ;;  %s7202_s28 = sld [smem:[#allocation12 + $0x55]] }
 0x476   :  { %v3047_v21 = vstv %s4663_s29  ;;  %v3033_v3 = vstv %s4662_s30  ;;  %v3129_v17 = vstv %s7057_s8  ;;  %s7208_s29 = sld [smem:[#allocation12 + $0x2a]] }
 0x477   :  { %s7212_s30 = sld [smem:[#allocation12 + $0x4e]] }
 0x478   :  { %v2649_v44 = vpop.permute.xlu1 %2648  ;;  %s7243_s8 = sld [smem:[#allocation12 + $0x32]] }
 0x479   :  { %2658 = vst.msk [vmem:[#allocation3 + $0x31] sm:$0xff] %vm2602_vm15, %v2649_v44  ;;  %v3048_v44 = vmul.f32 %v3047_v21, %v7023_v0 }
 0x47b   :  { %2764 = vrot.lane.b32.xlu2 %v2759_v59, %s4910_s15  ;;  %2750 = vrot.lane.b32.xlu0 %v2745_v37, %s4910_s15  ;;  %v3034_v59 = vmul.f32 %v3033_v3, %v7023_v0  ;;  %v3020_v37 = vmul.f32 %v3019_v34, %v7023_v0 }
 0x47c   :  { %2736 = vrot.lane.b32.xlu1 %v2731_v45, %s4910_s15 }
 0x47f   :  { %v2598_v49 = vpop.permute.xlu0 %2597 }
 0x480   :  { %2606 = vst.msk [vmem:[#allocation3 + $0x11] sm:$0x3] %vm2605_vm0, %v2598_v49  ;;  %v2676_v39 = vpop.permute.xlu1 %2675  ;;  %v3061_v49 = vstv %s4664_s0  ;;  %s7221_s0 = sld [smem:[#allocation12 + $0xe]] }
 0x481   :  { %2685 = vst.msk [vmem:[#allocation3 + $0x49] sm:$0xff] %vm2602_vm15, %v2676_v39 }
 0x483   :  { %2790 = vrot.lane.b32.xlu2 %v2786_v33, %s4911_s20  ;;  %2776 = vrot.lane.b32.xlu0 %v2772_v62, %s4911_s20  ;;  %v3089_v62 = vstv %s4666_s6  ;;  %s7234_s6 = sld [smem:[#allocation12 + $0x56]] }
 0x484   :  { %2762 = vrot.lane.b32.xlu1 %v2758_v13, %s4910_s15  ;;  %v3075_v13 = vstv %s4665_s7  ;;  %v3090_v63 = vmul.f32 %v3089_v62, %v7023_v0  ;;  %s7240_s7 = sld [smem:[#allocation12 + $0x72]] }
 0x487   :  { %v2626_v47 = vpop.permute.xlu0 %2625  ;;  %v6990_v51 = vld [vmem:[#allocation3 + $0xa] sm:$0xff] }
 0x488   :  { %2633 = vst.msk [vmem:[#allocation3 + $0x29] sm:$0x3] %vm2605_vm0, %v2626_v47  ;;  %v2869_v9 = vmul.f32 %v2867_v11, %v6990_v51  ;;  %v2855_v25 = vmul.f32 %v2853_v48, %v6990_v51  ;;  %v2911_v19 = vmul.f32 %v2909_v14, %v6990_v51  ;;  %v2897_v29 = vmul.f32 %v2895_v58, %v6990_v51  ;;  %v7033_v54 = vld [vmem:[#allocation3 + $0xb] sm:$0xff]  ;;  %v7069_v48 = vld [vmem:[#allocation3 + $0x21] sm:$0xff] }
 0x489   :  { %v2883_v53 = vmul.f32 %v2881_v40, %v6990_v51  ;;  %v2953_v46 = vmul.f32 %v2951_v55, %v6990_v51  ;;  %v2939_v38 = vmul.f32 %v2937_v42, %v6990_v51  ;;  %v2925_v57 = vmul.f32 %v2923_v35, %v6990_v51 }
 0x48a   :  { %v3021_v15 = vmul.f32 %v3019_v34, %v7033_v54  ;;  %v3007_v30 = vmul.f32 %v3005_v2, %v7033_v54  ;;  %v2993_v18 = vmul.f32 %v2991_v56, %v7033_v54  ;;  %v3063_v39 = vmul.f32 %v3061_v49, %v7033_v54 }
 0x48b   :  { %2806 = vrot.lane.b32.xlu2 %v2801_v1, %s4911_s20  ;;  %2792 = vrot.lane.b32.xlu0 %v2787_v5, %s4911_s20  ;;  %v3049_v32 = vmul.f32 %v3047_v21, %v7033_v54  ;;  %v3035_v24 = vmul.f32 %v3033_v3, %v7033_v54  ;;  %v3076_v47 = vmul.f32 %v3075_v13, %v7023_v0  ;;  %v2829_v35 = vstv %s7083_s13  ;;  %s7306_s13 = sld [smem:[#allocation12 + $0x2d]] }
 0x48c   :  { %2778 = vrot.lane.b32.xlu1 %v2773_v31, %s4911_s20  ;;  %v3062_v1 = vmul.f32 %v3061_v49, %v7023_v0 }
 0x48f   :  { %v2653_v16 = vpop.permute.xlu0 %2652 }
 0x490   :  { %2660 = vst.msk [vmem:[#allocation3 + $0x41] sm:$0x3] %vm2605_vm0, %v2653_v16 }
 0x493   :  { %2858 = vrot.lane.b32.xlu2 %v2854_v52, %s4910_s15  ;;  %2818 = vrot.lane.b32.xlu0 %v2814_v22, %s4911_s20  ;;  %v3131_v52 = vmul.f32 %v3129_v17, %v7069_v48  ;;  %v3091_v22 = vmul.f32 %v3089_v62, %v7033_v54 }
 0x494   :  { %2804 = vrot.lane.b32.xlu1 %v2800_v28, %s4911_s20  ;;  %v3077_v28 = vmul.f32 %v3075_v13, %v7033_v54 }
 0x497   :  { %v2680_v60 = vpop.permute.xlu0 %2679 }
 0x498   :  { %2687 = vst.msk [vmem:[#allocation3 + $0x59] sm:$0x3] %vm2605_vm0, %v2680_v60  ;;  %v2697_v60 = vstv %s7067_s9  ;;  %s7269_s9 = sld [smem:[#allocation12 + $0x7a]] }
 0x499   :  { %v2699_v21 = vmul.f32 %v2697_v60, %v6936_v4 }
 0x49b   :  { %2874 = vrot.lane.b32.xlu2 %v2869_v9, %s4910_s15  ;;  %2860 = vrot.lane.b32.xlu0 %v2855_v25, %s4910_s15  ;;  %v7093_v25 = vld [vmem:[#allocation3 + $0x19] sm:$0xff] }
 0x49c   :  { %2820 = vrot.lane.b32.xlu1 %v2815_v50, %s4911_s20  ;;  %v2698_v50 = vmul.f32 %v2697_v60, %v6946_v41  ;;  %v3130_v42 = vmul.f32 %v3129_v17, %v7093_v25  ;;  %v2709_v17 = vstv %s7127_s17  ;;  %s7359_s17 = sld [smem:[#allocation12 + $0x7d]] }
 0x49d   :  { %v2710_v60 = vmul.f32 %v2709_v17, %v6946_v41 }
 0x4a3   :  { %2900 = vrot.lane.b32.xlu2 %v2896_v23, %s4910_s15  ;;  %2886 = vrot.lane.b32.xlu0 %v2882_v43, %s4910_s15  ;;  %v3157_v23 = vstv %s7074_s10  ;;  %v3143_v43 = vstv %s7076_s11  ;;  %s7283_s10 = sld [smem:[#allocation12 + $0x10]] }
 0x4a4   :  { %2872 = vrot.lane.b32.xlu1 %v2868_v6, %s4910_s15  ;;  %v2691_v6 = vstv %s7071_s1  ;;  %v3158_v14 = vmul.f32 %v3157_v23, %v7093_v25  ;;  %v3145_v3 = vmul.f32 %v3143_v43, %v7069_v48  ;;  %s7281_s1 = sld [smem:[#allocation12 + $0x34]] }
 0x4a5   :  { %s7293_s11 = sld [smem:[#allocation12 + $0x9]] }
 0x4ab   :  { %2916 = vrot.lane.b32.xlu2 %v2911_v19, %s4911_s20  ;;  %2902 = vrot.lane.b32.xlu0 %v2897_v29, %s4910_s15  ;;  %v3144_v19 = vmul.f32 %v3143_v43, %v7093_v25  ;;  %v2703_v29 = vstv %s7078_s12  ;;  %s7299_s12 = sld [smem:[#allocation12 + $0x58]] }
 0x4ac   :  { %2888 = vrot.lane.b32.xlu1 %v2883_v53, %s4910_s15  ;;  %v2692_v53 = vmul.f32 %v2691_v6, %v6946_v41  ;;  %v2705_v55 = vmul.f32 %v2703_v29, %v6936_v4 }
 0x4b3   :  { %2942 = vrot.lane.b32.xlu2 %v2938_v26, %s4911_s20  ;;  %2928 = vrot.lane.b32.xlu0 %v2924_v10, %s4911_s20  ;;  %v2835_v26 = vstv %s7087_s2  ;;  %s7312_s2 = sld [smem:[#allocation12 + $0x11]] }
 0x4b4   :  { %2914 = vrot.lane.b32.xlu1 %v2910_v12, %s4911_s20  ;;  %v7031_v20 = vpop.permute.xlu2 %2722 }
 0x4bb   :  { %2958 = vrot.lane.b32.xlu2 %v2953_v46, %s4911_s20  ;;  %2944 = vrot.lane.b32.xlu0 %v2939_v38, %s4911_s20 }
 0x4bc   :  { %2930 = vrot.lane.b32.xlu1 %v2925_v57, %s4911_s20  ;;  %v2830_v57 = vmul.f32 %v2829_v35, %v6981_v7 }
 0x4c3   :  { %3010 = vrot.lane.b32.xlu2 %v3006_v61, %s4910_s15  ;;  %2996 = vrot.lane.b32.xlu0 %v2992_v27, %s4910_s15  ;;  %v3171_v61 = vstv %s7096_s3  ;;  %v2836_v27 = vmul.f32 %v2835_v26, %v6981_v7  ;;  %s7316_s3 = sld [smem:[#allocation12 + $0x7c]] }
 0x4c4   :  { %2956 = vrot.lane.b32.xlu1 %v2952_v8, %s4911_s20 }
 0x4cb   :  { %3026 = vrot.lane.b32.xlu2 %v3021_v15, %s4910_s15  ;;  %3012 = vrot.lane.b32.xlu0 %v3007_v30, %s4910_s15  ;;  %v3173_v30 = vmul.f32 %v3171_v61, %v7069_v48 }
 0x4cc   :  { %2998 = vrot.lane.b32.xlu1 %v2993_v18, %s4910_s15  ;;  %v3159_v18 = vmul.f32 %v3157_v23, %v7069_v48 }
 0x4cd   :  { %v7041_v36 = vpop.permute.xlu2 %2748 }
 0x4d3   :  { %3052 = vrot.lane.b32.xlu2 %v3048_v44, %s4911_s20  ;;  %3038 = vrot.lane.b32.xlu0 %v3034_v59, %s4910_s15  ;;  %v2693_v44 = vmul.f32 %v2691_v6, %v6936_v4 }
 0x4d4   :  { %3024 = vrot.lane.b32.xlu1 %v3020_v37, %s4910_s15 }
 0x4d5   :  { %v7049_v45 = vpop.permute.xlu2 %2764  ;;  %v2727_v49 = vadd.f32 %v7031_v20, %v2693_v44  ;;  %v3185_v20 = vstv %s7123_s16  ;;  %v7200_v44 = vld [vmem:[#allocation3 + $0x22] sm:$0xff]  ;;  %s7342_s16 = sld [smem:[#allocation12 + $0x35]] }
 0x4db   :  { %3068 = vrot.lane.b32.xlu2 %v3063_v39, %s4911_s20  ;;  %3054 = vrot.lane.b32.xlu0 %v3049_v32, %s4911_s20 }
 0x4dc   :  { %3040 = vrot.lane.b32.xlu1 %v3035_v24, %s4910_s15  ;;  %v2841_v24 = vstv %s7114_s4  ;;  %s7330_s4 = sld [smem:[#allocation12 + $0x51]] }
 0x4dd   :  { %v2791_v33 = vpop.permute.xlu2 %2790 }
 0x4e3   :  { %3094 = vrot.lane.b32.xlu2 %v3090_v63, %s4911_s20  ;;  %3080 = vrot.lane.b32.xlu0 %v3076_v47, %s4911_s20  ;;  %v2843_v63 = vmul.f32 %v2841_v24, %v6990_v51 }
 0x4e4   :  { %3066 = vrot.lane.b32.xlu1 %v3062_v1, %s4911_s20  ;;  %v2831_v1 = vmul.f32 %v2829_v35, %v6990_v51 }
 0x4e5   :  { %v7065_v5 = vpop.permute.xlu2 %2806  ;;  %v2735_v31 = vpop.permute.xlu0 %2734 }
 0x4e6   :  { %v2721_v16 = vpop.permute.xlu1 %2720  ;;  %v2740_v40 = vadd.f32 %v2735_v31, %v2698_v50  ;;  %v3199_v31 = vstv %s7119_s14  ;;  %v2704_v50 = vmul.f32 %v2703_v29, %v6946_v41  ;;  %v2842_v29 = vmul.f32 %v2841_v24, %v6981_v7  ;;  %s7335_s14 = sld [smem:[#allocation12 + $0x75]] }
 0x4e7   :  { %v2726_v12 = vadd.f32 %v2721_v16, %v2692_v53 }
 0x4e8   :  { %v2796_v10 = vadd.f32 %v2791_v33, %v2740_v40  ;;  %v2837_v33 = vmul.f32 %v2835_v26, %v6990_v51  ;;  %v2754_v23 = vadd.f32 %v7041_v36, %v2704_v50  ;;  %v3201_v36 = vmul.f32 %v3199_v31, %v7069_v48 }
 0x4e9   :  { %v2973_v50 = vstv %s7208_s29  ;;  %s7435_s29 = sld [smem:[#allocation12 + $0x38]] }
 0x4ea   :  { %v7125_v15 = vadd.f32 %v2836_v27, %v2796_v10 }
 0x4eb   :  { %3136 = vrot.lane.b32.xlu2 %v3131_v52, %s4910_s15  ;;  %3096 = vrot.lane.b32.xlu0 %v3091_v22, %s4911_s20  ;;  %v3200_v52 = vmul.f32 %v3199_v31, %v7093_v25  ;;  %v3186_v22 = vmul.f32 %v3185_v20, %v7093_v25  ;;  %v3309_v31 = vstv %s7196_s24  ;;  %s7408_s24 = sld [smem:[#allocation12 + $0x30]] }
 0x4ec   :  { %3082 = vrot.lane.b32.xlu1 %v3077_v28, %s4911_s20 }
 0x4ed   :  { %v7091_v11 = vpop.permute.xlu2 %2858  ;;  %v2751_v9 = vpop.permute.xlu0 %2750 }
 0x4ee   :  { %v2737_v58 = vpop.permute.xlu1 %2736  ;;  %v2755_v8 = vadd.f32 %v2751_v9, %v2705_v55  ;;  %v3172_v9 = vmul.f32 %v3171_v61, %v7093_v25  ;;  %v2711_v55 = vmul.f32 %v2709_v17, %v6936_v4  ;;  %v3267_v61 = vstv %s7168_s21  ;;  %s7397_s21 = sld [smem:[#allocation12 + $0x5b]] }
 0x4ef   :  { %v2741_v37 = vadd.f32 %v2737_v58, %v2699_v21  ;;  %v2847_v58 = vstv %s7136_s18  ;;  %v3269_v24 = vmul.f32 %v3267_v61, %v7200_v44  ;;  %s7362_s18 = sld [smem:[#allocation12 + $0x59]] }
 0x4f0   :  { %v2811_v59 = vadd.f32 %v7065_v5, %v2755_v8  ;;  %v2849_v8 = vmul.f32 %v2847_v58, %v6990_v51 }
 0x4f2   :  { %v7153_v16 = vadd.f32 %v2843_v63, %v2811_v59 }
 0x4f3   :  { %3162 = vrot.lane.b32.xlu2 %v3158_v14, %s4910_s15  ;;  %3148 = vrot.lane.b32.xlu0 %v3144_v19, %s4910_s15  ;;  %v2848_v14 = vmul.f32 %v2847_v58, %v6981_v7  ;;  %v2769_v7 = vadd.f32 %v7049_v45, %v2711_v55  ;;  %v2979_v58 = vstv %s7212_s30  ;;  %s7437_s30 = sld [smem:[#allocation12 + $0x14]] }
 0x4f4   :  { %3134 = vrot.lane.b32.xlu1 %v3130_v42, %s4910_s15  ;;  %v3213_v42 = vstv %s7145_s19  ;;  %s7383_s19 = sld [smem:[#allocation12 + $0x13]] }
 0x4f5   :  { %v7112_v46 = vpop.permute.xlu2 %2874  ;;  %v2777_v38 = vpop.permute.xlu0 %2776  ;;  %v3215_v26 = vmul.f32 %v3213_v42, %v7069_v48  ;;  %v3214_v45 = vmul.f32 %v3213_v42, %v7093_v25 }
 0x4f6   :  { %v2782_v2 = vadd.f32 %v2777_v38, %v2726_v12  ;;  %v2763_v56 = vpop.permute.xlu1 %2762  ;;  %v3187_v12 = vmul.f32 %v3185_v20, %v7069_v48  ;;  %v3295_v20 = vstv %s7202_s28  ;;  %s7430_s28 = sld [smem:[#allocation12 + $0x54]] }
 0x4f7   :  { %v2768_v40 = vadd.f32 %v2763_v56, %v2710_v60 }
 0x4f8   :  { %v7121_v34 = vadd.f32 %v2830_v57, %v2782_v2  ;;  %v7183_v2 = vld [vmem:[#allocation3 + $0x1a] sm:$0xff] }
 0x4f9   :  { %v3268_v4 = vmul.f32 %v3267_v61, %v7183_v2  ;;  %v3296_v60 = vmul.f32 %v3295_v20, %v7183_v2 }
 0x4fb   :  { %3178 = vrot.lane.b32.xlu2 %v3173_v30, %s4910_s15  ;;  %3164 = vrot.lane.b32.xlu0 %v3159_v18, %s4910_s15  ;;  %v3227_v30 = vstv %s7173_s22  ;;  %s7399_s22 = sld [smem:[#allocation12 + $0x37]] }
 0x4fc   :  { %3150 = vrot.lane.b32.xlu1 %v3145_v3, %s4910_s15  ;;  %v3228_v18 = vmul.f32 %v3227_v30, %v7093_v25 }
 0x4fd   :  { %v7141_v39 = vpop.permute.xlu2 %2900  ;;  %v2793_v32 = vpop.permute.xlu0 %2792 }
 0x4fe   :  { %v2797_v62 = vadd.f32 %v2793_v32, %v2741_v37  ;;  %v2779_v13 = vpop.permute.xlu1 %2778 }
 0x4ff   :  { %v2783_v47 = vadd.f32 %v2779_v13, %v2727_v49  ;;  %v3281_v49 = vstv %s7188_s23  ;;  %s7404_s23 = sld [smem:[#allocation12 + $0xc]] }
 0x500   :  { %v7149_v5 = vadd.f32 %v2837_v33, %v2797_v62  ;;  %v3283_v32 = vmul.f32 %v3281_v49, %v7200_v44  ;;  %v3229_v33 = vmul.f32 %v3227_v30, %v7069_v48  ;;  %v2985_v30 = vstv %s7240_s7  ;;  %s7476_s7 = sld [smem:[#allocation12 + $0x16]] }
 0x501   :  { %v2833_v28 = vadd.f32 %v2831_v1, %v2783_v47  ;;  %v2967_v47 = vstv %s7198_s25  ;;  %s7415_s25 = sld [smem:[#allocation12 + $0x7f]] }
 0x502   :  { %v2969_v17 = vmul.f32 %v2967_v47, %v7033_v54 }
 0x503   :  { %3204 = vrot.lane.b32.xlu2 %v3200_v52, %s4911_s20  ;;  %3190 = vrot.lane.b32.xlu0 %v3186_v22, %s4911_s20 }
 0x504   :  { %3176 = vrot.lane.b32.xlu1 %v3172_v9, %s4910_s15  ;;  %v3282_v9 = vmul.f32 %v3281_v49, %v7183_v2 }
 0x505   :  { %v2917_v43 = vpop.permute.xlu2 %2916  ;;  %v2819_v6 = vpop.permute.xlu0 %2818 }
 0x506   :  { %v2824_v19 = vadd.f32 %v2819_v6, %v2768_v40  ;;  %v2805_v53 = vpop.permute.xlu1 %2804 }
 0x507   :  { %v2810_v41 = vadd.f32 %v2805_v53, %v2754_v23 }
 0x508   :  { %v7171_v35 = vadd.f32 %v2848_v14, %v2824_v19  ;;  %v2864_v14 = vadd.f32 %v7091_v11, %v7121_v34  ;;  %v2974_v19 = vmul.f32 %v2973_v50, %v7023_v0 }
 0x509   :  { %v2844_v10 = vadd.f32 %v2842_v29, %v2810_v41  ;;  %v2968_v29 = vmul.f32 %v2967_v47, %v7023_v0  ;;  %v2986_v47 = vmul.f32 %v2985_v30, %v7023_v0 }
 0x50b   :  { %3220 = vrot.lane.b32.xlu2 %v3215_v26, %s4911_s20  ;;  %3206 = vrot.lane.b32.xlu0 %v3201_v36, %s4911_s20 }
 0x50c   :  { %3192 = vrot.lane.b32.xlu1 %v3187_v12, %s4911_s20  ;;  %v3311_v12 = vmul.f32 %v3309_v31, %v7200_v44 }
 0x50d   :  { %v2943_v38 = vpop.permute.xlu2 %2942  ;;  %v2861_v57 = vpop.permute.xlu0 %2860 }
 0x50e   :  { %v2821_v56 = vpop.permute.xlu1 %2820  ;;  %v2865_v37 = vadd.f32 %v2861_v57, %v2833_v28  ;;  %v3310_v28 = vmul.f32 %v3309_v31, %v7183_v2 }
 0x50f   :  { %v2825_v27 = vadd.f32 %v2821_v56, %v2769_v7  ;;  %v3297_v7 = vmul.f32 %v3295_v20, %v7200_v44 }
 0x510   :  { %v2921_v62 = vadd.f32 %v2917_v43, %v2865_v37 }
 0x511   :  { %v2851_v21 = vadd.f32 %v2849_v8, %v2825_v27  ;;  %v2879_v27 = vadd.f32 %v7112_v46, %v7149_v5  ;;  %v3351_v8 = vstv %s7234_s6  ;;  %s7456_s6 = sld [smem:[#allocation12 + $0x5c]] }
 0x512   :  { %v7223_v22 = vadd.f32 %v2969_v17, %v2921_v62  ;;  %v3352_v46 = vmul.f32 %v3351_v8, %v7183_v2  ;;  %v3353_v20 = vmul.f32 %v3351_v8, %v7200_v44 }
 0x513   :  { %3272 = vrot.lane.b32.xlu2 %v3268_v4, %s4910_s15  ;;  %3232 = vrot.lane.b32.xlu0 %v3228_v18, %s4911_s20  ;;  %v2981_v4 = vmul.f32 %v2979_v58, %v7033_v54 }
 0x514   :  { %3218 = vrot.lane.b32.xlu1 %v3214_v45, %s4911_s20  ;;  %v3337_v45 = vstv %s7243_s8  ;;  %s7479_s8 = sld [smem:[#allocation12 + $0x80]] }
 0x515   :  { %v2959_v51 = vpop.permute.xlu2 %2958  ;;  %v2887_v3 = vpop.permute.xlu0 %2886  ;;  %v3338_v5 = vmul.f32 %v3337_v45, %v7183_v2 }
 0x516   :  { %v2873_v59 = vpop.permute.xlu1 %2872  ;;  %v2892_v52 = vadd.f32 %v2887_v3, %v2844_v10  ;;  %v3323_v10 = vstv %s7221_s0  ;;  %v2987_v3 = vmul.f32 %v2985_v30, %v7033_v54  ;;  %s7446_s0 = sld [smem:[#allocation12 + $0x78]] }
 0x517   :  { %v2878_v23 = vadd.f32 %v2873_v59, %v7125_v15  ;;  %v2980_v15 = vmul.f32 %v2979_v58, %v7023_v0  ;;  %v3325_v34 = vmul.f32 %v3323_v10, %v7200_v44 }
 0x518   :  { %v2948_v40 = vadd.f32 %v2943_v38, %v2892_v52  ;;  %v3339_v52 = vmul.f32 %v3337_v45, %v7200_v44 }
 0x51a   :  { %v7250_v11 = vadd.f32 %v2980_v15, %v2948_v40 }
 0x51b   :  { %3288 = vrot.lane.b32.xlu2 %v3283_v32, %s4910_s15  ;;  %3274 = vrot.lane.b32.xlu0 %v3269_v24, %s4910_s15  ;;  %v3324_v32 = vmul.f32 %v3323_v10, %v7183_v2 }
 0x51c   :  { %3234 = vrot.lane.b32.xlu1 %v3229_v33, %s4911_s20  ;;  %v2906_v33 = vadd.f32 %v7141_v39, %v7171_v35 }
 0x51d   :  { %v7215_v13 = vpop.permute.xlu2 %3010  ;;  %v2903_v63 = vpop.permute.xlu0 %2902 }
 0x51e   :  { %v2889_v1 = vpop.permute.xlu1 %2888  ;;  %v2907_v26 = vadd.f32 %v2903_v63, %v2851_v21 }
 0x51f   :  { %v2893_v57 = vadd.f32 %v2889_v1, %v7153_v16  ;;  %v3365_v1 = vstv %s7269_s9  ;;  %s7497_s9 = sld [smem:[#allocation12 + $0x3a]] }
 0x520   :  { %v2963_v38 = vadd.f32 %v2959_v51, %v2907_v26  ;;  %v2975_v51 = vmul.f32 %v2973_v50, %v7033_v54  ;;  %v3367_v31 = vmul.f32 %v3365_v1, %v7200_v44  ;;  %v3433_v26 = vstv %s7299_s12  ;;  %s7524_s12 = sld [smem:[#allocation12 + $0x33]] }
 0x522   :  { %v7271_v37 = vadd.f32 %v2987_v3, %v2963_v38 }
 0x523   :  { %3314 = vrot.lane.b32.xlu2 %v3310_v28, %s4910_s15  ;;  %3300 = vrot.lane.b32.xlu0 %v3296_v60, %s4910_s15  ;;  %v7295_v28 = vld [vmem:[#allocation3 + $0x1b] sm:$0xff]  ;;  %v3419_v60 = vstv %s7281_s1  ;;  %s7508_s1 = sld [smem:[#allocation12 + $0x82]] }
 0x524   :  { %3286 = vrot.lane.b32.xlu1 %v3282_v9, %s4910_s15  ;;  %v3405_v9 = vstv %s7283_s10  ;;  %v3420_v58 = vmul.f32 %v3419_v60, %v7295_v28  ;;  %s7510_s10 = sld [smem:[#allocation12 + $0xf]] }
 0x525   :  { %v7236_v43 = vpop.permute.xlu2 %3026  ;;  %v2929_v6 = vpop.permute.xlu0 %2928  ;;  %v3406_v40 = vmul.f32 %v3405_v9, %v7295_v28 }
 0x526   :  { %v2934_v53 = vadd.f32 %v2929_v6, %v2878_v23  ;;  %v2915_v42 = vpop.permute.xlu1 %2914  ;;  %v3366_v23 = vmul.f32 %v3365_v1, %v7183_v2 }
 0x527   :  { %v2920_v41 = vadd.f32 %v2915_v42, %v2864_v14  ;;  %v7314_v42 = vld [vmem:[#allocation3 + $0x23] sm:$0xff] }
 0x528   :  { %v7247_v36 = vadd.f32 %v2974_v19, %v2934_v53  ;;  %v3105_v53 = vstv %s7293_s11  ;;  %s7514_s11 = sld [smem:[#allocation12 + $0x5e]] }
 0x529   :  { %v2970_v55 = vadd.f32 %v2968_v29, %v2920_v41  ;;  %v3106_v41 = vmul.f32 %v3105_v53, %v7093_v25 }
 0x52b   :  { %3330 = vrot.lane.b32.xlu2 %v3325_v34, %s4911_s20  ;;  %3316 = vrot.lane.b32.xlu0 %v3311_v12, %s4910_s15  ;;  %v3435_v34 = vmul.f32 %v3433_v26, %v7314_v42  ;;  %v3421_v12 = vmul.f32 %v3419_v60, %v7314_v42 }
 0x52c   :  { %3302 = vrot.lane.b32.xlu1 %v3297_v7, %s4910_s15  ;;  %v3111_v7 = vstv %s7306_s13  ;;  %s7528_s13 = sld [smem:[#allocation12 + $0x57]] }
 0x52d   :  { %v3053_v56 = vpop.permute.xlu2 %3052  ;;  %v2945_v61 = vpop.permute.xlu0 %2944 }
 0x52e   :  { %v2949_v18 = vadd.f32 %v2945_v61, %v2893_v57  ;;  %v2931_v21 = vpop.permute.xlu1 %2930 }
 0x52f   :  { %v2935_v59 = vadd.f32 %v2931_v21, %v2879_v27  ;;  %v3113_v21 = vmul.f32 %v3111_v7, %v7069_v48 }
 0x530   :  { %v7267_v16 = vadd.f32 %v2981_v4, %v2949_v18  ;;  %v3461_v4 = vstv %s7312_s2  ;;  %v3447_v18 = vstv %s7316_s3  ;;  %s7538_s2 = sld [smem:[#allocation12 + $0x17]] }
 0x531   :  { %v2977_v49 = vadd.f32 %v2975_v51, %v2935_v59  ;;  %v3462_v59 = vmul.f32 %v3461_v4, %v7295_v28  ;;  %v3448_v51 = vmul.f32 %v3447_v18, %v7295_v28  ;;  %s7550_s3 = sld [smem:[#allocation12 + $0x5f]] }
 0x533   :  { %3356 = vrot.lane.b32.xlu2 %v3352_v46, %s4911_s20  ;;  %3342 = vrot.lane.b32.xlu0 %v3338_v5, %s4911_s20  ;;  %v3434_v46 = vmul.f32 %v3433_v26, %v7295_v28 }
 0x534   :  { %3328 = vrot.lane.b32.xlu1 %v3324_v32, %s4911_s20  ;;  %v3117_v32 = vstv %s7330_s4  ;;  %s7554_s4 = sld [smem:[#allocation12 + $0x7b]] }
 0x535   :  { %v3069_v54 = vpop.permute.xlu2 %3068  ;;  %v2997_v24 = vpop.permute.xlu0 %2996 }
 0x536   :  { %v2957_v62 = vpop.permute.xlu1 %2956  ;;  %v3002_v50 = vadd.f32 %v2997_v24, %v2970_v55  ;;  %v3407_v55 = vmul.f32 %v3405_v9, %v7314_v42 }
 0x537   :  { %v2962_v63 = vadd.f32 %v2957_v62, %v2906_v33  ;;  %v3016_v33 = vadd.f32 %v7215_v13, %v7247_v36  ;;  %v3123_v62 = vstv %s7335_s14  ;;  %v3463_v36 = vmul.f32 %v3461_v4, %v7314_v42  ;;  %s7557_s14 = sld [smem:[#allocation12 + $0x3b]] }
 0x538   :  { %v3058_v6 = vadd.f32 %v3053_v56, %v3002_v50  ;;  %v3107_v56 = vmul.f32 %v3105_v53, %v7069_v48  ;;  %v3031_v50 = vadd.f32 %v7236_v43, %v7267_v16 }
 0x539   :  { %v2988_v17 = vadd.f32 %v2986_v47, %v2962_v63  ;;  %v3118_v47 = vmul.f32 %v3117_v32, %v7093_v25 }
 0x53a   :  { %v7320_v10 = vadd.f32 %v3106_v41, %v3058_v6  ;;  %v3503_v6 = vstv %s7359_s17  ;;  %s7588_s17 = sld [smem:[#allocation12 + $0x3d]] }
 0x53b   :  { %3372 = vrot.lane.b32.xlu2 %v3367_v31, %s4911_s20  ;;  %3358 = vrot.lane.b32.xlu0 %v3353_v20, %s4911_s20  ;;  %v3112_v20 = vmul.f32 %v3111_v7, %v7093_v25  ;;  %v3504_v41 = vmul.f32 %v3503_v6, %v7295_v28 }
 0x53c   :  { %3344 = vrot.lane.b32.xlu1 %v3339_v52, %s4911_s20  ;;  %v3475_v52 = vstv %s7342_s16  ;;  %s7578_s16 = sld [smem:[#allocation12 + $0x83]] }
 0x53d   :  { %v3095_v39 = vpop.permute.xlu2 %3094  ;;  %v3013_v35 = vpop.permute.xlu0 %3012  ;;  %v3477_v13 = vmul.f32 %v3475_v52, %v7314_v42  ;;  %v3476_v43 = vmul.f32 %v3475_v52, %v7295_v28 }
 0x53e   :  { %v2999_v0 = vpop.permute.xlu1 %2998  ;;  %v3017_v29 = vadd.f32 %v3013_v35, %v2977_v49 }
 0x53f   :  { %v3003_v57 = vadd.f32 %v2999_v0, %v7223_v22  ;;  %v3449_v0 = vmul.f32 %v3447_v18, %v7314_v42 }
 0x540   :  { %v3073_v38 = vadd.f32 %v3069_v54, %v3017_v29 }
 0x542   :  { %v7344_v3 = vadd.f32 %v3113_v21, %v3073_v38  ;;  %v3505_v38 = vmul.f32 %v3503_v6, %v7314_v42 }
 0x543   :  { %3424 = vrot.lane.b32.xlu2 %v3420_v58, %s4910_s15  ;;  %3410 = vrot.lane.b32.xlu0 %v3406_v40, %s4910_s15  ;;  %v3125_v58 = vmul.f32 %v3123_v62, %v7069_v48 }
 0x544   :  { %3370 = vrot.lane.b32.xlu1 %v3366_v23, %s4911_s20 }
 0x545   :  { %v7309_v14 = vpop.permute.xlu2 %3136  ;;  %v3039_v19 = vpop.permute.xlu0 %3038 }
 0x546   :  { %v3025_v15 = vpop.permute.xlu1 %3024  ;;  %v3044_v45 = vadd.f32 %v3039_v19, %v2988_v17  ;;  %v3489_v19 = vstv %s7362_s18  ;;  %s7590_s18 = sld [smem:[#allocation12 + $0x19]] }
 0x547   :  { %v3030_v49 = vadd.f32 %v3025_v15, %v7250_v11  ;;  %v3124_v11 = vmul.f32 %v3123_v62, %v7093_v25  ;;  %v3119_v15 = vmul.f32 %v3117_v32, %v7069_v48  ;;  %v3490_v29 = vmul.f32 %v3489_v19, %v7295_v28 }
 0x548   :  { %v3100_v5 = vadd.f32 %v3095_v39, %v3044_v45  ;;  %v3571_v45 = vstv %s7397_s21  ;;  %v3249_v32 = vstv %s7408_s24  ;;  %s7611_s21 = sld [smem:[#allocation12 + $0x61]] }
 0x549   :  { %s7631_s24 = sld [smem:[#allocation12 + $0x85]] }
 0x54a   :  { %v7369_v39 = vadd.f32 %v3124_v11, %v3100_v5 }
 0x54b   :  { %3440 = vrot.lane.b32.xlu2 %v3435_v34, %s4910_s15  ;;  %3426 = vrot.lane.b32.xlu0 %v3421_v12, %s4910_s15  ;;  %v7394_v12 = vld [vmem:[#allocation3 + $0x39] sm:$0xff] }
 0x54c   :  { %3412 = vrot.lane.b32.xlu1 %v3407_v55, %s4910_s15  ;;  %v3543_v55 = vstv %s7383_s19  ;;  %s7604_s19 = sld [smem:[#allocation12 + $0x12]] }
 0x54d   :  { %v3055_v61 = vpop.permute.xlu0 %3054  ;;  %v7333_v27 = vpop.permute.xlu2 %3162  ;;  %v3545_v7 = vmul.f32 %v3543_v55, %v7394_v12 }
 0x54e   :  { %v3059_v8 = vadd.f32 %v3055_v61, %v3003_v57  ;;  %v3041_v30 = vpop.permute.xlu1 %3040  ;;  %v3491_v57 = vmul.f32 %v3489_v19, %v7314_v42 }
 0x54f   :  { %v3045_v25 = vadd.f32 %v3041_v30, %v7271_v37 }
 0x550   :  { %v7340_v22 = vadd.f32 %v3107_v56, %v3059_v8  ;;  %v7413_v8 = vld [vmem:[#allocation3 + $0x31] sm:$0xff] }
 0x551   :  { %v3544_v5 = vmul.f32 %v3543_v55, %v7413_v8 }
 0x553   :  { %3466 = vrot.lane.b32.xlu2 %v3462_v59, %s4911_s20  ;;  %3452 = vrot.lane.b32.xlu0 %v3448_v51, %s4910_s15  ;;  %v3557_v59 = vstv %s7399_s22  ;;  %v3572_v51 = vmul.f32 %v3571_v45, %v7413_v8  ;;  %s7621_s22 = sld [smem:[#allocation12 + $0x36]] }
 0x554   :  { %3438 = vrot.lane.b32.xlu1 %v3434_v46, %s4910_s15  ;;  %v3558_v46 = vmul.f32 %v3557_v59, %v7413_v8 }
 0x555   :  { %v3081_v54 = vpop.permute.xlu0 %3080  ;;  %v7354_v24 = vpop.permute.xlu2 %3178 }
 0x556   :  { %v3086_v63 = vadd.f32 %v3081_v54, %v3030_v49  ;;  %v3067_v1 = vpop.permute.xlu1 %3066  ;;  %v3243_v49 = vstv %s7404_s23  ;;  %s7627_s23 = sld [smem:[#allocation12 + $0x1a]] }
 0x557   :  { %v3072_v31 = vadd.f32 %v3067_v1, %v3016_v33 }
 0x558   :  { %v7366_v17 = vadd.f32 %v3118_v47, %v3086_v63  ;;  %v3244_v47 = vmul.f32 %v3243_v49, %v7183_v2 }
 0x559   :  { %v3114_v35 = vadd.f32 %v3112_v20, %v3072_v31  ;;  %v3585_v31 = vstv %s7415_s25  ;;  %v3250_v20 = vmul.f32 %v3249_v32, %v7183_v2  ;;  %s7645_s25 = sld [smem:[#allocation12 + $0x5a]] }
 0x55b   :  { %3482 = vrot.lane.b32.xlu2 %v3477_v13, %s4911_s20  ;;  %3468 = vrot.lane.b32.xlu0 %v3463_v36, %s4911_s20  ;;  %v3587_v13 = vmul.f32 %v3585_v31, %v7394_v12  ;;  %v3573_v36 = vmul.f32 %v3571_v45, %v7394_v12 }
 0x55c   :  { %3454 = vrot.lane.b32.xlu1 %v3449_v0, %s4910_s15 }
 0x55d   :  { %v3097_v60 = vpop.permute.xlu0 %3096  ;;  %v3205_v9 = vpop.permute.xlu2 %3204 }
 0x55e   :  { %v3101_v40 = vadd.f32 %v3097_v60, %v3045_v25  ;;  %v3083_v23 = vpop.permute.xlu1 %3082 }
 0x55f   :  { %v3087_v53 = vadd.f32 %v3083_v23, %v3031_v50  ;;  %v3255_v50 = vstv %s7430_s28  ;;  %s7650_s28 = sld [smem:[#allocation12 + $0x7e]] }
 0x560   :  { %v7386_v37 = vadd.f32 %v3125_v58, %v3101_v40  ;;  %v3251_v58 = vmul.f32 %v3249_v32, %v7200_v44  ;;  %v3257_v6 = vmul.f32 %v3255_v50, %v7200_v44  ;;  %v3681_v32 = vstv %s7476_s7  ;;  %s7707_s7 = sld [smem:[#allocation12 + $0x64]] }
 0x561   :  { %v3121_v26 = vadd.f32 %v3119_v15, %v3087_v53  ;;  %v3613_v15 = vstv %s7435_s29  ;;  %s7656_s29 = sld [smem:[#allocation12 + $0x3e]] }
 0x563   :  { %3508 = vrot.lane.b32.xlu2 %v3504_v41, %s4911_s20  ;;  %3494 = vrot.lane.b32.xlu0 %v3490_v29, %s4911_s20  ;;  %v3599_v41 = vstv %s7437_s30  ;;  %s7670_s30 = sld [smem:[#allocation12 + $0x86]] }
 0x564   :  { %3480 = vrot.lane.b32.xlu1 %v3476_v43, %s4911_s20  ;;  %v3586_v43 = vmul.f32 %v3585_v31, %v7413_v8 }
 0x565   :  { %v3221_v16 = vpop.permute.xlu2 %3220  ;;  %v3149_v34 = vpop.permute.xlu0 %3148 }
 0x566   :  { %v3135_v48 = vpop.permute.xlu1 %3134  ;;  %v3154_v18 = vadd.f32 %v3149_v34, %v3114_v35  ;;  %v3559_v35 = vmul.f32 %v3557_v59, %v7394_v12  ;;  %v3601_v59 = vmul.f32 %v3599_v41, %v7394_v12 }
 0x567   :  { %v3140_v33 = vadd.f32 %v3135_v48, %v7320_v10 }
 0x568   :  { %v3210_v54 = vadd.f32 %v3205_v9, %v3154_v18  ;;  %v3141_v9 = vadd.f32 %v7309_v14, %v7340_v22  ;;  %v3614_v14 = vmul.f32 %v3613_v15, %v7413_v8  ;;  %v3600_v22 = vmul.f32 %v3599_v41, %v7413_v8 }
 0x569   :  { %v3256_v18 = vmul.f32 %v3255_v50, %v7183_v2 }
 0x56a   :  { %v7439_v10 = vadd.f32 %v3250_v20, %v3210_v54 }
 0x56b   :  { %3550 = vrot.lane.b32.xlu2 %v3545_v7, %s4910_s15  ;;  %3510 = vrot.lane.b32.xlu0 %v3505_v38, %s4911_s20  ;;  %v3168_v7 = vadd.f32 %v7333_v27, %v7366_v17  ;;  %v3615_v27 = vmul.f32 %v3613_v15, %v7394_v12 }
 0x56c   :  { %3496 = vrot.lane.b32.xlu1 %v3491_v57, %s4911_s20 }
 0x56d   :  { %v7411_v56 = vpop.permute.xlu2 %3272  ;;  %v3165_v61 = vpop.permute.xlu0 %3164 }
 0x56e   :  { %v3169_v30 = vadd.f32 %v3165_v61, %v3121_v26  ;;  %v3151_v4 = vpop.permute.xlu1 %3150 }
 0x56f   :  { %v3155_v0 = vadd.f32 %v3151_v4, %v7344_v3  ;;  %v3245_v3 = vmul.f32 %v3243_v49, %v7200_v44 }
 0x570   :  { %v3225_v21 = vadd.f32 %v3221_v16, %v3169_v30  ;;  %v3261_v16 = vstv %s7446_s0  ;;  %v3627_v30 = vstv %s7456_s6  ;;  %s7673_s0 = sld [smem:[#allocation12 + $0x62]] }
 0x571   :  { %v3262_v38 = vmul.f32 %v3261_v16, %v7183_v2  ;;  %v3629_v45 = vmul.f32 %v3627_v30, %v7394_v12  ;;  %s7690_s6 = sld [smem:[#allocation12 + $0x1c]] }
 0x572   :  { %v7462_v29 = vadd.f32 %v3257_v6, %v3225_v21 }
 0x573   :  { %3576 = vrot.lane.b32.xlu2 %v3572_v51, %s4910_s15  ;;  %3562 = vrot.lane.b32.xlu0 %v3558_v46, %s4910_s15  ;;  %v7492_v46 = vld [vmem:[#allocation3 + $0x32] sm:$0xff] }
 0x574   :  { %3548 = vrot.lane.b32.xlu1 %v3544_v5, %s4910_s15 }
 0x575   :  { %v7428_v62 = vpop.permute.xlu2 %3288  ;;  %v3191_v63 = vpop.permute.xlu0 %3190 }
 0x576   :  { %v3196_v1 = vadd.f32 %v3191_v63, %v3140_v33  ;;  %v3177_v11 = vpop.permute.xlu1 %3176  ;;  %v3263_v33 = vmul.f32 %v3261_v16, %v7200_v44  ;;  %v3387_v16 = vstv %s7524_s12  ;;  %s7752_s12 = sld [smem:[#allocation12 + $0x41]] }
 0x577   :  { %v3182_v34 = vadd.f32 %v3177_v11, %v7369_v39  ;;  %v3682_v11 = vmul.f32 %v3681_v32, %v7492_v46 }
 0x578   :  { %v3246_v52 = vadd.f32 %v3244_v47, %v3196_v1  ;;  %v3641_v47 = vstv %s7479_s8  ;;  %s7709_s8 = sld [smem:[#allocation12 + $0x40]] }
 0x579   :  { %v3642_v31 = vmul.f32 %v3641_v47, %v7413_v8 }
 0x57a   :  { %v7482_v39 = vadd.f32 %v7411_v56, %v3246_v52  ;;  %v3183_v56 = vadd.f32 %v7354_v24, %v7386_v37  ;;  %v3628_v37 = vmul.f32 %v3627_v30, %v7413_v8 }
 0x57b   :  { %3592 = vrot.lane.b32.xlu2 %v3587_v13, %s4910_s15  ;;  %3578 = vrot.lane.b32.xlu0 %v3573_v36, %s4910_s15 }
 0x57c   :  { %3564 = vrot.lane.b32.xlu1 %v3559_v35, %s4910_s15 }
 0x57d   :  { %v7450_v25 = vpop.permute.xlu2 %3314  ;;  %v3207_v60 = vpop.permute.xlu0 %3206 }
 0x57e   :  { %v3211_v40 = vadd.f32 %v3207_v60, %v3155_v0  ;;  %v3193_v23 = vpop.permute.xlu1 %3192  ;;  %v3695_v0 = vstv %s7497_s9  ;;  %s7717_s9 = sld [smem:[#allocation12 + $0x15]] }
 0x57f   :  { %v3197_v19 = vadd.f32 %v3193_v23, %v3141_v9 }
 0x580   :  { %v3253_v53 = vadd.f32 %v3251_v58, %v3211_v40  ;;  %v3643_v58 = vmul.f32 %v3641_v47, %v7394_v12  ;;  %v3381_v40 = vstv %s7510_s10  ;;  %v3389_v47 = vmul.f32 %v3387_v16, %v7314_v42  ;;  %s7728_s10 = sld [smem:[#allocation12 + $0x88]] }
 0x581   :  { %v3247_v26 = vadd.f32 %v3245_v3, %v3197_v19  ;;  %v3723_v19 = vstv %s7508_s1  ;;  %v3709_v3 = vstv %s7514_s11  ;;  %v3382_v30 = vmul.f32 %v3381_v40, %v7295_v28  ;;  %s7721_s1 = sld [smem:[#allocation12 + $0x39]] }
 0x582   :  { %v7500_v1 = vadd.f32 %v7428_v62, %v3253_v53  ;;  %v7512_v62 = vld [vmem:[#allocation3 + $0x3a] sm:$0xff]  ;;  %v3383_v53 = vmul.f32 %v3381_v40, %v7314_v42  ;;  %s7746_s11 = sld [smem:[#allocation12 + $0x5d]] }
 0x583   :  { %3618 = vrot.lane.b32.xlu2 %v3614_v14, %s4911_s20  ;;  %3604 = vrot.lane.b32.xlu0 %v3600_v22, %s4911_s20  ;;  %v3697_v9 = vmul.f32 %v3695_v0, %v7512_v62  ;;  %v3683_v50 = vmul.f32 %v3681_v32, %v7512_v62  ;;  %v3724_v22 = vmul.f32 %v3723_v19, %v7492_v46  ;;  %v3765_v32 = vstv %s7550_s3  ;;  %s7770_s3 = sld [smem:[#allocation12 + $0x65]] }
 0x584   :  { %3590 = vrot.lane.b32.xlu1 %v3586_v43, %s4910_s15  ;;  %v3696_v43 = vmul.f32 %v3695_v0, %v7492_v46 }
 0x585   :  { %v3331_v48 = vpop.permute.xlu2 %3330  ;;  %v3233_v55 = vpop.permute.xlu0 %3232 }
 0x586   :  { %v3238_v57 = vadd.f32 %v3233_v55, %v3182_v34  ;;  %v3219_v61 = vpop.permute.xlu1 %3218  ;;  %v3393_v34 = vstv %s7528_s13  ;;  %v3388_v55 = vmul.f32 %v3387_v16, %v7295_v28  ;;  %s7754_s13 = sld [smem:[#allocation12 + $0x1d]] }
 0x587   :  { %v3224_v4 = vadd.f32 %v3219_v61, %v3168_v7 }
 0x588   :  { %v3264_v21 = vadd.f32 %v3262_v38, %v3238_v57  ;;  %v3394_v57 = vmul.f32 %v3393_v34, %v7295_v28 }
 0x589   :  { %v3258_v17 = vadd.f32 %v3256_v18, %v3224_v4  ;;  %v3737_v18 = vstv %s7538_s2  ;;  %s7763_s2 = sld [smem:[#allocation12 + $0x81]] }
 0x58a   :  { %v7519_v60 = vadd.f32 %v7450_v25, %v3264_v21 }
 0x58b   :  { %3634 = vrot.lane.b32.xlu2 %v3629_v45, %s4911_s20  ;;  %3620 = vrot.lane.b32.xlu0 %v3615_v27, %s4911_s20  ;;  %v3739_v45 = vmul.f32 %v3737_v18, %v7512_v62  ;;  %v3725_v27 = vmul.f32 %v3723_v19, %v7512_v62 }
 0x58c   :  { %3606 = vrot.lane.b32.xlu1 %v3601_v59, %s4911_s20  ;;  %v3711_v59 = vmul.f32 %v3709_v3, %v7512_v62 }
 0x58d   :  { %v3357_v2 = vpop.permute.xlu2 %3356  ;;  %v3275_v51 = vpop.permute.xlu0 %3274 }
 0x58e   :  { %v3279_v5 = vadd.f32 %v3275_v51, %v3247_v26  ;;  %v3235_v49 = vpop.permute.xlu1 %3234  ;;  %v3710_v26 = vmul.f32 %v3709_v3, %v7492_v46  ;;  %v3833_v3 = vstv %s7588_s17  ;;  %s7820_s17 = sld [smem:[#allocation12 + $0x8b]] }
 0x58f   :  { %v3239_v54 = vadd.f32 %v3235_v49, %v3183_v56  ;;  %v3399_v56 = vstv %s7554_s4  ;;  %s7788_s4 = sld [smem:[#allocation12 + $0x1f]] }
 0x590   :  { %v3335_v63 = vadd.f32 %v3331_v48, %v3279_v5 }
 0x591   :  { %v3265_v24 = vadd.f32 %v3263_v33, %v3239_v54  ;;  %v3751_v54 = vstv %s7557_s14  ;;  %v3401_v33 = vmul.f32 %v3399_v56, %v7314_v42  ;;  %s7792_s14 = sld [smem:[#allocation12 + $0x89]] }
 0x592   :  { %v7540_v14 = vadd.f32 %v3383_v53, %v3335_v63  ;;  %v3819_v53 = vstv %s7590_s18  ;;  %s7822_s18 = sld [smem:[#allocation12 + $0x18]] }
 0x593   :  { %3686 = vrot.lane.b32.xlu2 %v3682_v11, %s4910_s15  ;;  %3646 = vrot.lane.b32.xlu0 %v3642_v31, %s4911_s20 }
 0x594   :  { %3632 = vrot.lane.b32.xlu1 %v3628_v37, %s4911_s20  ;;  %v3752_v37 = vmul.f32 %v3751_v54, %v7492_v46 }
 0x595   :  { %v3373_v44 = vpop.permute.xlu2 %3372  ;;  %v3301_v20 = vpop.permute.xlu0 %3300 }
 0x596   :  { %v3306_v52 = vadd.f32 %v3301_v20, %v3258_v17  ;;  %v3287_v13 = vpop.permute.xlu1 %3286  ;;  %v3738_v20 = vmul.f32 %v3737_v18, %v7492_v46 }
 0x597   :  { %v3292_v36 = vadd.f32 %v3287_v13, %v7439_v10 }
 0x598   :  { %v3362_v35 = vadd.f32 %v3357_v2, %v3306_v52  ;;  %v3395_v2 = vmul.f32 %v3393_v34, %v7314_v42 }
 0x59a   :  { %v7563_v21 = vadd.f32 %v3394_v57, %v3362_v35  ;;  %v3400_v35 = vmul.f32 %v3399_v56, %v7295_v28  ;;  %v3875_v56 = vstv %s7627_s23  ;;  %s7850_s23 = sld [smem:[#allocation12 + $0x20]] }
 0x59b   :  { %3702 = vrot.lane.b32.xlu2 %v3697_v9, %s4910_s15  ;;  %3688 = vrot.lane.b32.xlu0 %v3683_v50, %s4910_s15  ;;  %v3779_v9 = vstv %s7578_s16  ;;  %s7809_s16 = sld [smem:[#allocation12 + $0x43]] }
 0x59c   :  { %3648 = vrot.lane.b32.xlu1 %v3643_v58, %s4911_s20  ;;  %v3781_v58 = vmul.f32 %v3779_v9, %v7512_v62  ;;  %v3780_v16 = vmul.f32 %v3779_v9, %v7492_v46 }
 0x59d   :  { %v7531_v10 = vpop.permute.xlu2 %3424  ;;  %v3317_v25 = vpop.permute.xlu0 %3316 }
 0x59e   :  { %v3321_v23 = vadd.f32 %v3317_v25, %v3265_v24  ;;  %v3303_v6 = vpop.permute.xlu1 %3302  ;;  %v3766_v24 = vmul.f32 %v3765_v32, %v7492_v46  ;;  %v3767_v25 = vmul.f32 %v3765_v32, %v7512_v62 }
 0x59f   :  { %v3307_v15 = vadd.f32 %v3303_v6, %v7462_v29  ;;  %v7606_v6 = vld [vmem:[#allocation3 + $0x33] sm:$0xff] }
 0x5a0   :  { %v3377_v41 = vadd.f32 %v3373_v44, %v3321_v23  ;;  %v3753_v23 = vmul.f32 %v3751_v54, %v7512_v62 }
 0x5a2   :  { %v7580_v31 = vadd.f32 %v3401_v33, %v3377_v41 }
 0x5a3   :  { %3728 = vrot.lane.b32.xlu2 %v3724_v22, %s4910_s15  ;;  %3714 = vrot.lane.b32.xlu0 %v3710_v26, %s4910_s15  ;;  %v3834_v26 = vmul.f32 %v3833_v3, %v7606_v6 }
 0x5a4   :  { %3700 = vrot.lane.b32.xlu1 %v3696_v43, %s4910_s15  ;;  %v3820_v43 = vmul.f32 %v3819_v53, %v7606_v6 }
 0x5a5   :  { %v7552_v29 = vpop.permute.xlu2 %3440  ;;  %v3343_v48 = vpop.permute.xlu0 %3342 }
 0x5a6   :  { %v3348_v7 = vadd.f32 %v3343_v48, %v3292_v36  ;;  %v3329_v38 = vpop.permute.xlu1 %3328  ;;  %v7629_v48 = vld [vmem:[#allocation3 + $0x3b] sm:$0xff] }
 0x5a7   :  { %v3334_v61 = vadd.f32 %v3329_v38, %v7482_v39 }
 0x5a8   :  { %v3390_v4 = vadd.f32 %v3388_v55, %v3348_v7 }
 0x5a9   :  { %v3384_v17 = vadd.f32 %v3382_v30, %v3334_v61  ;;  %v3847_v30 = vstv %s7611_s21  ;;  %s7836_s21 = sld [smem:[#allocation12 + $0x3c]] }
 0x5aa   :  { %v7596_v50 = vadd.f32 %v7531_v10, %v3390_v4  ;;  %v3849_v18 = vmul.f32 %v3847_v30, %v7629_v48 }
 0x5ab   :  { %3744 = vrot.lane.b32.xlu2 %v3739_v45, %s4911_s20  ;;  %3730 = vrot.lane.b32.xlu0 %v3725_v27, %s4910_s15  ;;  %v3835_v45 = vmul.f32 %v3833_v3, %v7629_v48  ;;  %v3821_v27 = vmul.f32 %v3819_v53, %v7629_v48  ;;  %v3903_v3 = vstv %s7673_s0  ;;  %s7902_s0 = sld [smem:[#allocation12 + $0x22]] }
 0x5ac   :  { %3716 = vrot.lane.b32.xlu1 %v3711_v59, %s4910_s15 }
 0x5ad   :  { %v3467_v39 = vpop.permute.xlu2 %3466  ;;  %v3359_v51 = vpop.permute.xlu0 %3358 }
 0x5ae   :  { %v3363_v5 = vadd.f32 %v3359_v51, %v3307_v15  ;;  %v3345_v49 = vpop.permute.xlu1 %3344 }
 0x5af   :  { %v3349_v63 = vadd.f32 %v3345_v49, %v7500_v1 }
 0x5b0   :  { %v3397_v11 = vadd.f32 %v3395_v2, %v3363_v5  ;;  %v3861_v5 = vstv %s7631_s24  ;;  %s7862_s24 = sld [smem:[#allocation12 + $0x68]] }
 0x5b1   :  { %v3391_v44 = vadd.f32 %v3389_v47, %v3349_v63  ;;  %v3876_v63 = vmul.f32 %v3875_v56, %v7606_v6  ;;  %v3862_v47 = vmul.f32 %v3861_v5, %v7606_v6 }
 0x5b2   :  { %v7614_v22 = vadd.f32 %v7552_v29, %v3397_v11  ;;  %v3519_v29 = vstv %s7604_s19  ;;  %v3848_v11 = vmul.f32 %v3847_v30, %v7606_v6  ;;  %s7826_s19 = sld [smem:[#allocation12 + $0x67]] }
 0x5b3   :  { %3770 = vrot.lane.b32.xlu2 %v3766_v24, %s4911_s20  ;;  %3756 = vrot.lane.b32.xlu0 %v3752_v37, %s4911_s20  ;;  %v3520_v38 = vmul.f32 %v3519_v29, %v7413_v8  ;;  %v3531_v24 = vstv %s7645_s25  ;;  %s7866_s25 = sld [smem:[#allocation12 + $0x84]] }
 0x5b4   :  { %3742 = vrot.lane.b32.xlu1 %v3738_v20, %s4911_s20 }
 0x5b5   :  { %v3483_v42 = vpop.permute.xlu2 %3482  ;;  %v3411_v1 = vpop.permute.xlu0 %3410 }
 0x5b6   :  { %v3416_v52 = vadd.f32 %v3411_v1, %v3384_v17  ;;  %v3371_v13 = vpop.permute.xlu1 %3370  ;;  %v3525_v17 = vstv %s7621_s22  ;;  %s7840_s22 = sld [smem:[#allocation12 + $0x60]] }
 0x5b7   :  { %v3376_v36 = vadd.f32 %v3371_v13, %v7519_v60  ;;  %v3527_v49 = vmul.f32 %v3525_v17, %v7394_v12 }
 0x5b8   :  { %v3472_v0 = vadd.f32 %v3467_v39, %v3416_v52 }
 0x5b9   :  { %v3402_v40 = vadd.f32 %v3400_v35, %v3376_v36  ;;  %v3526_v36 = vmul.f32 %v3525_v17, %v7413_v8 }
 0x5ba   :  { %v7636_v4 = vadd.f32 %v3520_v38, %v3472_v0  ;;  %v3889_v0 = vstv %s7656_s29  ;;  %v3957_v38 = vstv %s7690_s6  ;;  %s7890_s29 = sld [smem:[#allocation12 + $0x8c]] }
 0x5bb   :  { %3786 = vrot.lane.b32.xlu2 %v3781_v58, %s4911_s20  ;;  %3772 = vrot.lane.b32.xlu0 %v3767_v25, %s4911_s20  ;;  %v3891_v58 = vmul.f32 %v3889_v0, %v7629_v48  ;;  %v3877_v25 = vmul.f32 %v3875_v56, %v7629_v48  ;;  %v3985_v56 = vstv %s7707_s7  ;;  %s7916_s6 = sld [smem:[#allocation12 + $0x1b]] }
 0x5bc   :  { %3758 = vrot.lane.b32.xlu1 %v3753_v23, %s4911_s20  ;;  %v3863_v23 = vmul.f32 %v3861_v5, %v7629_v48  ;;  %v3971_v5 = vstv %s7709_s8  ;;  %s7923_s7 = sld [smem:[#allocation12 + $0x6a]] }
 0x5bd   :  { %v3509_v28 = vpop.permute.xlu2 %3508  ;;  %v3427_v60 = vpop.permute.xlu0 %3426  ;;  %s7933_s8 = sld [smem:[#allocation12 + $0x3f]] }
 0x5be   :  { %v3431_v10 = vadd.f32 %v3427_v60, %v3391_v44  ;;  %v3413_v19 = vpop.permute.xlu1 %3412  ;;  %v3537_v44 = vstv %s7650_s28  ;;  %s7869_s28 = sld [smem:[#allocation12 + $0x44]] }
 0x5bf   :  { %v3417_v15 = vadd.f32 %v3413_v19, %v7540_v14  ;;  %v3538_v52 = vmul.f32 %v3537_v44, %v7413_v8  ;;  %v3917_v19 = vstv %s7670_s30  ;;  %s7900_s30 = sld [smem:[#allocation12 + $0x46]] }
 0x5c0   :  { %v3487_v41 = vadd.f32 %v3483_v42, %v3431_v10  ;;  %v3532_v42 = vmul.f32 %v3531_v24, %v7413_v8 }
 0x5c2   :  { %v7658_v33 = vadd.f32 %v3527_v49, %v3487_v41 }
 0x5c3   :  { %3838 = vrot.lane.b32.xlu2 %v3834_v26, %s4910_s15  ;;  %3824 = vrot.lane.b32.xlu0 %v3820_v43, %s4910_s15  ;;  %v3918_v43 = vmul.f32 %v3917_v19, %v7606_v6 }
 0x5c4   :  { %3784 = vrot.lane.b32.xlu1 %v3780_v16, %s4911_s20  ;;  %v3904_v16 = vmul.f32 %v3903_v3, %v7606_v6 }
 0x5c5   :  { %v7624_v14 = vpop.permute.xlu2 %3550  ;;  %v3453_v34 = vpop.permute.xlu0 %3452 }
 0x5c6   :  { %v3458_v55 = vadd.f32 %v3453_v34, %v3402_v40  ;;  %v3439_v7 = vpop.permute.xlu1 %3438 }
 0x5c7   :  { %v3444_v57 = vadd.f32 %v3439_v7, %v7563_v21  ;;  %v3521_v21 = vmul.f32 %v3519_v29, %v7394_v12  ;;  %v3890_v29 = vmul.f32 %v3889_v0, %v7606_v6 }
 0x5c8   :  { %v3514_v61 = vadd.f32 %v3509_v28, %v3458_v55  ;;  %v3539_v28 = vmul.f32 %v3537_v44, %v7394_v12 }
 0x5ca   :  { %v7679_v9 = vadd.f32 %v3538_v52, %v3514_v61 }
 0x5cb   :  { %3854 = vrot.lane.b32.xlu2 %v3849_v18, %s4910_s15  ;;  %3840 = vrot.lane.b32.xlu0 %v3835_v45, %s4910_s15  ;;  %v3919_v45 = vmul.f32 %v3917_v19, %v7629_v48  ;;  %v4027_v19 = vstv %s7752_s12  ;;  %s7968_s12 = sld [smem:[#allocation12 + $0x47]] }
 0x5cc   :  { %3826 = vrot.lane.b32.xlu1 %v3821_v27, %s4910_s15  ;;  %v3905_v27 = vmul.f32 %v3903_v3, %v7629_v48  ;;  %v4013_v3 = vstv %s7754_s13  ;;  %s7980_s13 = sld [smem:[#allocation12 + $0x8f]] }
 0x5cd   :  { %v3469_v59 = vpop.permute.xlu0 %3468  ;;  %v7648_v39 = vpop.permute.xlu2 %3576 }
 0x5ce   :  { %v3473_v2 = vadd.f32 %v3469_v59, %v3417_v15  ;;  %v3455_v51 = vpop.permute.xlu1 %3454  ;;  %v3533_v15 = vmul.f32 %v3531_v24, %v7394_v12  ;;  %v7703_v12 = vld [vmem:[#allocation3 + $0x51] sm:$0xff] }
 0x5cf   :  { %v3459_v32 = vadd.f32 %v3455_v51, %v7580_v31  ;;  %v3959_v18 = vmul.f32 %v3957_v38, %v7703_v12  ;;  %v3973_v0 = vmul.f32 %v3971_v5, %v7703_v12 }
 0x5d0   :  { %v3523_v54 = vadd.f32 %v3521_v21, %v3473_v2  ;;  %v7726_v21 = vld [vmem:[#allocation3 + $0x49] sm:$0xff] }
 0x5d2   :  { %v7695_v26 = vadd.f32 %v7624_v14, %v3523_v54  ;;  %v3972_v54 = vmul.f32 %v3971_v5, %v7726_v21 }
 0x5d3   :  { %3880 = vrot.lane.b32.xlu2 %v3876_v63, %s4911_s20  ;;  %3866 = vrot.lane.b32.xlu0 %v3862_v47, %s4910_s15  ;;  %v3958_v63 = vmul.f32 %v3957_v38, %v7726_v21  ;;  %v3657_v47 = vstv %s7717_s9  ;;  %s7939_s9 = sld [smem:[#allocation12 + $0x23]] }
 0x5d4   :  { %3852 = vrot.lane.b32.xlu1 %v3848_v11, %s4910_s15  ;;  %v3663_v11 = vstv %s7721_s1  ;;  %s7943_s1 = sld [smem:[#allocation12 + $0x8e]] }
 0x5d5   :  { %v3495_v31 = vpop.permute.xlu0 %3494  ;;  %v7667_v37 = vpop.permute.xlu2 %3592 }
 0x5d6   :  { %v3500_v20 = vadd.f32 %v3495_v31, %v3444_v57  ;;  %v3481_v1 = vpop.permute.xlu1 %3480  ;;  %v3658_v31 = vmul.f32 %v3657_v47, %v7492_v46 }
 0x5d7   :  { %v3486_v13 = vadd.f32 %v3481_v1, %v7596_v50 }
 0x5d8   :  { %v3534_v35 = vadd.f32 %v3532_v42, %v3500_v20  ;;  %v3999_v20 = vstv %s7728_s10  ;;  %v3664_v42 = vmul.f32 %v3663_v11, %v7492_v46  ;;  %s7957_s10 = sld [smem:[#allocation12 + $0x63]] }
 0x5d9   :  { %v3528_v40 = vadd.f32 %v3526_v36, %v3486_v13  ;;  %v4001_v36 = vmul.f32 %v3999_v20, %v7703_v12 }
 0x5da   :  { %v7712_v30 = vadd.f32 %v7648_v39, %v3534_v35  ;;  %v3987_v35 = vmul.f32 %v3985_v56, %v7703_v12 }
 0x5db   :  { %3896 = vrot.lane.b32.xlu2 %v3891_v58, %s4911_s20  ;;  %3882 = vrot.lane.b32.xlu0 %v3877_v25, %s4911_s20  ;;  %v3669_v25 = vstv %s7746_s11  ;;  %s7962_s11 = sld [smem:[#allocation12 + $0x87]] }
 0x5dc   :  { %3868 = vrot.lane.b32.xlu1 %v3863_v23, %s4910_s15 }
 0x5dd   :  { %v3511_v8 = vpop.permute.xlu0 %3510  ;;  %v3619_v50 = vpop.permute.xlu2 %3618 }
 0x5de   :  { %v3515_v60 = vadd.f32 %v3511_v8, %v3459_v32  ;;  %v3497_v10 = vpop.permute.xlu1 %3496  ;;  %v3986_v32 = vmul.f32 %v3985_v56, %v7726_v21 }
 0x5df   :  { %v3501_v53 = vadd.f32 %v3497_v10, %v7614_v22 }
 0x5e0   :  { %v3541_v41 = vadd.f32 %v3539_v28, %v3515_v60  ;;  %v3659_v60 = vmul.f32 %v3657_v47, %v7512_v62 }
 0x5e1   :  { %v3535_v34 = vadd.f32 %v3533_v15, %v3501_v53  ;;  %v4028_v15 = vmul.f32 %v4027_v19, %v7726_v21 }
 0x5e2   :  { %v7734_v49 = vadd.f32 %v7667_v37, %v3541_v41  ;;  %v4014_v41 = vmul.f32 %v4013_v3, %v7726_v21 }
 0x5e3   :  { %3922 = vrot.lane.b32.xlu2 %v3918_v43, %s4911_s20  ;;  %3908 = vrot.lane.b32.xlu0 %v3904_v16, %s4911_s20  ;;  %v4000_v16 = vmul.f32 %v3999_v20, %v7726_v21 }
 0x5e4   :  { %3894 = vrot.lane.b32.xlu1 %v3890_v29, %s4911_s20 }
 0x5e5   :  { %v3635_v22 = vpop.permute.xlu2 %3634  ;;  %v3563_v55 = vpop.permute.xlu0 %3562 }
 0x5e6   :  { %v3568_v7 = vadd.f32 %v3563_v55, %v3528_v40  ;;  %v3549_v14 = vpop.permute.xlu1 %3548  ;;  %v3665_v40 = vmul.f32 %v3663_v11, %v7512_v62 }
 0x5e7   :  { %v3554_v57 = vadd.f32 %v3549_v14, %v7636_v4  ;;  %v4041_v14 = vstv %s7770_s3  ;;  %s8013_s3 = sld [smem:[#allocation12 + $0x1e]] }
 0x5e8   :  { %v3624_v61 = vadd.f32 %v3619_v50, %v3568_v7  ;;  %v3671_v50 = vmul.f32 %v3669_v25, %v7512_v62 }
 0x5ea   :  { %v7756_v13 = vadd.f32 %v3664_v42, %v3624_v61 }
 0x5eb   :  { %3964 = vrot.lane.b32.xlu2 %v3959_v18, %s4910_s15  ;;  %3924 = vrot.lane.b32.xlu0 %v3919_v45, %s4911_s20  ;;  %v4043_v45 = vmul.f32 %v4041_v14, %v7703_v12 }
 0x5ec   :  { %3910 = vrot.lane.b32.xlu1 %v3905_v27, %s4911_s20  ;;  %v4029_v27 = vmul.f32 %v4027_v19, %v7703_v12 }
 0x5ed   :  { %v7724_v4 = vpop.permute.xlu2 %3686  ;;  %v3579_v17 = vpop.permute.xlu0 %3578 }
 0x5ee   :  { %v3583_v59 = vadd.f32 %v3579_v17, %v3535_v34  ;;  %v3565_v39 = vpop.permute.xlu1 %3564 }
 0x5ef   :  { %v3569_v2 = vadd.f32 %v3565_v39, %v7658_v33  ;;  %v7803_v39 = vld [vmem:[#allocation3 + $0x4a] sm:$0xff] }
 0x5f0   :  { %v3639_v51 = vadd.f32 %v3635_v22, %v3583_v59  ;;  %v4015_v59 = vmul.f32 %v4013_v3, %v7703_v12 }
 0x5f2   :  { %v7777_v53 = vadd.f32 %v3671_v50, %v3639_v51  ;;  %v4095_v51 = vstv %s7788_s4  ;;  %s8017_s4 = sld [smem:[#allocation12 + $0x42]] }
 0x5f3   :  { %3990 = vrot.lane.b32.xlu2 %v3986_v32, %s4910_s15  ;;  %3976 = vrot.lane.b32.xlu0 %v3972_v54, %s4910_s15  ;;  %v4055_v54 = vstv %s7792_s14  ;;  %v4096_v47 = vmul.f32 %v4095_v51, %v7803_v39  ;;  %s8033_s14 = sld [smem:[#allocation12 + $0x8a]] }
 0x5f4   :  { %3962 = vrot.lane.b32.xlu1 %v3958_v63, %s4910_s15  ;;  %v4056_v11 = vmul.f32 %v4055_v54, %v7726_v21 }
 0x5f5   :  { %v7744_v33 = vpop.permute.xlu2 %3702  ;;  %v3605_v24 = vpop.permute.xlu0 %3604 }
 0x5f6   :  { %v3610_v37 = vadd.f32 %v3605_v24, %v3554_v57  ;;  %v3591_v44 = vpop.permute.xlu1 %3590  ;;  %v3670_v57 = vmul.f32 %v3669_v25, %v7492_v46 }
 0x5f7   :  { %v3596_v1 = vadd.f32 %v3591_v44, %v7679_v9 }
 0x5f8   :  { %v3660_v52 = vadd.f32 %v3658_v31, %v3610_v37  ;;  %v4042_v31 = vmul.f32 %v4041_v14, %v7726_v21 }
 0x5fa   :  { %v7795_v18 = vadd.f32 %v7724_v4, %v3660_v52 }
 0x5fb   :  { %4006 = vrot.lane.b32.xlu2 %v4001_v36, %s4910_s15  ;;  %3992 = vrot.lane.b32.xlu0 %v3987_v35, %s4910_s15 }
 0x5fc   :  { %3978 = vrot.lane.b32.xlu1 %v3973_v0, %s4910_s15  ;;  %v4057_v0 = vmul.f32 %v4055_v54, %v7703_v12 }
 0x5fd   :  { %v7766_v9 = vpop.permute.xlu2 %3728  ;;  %v3621_v58 = vpop.permute.xlu0 %3620 }
 0x5fe   :  { %v3625_v23 = vadd.f32 %v3621_v58, %v3569_v2  ;;  %v3607_v8 = vpop.permute.xlu1 %3606  ;;  %v3795_v58 = vstv %s7822_s18  ;;  %s4765_s18 = sld [smem:[#allocation12 + $0x69]] }
 0x5ff   :  { %v3611_v28 = vadd.f32 %v3607_v8, %v7695_v26  ;;  %v3675_v26 = vstv %s7763_s2  ;;  %v4123_v8 = vstv %s7826_s19  ;;  %v3797_v50 = vmul.f32 %v3795_v58, %v7629_v48  ;;  %s7983_s2 = sld [smem:[#allocation12 + $0x6b]] }
 0x600   :  { %v3667_v10 = vadd.f32 %v3665_v40, %v3625_v23  ;;  %v3676_v22 = vmul.f32 %v3675_v26, %v7492_v46  ;;  %v3677_v5 = vmul.f32 %v3675_v26, %v7512_v62  ;;  %v4137_v23 = vstv %s7820_s17  ;;  %s8045_s17 = sld [smem:[#allocation12 + $0x45]] }
 0x601   :  { %v3661_v43 = vadd.f32 %v3659_v60, %v3611_v28  ;;  %v4138_v19 = vmul.f32 %v4137_v23, %v7803_v39  ;;  %v4124_v3 = vmul.f32 %v4123_v8, %v7803_v39  ;;  %s4766_s19 = sld [smem:[#allocation12 + $0x8d]] }
 0x602   :  { %v7812_v63 = vadd.f32 %v7744_v33, %v3667_v10  ;;  %v7824_v33 = vld [vmem:[#allocation3 + $0x52] sm:$0xff] }
 0x603   :  { %4032 = vrot.lane.b32.xlu2 %v4028_v15, %s4911_s20  ;;  %4018 = vrot.lane.b32.xlu0 %v4014_v41, %s4911_s20  ;;  %v4097_v35 = vmul.f32 %v4095_v51, %v7824_v33  ;;  %v3801_v41 = vstv %s7836_s21  ;;  %s8062_s21 = sld [smem:[#allocation13]] }
 0x604   :  { %4004 = vrot.lane.b32.xlu1 %v4000_v16, %s4910_s15  ;;  %v3802_v26 = vmul.f32 %v3801_v41, %v7606_v6  ;;  %v3803_v54 = vmul.f32 %v3801_v41, %v7629_v48 }
 0x605   :  { %v3745_v34 = vpop.permute.xlu2 %3744  ;;  %v3647_v29 = vpop.permute.xlu0 %3646 }
 0x606   :  { %v3652_v55 = vadd.f32 %v3647_v29, %v3596_v1  ;;  %v3633_v7 = vpop.permute.xlu1 %3632  ;;  %v4109_v1 = vstv %s7809_s16  ;;  %s4763_s16 = sld [smem:[#allocation12 + $0x21]] }
 0x607   :  { %v3638_v38 = vadd.f32 %v3633_v7, %v7712_v30  ;;  %v4111_v36 = vmul.f32 %v4109_v1, %v7824_v33  ;;  %v4110_v15 = vmul.f32 %v4109_v1, %v7803_v39  ;;  %v3796_v7 = vmul.f32 %v3795_v58, %v7606_v6 }
 0x608   :  { %v3678_v61 = vadd.f32 %v3676_v22, %v3652_v55 }
 0x609   :  { %v3672_v17 = vadd.f32 %v3670_v57, %v3638_v38  ;;  %v4151_v38 = vstv %s7850_s23  ;;  %s8069_s23 = sld [smem:[#allocation13 + $0x3]] }
 0x60a   :  { %v7831_v52 = vadd.f32 %v7766_v9, %v3678_v61  ;;  %v4153_v61 = vmul.f32 %v4151_v38, %v7824_v33 }
 0x60b   :  { %4048 = vrot.lane.b32.xlu2 %v4043_v45, %s4911_s20  ;;  %4034 = vrot.lane.b32.xlu0 %v4029_v27, %s4911_s20  ;;  %v4139_v45 = vmul.f32 %v4137_v23, %v7824_v33 }
 0x60c   :  { %4020 = vrot.lane.b32.xlu1 %v4015_v59, %s4911_s20 }
 0x60d   :  { %v3771_v46 = vpop.permute.xlu2 %3770  ;;  %v3689_v30 = vpop.permute.xlu0 %3688 }
 0x60e   :  { %v3693_v4 = vadd.f32 %v3689_v30, %v3661_v43  ;;  %v3649_v2 = vpop.permute.xlu1 %3648  ;;  %v3807_v43 = vstv %s7840_s22  ;;  %v3813_v30 = vstv %s7866_s25  ;;  %s8064_s22 = sld [smem:[#allocation13 + $0x2]] }
 0x60f   :  { %v3653_v56 = vadd.f32 %v3649_v2, %v7734_v49  ;;  %v3808_v22 = vmul.f32 %v3807_v43, %v7606_v6 }
 0x610   :  { %v3749_v32 = vadd.f32 %v3745_v34, %v3693_v4  ;;  %v3809_v4 = vmul.f32 %v3807_v43, %v7629_v48 }
 0x611   :  { %v3679_v24 = vadd.f32 %v3677_v5, %v3653_v56  ;;  %v4165_v56 = vstv %s7869_s28  ;;  %v3815_v5 = vmul.f32 %v3813_v30, %v7629_v48 }
 0x612   :  { %v7852_v10 = vadd.f32 %v3797_v50, %v3749_v32  ;;  %v4233_v50 = vstv %s7902_s0 }
 0x613   :  { %4100 = vrot.lane.b32.xlu2 %v4096_v47, %s4910_s15  ;;  %4060 = vrot.lane.b32.xlu0 %v4056_v11, %s4911_s20 }
 0x614   :  { %4046 = vrot.lane.b32.xlu1 %v4042_v31, %s4911_s20  ;;  %v4166_v31 = vmul.f32 %v4165_v56, %v7803_v39 }
 0x615   :  { %v3787_v62 = vpop.permute.xlu2 %3786  ;;  %v3715_v49 = vpop.permute.xlu0 %3714 }
 0x616   :  { %v3720_v37 = vadd.f32 %v3715_v49, %v3672_v17  ;;  %v3701_v44 = vpop.permute.xlu1 %3700  ;;  %v4125_v17 = vmul.f32 %v4123_v8, %v7824_v33  ;;  %v4152_v49 = vmul.f32 %v4151_v38, %v7803_v39  ;;  %v4247_v8 = vstv %s7900_s30  ;;  %s4466_s30 = sshll.u32 %s8104_s5, 4  ;;  %s4467_s30 = int_to_ptr.hbm [resolvable:$true] %s4466_s30 }
 0x617   :  { %v3706_v20 = vadd.f32 %v3701_v44, %v7756_v13 }
 0x618   :  { %v3776_v42 = vadd.f32 %v3771_v46, %v3720_v37  ;;  %v4179_v46 = vstv %s7862_s24  ;;  %s8071_s24 = sld [smem:[#allocation13 + $0x1]] }
 0x61a   :  { %v7875_v57 = vadd.f32 %v3808_v22, %v3776_v42  ;;  %v3814_v42 = vmul.f32 %v3813_v30, %v7606_v6 }
 0x61b   :  { %4116 = vrot.lane.b32.xlu2 %v4111_v36, %s4910_s15  ;;  %4102 = vrot.lane.b32.xlu0 %v4097_v35, %s4910_s15  ;;  %v4193_v36 = vstv %s7890_s29 }
 0x61c   :  { %4062 = vrot.lane.b32.xlu1 %v4057_v0, %s4911_s20  ;;  %v4195_v0 = vmul.f32 %v4193_v36, %v7824_v33  ;;  %v4194_v41 = vmul.f32 %v4193_v36, %v7803_v39 }
 0x61d   :  { %v7843_v13 = vpop.permute.xlu2 %3838  ;;  %v3731_v9 = vpop.permute.xlu0 %3730 }
 0x61e   :  { %v3735_v25 = vadd.f32 %v3731_v9, %v3679_v24  ;;  %v3717_v40 = vpop.permute.xlu1 %3716  ;;  %v4180_v24 = vmul.f32 %v4179_v46, %v7803_v39  ;;  %v4181_v9 = vmul.f32 %v4179_v46, %v7824_v33 }
 0x61f   :  { %v3721_v28 = vadd.f32 %v3717_v40, %v7777_v53  ;;  %v7918_v40 = vld [vmem:[#allocation3 + $0x4b] sm:$0xff] }
 0x620   :  { %v3791_v60 = vadd.f32 %v3787_v62, %v3735_v25  ;;  %v4167_v25 = vmul.f32 %v4165_v56, %v7824_v33 }
 0x622   :  { %v7892_v11 = vadd.f32 %v3815_v5, %v3791_v60 }
 0x623   :  { %4142 = vrot.lane.b32.xlu2 %v4138_v19, %s4910_s15  ;;  %4128 = vrot.lane.b32.xlu0 %v4124_v3, %s4910_s15  ;;  %v4248_v3 = vmul.f32 %v4247_v8, %v7918_v40 }
 0x624   :  { %4114 = vrot.lane.b32.xlu1 %v4110_v15, %s4910_s15  ;;  %v4234_v15 = vmul.f32 %v4233_v50, %v7918_v40 }
 0x625   :  { %v7864_v53 = vpop.permute.xlu2 %3854  ;;  %v3757_v16 = vpop.permute.xlu0 %3756 }
 0x626   :  { %v3762_v34 = vadd.f32 %v3757_v16, %v3706_v20  ;;  %v3743_v29 = vpop.permute.xlu1 %3742  ;;  %v7941_v16 = vld [vmem:[#allocation3 + $0x53] sm:$0xff] }
 0x627   :  { %v3748_v55 = vadd.f32 %v3743_v29, %v7795_v18 }
 0x628   :  { %v3804_v14 = vadd.f32 %v3802_v26, %v3762_v34 }
 0x629   :  { %v3798_v27 = vadd.f32 %v3796_v7, %v3748_v55  ;;  %v4261_v7 = vstv %s7923_s7 }
 0x62a   :  { %v7908_v35 = vadd.f32 %v7843_v13, %v3804_v14  ;;  %v4263_v38 = vmul.f32 %v4261_v7, %v7941_v16 }
 0x62b   :  { %4158 = vrot.lane.b32.xlu2 %v4153_v61, %s4911_s20  ;;  %4144 = vrot.lane.b32.xlu0 %v4139_v45, %s4910_s15  ;;  %v4249_v61 = vmul.f32 %v4247_v8, %v7941_v16  ;;  %v4235_v45 = vmul.f32 %v4233_v50, %v7941_v16  ;;  %v4317_v8 = vstv %s7983_s2 }
 0x62c   :  { %4130 = vrot.lane.b32.xlu1 %v4125_v17, %s4910_s15 }
 0x62d   :  { %v3881_v18 = vpop.permute.xlu2 %3880  ;;  %v3773_v59 = vpop.permute.xlu0 %3772 }
 0x62e   :  { %v3777_v2 = vadd.f32 %v3773_v59, %v3721_v28  ;;  %v3759_v51 = vpop.permute.xlu1 %3758 }
 0x62f   :  { %v3763_v32 = vadd.f32 %v3759_v51, %v7812_v63 }
 0x630   :  { %v3811_v47 = vadd.f32 %v3809_v4, %v3777_v2  ;;  %v4275_v4 = vstv %s7943_s1 }
 0x631   :  { %v3805_v62 = vadd.f32 %v3803_v54, %v3763_v32  ;;  %v4276_v54 = vmul.f32 %v4275_v4, %v7918_v40 }
 0x632   :  { %v7926_v19 = vadd.f32 %v7864_v53, %v3811_v47  ;;  %v3933_v53 = vstv %s7916_s6  ;;  %v4262_v47 = vmul.f32 %v4261_v7, %v7918_v40  ;;  %v4345_v7 = vld [vmem:[#allocation2 + $0xa] sm:$0xff] }
 0x633   :  { %4184 = vrot.lane.b32.xlu2 %v4180_v24, %s4911_s20  ;;  %4170 = vrot.lane.b32.xlu0 %v4166_v31, %s4911_s20  ;;  %v3934_v29 = vmul.f32 %v3933_v53, %v7726_v21  ;;  %v3935_v59 = vmul.f32 %v3933_v53, %v7703_v12  ;;  %v3945_v24 = vstv %s7957_s10 }
 0x634   :  { %4156 = vrot.lane.b32.xlu1 %v4152_v49, %s4911_s20 }
 0x635   :  { %v3897_v48 = vpop.permute.xlu2 %3896  ;;  %v3825_v63 = vpop.permute.xlu0 %3824 }
 0x636   :  { %v3830_v37 = vadd.f32 %v3825_v63, %v3798_v27  ;;  %v3785_v44 = vpop.permute.xlu1 %3784  ;;  %v3939_v27 = vstv %s7933_s8 }
 0x637   :  { %v3790_v20 = vadd.f32 %v3785_v44, %v7831_v52  ;;  %v3941_v2 = vmul.f32 %v3939_v27, %v7703_v12 }
 0x638   :  { %v3886_v1 = vadd.f32 %v3881_v18, %v3830_v37  ;;  %v4289_v18 = vstv %s7939_s9 }
 0x639   :  { %v3816_v58 = vadd.f32 %v3814_v42, %v3790_v20  ;;  %v4290_v32 = vmul.f32 %v4289_v18, %v7918_v40  ;;  %v3940_v20 = vmul.f32 %v3939_v27, %v7726_v21 }
 0x63a   :  { %v7948_v14 = vadd.f32 %v3934_v29, %v3886_v1  ;;  %v4303_v1 = vstv %s7968_s12 }
 0x63b   :  { %4200 = vrot.lane.b32.xlu2 %v4195_v0, %s4911_s20  ;;  %4186 = vrot.lane.b32.xlu0 %v4181_v9, %s4911_s20  ;;  %v4305_v0 = vmul.f32 %v4303_v1, %v7941_v16  ;;  %v4291_v9 = vmul.f32 %v4289_v18, %v7941_v16  ;;  %v4304_v53 = vmul.f32 %v4303_v1, %v7918_v40 }
 0x63c   :  { %4172 = vrot.lane.b32.xlu1 %v4167_v25, %s4911_s20  ;;  %v4277_v25 = vmul.f32 %v4275_v4, %v7941_v16  ;;  %v4071_v4 = vstv %s8013_s3 }
 0x63d   :  { %v3923_v6 = vpop.permute.xlu2 %3922  ;;  %v3841_v52 = vpop.permute.xlu0 %3840 }
 0x63e   :  { %v3845_v13 = vadd.f32 %v3841_v52, %v3805_v62  ;;  %v3827_v23 = vpop.permute.xlu1 %3826  ;;  %v3951_v62 = vstv %s7962_s11 }
 0x63f   :  { %v3831_v28 = vadd.f32 %v3827_v23, %v7852_v10  ;;  %v3952_v37 = vmul.f32 %v3951_v62, %v7726_v21  ;;  %v4331_v23 = vstv %s7980_s13 }
 0x640   :  { %v3901_v60 = vadd.f32 %v3897_v48, %v3845_v13  ;;  %v3946_v48 = vmul.f32 %v3945_v24, %v7726_v21 }
 0x642   :  { %v7970_v5 = vadd.f32 %v3941_v2, %v3901_v60  ;;  %v4077_v2 = vstv %s8017_s4 }
 0x643   :  { %4252 = vrot.lane.b32.xlu2 %v4248_v3, %s4910_s15  ;;  %4238 = vrot.lane.b32.xlu0 %v4234_v15, %s4910_s15  ;;  %v4332_v15 = vmul.f32 %v4331_v23, %v7918_v40 }
 0x644   :  { %4198 = vrot.lane.b32.xlu1 %v4194_v41, %s4911_s20  ;;  %v4318_v41 = vmul.f32 %v4317_v8, %v7918_v40 }
 0x645   :  { %v7936_v10 = vpop.permute.xlu2 %3964  ;;  %v3867_v43 = vpop.permute.xlu0 %3866 }
 0x646   :  { %v3872_v26 = vadd.f32 %v3867_v43, %v3816_v58  ;;  %v3853_v34 = vpop.permute.xlu1 %3852 }
 0x647   :  { %v3858_v22 = vadd.f32 %v3853_v34, %v7875_v57 }
 0x648   :  { %v3928_v55 = vadd.f32 %v3923_v6, %v3872_v26  ;;  %v3953_v6 = vmul.f32 %v3951_v62, %v7703_v12  ;;  %v4432_v62 = vld [vmem:[#allocation2 + $0x52] sm:$0xff] }
 0x64a   :  { %v7989_v36 = vadd.f32 %v3952_v37, %v3928_v55  ;;  %v4333_v55 = vmul.f32 %v4331_v23, %v7941_v16 }
 0x64b   :  { %4268 = vrot.lane.b32.xlu2 %v4263_v38, %s4910_s15  ;;  %4254 = vrot.lane.b32.xlu0 %v4249_v61, %s4910_s15  ;;  %v4319_v38 = vmul.f32 %v4317_v8, %v7941_v16 }
 0x64c   :  { %4240 = vrot.lane.b32.xlu1 %v4235_v45, %s4910_s15 }
 0x64d   :  { %v3883_v57 = vpop.permute.xlu0 %3882  ;;  %v7959_v17 = vpop.permute.xlu2 %3990 }
 0x64e   :  { %v3887_v46 = vadd.f32 %v3883_v57, %v3831_v28  ;;  %v3869_v30 = vpop.permute.xlu1 %3868  ;;  %v3947_v28 = vmul.f32 %v3945_v24, %v7703_v12 }
 0x64f   :  { %v3873_v51 = vadd.f32 %v3869_v30, %v7892_v11  ;;  %v4344_v30 = vld [vmem:[#allocation2 + $0x2] sm:$0xff] }
 0x650   :  { %v3937_v56 = vadd.f32 %v3935_v59, %v3887_v46  ;;  %v4402_v59 = vld [vmem:[#allocation2 + $0x32] sm:$0xff]  ;;  %v4373_v46 = vld [vmem:[#allocation2 + $0x1a] sm:$0xff] }
 0x652   :  { %v3969_v3 = vadd.f32 %v7936_v10, %v3937_v56 }
 0x653   :  { %4294 = vrot.lane.b32.xlu2 %v4290_v32, %s4911_s20  ;;  %4280 = vrot.lane.b32.xlu0 %v4276_v54, %s4910_s15  ;;  %v4072_v32 = vmul.f32 %v4071_v4, %v7803_v39 }
 0x654   :  { %4266 = vrot.lane.b32.xlu1 %v4262_v47, %s4910_s15  ;;  %v4078_v47 = vmul.f32 %v4077_v2, %v7803_v39 }
 0x655   :  { %v3909_v11 = vpop.permute.xlu0 %3908  ;;  %v4007_v31 = vpop.permute.xlu2 %4006 }
 0x656   :  { %v3914_v49 = vadd.f32 %v3909_v11, %v3858_v22  ;;  %v3895_v63 = vpop.permute.xlu1 %3894 }
 0x657   :  { %v3900_v44 = vadd.f32 %v3895_v63, %v7908_v35 }
 0x658   :  { %v3948_v42 = vadd.f32 %v3946_v48, %v3914_v49  ;;  %v4403_v49 = vld [vmem:[#allocation2 + $0x3a] sm:$0xff]  ;;  %v4374_v48 = vld [vmem:[#allocation2 + $0x22] sm:$0xff] }
 0x659   :  { %v3942_v58 = vadd.f32 %v3940_v20, %v3900_v44  ;;  %v4079_v20 = vmul.f32 %v4077_v2, %v7824_v33 }
 0x65a   :  { %v3996_v22 = vadd.f32 %v7959_v17, %v3948_v42 }
 0x65b   :  { %4310 = vrot.lane.b32.xlu2 %v4305_v0, %s4911_s20  ;;  %4296 = vrot.lane.b32.xlu0 %v4291_v9, %s4911_s20  ;;  %v4073_v9 = vmul.f32 %v4071_v4, %v7824_v33 }
 0x65c   :  { %4282 = vrot.lane.b32.xlu1 %v4277_v25, %s4910_s15 }
 0x65d   :  { %v3925_v21 = vpop.permute.xlu0 %3924  ;;  %v4033_v35 = vpop.permute.xlu2 %4032 }
 0x65e   :  { %v3929_v52 = vadd.f32 %v3925_v21, %v3873_v51  ;;  %v3911_v13 = vpop.permute.xlu1 %3910 }
 0x65f   :  { %v3915_v50 = vadd.f32 %v3911_v13, %v7926_v19 }
 0x660   :  { %v3955_v60 = vadd.f32 %v3953_v6, %v3929_v52  ;;  %v4089_v6 = vstv %s8033_s14 }
 0x661   :  { %v3949_v43 = vadd.f32 %v3947_v28, %v3915_v50  ;;  %v4090_v23 = vmul.f32 %v4089_v6, %v7803_v39 }
 0x662   :  { %v4011_v18 = vadd.f32 %v4007_v31, %v3955_v60 }
 0x663   :  { %4336 = vrot.lane.b32.xlu2 %v4332_v15, %s4911_s20  ;;  %4322 = vrot.lane.b32.xlu0 %v4318_v41, %s4911_s20 }
 0x664   :  { %4308 = vrot.lane.b32.xlu1 %v4304_v53, %s4911_s20 }
 0x665   :  { %v4049_v26 = vpop.permute.xlu2 %4048  ;;  %v3977_v19 = vpop.permute.xlu0 %3976 }
 0x666   :  { %v3982_v34 = vadd.f32 %v3977_v19, %v3942_v58  ;;  %v3963_v12 = vpop.permute.xlu1 %3962 }
 0x667   :  { %v3968_v29 = vadd.f32 %v3963_v12, %v7948_v14 }
 0x668   :  { %v4038_v10 = vadd.f32 %v4033_v35, %v3982_v34  ;;  %v4431_v35 = vld [vmem:[#allocation2 + $0x4a] sm:$0xff]  ;;  %v4091_v34 = vmul.f32 %v4089_v6, %v7824_v33 }
 0x66a   :  { %v4080_v31 = vadd.f32 %v4078_v47, %v4038_v10 }
 0x66b   :  { %4354 = vrot.lane.b32.xlu2 %v4345_v7, %s4910_s15  ;;  %4338 = vrot.lane.b32.xlu0 %v4333_v55, %s4911_s20 }
 0x66c   :  { %4324 = vrot.lane.b32.xlu1 %v4319_v38, %s4911_s20  ;;  %s8026_s20 = sld [smem:[#allocation12 + $0x66]] }
 0x66d   :  { %v4101_v14 = vpop.permute.xlu2 %4100  ;;  %v3993_v61 = vpop.permute.xlu0 %3992 }
 0x66e   :  { %v3997_v45 = vadd.f32 %v3993_v61, %v3949_v43  ;;  %v3979_v27 = vpop.permute.xlu1 %3978 }
 0x66f   :  { %v3983_v57 = vadd.f32 %v3979_v27, %v7970_v5  ;;  %v4209_v27 = vstv %s4763_s16 }
 0x670   :  { %v4053_v17 = vadd.f32 %v4049_v26, %v3997_v45 }
 0x672   :  { %v4083_v44 = vstv %s8026_s20 }
 0x673   :  { %4410 = vrot.lane.b32.xlu2 %v4402_v59, %s4910_s15  ;;  %4381 = vrot.lane.b32.xlu0 %v4373_v46, %s4910_s15  ;;  %v4084_v60 = vmul.f32 %v4083_v44, %v7803_v39  ;;  %v4215_v46 = vstv %s8045_s17 }
 0x674   :  { %4352 = vrot.lane.b32.xlu1 %v4344_v30, %s4910_s15  ;;  %v4221_v30 = vstv %s4765_s18 }
 0x675   :  { %v4117_v51 = vpop.permute.xlu2 %4116  ;;  %v4019_v56 = vpop.permute.xlu0 %4018 }
 0x676   :  { %v4024_v5 = vadd.f32 %v4019_v56, %v3968_v29  ;;  %v4005_v54 = vpop.permute.xlu1 %4004  ;;  %v4216_v56 = vmul.f32 %v4215_v46, %v7918_v40 }
 0x677   :  { %v4010_v24 = vadd.f32 %v4005_v54, %v7989_v36  ;;  %v4085_v36 = vmul.f32 %v4083_v44, %v7824_v33  ;;  %v4211_v33 = vmul.f32 %v4209_v27, %v7941_v16  ;;  %v4222_v54 = vmul.f32 %v4221_v30, %v7918_v40 }
 0x678   :  { %v4074_v11 = vadd.f32 %v4072_v32, %v4024_v5 }
 0x679   :  { %v4087_v25 = vadd.f32 %v4085_v36, %v4053_v17 }
 0x67b   :  { %4441 = vrot.lane.b32.xlu2 %v4432_v62, %s4910_s15  ;;  %4412 = vrot.lane.b32.xlu0 %v4403_v49, %s4910_s15 }
 0x67c   :  { %4383 = vrot.lane.b32.xlu1 %v4374_v48, %s4910_s15 }
 0x67d   :  { %v4143_v63 = vpop.permute.xlu2 %4142  ;;  %v4035_v37 = vpop.permute.xlu0 %4034 }
 0x67e   :  { %v4039_v42 = vadd.f32 %v4035_v37, %v3983_v57  ;;  %v4021_v1 = vpop.permute.xlu1 %4020 }
 0x67f   :  { %v4025_v0 = vadd.f32 %v4021_v1, %v3969_v3  ;;  %v4106_v3 = vadd.f32 %v4101_v14, %v4074_v11  ;;  %v4217_v1 = vmul.f32 %v4215_v46, %v7941_v16  ;;  %v4434_v46 = vstv %s8069_s23 }
 0x680   :  { %v4081_v58 = vadd.f32 %v4079_v20, %v4039_v42 }
 0x681   :  { %v4075_v21 = vadd.f32 %v4073_v9, %v4025_v0 }
 0x682   :  { %v4121_v12 = vadd.f32 %v4117_v51, %v4081_v58  ;;  %v4227_v58 = vstv %s4766_s19 }
 0x684   :  { %4439 = vrot.lane.b32.xlu1 %v4431_v35, %s4910_s15 }
 0x685   :  { %v4159_v52 = vpop.permute.xlu2 %4158  ;;  %v4061_v13 = vpop.permute.xlu0 %4060 }
 0x686   :  { %v4066_v8 = vadd.f32 %v4061_v13, %v4010_v24  ;;  %v4047_v50 = vpop.permute.xlu1 %4046  ;;  %v4210_v24 = vmul.f32 %v4209_v27, %v7918_v40  ;;  %v4228_v13 = vmul.f32 %v4227_v58, %v7918_v40  ;;  %v4347_v40 = vstv %s8062_s21 }
 0x687   :  { %v4052_v28 = vadd.f32 %v4047_v50, %v3996_v22 }
 0x688   :  { %v4092_v15 = vadd.f32 %v4090_v23, %v4066_v8 }
 0x689   :  { %v4086_v41 = vadd.f32 %v4084_v60, %v4052_v28 }
 0x68a   :  { %v4148_v22 = vadd.f32 %v4143_v63, %v4092_v15  ;;  %v4223_v63 = vmul.f32 %v4221_v30, %v7941_v16 }
 0x68d   :  { %v4185_v43 = vpop.permute.xlu2 %4184  ;;  %v4103_v53 = vpop.permute.xlu0 %4102 }
 0x68e   :  { %v4063_v26 = vpop.permute.xlu1 %4062  ;;  %v4107_v61 = vadd.f32 %v4103_v53, %v4075_v21 }
 0x68f   :  { %v4067_v19 = vadd.f32 %v4063_v26, %v4011_v18 }
 0x690   :  { %v4163_v39 = vadd.f32 %v4159_v52, %v4107_v61 }
 0x691   :  { %v4093_v29 = vadd.f32 %v4091_v34, %v4067_v19 }
 0x692   :  { %v4213_v59 = vadd.f32 %v4211_v33, %v4163_v39 }
 0x695   :  { %v4201_v10 = vpop.permute.xlu2 %4200  ;;  %v4129_v55 = vpop.permute.xlu0 %4128 }
 0x696   :  { %v4115_v7 = vpop.permute.xlu1 %4114  ;;  %v4134_v18 = vadd.f32 %v4129_v55, %v4086_v41 }
 0x697   :  { %v4120_v38 = vadd.f32 %v4115_v7, %v4080_v31 }
 0x698   :  { %v4190_v4 = vadd.f32 %v4185_v43, %v4134_v18 }
 0x69a   :  { %v4224_v31 = vadd.f32 %v4222_v54, %v4190_v4 }
 0x69d   :  { %v8047_v14 = vpop.permute.xlu2 %4252  ;;  %v4145_v45 = vpop.permute.xlu0 %4144 }
 0x69e   :  { %v4131_v57 = vpop.permute.xlu1 %4130  ;;  %v4149_v49 = vadd.f32 %v4145_v45, %v4093_v29 }
 0x69f   :  { %v4135_v17 = vadd.f32 %v4131_v57, %v4087_v25  ;;  %v4229_v25 = vmul.f32 %v4227_v58, %v7941_v16 }
 0x6a0   :  { %v4205_v36 = vadd.f32 %v4201_v10, %v4149_v49  ;;  %v4405_v10 = vstv %s8064_s22 }
 0x6a2   :  { %v4231_v21 = vadd.f32 %v4229_v25, %v4205_v36 }
 0x6a5   :  { %v8051_v2 = vpop.permute.xlu2 %4268  ;;  %v4171_v51 = vpop.permute.xlu0 %4170 }
 0x6a6   :  { %v4176_v32 = vadd.f32 %v4171_v51, %v4120_v38  ;;  %v4157_v5 = vpop.permute.xlu1 %4156 }
 0x6a7   :  { %v4162_v47 = vadd.f32 %v4157_v5, %v4106_v3  ;;  %v4376_v5 = vstv %s8071_s24 }
 0x6a8   :  { %v4218_v11 = vadd.f32 %v4216_v56, %v4176_v32 }
 0x6a9   :  { %v4212_v62 = vadd.f32 %v4210_v24, %v4162_v47 }
 0x6ad   :  { %v4187_v48 = vpop.permute.xlu0 %4186  ;;  %v4295_v20 = vpop.permute.xlu2 %4294 }
 0x6ae   :  { %v4191_v37 = vadd.f32 %v4187_v48, %v4135_v17  ;;  %v4173_v44 = vpop.permute.xlu1 %4172  ;;  %v4258_v17 = vadd.f32 %v8047_v14, %v4218_v11 }
 0x6af   :  { %v4177_v42 = vadd.f32 %v4173_v44, %v4121_v12 }
 0x6b0   :  { %v4225_v0 = vadd.f32 %v4223_v63, %v4191_v37 }
 0x6b1   :  { %v4219_v9 = vadd.f32 %v4217_v1, %v4177_v42 }
 0x6b5   :  { %v4239_v35 = vpop.permute.xlu0 %4238  ;;  %v4311_v23 = vpop.permute.xlu2 %4310 }
 0x6b6   :  { %v4199_v6 = vpop.permute.xlu1 %4198  ;;  %v4244_v57 = vadd.f32 %v4239_v35, %v4212_v62  ;;  %v4273_v62 = vadd.f32 %v8051_v2, %v4225_v0 }
 0x6b7   :  { %v4204_v52 = vadd.f32 %v4199_v6, %v4148_v22 }
 0x6b8   :  { %v4300_v51 = vadd.f32 %v4295_v20, %v4244_v57 }
 0x6b9   :  { %v4230_v8 = vadd.f32 %v4228_v13, %v4204_v52 }
 0x6ba   :  { %v4348_v49 = vadd.f32 %v4347_v40, %v4300_v51 }
 0x6bd   :  { %v4255_v50 = vpop.permute.xlu0 %4254  ;;  %v8060_v60 = vpop.permute.xlu2 %4336 }
 0x6be   :  { %v4241_v28 = vpop.permute.xlu1 %4240  ;;  %v4259_v24 = vadd.f32 %v4255_v50, %v4219_v9 }
 0x6bf   :  { %v4245_v41 = vadd.f32 %v4241_v28, %v4213_v59 }
 0x6c0   :  { %v4315_v44 = vadd.f32 %v4311_v23, %v4259_v24 }
 0x6c2   :  { %v4378_v9 = vadd.f32 %v4376_v5, %v4315_v44 }
 0x6c5   :  { %v4281_v15 = vpop.permute.xlu0 %4280  ;;  %v4355_v43 = vpop.permute.xlu2 %4354 }
 0x6c6   :  { %v4267_v3 = vpop.permute.xlu1 %4266  ;;  %v4286_v1 = vadd.f32 %v4281_v15, %v4230_v8 }
 0x6c7   :  { %v4272_v12 = vadd.f32 %v4267_v3, %v4224_v31 }
 0x6cd   :  { %v4297_v16 = vpop.permute.xlu0 %4296  ;;  %v4411_v61 = vpop.permute.xlu2 %4410 }
 0x6ce   :  { %v4301_v53 = vadd.f32 %v4297_v16, %v4245_v41  ;;  %v4283_v26 = vpop.permute.xlu1 %4282 }
 0x6cf   :  { %v4287_v45 = vadd.f32 %v4283_v26, %v4231_v21  ;;  %v4342_v21 = vadd.f32 %v8060_v60, %v4286_v1 }
 0x6d0   :  { %v4349_v19 = vadd.f32 %v4347_v40, %v4301_v53 }
 0x6d1   :  { %v4435_v6 = vadd.f32 %v4434_v46, %v4342_v21 }
 0x6d2   :  { %v4359_v34 = vadd.f32 %v4355_v43, %v4349_v19 }
 0x6d4   :  { %v4361_v29 = vmax.f32 %v4359_v34, 0.0 }
 0x6d5   :  { %v4323_v55 = vpop.permute.xlu0 %4322  ;;  %v4442_v56 = vpop.permute.xlu2 %4441 }
 0x6d6   :  { %v4328_v7 = vadd.f32 %v4323_v55, %v4272_v12  ;;  %v4309_v38 = vpop.permute.xlu1 %4308  ;;  %4366 = vrot.lane.b32.xlu1 %v4361_v29, %s4910_s15 }
 0x6d7   :  { %v4314_v30 = vadd.f32 %v4309_v38, %v4258_v17 }
 0x6d8   :  { %v4406_v22 = vadd.f32 %v4405_v10, %v4328_v7 }
 0x6d9   :  { %v4377_v47 = vadd.f32 %v4376_v5, %v4314_v30 }
 0x6da   :  { %v4416_v39 = vadd.f32 %v4411_v61, %v4406_v22 }
 0x6dc   :  { %v4418_v27 = vmax.f32 %v4416_v39, 0.0 }
 0x6dd   :  { %v4339_v33 = vpop.permute.xlu0 %4338 }
 0x6de   :  { %v4343_v18 = vadd.f32 %v4339_v33, %v4287_v45  ;;  %v4325_v59 = vpop.permute.xlu1 %4324  ;;  %4422 = vrot.lane.b32.xlu1 %v4418_v27, %s4910_s15 }
 0x6df   :  { %v4329_v63 = vadd.f32 %v4325_v59, %v4273_v62 }
 0x6e0   :  { %v4436_v4 = vadd.f32 %v4434_v46, %v4343_v18 }
 0x6e1   :  { %v4407_v20 = vadd.f32 %v4405_v10, %v4329_v63 }
 0x6e2   :  { %v4446_v32 = vadd.f32 %v4442_v56, %v4436_v4 }
 0x6e4   :  { %v4448_v54 = vmax.f32 %v4446_v32, 0.0 }
 0x6e5   :  { %v4382_v31 = vpop.permute.xlu0 %4381 }
 0x6e6   :  { %v4387_v48 = vadd.f32 %v4382_v31, %v4377_v47  ;;  %v4353_v14 = vpop.permute.xlu1 %4352  ;;  %4453 = vrot.lane.b32.xlu1 %v4448_v54, %s4910_s15 }
 0x6e7   :  { %v4358_v11 = vadd.f32 %v4353_v14, %v4348_v49 }
 0x6e8   :  { %v4389_v37 = vmax.f32 %v4387_v48, 0.0 }
 0x6e9   :  { %v4360_v42 = vmax.f32 %v4358_v11, 0.0 }
 0x6ea   :  { %4393 = vrot.lane.b32.xlu2 %v4389_v37, %s4910_s15 }
 0x6eb   :  { %4364 = vrot.lane.b32.xlu0 %v4360_v42, %s4910_s15 }
 0x6ed   :  { %v4413_v36 = vpop.permute.xlu0 %4412 }
 0x6ee   :  { %v4417_v58 = vadd.f32 %v4413_v36, %v4407_v20  ;;  %v4384_v25 = vpop.permute.xlu1 %4383 }
 0x6ef   :  { %v4388_v2 = vadd.f32 %v4384_v25, %v4378_v9 }
 0x6f0   :  { %v4419_v0 = vmax.f32 %v4417_v58, 0.0 }
 0x6f1   :  { %v4390_v35 = vmax.f32 %v4388_v2, 0.0 }
 0x6f2   :  { %4424 = vrot.lane.b32.xlu2 %v4419_v0, %s4910_s15 }
 0x6f3   :  { %4395 = vrot.lane.b32.xlu0 %v4390_v35, %s4910_s15 }
 0x6f6   :  { %v4440_v52 = vpop.permute.xlu1 %4439 }
 0x6f7   :  { %v4445_v13 = vadd.f32 %v4440_v52, %v4435_v6 }
 0x6f9   :  { %v4447_v23 = vmax.f32 %v4445_v13, 0.0 }
 0x6fb   :  { %4451 = vrot.lane.b32.xlu0 %v4447_v23, %s4910_s15  ;;  %s4913_s15 = smov [#allocation15]  }
 0x6fc   :  { %s4464_s25 = sshll.u32 %s4913_s15, 4  ;;  %s4465_s25 = int_to_ptr.vmem [resolvable:$true] %s4464_s25 }
 0x744   :  { %v4394_v8 = vpop.permute.xlu2 %4393 }
 0x745   :  { %4400 = vst.msk [vmem:[#allocation15 + $0x10] sm:$0xff] %vm4370_vm1, %v4394_v8 }
 0x748   :  { %v4367_v50 = vpop.permute.xlu1 %4366 }
 0x749   :  { %4372 = vst.msk [vmem:[#allocation15 + $0x8] sm:$0xff] %vm4370_vm1, %v4367_v50 }
 0x74c   :  { %v4425_v28 = vpop.permute.xlu2 %4424 }
 0x74d   :  { %4430 = vst.msk [vmem:[#allocation15 + $0x28] sm:$0xff] %vm4370_vm1, %v4425_v28 }
 0x750   :  { %v4423_v60 = vpop.permute.xlu1 %4422 }
 0x751   :  { %4429 = vst.msk [vmem:[#allocation15 + $0x20] sm:$0xff] %vm4370_vm1, %v4423_v60 }
 0x758   :  { %v4454_v15 = vpop.permute.xlu1 %4453 }
 0x759   :  { %4459 = vst.msk [vmem:[#allocation15 + $0x38] sm:$0xff] %vm4370_vm1, %v4454_v15 }
 0x75d   :  { %v4365_v3 = vpop.permute.xlu0 %4364 }
 0x75e   :  { %4371 = vst.msk [vmem:[#allocation15] sm:$0xff] %vm4370_vm1, %v4365_v3 }
 0x765   :  { %v4396_v41 = vpop.permute.xlu0 %4395 }
 0x766   :  { %4401 = vst.msk [vmem:[#allocation15 + $0x18] sm:$0xff] %vm4370_vm1, %v4396_v41 }
 0x76d   :  { %v4452_v43 = vpop.permute.xlu0 %4451 }
 0x76e   :  { %4458 = vst.msk [vmem:[#allocation15 + $0x30] sm:$0xff] %vm4370_vm1, %v4452_v43 }
 0x76f   :  { %4472 = dma.vmem_to_hbm [thread:$0]  %s4465_s25, 1024, %s4467_s30, [#allocation6], %s4901_s26, %s4901_s26, %s4902_s27  }
 0x770   :  { %4898 = dma.done.wait [#allocation6], 1024  }
 0x771   :  { %4899 = vsyncadd [#allocation6], 4294966272 }
 0x772   :  { %4477 = vsyncpa [#allocation5], 1 }
 0x773   :  { %4478 = vsyncpa [#allocation6], 1 }
 0x774   :  { %4479 = vsyncpa [#allocation7], 1 }
 0x775   :  { %4480 = vsyncpa [#allocation11], 1 }
 0x776   :  { %4481 = vsyncpa [#allocation8], 1 }
 0x777   :  { %4482 = vsyncpa [#allocation14], 1 }

</bundles_post_ra>
